<compile_context>
chip_gen: v7x
topology: tpu7x:2x2x1
jax: 0.10.0
libtpu: 0.0.40
codegen_flags: <defaults>
</compile_context>

<pallas_src>
import functools

import jax
import jax.numpy as jnp
from jax.experimental import pallas as pl
from jax.experimental.pallas import tpu as pltpu


# ----------------------------------------------------------------------------
# The fused kernel: [TCN blocks] -> flatten -> linear -> heads -> sigmoid
# ----------------------------------------------------------------------------
def _mtl_fused_kernel(*refs, block_cfg, n_stages, k, lp):
    # ---- unpack the flat ref list (layout mirrors mtl_cascade_forward) ----
    idx = 0
    x_ref = refs[idx]; idx += 1
    blk_refs = []
    for _, has_ds in block_cfg:
        n = 6 if has_ds else 4
        blk_refs.append(refs[idx:idx + n]); idx += n
    wlin_ref, blin_ref = refs[idx], refs[idx + 1]; idx += 2
    stage_refs = refs[idx:idx + 2 * n_stages]; idx += 2 * n_stages
    wout_ref, bout_ref = refs[idx], refs[idx + 1]; idx += 2
    out_ref = refs[idx]

    x = x_ref[...]                                  # (C_in_pad, N), N = B*Lp
    n_lanes = x.shape[1]
    # position inside each batch segment (Lp is a power of two)
    t_local = jnp.bitwise_and(
        jax.lax.broadcasted_iota(jnp.int32, (1, n_lanes), 1), lp - 1)

    def shifted_tap(inp, s, mask):
        # tap[:, n] = inp[:, n - s] if t_local(n) >= s else 0   (causal, per batch)
        if s == 0:
            return inp
        z = jnp.zeros((inp.shape[0], s), inp.dtype)
        shifted = jnp.concatenate([z, inp[:, :inp.shape[1] - s]], axis=1)
        return jnp.where(mask, shifted, 0.0)        # kills cross-batch leakage

    def causal_conv(inp, w_ref, b_ref, shifts, masks):
        # k accumulated matmuls (one per dilated tap), bf16 operands, f32 acc.
        acc = None
        for j, s in enumerate(shifts):
            tap = shifted_tap(inp, s, masks.get(s))
            part = jnp.dot(w_ref[j], tap.astype(w_ref.dtype),
                           preferred_element_type=jnp.float32)
            acc = part if acc is None else acc + part
        return acc + b_ref[...]

    # ---- TCN blocks: conv->chomp->relu x2 + (1x1) residual + relu ----------
    y = x
    for bi, (d, has_ds) in enumerate(block_cfg):
        r = blk_refs[bi]
        shifts = tuple((k - 1 - j) * d for j in range(k))
        masks = {s: (t_local >= s) for s in set(shifts) if s != 0}   # hoisted
        h = jnp.maximum(causal_conv(y, r[0], r[1], shifts, masks), 0.0)
        h = jnp.maximum(causal_conv(h, r[2], r[3], shifts, masks), 0.0)
        if has_ds:
            res = jnp.dot(r[4][...], y.astype(r[4].dtype),
                          preferred_element_type=jnp.float32) + r[5][...]
        else:
            res = y
        y = jnp.maximum(h + res, 0.0)

    # ---- flatten in-kernel: (C_pad, B*Lp) -> (1, C_pad*B*Lp) ---------------
    # Every piece is a full 128-lane row, so the concat is lane-tile aligned.
    # Feature order m = c*(B*Lp) + b*Lp + t is baked into wlin in prepare().
    c_pad = y.shape[0]
    feat = jnp.concatenate([y[c:c + 1, :] for c in range(c_pad)], axis=1)

    # ---- dense cascade (per-batch 128-lane blocks, heads fused, BN folded) --
    h = jnp.dot(feat.astype(wlin_ref.dtype), wlin_ref[...],
                preferred_element_type=jnp.float32) + blin_ref[...]
    for s in range(n_stages):
        w_r, b_r = stage_refs[2 * s], stage_refs[2 * s + 1]
        h = jnp.dot(h.astype(w_r.dtype), w_r[...],
                    preferred_element_type=jnp.float32) + b_r[...]
        h = jnp.maximum(h, 0.0)                       # Dropout = identity (eval)
    logits = jnp.dot(h.astype(wout_ref.dtype), wout_ref[...],
                     preferred_element_type=jnp.float32) + bout_ref[...]
    out_ref[...] = jax.nn.sigmoid(logits)             # (1, B*128), lane-dense


# ----------------------------------------------------------------------------
# Forward wrapper: one pallas_call for the whole model
# ----------------------------------------------------------------------------
def mtl_cascade_forward(prep, x):
    B, c_in, L = x.shape
    assert B == prep['batch'], "prepare_params() was specialised to another batch"
    assert L == prep['seq_len']
    lp, hpad, cin_pad = prep['lp'], prep['hpad'], prep['cin_pad']

    # NCL -> lane-dense (C_in_pad, B*Lp) input layout (tiny one-time XLA prep).
    xp = jnp.pad(x.astype(jnp.float32),
                 ((0, 0), (0, cin_pad - c_in), (0, lp - L)))
    xk = jnp.transpose(xp, (1, 0, 2)).reshape(cin_pad, B * lp)

    args = [xk]
    for blk in prep['blocks']:
        args += [blk['w1'], blk['b1'], blk['w2'], blk['b2']]
        if blk['has_ds']:
            args += [blk['wd'], blk['bd']]
    dn = prep['dense']
    args += [dn['wlin'], dn['blin']]
    for w, b in dn['stages']:
        args += [w, b]
    args += [dn['wout'], dn['bout']]

    kernel = functools.partial(
        _mtl_fused_kernel,
        block_cfg=tuple((blk['d'], blk['has_ds']) for blk in prep['blocks']),
        n_stages=dn['n_stages'], k=prep['k'], lp=lp)

    out = pl.pallas_call(
        kernel,
        out_shape=jax.ShapeDtypeStruct((1, B * hpad), jnp.float32),
        in_specs=[pl.BlockSpec(memory_space=pltpu.MemorySpace.VMEM)] * len(args),
        out_specs=pl.BlockSpec(memory_space=pltpu.MemorySpace.VMEM),
    )(*args)

    o = out.reshape(B, hpad)                 # per-batch 128-lane block
    return o[:, 0:1], o[:, 1:2], o[:, 2:3]   # sp, mu, smr


# ----------------------------------------------------------------------------
# One-time parameter preparation (pad / transpose / BN-fold / bf16 / fuse)
# ----------------------------------------------------------------------------
def _round8(n):
    return ((n + 7) // 8) * 8


def _prep_conv_w(w, c_out_pad, c_in_pad):
    # torch layout (C_out, C_in, k) -> (k, C_out_pad, C_in_pad) bf16 (per-tap)
    c_out, c_in, k = w.shape
    wp = jnp.zeros((k, c_out_pad, c_in_pad), jnp.float32)
    wp = wp.at[:, :c_out, :c_in].set(jnp.transpose(w.astype(jnp.float32), (2, 0, 1)))
    return wp.astype(jnp.bfloat16)


def _prep_bias(b, c_pad):
    return jnp.zeros((c_pad, 1), jnp.float32).at[:b.shape[0], 0].set(
        b.astype(jnp.float32))


def _fold_bn(lyr, eps=1e-5):
    inv = 1.0 / jnp.sqrt(lyr['var'] + eps)
    scale = lyr['gamma'] * inv
    shift = lyr['beta'] - lyr['mean'] * scale
    w_eff = lyr['w'].astype(jnp.float32) * scale[None, :]
    b_eff = lyr['b'].astype(jnp.float32) * scale + shift
    return w_eff, b_eff


def prepare_params(params, hp, in_channels=128, seq_len=63, batch=2):
    lp = 1 << (seq_len - 1).bit_length()         # 63 -> 64
    cin_pad = _round8(in_channels)

    # ---- TCN blocks ----
    blocks = []
    c_prev_real, c_prev_pad = in_channels, cin_pad
    k = 3
    for blk in params['tcn']:
        c_out_real, _, k = blk['w1'].shape
        c_out_pad = _round8(c_out_real)
        entry = dict(
            d=int(blk['d']), has_ds=blk['wd'] is not None,
            w1=_prep_conv_w(blk['w1'], c_out_pad, c_prev_pad),
            b1=_prep_bias(blk['b1'], c_out_pad),
            w2=_prep_conv_w(blk['w2'], c_out_pad, c_out_pad),
            b2=_prep_bias(blk['b2'], c_out_pad),
        )
        if entry['has_ds']:
            wd = jnp.zeros((c_out_pad, c_prev_pad), jnp.float32)
            wd = wd.at[:c_out_real, :c_prev_real].set(
                blk['wd'][:, :, 0].astype(jnp.float32))
            entry['wd'] = wd.astype(jnp.bfloat16)
            entry['bd'] = _prep_bias(blk['bd'], c_out_pad)
        blocks.append(entry)
        c_prev_real, c_prev_pad = c_out_real, c_out_pad

    # ---- flatten-linear, remapped to the in-kernel feature order
    #      m = c*(B*Lp) + b*Lp + t, with per-batch 128-lane output blocks ----
    H = hp['sp_hidden_nodes']
    assert hp['mu_hidden_nodes'] == H and hp['smr_hidden_nodes'] == H
    hpad = 128
    assert 3 * H <= hpad
    lw3 = params['linear_w'].astype(jnp.float32).reshape(c_prev_real, seq_len, H)
    wlin = jnp.zeros((c_prev_pad, batch, lp, batch, hpad), jnp.float32)
    blin = jnp.zeros((1, batch * hpad), jnp.float32)
    for b in range(batch):
        wlin = wlin.at[:c_prev_real, b, :seq_len, b, :H].set(lw3)
        blin = blin.at[0, b * hpad:b * hpad + H].set(
            params['linear_b'].astype(jnp.float32))
    wlin = wlin.reshape(c_prev_pad * batch * lp, batch * hpad).astype(jnp.bfloat16)

    # ---- three heads fused inside each 128-lane batch block, BN folded ----
    heads = [params['sp'], params['mu'], params['smr']]
    n_stages = len(heads[0])
    assert all(len(h) == n_stages for h in heads)
    eye_b = jnp.eye(batch, dtype=jnp.float32)
    stages = []
    for s in range(n_stages):
        wblk = jnp.zeros((hpad, hpad), jnp.float32)
        bblk = jnp.zeros((hpad,), jnp.float32)
        for i, hd in enumerate(heads):
            w_eff, b_eff = _fold_bn(hd[s])
            rows = slice(0, H) if s == 0 else slice(i * H, (i + 1) * H)
            wblk = wblk.at[rows, i * H:(i + 1) * H].set(w_eff)
            bblk = bblk.at[i * H:(i + 1) * H].set(b_eff)
        stages.append((jnp.kron(eye_b, wblk).astype(jnp.bfloat16),
                       jnp.tile(bblk, batch).reshape(1, batch * hpad)))

    wo = jnp.zeros((hpad, hpad), jnp.float32)
    bo = jnp.zeros((hpad,), jnp.float32)
    wouts = [params['out_sp_w'], params['out_mu_w'], params['out_smr_w']]
    bouts = [params['out_sp_b'], params['out_mu_b'], params['out_smr_b']]
    for i in range(3):
        rows = slice(i * H, (i + 1) * H) if n_stages > 0 else slice(0, H)
        wo = wo.at[rows, i].set(wouts[i][:, 0].astype(jnp.float32))
        bo = bo.at[i].set(bouts[i][0].astype(jnp.float32))
    wout = jnp.kron(eye_b, wo).astype(jnp.bfloat16)
    bout = jnp.tile(bo, batch).reshape(1, batch * hpad)

    dense = dict(n_stages=n_stages, wlin=wlin, blin=blin, stages=stages,
                 wout=wout, bout=bout)
    return dict(blocks=blocks, dense=dense, lp=lp, seq_len=seq_len, batch=batch,
                k=k, cin_pad=cin_pad, cpad=c_prev_pad, hpad=hpad)


# ----------------------------------------------------------------------------
# Pure-JAX reference (eval-mode PyTorch semantics) for correctness checking
# ----------------------------------------------------------------------------
def reference_forward(params, x):
    def causal_conv(h, w, b, d):
        k = w.shape[2]
        pad = (k - 1) * d
        hp_ = jnp.pad(h, ((0, 0), (0, 0), (pad, 0)))
        L = h.shape[2]
        out = b[None, :, None]
        for j in range(k):
            seg = hp_[:, :, j * d:j * d + L]
            out = out + jnp.einsum('oc,bcl->bol', w[:, :, j], seg)
        return out

    h = x.astype(jnp.float32)
    for blk in params['tcn']:
        d = int(blk['d'])
        z = jnp.maximum(causal_conv(h, blk['w1'], blk['b1'], d), 0.0)
        z = jnp.maximum(causal_conv(z, blk['w2'], blk['b2'], d), 0.0)
        if blk['wd'] is not None:
            res = jnp.einsum('oc,bcl->bol', blk['wd'][:, :, 0], h) \
                + blk['bd'][None, :, None]
        else:
            res = h
        h = jnp.maximum(z + res, 0.0)

    feat = h.reshape(h.shape[0], -1)                       # torch .view order
    h0 = feat @ params['linear_w'] + params['linear_b']

    def head(hin, layers, wout, bout):
        z = hin
        for lyr in layers:
            z = z @ lyr['w'] + lyr['b']
            z = (z - lyr['mean']) / jnp.sqrt(lyr['var'] + 1e-5) * lyr['gamma'] \
                + lyr['beta']
            z = jnp.maximum(z, 0.0)
        return jax.nn.sigmoid(z @ wout + bout)

    return (head(h0, params['sp'], params['out_sp_w'], params['out_sp_b']),
            head(h0, params['mu'], params['out_mu_w'], params['out_mu_b']),
            head(h0, params['smr'], params['out_smr_w'], params['out_smr_b']))


# ----------------------------------------------------------------------------
# Deterministic synthetic parameters (PyTorch-equivalent shapes)
# ----------------------------------------------------------------------------
def init_params(key, hp, in_channels=128):
    keys = iter(jax.random.split(key, 128))

    def rnd(shape, scale=0.1):
        return scale * jax.random.normal(next(keys), shape, dtype=jnp.float32)

    num_channels = [63] * hp['n_layers']
    ksz = 3
    tcn = []
    c_prev = in_channels
    for i, c_out in enumerate(num_channels):
        blk = dict(
            d=2 ** i,
            w1=rnd((c_out, c_prev, ksz)), b1=rnd((c_out,)),
            w2=rnd((c_out, c_out, ksz)), b2=rnd((c_out,)),
        )
        if c_prev != c_out:
            blk['wd'] = rnd((c_out, c_prev, 1))
            blk['bd'] = rnd((c_out,))
        else:
            blk['wd'] = None
            blk['bd'] = None
        tcn.append(blk)
        c_prev = c_out

    def head(h, n_layers):
        layers = []
        for _ in range(n_layers):
            layers.append(dict(
                w=rnd((h, h)), b=rnd((h,)),
                gamma=1.0 + rnd((h,), 0.05),
                beta=rnd((h,), 0.05),
                mean=rnd((h,), 0.05),
                var=1.0 + 0.1 * jnp.abs(
                    jax.random.normal(next(keys), (h,), jnp.float32)),
            ))
        return layers

    feat = num_channels[-1] * num_channels[-1]             # 63 * 63
    return dict(
        tcn=tcn,
        linear_w=rnd((feat, hp['sp_hidden_nodes'])),
        linear_b=rnd((hp['sp_hidden_nodes'],)),
        sp=head(hp['sp_hidden_nodes'], hp['n_sp_hidden_lyrs']),
        mu=head(hp['mu_hidden_nodes'], hp['n_mu_hidden_lyrs']),
        smr=head(hp['smr_hidden_nodes'], hp['n_smr_hidden_lyrs']),
        out_sp_w=rnd((hp['sp_hidden_nodes'], 1)), out_sp_b=rnd((1,)),
        out_mu_w=rnd((hp['mu_hidden_nodes'], 1)), out_mu_b=rnd((1,)),
        out_smr_w=rnd((hp['smr_hidden_nodes'], 1)), out_smr_b=rnd((1,)),
    )


# ----------------------------------------------------------------------------
if __name__ == "__main__":
    hp = dict(
        n_layers=2,
        sp_hidden_nodes=32, n_sp_hidden_lyrs=1,
        mu_hidden_nodes=32, n_mu_hidden_lyrs=1,
        smr_hidden_nodes=32, n_smr_hidden_lyrs=1,
    )
    key = jax.random.PRNGKey(0)
    pkey, xkey = jax.random.split(key)

    # Input: NCL = (batch=2, channels=128, seq_len=63); seq_len must be 63 so
    # the flattened TCN output matches Linear(63*63, sp_hidden_nodes).
    B, C_in, L = 2, 128, 63
    x = jax.random.normal(xkey, (B, C_in, L), dtype=jnp.float32)

    params = init_params(pkey, hp, in_channels=C_in)
    prep = prepare_params(params, hp, in_channels=C_in, seq_len=L, batch=B)

    fwd = jax.jit(lambda xx: mtl_cascade_forward(prep, xx))
    sp, mu, smr = jax.block_until_ready(fwd(x))

    # correctness check against a pure-JAX eval-mode reference (bf16 tolerance)
    rsp, rmu, rsmr = reference_forward(params, x)
    for got, ref in ((sp, rsp), (mu, rmu), (smr, rsmr)):
        assert got.shape == (B, 1)
        assert bool(jnp.all(jnp.isfinite(got)))
        assert bool(jnp.all((got >= 0.0) & (got <= 1.0)))
        assert float(jnp.max(jnp.abs(got - ref))) < 6e-2, "mismatch vs reference"

    print("KERNEL_OK")
</pallas_src>

<mosaic_0001>
module attributes {stable_mosaic.version = 11 : i64} {
  func.func @_mtl_fused_kernel(%arg0: memref<128x128xf32, #tpu.memory_space<vmem>>, %arg1: memref<3x64x128xbf16, #tpu.memory_space<vmem>>, %arg2: memref<64x1xf32, #tpu.memory_space<vmem>>, %arg3: memref<3x64x64xbf16, #tpu.memory_space<vmem>>, %arg4: memref<64x1xf32, #tpu.memory_space<vmem>>, %arg5: memref<64x128xbf16, #tpu.memory_space<vmem>>, %arg6: memref<64x1xf32, #tpu.memory_space<vmem>>, %arg7: memref<3x64x64xbf16, #tpu.memory_space<vmem>>, %arg8: memref<64x1xf32, #tpu.memory_space<vmem>>, %arg9: memref<3x64x64xbf16, #tpu.memory_space<vmem>>, %arg10: memref<64x1xf32, #tpu.memory_space<vmem>>, %arg11: memref<8192x256xbf16, #tpu.memory_space<vmem>>, %arg12: memref<1x256xf32, #tpu.memory_space<vmem>>, %arg13: memref<256x256xbf16, #tpu.memory_space<vmem>>, %arg14: memref<1x256xf32, #tpu.memory_space<vmem>>, %arg15: memref<256x256xbf16, #tpu.memory_space<vmem>>, %arg16: memref<1x256xf32, #tpu.memory_space<vmem>>, %arg17: memref<1x256xf32, #tpu.memory_space<vmem>>) attributes {dimension_semantics = [], scalar_prefetch = 0 : i64, scratch_operands = 0 : i64, tpu.core_type = #tpu.core_type<tc>} {
    %c0 = arith.constant 0 : index
    %c0_0 = arith.constant 0 : index
    %0 = vector.load %arg0[%c0, %c0_0] : memref<128x128xf32, #tpu.memory_space<vmem>>, vector<128x128xf32>
    %1 = tpu.iota {dimensions = array<i32: 1>} : vector<1x128xi32>
    %c63_i32 = arith.constant 63 : i32
    %2 = vector.broadcast %c63_i32 : i32 to vector<1x128xi32>
    %3 = arith.andi %1, %2 : vector<1x128xi32>
    %c1_i32 = arith.constant 1 : i32
    %4 = vector.broadcast %c1_i32 : i32 to vector<1x128xi32>
    %5 = arith.cmpi sge, %3, %4 : vector<1x128xi32>
    %c2_i32 = arith.constant 2 : i32
    %6 = vector.broadcast %c2_i32 : i32 to vector<1x128xi32>
    %7 = arith.cmpi sge, %3, %6 : vector<1x128xi32>
    %cst = arith.constant 0.000000e+00 : f32
    %8 = vector.broadcast %cst : f32 to vector<128x2xf32>
    %9 = vector.extract_strided_slice %0 {offsets = [0, 0], sizes = [128, 126], strides = [1, 1]} : vector<128x128xf32> to vector<128x126xf32>
    %10 = tpu.concatenate %8, %9 in 1 : vector<128x2xf32>, vector<128x126xf32> -> vector<128x128xf32>
    %cst_1 = arith.constant 0.000000e+00 : f32
    %11 = vector.shape_cast %7 : vector<1x128xi1> to vector<1x128xi1>
    %12 = vector.broadcast %11 : vector<1x128xi1> to vector<128x128xi1>
    %13 = vector.broadcast %cst_1 : f32 to vector<128x128xf32>
    %14 = arith.select %12, %10, %13 : vector<128x128xi1>, vector<128x128xf32>
    %c0_2 = arith.constant 0 : index
    %c0_3 = arith.constant 0 : index
    %c0_4 = arith.constant 0 : index
    %15 = vector.load %arg1[%c0_2, %c0_3, %c0_4] : memref<3x64x128xbf16, #tpu.memory_space<vmem>>, vector<1x64x128xbf16>
    %16 = vector.shape_cast %15 : vector<1x64x128xbf16> to vector<64x128xbf16>
    %17 = arith.truncf %14 : vector<128x128xf32> to vector<128x128xbf16>
    %cst_5 = arith.constant dense<0.000000e+00> : vector<64x128xf32>
    %18 = tpu.matmul %16, %17, %cst_5 {dimension_numbers = #tpu.dot_dimension_numbers<[1], [0], [0], [1], [0, 0, 1, 1], [], []>} : vector<64x128xbf16>, vector<128x128xbf16>, vector<64x128xf32> -> vector<64x128xf32>
    %cst_6 = arith.constant 0.000000e+00 : f32
    %19 = vector.broadcast %cst_6 : f32 to vector<128x1xf32>
    %20 = vector.extract_strided_slice %0 {offsets = [0, 0], sizes = [128, 127], strides = [1, 1]} : vector<128x128xf32> to vector<128x127xf32>
    %21 = tpu.concatenate %19, %20 in 1 : vector<128x1xf32>, vector<128x127xf32> -> vector<128x128xf32>
    %cst_7 = arith.constant 0.000000e+00 : f32
    %22 = vector.shape_cast %5 : vector<1x128xi1> to vector<1x128xi1>
    %23 = vector.broadcast %22 : vector<1x128xi1> to vector<128x128xi1>
    %24 = vector.broadcast %cst_7 : f32 to vector<128x128xf32>
    %25 = arith.select %23, %21, %24 : vector<128x128xi1>, vector<128x128xf32>
    %c1 = arith.constant 1 : index
    %c0_8 = arith.constant 0 : index
    %c0_9 = arith.constant 0 : index
    %26 = vector.load %arg1[%c1, %c0_8, %c0_9] : memref<3x64x128xbf16, #tpu.memory_space<vmem>>, vector<1x64x128xbf16>
    %27 = vector.shape_cast %26 : vector<1x64x128xbf16> to vector<64x128xbf16>
    %28 = arith.truncf %25 : vector<128x128xf32> to vector<128x128xbf16>
    %cst_10 = arith.constant dense<0.000000e+00> : vector<64x128xf32>
    %29 = tpu.matmul %27, %28, %cst_10 {dimension_numbers = #tpu.dot_dimension_numbers<[1], [0], [0], [1], [0, 0, 1, 1], [], []>} : vector<64x128xbf16>, vector<128x128xbf16>, vector<64x128xf32> -> vector<64x128xf32>
    %30 = arith.addf %18, %29 : vector<64x128xf32>
    %c2 = arith.constant 2 : index
    %c0_11 = arith.constant 0 : index
    %c0_12 = arith.constant 0 : index
    %31 = vector.load %arg1[%c2, %c0_11, %c0_12] : memref<3x64x128xbf16, #tpu.memory_space<vmem>>, vector<1x64x128xbf16>
    %32 = vector.shape_cast %31 : vector<1x64x128xbf16> to vector<64x128xbf16>
    %33 = arith.truncf %0 : vector<128x128xf32> to vector<128x128xbf16>
    %cst_13 = arith.constant dense<0.000000e+00> : vector<64x128xf32>
    %34 = tpu.matmul %32, %33, %cst_13 {dimension_numbers = #tpu.dot_dimension_numbers<[1], [0], [0], [1], [0, 0, 1, 1], [], []>} : vector<64x128xbf16>, vector<128x128xbf16>, vector<64x128xf32> -> vector<64x128xf32>
    %35 = arith.addf %30, %34 : vector<64x128xf32>
    %c0_14 = arith.constant 0 : index
    %c0_15 = arith.constant 0 : index
    %36 = vector.load %arg2[%c0_14, %c0_15] : memref<64x1xf32, #tpu.memory_space<vmem>>, vector<64x1xf32>
    %37 = vector.broadcast %36 : vector<64x1xf32> to vector<64x128xf32>
    %38 = arith.addf %35, %37 : vector<64x128xf32>
    %cst_16 = arith.constant 0.000000e+00 : f32
    %39 = vector.broadcast %cst_16 : f32 to vector<64x128xf32>
    %40 = arith.maximumf %38, %39 : vector<64x128xf32>
    %cst_17 = arith.constant 0.000000e+00 : f32
    %41 = vector.broadcast %cst_17 : f32 to vector<64x2xf32>
    %42 = vector.extract_strided_slice %40 {offsets = [0, 0], sizes = [64, 126], strides = [1, 1]} : vector<64x128xf32> to vector<64x126xf32>
    %43 = tpu.concatenate %41, %42 in 1 : vector<64x2xf32>, vector<64x126xf32> -> vector<64x128xf32>
    %cst_18 = arith.constant 0.000000e+00 : f32
    %44 = vector.shape_cast %7 : vector<1x128xi1> to vector<1x128xi1>
    %45 = vector.broadcast %44 : vector<1x128xi1> to vector<64x128xi1>
    %46 = vector.broadcast %cst_18 : f32 to vector<64x128xf32>
    %47 = arith.select %45, %43, %46 : vector<64x128xi1>, vector<64x128xf32>
    %c0_19 = arith.constant 0 : index
    %c0_20 = arith.constant 0 : index
    %c0_21 = arith.constant 0 : index
    %48 = vector.load %arg3[%c0_19, %c0_20, %c0_21] : memref<3x64x64xbf16, #tpu.memory_space<vmem>>, vector<1x64x64xbf16>
    %49 = vector.shape_cast %48 : vector<1x64x64xbf16> to vector<64x64xbf16>
    %50 = arith.truncf %47 : vector<64x128xf32> to vector<64x128xbf16>
    %cst_22 = arith.constant dense<0.000000e+00> : vector<64x128xf32>
    %51 = tpu.matmul %49, %50, %cst_22 {dimension_numbers = #tpu.dot_dimension_numbers<[1], [0], [0], [1], [0, 0, 1, 1], [], []>} : vector<64x64xbf16>, vector<64x128xbf16>, vector<64x128xf32> -> vector<64x128xf32>
    %cst_23 = arith.constant 0.000000e+00 : f32
    %52 = vector.broadcast %cst_23 : f32 to vector<64x1xf32>
    %53 = vector.extract_strided_slice %40 {offsets = [0, 0], sizes = [64, 127], strides = [1, 1]} : vector<64x128xf32> to vector<64x127xf32>
    %54 = tpu.concatenate %52, %53 in 1 : vector<64x1xf32>, vector<64x127xf32> -> vector<64x128xf32>
    %cst_24 = arith.constant 0.000000e+00 : f32
    %55 = vector.shape_cast %5 : vector<1x128xi1> to vector<1x128xi1>
    %56 = vector.broadcast %55 : vector<1x128xi1> to vector<64x128xi1>
    %57 = vector.broadcast %cst_24 : f32 to vector<64x128xf32>
    %58 = arith.select %56, %54, %57 : vector<64x128xi1>, vector<64x128xf32>
    %c1_25 = arith.constant 1 : index
    %c0_26 = arith.constant 0 : index
    %c0_27 = arith.constant 0 : index
    %59 = vector.load %arg3[%c1_25, %c0_26, %c0_27] : memref<3x64x64xbf16, #tpu.memory_space<vmem>>, vector<1x64x64xbf16>
    %60 = vector.shape_cast %59 : vector<1x64x64xbf16> to vector<64x64xbf16>
    %61 = arith.truncf %58 : vector<64x128xf32> to vector<64x128xbf16>
    %cst_28 = arith.constant dense<0.000000e+00> : vector<64x128xf32>
    %62 = tpu.matmul %60, %61, %cst_28 {dimension_numbers = #tpu.dot_dimension_numbers<[1], [0], [0], [1], [0, 0, 1, 1], [], []>} : vector<64x64xbf16>, vector<64x128xbf16>, vector<64x128xf32> -> vector<64x128xf32>
    %63 = arith.addf %51, %62 : vector<64x128xf32>
    %c2_29 = arith.constant 2 : index
    %c0_30 = arith.constant 0 : index
    %c0_31 = arith.constant 0 : index
    %64 = vector.load %arg3[%c2_29, %c0_30, %c0_31] : memref<3x64x64xbf16, #tpu.memory_space<vmem>>, vector<1x64x64xbf16>
    %65 = vector.shape_cast %64 : vector<1x64x64xbf16> to vector<64x64xbf16>
    %66 = arith.truncf %40 : vector<64x128xf32> to vector<64x128xbf16>
    %cst_32 = arith.constant dense<0.000000e+00> : vector<64x128xf32>
    %67 = tpu.matmul %65, %66, %cst_32 {dimension_numbers = #tpu.dot_dimension_numbers<[1], [0], [0], [1], [0, 0, 1, 1], [], []>} : vector<64x64xbf16>, vector<64x128xbf16>, vector<64x128xf32> -> vector<64x128xf32>
    %68 = arith.addf %63, %67 : vector<64x128xf32>
    %c0_33 = arith.constant 0 : index
    %c0_34 = arith.constant 0 : index
    %69 = vector.load %arg4[%c0_33, %c0_34] : memref<64x1xf32, #tpu.memory_space<vmem>>, vector<64x1xf32>
    %70 = vector.broadcast %69 : vector<64x1xf32> to vector<64x128xf32>
    %71 = arith.addf %68, %70 : vector<64x128xf32>
    %cst_35 = arith.constant 0.000000e+00 : f32
    %72 = vector.broadcast %cst_35 : f32 to vector<64x128xf32>
    %73 = arith.maximumf %71, %72 : vector<64x128xf32>
    %c0_36 = arith.constant 0 : index
    %c0_37 = arith.constant 0 : index
    %74 = vector.load %arg5[%c0_36, %c0_37] : memref<64x128xbf16, #tpu.memory_space<vmem>>, vector<64x128xbf16>
    %75 = arith.truncf %0 : vector<128x128xf32> to vector<128x128xbf16>
    %cst_38 = arith.constant dense<0.000000e+00> : vector<64x128xf32>
    %76 = tpu.matmul %74, %75, %cst_38 {dimension_numbers = #tpu.dot_dimension_numbers<[1], [0], [0], [1], [0, 0, 1, 1], [], []>} : vector<64x128xbf16>, vector<128x128xbf16>, vector<64x128xf32> -> vector<64x128xf32>
    %c0_39 = arith.constant 0 : index
    %c0_40 = arith.constant 0 : index
    %77 = vector.load %arg6[%c0_39, %c0_40] : memref<64x1xf32, #tpu.memory_space<vmem>>, vector<64x1xf32>
    %78 = vector.broadcast %77 : vector<64x1xf32> to vector<64x128xf32>
    %79 = arith.addf %76, %78 : vector<64x128xf32>
    %80 = arith.addf %73, %79 : vector<64x128xf32>
    %cst_41 = arith.constant 0.000000e+00 : f32
    %81 = vector.broadcast %cst_41 : f32 to vector<64x128xf32>
    %82 = arith.maximumf %80, %81 : vector<64x128xf32>
    %c2_i32_42 = arith.constant 2 : i32
    %83 = vector.broadcast %c2_i32_42 : i32 to vector<1x128xi32>
    %84 = arith.cmpi sge, %3, %83 : vector<1x128xi32>
    %c4_i32 = arith.constant 4 : i32
    %85 = vector.broadcast %c4_i32 : i32 to vector<1x128xi32>
    %86 = arith.cmpi sge, %3, %85 : vector<1x128xi32>
    %cst_43 = arith.constant 0.000000e+00 : f32
    %87 = vector.broadcast %cst_43 : f32 to vector<64x4xf32>
    %88 = vector.extract_strided_slice %82 {offsets = [0, 0], sizes = [64, 124], strides = [1, 1]} : vector<64x128xf32> to vector<64x124xf32>
    %89 = tpu.concatenate %87, %88 in 1 : vector<64x4xf32>, vector<64x124xf32> -> vector<64x128xf32>
    %cst_44 = arith.constant 0.000000e+00 : f32
    %90 = vector.shape_cast %86 : vector<1x128xi1> to vector<1x128xi1>
    %91 = vector.broadcast %90 : vector<1x128xi1> to vector<64x128xi1>
    %92 = vector.broadcast %cst_44 : f32 to vector<64x128xf32>
    %93 = arith.select %91, %89, %92 : vector<64x128xi1>, vector<64x128xf32>
    %c0_45 = arith.constant 0 : index
    %c0_46 = arith.constant 0 : index
    %c0_47 = arith.constant 0 : index
    %94 = vector.load %arg7[%c0_45, %c0_46, %c0_47] : memref<3x64x64xbf16, #tpu.memory_space<vmem>>, vector<1x64x64xbf16>
    %95 = vector.shape_cast %94 : vector<1x64x64xbf16> to vector<64x64xbf16>
    %96 = arith.truncf %93 : vector<64x128xf32> to vector<64x128xbf16>
    %cst_48 = arith.constant dense<0.000000e+00> : vector<64x128xf32>
    %97 = tpu.matmul %95, %96, %cst_48 {dimension_numbers = #tpu.dot_dimension_numbers<[1], [0], [0], [1], [0, 0, 1, 1], [], []>} : vector<64x64xbf16>, vector<64x128xbf16>, vector<64x128xf32> -> vector<64x128xf32>
    %cst_49 = arith.constant 0.000000e+00 : f32
    %98 = vector.broadcast %cst_49 : f32 to vector<64x2xf32>
    %99 = vector.extract_strided_slice %82 {offsets = [0, 0], sizes = [64, 126], strides = [1, 1]} : vector<64x128xf32> to vector<64x126xf32>
    %100 = tpu.concatenate %98, %99 in 1 : vector<64x2xf32>, vector<64x126xf32> -> vector<64x128xf32>
    %cst_50 = arith.constant 0.000000e+00 : f32
    %101 = vector.shape_cast %84 : vector<1x128xi1> to vector<1x128xi1>
    %102 = vector.broadcast %101 : vector<1x128xi1> to vector<64x128xi1>
    %103 = vector.broadcast %cst_50 : f32 to vector<64x128xf32>
    %104 = arith.select %102, %100, %103 : vector<64x128xi1>, vector<64x128xf32>
    %c1_51 = arith.constant 1 : index
    %c0_52 = arith.constant 0 : index
    %c0_53 = arith.constant 0 : index
    %105 = vector.load %arg7[%c1_51, %c0_52, %c0_53] : memref<3x64x64xbf16, #tpu.memory_space<vmem>>, vector<1x64x64xbf16>
    %106 = vector.shape_cast %105 : vector<1x64x64xbf16> to vector<64x64xbf16>
    %107 = arith.truncf %104 : vector<64x128xf32> to vector<64x128xbf16>
    %cst_54 = arith.constant dense<0.000000e+00> : vector<64x128xf32>
    %108 = tpu.matmul %106, %107, %cst_54 {dimension_numbers = #tpu.dot_dimension_numbers<[1], [0], [0], [1], [0, 0, 1, 1], [], []>} : vector<64x64xbf16>, vector<64x128xbf16>, vector<64x128xf32> -> vector<64x128xf32>
    %109 = arith.addf %97, %108 : vector<64x128xf32>
    %c2_55 = arith.constant 2 : index
    %c0_56 = arith.constant 0 : index
    %c0_57 = arith.constant 0 : index
    %110 = vector.load %arg7[%c2_55, %c0_56, %c0_57] : memref<3x64x64xbf16, #tpu.memory_space<vmem>>, vector<1x64x64xbf16>
    %111 = vector.shape_cast %110 : vector<1x64x64xbf16> to vector<64x64xbf16>
    %112 = arith.truncf %82 : vector<64x128xf32> to vector<64x128xbf16>
    %cst_58 = arith.constant dense<0.000000e+00> : vector<64x128xf32>
    %113 = tpu.matmul %111, %112, %cst_58 {dimension_numbers = #tpu.dot_dimension_numbers<[1], [0], [0], [1], [0, 0, 1, 1], [], []>} : vector<64x64xbf16>, vector<64x128xbf16>, vector<64x128xf32> -> vector<64x128xf32>
    %114 = arith.addf %109, %113 : vector<64x128xf32>
    %c0_59 = arith.constant 0 : index
    %c0_60 = arith.constant 0 : index
    %115 = vector.load %arg8[%c0_59, %c0_60] : memref<64x1xf32, #tpu.memory_space<vmem>>, vector<64x1xf32>
    %116 = vector.broadcast %115 : vector<64x1xf32> to vector<64x128xf32>
    %117 = arith.addf %114, %116 : vector<64x128xf32>
    %cst_61 = arith.constant 0.000000e+00 : f32
    %118 = vector.broadcast %cst_61 : f32 to vector<64x128xf32>
    %119 = arith.maximumf %117, %118 : vector<64x128xf32>
    %cst_62 = arith.constant 0.000000e+00 : f32
    %120 = vector.broadcast %cst_62 : f32 to vector<64x4xf32>
    %121 = vector.extract_strided_slice %119 {offsets = [0, 0], sizes = [64, 124], strides = [1, 1]} : vector<64x128xf32> to vector<64x124xf32>
    %122 = tpu.concatenate %120, %121 in 1 : vector<64x4xf32>, vector<64x124xf32> -> vector<64x128xf32>
    %cst_63 = arith.constant 0.000000e+00 : f32
    %123 = vector.shape_cast %86 : vector<1x128xi1> to vector<1x128xi1>
    %124 = vector.broadcast %123 : vector<1x128xi1> to vector<64x128xi1>
    %125 = vector.broadcast %cst_63 : f32 to vector<64x128xf32>
    %126 = arith.select %124, %122, %125 : vector<64x128xi1>, vector<64x128xf32>
    %c0_64 = arith.constant 0 : index
    %c0_65 = arith.constant 0 : index
    %c0_66 = arith.constant 0 : index
    %127 = vector.load %arg9[%c0_64, %c0_65, %c0_66] : memref<3x64x64xbf16, #tpu.memory_space<vmem>>, vector<1x64x64xbf16>
    %128 = vector.shape_cast %127 : vector<1x64x64xbf16> to vector<64x64xbf16>
    %129 = arith.truncf %126 : vector<64x128xf32> to vector<64x128xbf16>
    %cst_67 = arith.constant dense<0.000000e+00> : vector<64x128xf32>
    %130 = tpu.matmul %128, %129, %cst_67 {dimension_numbers = #tpu.dot_dimension_numbers<[1], [0], [0], [1], [0, 0, 1, 1], [], []>} : vector<64x64xbf16>, vector<64x128xbf16>, vector<64x128xf32> -> vector<64x128xf32>
    %cst_68 = arith.constant 0.000000e+00 : f32
    %131 = vector.broadcast %cst_68 : f32 to vector<64x2xf32>
    %132 = vector.extract_strided_slice %119 {offsets = [0, 0], sizes = [64, 126], strides = [1, 1]} : vector<64x128xf32> to vector<64x126xf32>
    %133 = tpu.concatenate %131, %132 in 1 : vector<64x2xf32>, vector<64x126xf32> -> vector<64x128xf32>
    %cst_69 = arith.constant 0.000000e+00 : f32
    %134 = vector.shape_cast %84 : vector<1x128xi1> to vector<1x128xi1>
    %135 = vector.broadcast %134 : vector<1x128xi1> to vector<64x128xi1>
    %136 = vector.broadcast %cst_69 : f32 to vector<64x128xf32>
    %137 = arith.select %135, %133, %136 : vector<64x128xi1>, vector<64x128xf32>
    %c1_70 = arith.constant 1 : index
    %c0_71 = arith.constant 0 : index
    %c0_72 = arith.constant 0 : index
    %138 = vector.load %arg9[%c1_70, %c0_71, %c0_72] : memref<3x64x64xbf16, #tpu.memory_space<vmem>>, vector<1x64x64xbf16>
    %139 = vector.shape_cast %138 : vector<1x64x64xbf16> to vector<64x64xbf16>
    %140 = arith.truncf %137 : vector<64x128xf32> to vector<64x128xbf16>
    %cst_73 = arith.constant dense<0.000000e+00> : vector<64x128xf32>
    %141 = tpu.matmul %139, %140, %cst_73 {dimension_numbers = #tpu.dot_dimension_numbers<[1], [0], [0], [1], [0, 0, 1, 1], [], []>} : vector<64x64xbf16>, vector<64x128xbf16>, vector<64x128xf32> -> vector<64x128xf32>
    %142 = arith.addf %130, %141 : vector<64x128xf32>
    %c2_74 = arith.constant 2 : index
    %c0_75 = arith.constant 0 : index
    %c0_76 = arith.constant 0 : index
    %143 = vector.load %arg9[%c2_74, %c0_75, %c0_76] : memref<3x64x64xbf16, #tpu.memory_space<vmem>>, vector<1x64x64xbf16>
    %144 = vector.shape_cast %143 : vector<1x64x64xbf16> to vector<64x64xbf16>
    %145 = arith.truncf %119 : vector<64x128xf32> to vector<64x128xbf16>
    %cst_77 = arith.constant dense<0.000000e+00> : vector<64x128xf32>
    %146 = tpu.matmul %144, %145, %cst_77 {dimension_numbers = #tpu.dot_dimension_numbers<[1], [0], [0], [1], [0, 0, 1, 1], [], []>} : vector<64x64xbf16>, vector<64x128xbf16>, vector<64x128xf32> -> vector<64x128xf32>
    %147 = arith.addf %142, %146 : vector<64x128xf32>
    %c0_78 = arith.constant 0 : index
    %c0_79 = arith.constant 0 : index
    %148 = vector.load %arg10[%c0_78, %c0_79] : memref<64x1xf32, #tpu.memory_space<vmem>>, vector<64x1xf32>
    %149 = vector.broadcast %148 : vector<64x1xf32> to vector<64x128xf32>
    %150 = arith.addf %147, %149 : vector<64x128xf32>
    %cst_80 = arith.constant 0.000000e+00 : f32
    %151 = vector.broadcast %cst_80 : f32 to vector<64x128xf32>
    %152 = arith.maximumf %150, %151 : vector<64x128xf32>
    %153 = arith.addf %152, %82 : vector<64x128xf32>
    %cst_81 = arith.constant 0.000000e+00 : f32
    %154 = vector.broadcast %cst_81 : f32 to vector<64x128xf32>
    %155 = arith.maximumf %153, %154 : vector<64x128xf32>
    %156 = vector.extract_strided_slice %155 {offsets = [0, 0], sizes = [1, 128], strides = [1, 1]} : vector<64x128xf32> to vector<1x128xf32>
    %157 = vector.extract_strided_slice %155 {offsets = [1, 0], sizes = [1, 128], strides = [1, 1]} : vector<64x128xf32> to vector<1x128xf32>
    %158 = vector.extract_strided_slice %155 {offsets = [2, 0], sizes = [1, 128], strides = [1, 1]} : vector<64x128xf32> to vector<1x128xf32>
    %159 = vector.extract_strided_slice %155 {offsets = [3, 0], sizes = [1, 128], strides = [1, 1]} : vector<64x128xf32> to vector<1x128xf32>
    %160 = vector.extract_strided_slice %155 {offsets = [4, 0], sizes = [1, 128], strides = [1, 1]} : vector<64x128xf32> to vector<1x128xf32>
    %161 = vector.extract_strided_slice %155 {offsets = [5, 0], sizes = [1, 128], strides = [1, 1]} : vector<64x128xf32> to vector<1x128xf32>
    %162 = vector.extract_strided_slice %155 {offsets = [6, 0], sizes = [1, 128], strides = [1, 1]} : vector<64x128xf32> to vector<1x128xf32>
    %163 = vector.extract_strided_slice %155 {offsets = [7, 0], sizes = [1, 128], strides = [1, 1]} : vector<64x128xf32> to vector<1x128xf32>
    %164 = vector.extract_strided_slice %155 {offsets = [8, 0], sizes = [1, 128], strides = [1, 1]} : vector<64x128xf32> to vector<1x128xf32>
    %165 = vector.extract_strided_slice %155 {offsets = [9, 0], sizes = [1, 128], strides = [1, 1]} : vector<64x128xf32> to vector<1x128xf32>
    %166 = vector.extract_strided_slice %155 {offsets = [10, 0], sizes = [1, 128], strides = [1, 1]} : vector<64x128xf32> to vector<1x128xf32>
    %167 = vector.extract_strided_slice %155 {offsets = [11, 0], sizes = [1, 128], strides = [1, 1]} : vector<64x128xf32> to vector<1x128xf32>
    %168 = vector.extract_strided_slice %155 {offsets = [12, 0], sizes = [1, 128], strides = [1, 1]} : vector<64x128xf32> to vector<1x128xf32>
    %169 = vector.extract_strided_slice %155 {offsets = [13, 0], sizes = [1, 128], strides = [1, 1]} : vector<64x128xf32> to vector<1x128xf32>
    %170 = vector.extract_strided_slice %155 {offsets = [14, 0], sizes = [1, 128], strides = [1, 1]} : vector<64x128xf32> to vector<1x128xf32>
    %171 = vector.extract_strided_slice %155 {offsets = [15, 0], sizes = [1, 128], strides = [1, 1]} : vector<64x128xf32> to vector<1x128xf32>
    %172 = vector.extract_strided_slice %155 {offsets = [16, 0], sizes = [1, 128], strides = [1, 1]} : vector<64x128xf32> to vector<1x128xf32>
    %173 = vector.extract_strided_slice %155 {offsets = [17, 0], sizes = [1, 128], strides = [1, 1]} : vector<64x128xf32> to vector<1x128xf32>
    %174 = vector.extract_strided_slice %155 {offsets = [18, 0], sizes = [1, 128], strides = [1, 1]} : vector<64x128xf32> to vector<1x128xf32>
    %175 = vector.extract_strided_slice %155 {offsets = [19, 0], sizes = [1, 128], strides = [1, 1]} : vector<64x128xf32> to vector<1x128xf32>
    %176 = vector.extract_strided_slice %155 {offsets = [20, 0], sizes = [1, 128], strides = [1, 1]} : vector<64x128xf32> to vector<1x128xf32>
    %177 = vector.extract_strided_slice %155 {offsets = [21, 0], sizes = [1, 128], strides = [1, 1]} : vector<64x128xf32> to vector<1x128xf32>
    %178 = vector.extract_strided_slice %155 {offsets = [22, 0], sizes = [1, 128], strides = [1, 1]} : vector<64x128xf32> to vector<1x128xf32>
    %179 = vector.extract_strided_slice %155 {offsets = [23, 0], sizes = [1, 128], strides = [1, 1]} : vector<64x128xf32> to vector<1x128xf32>
    %180 = vector.extract_strided_slice %155 {offsets = [24, 0], sizes = [1, 128], strides = [1, 1]} : vector<64x128xf32> to vector<1x128xf32>
    %181 = vector.extract_strided_slice %155 {offsets = [25, 0], sizes = [1, 128], strides = [1, 1]} : vector<64x128xf32> to vector<1x128xf32>
    %182 = vector.extract_strided_slice %155 {offsets = [26, 0], sizes = [1, 128], strides = [1, 1]} : vector<64x128xf32> to vector<1x128xf32>
    %183 = vector.extract_strided_slice %155 {offsets = [27, 0], sizes = [1, 128], strides = [1, 1]} : vector<64x128xf32> to vector<1x128xf32>
    %184 = vector.extract_strided_slice %155 {offsets = [28, 0], sizes = [1, 128], strides = [1, 1]} : vector<64x128xf32> to vector<1x128xf32>
    %185 = vector.extract_strided_slice %155 {offsets = [29, 0], sizes = [1, 128], strides = [1, 1]} : vector<64x128xf32> to vector<1x128xf32>
    %186 = vector.extract_strided_slice %155 {offsets = [30, 0], sizes = [1, 128], strides = [1, 1]} : vector<64x128xf32> to vector<1x128xf32>
    %187 = vector.extract_strided_slice %155 {offsets = [31, 0], sizes = [1, 128], strides = [1, 1]} : vector<64x128xf32> to vector<1x128xf32>
    %188 = vector.extract_strided_slice %155 {offsets = [32, 0], sizes = [1, 128], strides = [1, 1]} : vector<64x128xf32> to vector<1x128xf32>
    %189 = vector.extract_strided_slice %155 {offsets = [33, 0], sizes = [1, 128], strides = [1, 1]} : vector<64x128xf32> to vector<1x128xf32>
    %190 = vector.extract_strided_slice %155 {offsets = [34, 0], sizes = [1, 128], strides = [1, 1]} : vector<64x128xf32> to vector<1x128xf32>
    %191 = vector.extract_strided_slice %155 {offsets = [35, 0], sizes = [1, 128], strides = [1, 1]} : vector<64x128xf32> to vector<1x128xf32>
    %192 = vector.extract_strided_slice %155 {offsets = [36, 0], sizes = [1, 128], strides = [1, 1]} : vector<64x128xf32> to vector<1x128xf32>
    %193 = vector.extract_strided_slice %155 {offsets = [37, 0], sizes = [1, 128], strides = [1, 1]} : vector<64x128xf32> to vector<1x128xf32>
    %194 = vector.extract_strided_slice %155 {offsets = [38, 0], sizes = [1, 128], strides = [1, 1]} : vector<64x128xf32> to vector<1x128xf32>
    %195 = vector.extract_strided_slice %155 {offsets = [39, 0], sizes = [1, 128], strides = [1, 1]} : vector<64x128xf32> to vector<1x128xf32>
    %196 = vector.extract_strided_slice %155 {offsets = [40, 0], sizes = [1, 128], strides = [1, 1]} : vector<64x128xf32> to vector<1x128xf32>
    %197 = vector.extract_strided_slice %155 {offsets = [41, 0], sizes = [1, 128], strides = [1, 1]} : vector<64x128xf32> to vector<1x128xf32>
    %198 = vector.extract_strided_slice %155 {offsets = [42, 0], sizes = [1, 128], strides = [1, 1]} : vector<64x128xf32> to vector<1x128xf32>
    %199 = vector.extract_strided_slice %155 {offsets = [43, 0], sizes = [1, 128], strides = [1, 1]} : vector<64x128xf32> to vector<1x128xf32>
    %200 = vector.extract_strided_slice %155 {offsets = [44, 0], sizes = [1, 128], strides = [1, 1]} : vector<64x128xf32> to vector<1x128xf32>
    %201 = vector.extract_strided_slice %155 {offsets = [45, 0], sizes = [1, 128], strides = [1, 1]} : vector<64x128xf32> to vector<1x128xf32>
    %202 = vector.extract_strided_slice %155 {offsets = [46, 0], sizes = [1, 128], strides = [1, 1]} : vector<64x128xf32> to vector<1x128xf32>
    %203 = vector.extract_strided_slice %155 {offsets = [47, 0], sizes = [1, 128], strides = [1, 1]} : vector<64x128xf32> to vector<1x128xf32>
    %204 = vector.extract_strided_slice %155 {offsets = [48, 0], sizes = [1, 128], strides = [1, 1]} : vector<64x128xf32> to vector<1x128xf32>
    %205 = vector.extract_strided_slice %155 {offsets = [49, 0], sizes = [1, 128], strides = [1, 1]} : vector<64x128xf32> to vector<1x128xf32>
    %206 = vector.extract_strided_slice %155 {offsets = [50, 0], sizes = [1, 128], strides = [1, 1]} : vector<64x128xf32> to vector<1x128xf32>
    %207 = vector.extract_strided_slice %155 {offsets = [51, 0], sizes = [1, 128], strides = [1, 1]} : vector<64x128xf32> to vector<1x128xf32>
    %208 = vector.extract_strided_slice %155 {offsets = [52, 0], sizes = [1, 128], strides = [1, 1]} : vector<64x128xf32> to vector<1x128xf32>
    %209 = vector.extract_strided_slice %155 {offsets = [53, 0], sizes = [1, 128], strides = [1, 1]} : vector<64x128xf32> to vector<1x128xf32>
    %210 = vector.extract_strided_slice %155 {offsets = [54, 0], sizes = [1, 128], strides = [1, 1]} : vector<64x128xf32> to vector<1x128xf32>
    %211 = vector.extract_strided_slice %155 {offsets = [55, 0], sizes = [1, 128], strides = [1, 1]} : vector<64x128xf32> to vector<1x128xf32>
    %212 = vector.extract_strided_slice %155 {offsets = [56, 0], sizes = [1, 128], strides = [1, 1]} : vector<64x128xf32> to vector<1x128xf32>
    %213 = vector.extract_strided_slice %155 {offsets = [57, 0], sizes = [1, 128], strides = [1, 1]} : vector<64x128xf32> to vector<1x128xf32>
    %214 = vector.extract_strided_slice %155 {offsets = [58, 0], sizes = [1, 128], strides = [1, 1]} : vector<64x128xf32> to vector<1x128xf32>
    %215 = vector.extract_strided_slice %155 {offsets = [59, 0], sizes = [1, 128], strides = [1, 1]} : vector<64x128xf32> to vector<1x128xf32>
    %216 = vector.extract_strided_slice %155 {offsets = [60, 0], sizes = [1, 128], strides = [1, 1]} : vector<64x128xf32> to vector<1x128xf32>
    %217 = vector.extract_strided_slice %155 {offsets = [61, 0], sizes = [1, 128], strides = [1, 1]} : vector<64x128xf32> to vector<1x128xf32>
    %218 = vector.extract_strided_slice %155 {offsets = [62, 0], sizes = [1, 128], strides = [1, 1]} : vector<64x128xf32> to vector<1x128xf32>
    %219 = vector.extract_strided_slice %155 {offsets = [63, 0], sizes = [1, 128], strides = [1, 1]} : vector<64x128xf32> to vector<1x128xf32>
    %220 = tpu.concatenate %156, %157, %158, %159, %160, %161, %162, %163, %164, %165, %166, %167, %168, %169, %170, %171 in 1 : vector<1x128xf32>, vector<1x128xf32>, vector<1x128xf32>, vector<1x128xf32>, vector<1x128xf32>, vector<1x128xf32>, vector<1x128xf32>, vector<1x128xf32>, vector<1x128xf32>, vector<1x128xf32>, vector<1x128xf32>, vector<1x128xf32>, vector<1x128xf32>, vector<1x128xf32>, vector<1x128xf32>, vector<1x128xf32> -> vector<1x2048xf32>
    %221 = tpu.concatenate %172, %173, %174, %175, %176, %177, %178, %179, %180, %181, %182, %183, %184, %185, %186, %187 in 1 : vector<1x128xf32>, vector<1x128xf32>, vector<1x128xf32>, vector<1x128xf32>, vector<1x128xf32>, vector<1x128xf32>, vector<1x128xf32>, vector<1x128xf32>, vector<1x128xf32>, vector<1x128xf32>, vector<1x128xf32>, vector<1x128xf32>, vector<1x128xf32>, vector<1x128xf32>, vector<1x128xf32>, vector<1x128xf32> -> vector<1x2048xf32>
    %222 = tpu.concatenate %188, %189, %190, %191, %192, %193, %194, %195, %196, %197, %198, %199, %200, %201, %202, %203 in 1 : vector<1x128xf32>, vector<1x128xf32>, vector<1x128xf32>, vector<1x128xf32>, vector<1x128xf32>, vector<1x128xf32>, vector<1x128xf32>, vector<1x128xf32>, vector<1x128xf32>, vector<1x128xf32>, vector<1x128xf32>, vector<1x128xf32>, vector<1x128xf32>, vector<1x128xf32>, vector<1x128xf32>, vector<1x128xf32> -> vector<1x2048xf32>
    %223 = tpu.concatenate %204, %205, %206, %207, %208, %209, %210, %211, %212, %213, %214, %215, %216, %217, %218, %219 in 1 : vector<1x128xf32>, vector<1x128xf32>, vector<1x128xf32>, vector<1x128xf32>, vector<1x128xf32>, vector<1x128xf32>, vector<1x128xf32>, vector<1x128xf32>, vector<1x128xf32>, vector<1x128xf32>, vector<1x128xf32>, vector<1x128xf32>, vector<1x128xf32>, vector<1x128xf32>, vector<1x128xf32>, vector<1x128xf32> -> vector<1x2048xf32>
    %224 = tpu.concatenate %220, %221, %222, %223 in 1 : vector<1x2048xf32>, vector<1x2048xf32>, vector<1x2048xf32>, vector<1x2048xf32> -> vector<1x8192xf32>
    %225 = arith.truncf %224 : vector<1x8192xf32> to vector<1x8192xbf16>
    %c0_82 = arith.constant 0 : index
    %c0_83 = arith.constant 0 : index
    %226 = vector.load %arg11[%c0_82, %c0_83] : memref<8192x256xbf16, #tpu.memory_space<vmem>>, vector<8192x256xbf16>
    %cst_84 = arith.constant dense<0.000000e+00> : vector<1x256xf32>
    %227 = tpu.matmul %225, %226, %cst_84 {dimension_numbers = #tpu.dot_dimension_numbers<[1], [0], [0], [1], [0, 0, 1, 1], [], []>} : vector<1x8192xbf16>, vector<8192x256xbf16>, vector<1x256xf32> -> vector<1x256xf32>
    %c0_85 = arith.constant 0 : index
    %c0_86 = arith.constant 0 : index
    %228 = vector.load %arg12[%c0_85, %c0_86] : memref<1x256xf32, #tpu.memory_space<vmem>>, vector<1x256xf32>
    %229 = arith.addf %227, %228 : vector<1x256xf32>
    %230 = arith.truncf %229 : vector<1x256xf32> to vector<1x256xbf16>
    %c0_87 = arith.constant 0 : index
    %c0_88 = arith.constant 0 : index
    %231 = vector.load %arg13[%c0_87, %c0_88] : memref<256x256xbf16, #tpu.memory_space<vmem>>, vector<256x256xbf16>
    %cst_89 = arith.constant dense<0.000000e+00> : vector<1x256xf32>
    %232 = tpu.matmul %230, %231, %cst_89 {dimension_numbers = #tpu.dot_dimension_numbers<[1], [0], [0], [1], [0, 0, 1, 1], [], []>} : vector<1x256xbf16>, vector<256x256xbf16>, vector<1x256xf32> -> vector<1x256xf32>
    %c0_90 = arith.constant 0 : index
    %c0_91 = arith.constant 0 : index
    %233 = vector.load %arg14[%c0_90, %c0_91] : memref<1x256xf32, #tpu.memory_space<vmem>>, vector<1x256xf32>
    %234 = arith.addf %232, %233 : vector<1x256xf32>
    %cst_92 = arith.constant 0.000000e+00 : f32
    %235 = vector.broadcast %cst_92 : f32 to vector<1x256xf32>
    %236 = arith.maximumf %234, %235 : vector<1x256xf32>
    %237 = arith.truncf %236 : vector<1x256xf32> to vector<1x256xbf16>
    %c0_93 = arith.constant 0 : index
    %c0_94 = arith.constant 0 : index
    %238 = vector.load %arg15[%c0_93, %c0_94] : memref<256x256xbf16, #tpu.memory_space<vmem>>, vector<256x256xbf16>
    %cst_95 = arith.constant dense<0.000000e+00> : vector<1x256xf32>
    %239 = tpu.matmul %237, %238, %cst_95 {dimension_numbers = #tpu.dot_dimension_numbers<[1], [0], [0], [1], [0, 0, 1, 1], [], []>} : vector<1x256xbf16>, vector<256x256xbf16>, vector<1x256xf32> -> vector<1x256xf32>
    %c0_96 = arith.constant 0 : index
    %c0_97 = arith.constant 0 : index
    %240 = vector.load %arg16[%c0_96, %c0_97] : memref<1x256xf32, #tpu.memory_space<vmem>>, vector<1x256xf32>
    %241 = arith.addf %239, %240 : vector<1x256xf32>
    %242 = arith.negf %241 : vector<1x256xf32>
    %243 = math.exp %242 : vector<1x256xf32>
    %cst_98 = arith.constant 1.000000e+00 : f32
    %244 = vector.broadcast %cst_98 : f32 to vector<1x256xf32>
    %245 = arith.addf %244, %243 : vector<1x256xf32>
    %246 = arith.divf %244, %245 : vector<1x256xf32>
    %c0_99 = arith.constant 0 : index
    %c0_100 = arith.constant 0 : index
    %247 = vector.load %arg17[%c0_99, %c0_100] : memref<1x256xf32, #tpu.memory_space<vmem>>, vector<1x256xf32>
    tpu.vector_store %arg17[%c0_99, %c0_100], %246 {strides = array<i32>} : memref<1x256xf32, #tpu.memory_space<vmem>>, vector<1x256xf32>,
    return
  }
}

</mosaic_0001>

<bundles_post_ra>
// kernel: _lambda_.1
= control target key start
LH: loop header
LB: loop body
LE: loop exit
PB: predicated region body
PF: predicated region fallthrough
CT: control target
= control target key end

     0   :  { %s14294_s27 = smov 1   ;;  %s14295_s30 = smov 2   ;;  %v14296_v28 = vmov 0   ;;  %v73_v33 = vlaneseq  ;;  %vm241_vm0 = vcmask 7168   ;;  %vm142_vm3 = vcmask 15360   ;;  %s18603_s0 = inlined_call_operand.vmem [shape: f32[128,128], index: 0, kind: input, shape index: {}]   ;;  %s18604_s1 = inlined_call_operand.vmem [shape: bf16[3,64,128], index: 1, kind: input, shape index: {}]   ;;  %s18605_s2 = inlined_call_operand.vmem [shape: f32[64,1], index: 2, kind: input, shape index: {}]   ;;  %s18606_s3 = inlined_call_operand.vmem [shape: bf16[3,64,64], index: 3, kind: input, shape index: {}]   ;;  %s18607_s4 = inlined_call_operand.vmem [shape: f32[64,1], index: 4, kind: input, shape index: {}]   ;;  %s18608_s6 = inlined_call_operand.vmem [shape: f32[64,1], index: 6, kind: input, shape index: {}]   ;;  %s18609_s5 = inlined_call_operand.vmem [shape: bf16[64,128], index: 5, kind: input, shape index: {}]   ;;  %s18610_s7 = inlined_call_operand.vmem [shape: bf16[3,64,64], index: 7, kind: input, shape index: {}]   ;;  %s18611_s8 = inlined_call_operand.vmem [shape: f32[64,1], index: 8, kind: input, shape index: {}]   ;;  %s18612_s9 = inlined_call_operand.vmem [shape: bf16[3,64,64], index: 9, kind: input, shape index: {}]   ;;  %s18613_s10 = inlined_call_operand.vmem [shape: f32[64,1], index: 10, kind: input, shape index: {}]   ;;  %s18614_s11 = inlined_call_operand.vmem [shape: bf16[8192,256], index: 11, kind: input, shape index: {}]   ;;  %s18615_s13 = inlined_call_operand.vmem [shape: bf16[256,256], index: 13, kind: input, shape index: {}]   ;;  %s18616_s15 = inlined_call_operand.vmem [shape: bf16[256,256], index: 15, kind: input, shape index: {}]   ;;  %s18617_s12 = inlined_call_operand.vmem [shape: f32[1,256], index: 12, kind: input, shape index: {}]   ;;  %s18618_s14 = inlined_call_operand.vmem [shape: f32[1,256], index: 14, kind: input, shape index: {}]   ;;  %s18619_s16 = inlined_call_operand.vmem [shape: f32[1,256], index: 16, kind: input, shape index: {}]   ;;  %s18620_s17 = inlined_call_operand.vmem [shape: f32[1,256], index: 17, kind: output, shape index: {}]  }
   0x1   :  { %18623 = sst [smem:[#allocation2_spill]] %s18603_s0  ;;  %12481 = vset.pattern.permute.xlu1 %v14296_v28  ;;  %12480 = vset.pattern.permute.xlu0 %v14296_v28  ;;  %v586_v29 = vld [vmem:[%s18605_s2 + $0x8] sm:$0xff]  ;;  %v585_v30 = vld [vmem:[%s18605_s2] sm:$0xff]  ;;  %v587_v31 = vld [vmem:[%s18605_s2 + $0x10] sm:$0xff]  ;;  %vm782_vm6 = vcmask 523264   ;;  %vm1333_vm7 = vcmask 31744  }
   0x2   :  { %18624 = sst [smem:[#allocation3_spill]] %s18604_s1  ;;  %s18625_s26 = sld [smem:[#allocation2_spill]]  ;;  %v588_v32 = vld [vmem:[%s18605_s2 + $0x18] sm:$0xff]  ;;  %v589_v34 = vld [vmem:[%s18605_s2 + $0x20] sm:$0xff]  ;;  %v590_v35 = vld [vmem:[%s18605_s2 + $0x28] sm:$0xff]  ;;  %v74_v36 = vand.u32 127, %v73_v33 }
   0x3   :  { %s18626_s19 = sld [smem:[#allocation3_spill]]  ;;  %v591_v37 = vld [vmem:[%s18605_s2 + $0x30] sm:$0xff]  ;;  %v592_v38 = vld [vmem:[%s18605_s2 + $0x38] sm:$0xff]  ;;  %vm10478_vm10 = vcmp.lt.s32.totalorder %v73_v33, 256 }
   0x4   :  { %v14517_v39 = vand.u32 63, %v74_v36 }
   0x6   :  { %vm76_vm1 = vcmp.ge.s32.totalorder %v14517_v39, 1  ;;  %vm77_vm4 = vcmp.ge.s32.totalorder %v14517_v39, 2  ;;  %vm1300_vm8 = vcmp.ge.s32.totalorder %v14517_v39, 4  ;;  %v12631_v39 = vld [vmem:[%s18610_s7 + $0x28] sm:$0xff]  }
   0x7   :  { %vm14522_vm2 = vmpackc.low %vm76_vm1, %vm76_vm1 }
   0x8   :  { %v57_v0 = vld [vmem:[%s18625_s26] sm:$0xff]  ;;  %v58_v1 = vld [vmem:[%s18625_s26 + $0x8] sm:$0xff]  ;;  %v59_v2 = vld [vmem:[%s18625_s26 + $0x10] sm:$0xff] }
   0x9   :  { %v12400_v3 = vpack.i.bf16 %v58_v1, %v57_v0  ;;  %v14398_v4 = vpack.c.bf16 %v58_v1, %v57_v0  ;;  %v60_v5 = vld [vmem:[%s18625_s26 + $0x18] sm:$0xff]  ;;  %v61_v6 = vld [vmem:[%s18625_s26 + $0x20] sm:$0xff]  ;;  %v62_v7 = vld [vmem:[%s18625_s26 + $0x28] sm:$0xff] }
   0xa   :  { %v12410_v8 = vpack.i.bf16 %v62_v7, %v61_v6  ;;  %v14409_v9 = vpack.c.bf16 %v62_v7, %v61_v6  ;;  %v14414_v10 = vld [vmem:[%s18625_s26 + $0x30] sm:$0xff]  ;;  %v14419_v11 = vld [vmem:[%s18625_s26 + $0x38] sm:$0xff]  ;;  %v12405_v12 = vpack.i.bf16 %v60_v5, %v59_v2  ;;  %v14428_v14 = vld [vmem:[%s18625_s26 + $0x40] sm:$0xff]  ;;  %v14490_v27 = vpack.c.bf16 %v60_v5, %v59_v2 }
   0xb   :  { %12401 = vrot.lane.b32.xlu0 %v12400_v3, %s14294_s27  ;;  %v12415_v13 = vpack.i.bf16 %v14419_v11, %v14414_v10  ;;  %v14433_v15 = vld [vmem:[%s18625_s26 + $0x48] sm:$0xff]  ;;  %v14438_v16 = vld [vmem:[%s18625_s26 + $0x50] sm:$0xff]  ;;  %v14443_v17 = vld [vmem:[%s18625_s26 + $0x58] sm:$0xff] }
   0xc   :  { %12411 = vrot.lane.b32.xlu1 %v12410_v8, %s14294_s27  ;;  %v12420_v18 = vpack.i.bf16 %v14433_v15, %v14428_v14  ;;  %v12425_v19 = vpack.i.bf16 %v14443_v17, %v14438_v16  ;;  %v14454_v20 = vld [vmem:[%s18625_s26 + $0x60] sm:$0xff]  ;;  %v14459_v21 = vld [vmem:[%s18625_s26 + $0x68] sm:$0xff]  ;;  %v14464_v22 = vld [vmem:[%s18625_s26 + $0x70] sm:$0xff] }
   0xd   :  { %v14469_v23 = vld [vmem:[%s18625_s26 + $0x78] sm:$0xff]  ;;  %v12430_v24 = vpack.i.bf16 %v14459_v21, %v14454_v20  ;;  %v12602_v26 = vld [vmem:[%s18626_s19 + $0x20] sm:$0xff]   ;;  %vm14573_vm5 = vmpackc.low %vm77_vm4, %vm77_vm4 }
   0xe   :  { %v12435_v25 = vpack.i.bf16 %v14469_v23, %v14464_v22  ;;  %11983 = vmatprep.mubr.bf16.mxu0 %v12602_v26  ;;  %vm14975_vm9 = vmpackc.low %vm1300_vm8, %vm1300_vm8 }
   0xf   :  { %12406 = vrot.lane.b32.xlu0 %v12405_v12, %s14294_s27 }
  0x10   :  { %12416 = vrot.lane.b32.xlu1 %v12415_v13, %s14294_s27 }
  0x13   :  { %12421 = vrot.lane.b32.xlu0 %v12420_v18, %s14294_s27 }
  0x14   :  { %12426 = vrot.lane.b32.xlu1 %v12425_v19, %s14294_s27 }
  0x17   :  { %12431 = vrot.lane.b32.xlu0 %v12430_v24, %s14294_s27 }
  0x18   :  { %12436 = vrot.lane.b32.xlu1 %v12435_v25, %s14294_s27 }
  0x1b   :  { %12441 = vrot.lane.b32.xlu0 %v12400_v3, %s14295_s30 }
  0x1c   :  { %12446 = vrot.lane.b32.xlu1 %v12405_v12, %s14295_s30 }
  0x1f   :  { %12451 = vrot.lane.b32.xlu0 %v12410_v8, %s14295_s30 }
  0x20   :  { %12456 = vrot.lane.b32.xlu1 %v12415_v13, %s14295_s30 }
  0x23   :  { %12461 = vrot.lane.b32.xlu0 %v12420_v18, %s14295_s30 }
  0x24   :  { %12466 = vrot.lane.b32.xlu1 %v12425_v19, %s14295_s30 }
  0x27   :  { %12471 = vrot.lane.b32.xlu0 %v12430_v24, %s14295_s30 }
  0x28   :  { %12476 = vrot.lane.b32.xlu1 %v12435_v25, %s14295_s30 }
  0x2b   :  { %595 = vperm.xlu0 %12480, %v585_v30  }
  0x2c   :  { %600 = vperm.xlu1 %12481, %v586_v29  }
  0x2f   :  { %610 = vperm.xlu0 %12480, %v588_v32  }
  0x30   :  { %605 = vperm.xlu1 %12481, %v587_v31  }
  0x33   :  { %620 = vperm.xlu0 %12480, %v590_v35  }
  0x34   :  { %615 = vperm.xlu1 %12481, %v589_v34  }
  0x37   :  { %630 = vperm.xlu0 %12480, %v592_v38  }
  0x38   :  { %625 = vperm.xlu1 %12481, %v591_v37  }
  0x7d   :  { %v12402_v40 = vpop.permute.xlu0 %12401 }
  0x7e   :  { %v12404_v41 = vunpack.i.h.bf16 %v12402_v40  ;;  %v12403_v42 = vunpack.i.l.bf16 %v12402_v40  ;;  %v12412_v43 = vpop.permute.xlu1 %12411 }
  0x7f   :  { %v12414_v44 = vunpack.i.h.bf16 %v12412_v43  ;;  %v12413_v45 = vunpack.i.l.bf16 %v12412_v43 }
  0x80   :  { %v242_v46 = vsel %vm241_vm0, 0.0, %v12403_v42  ;;  %v243_v47 = vsel %vm241_vm0, 0.0, %v12404_v41 }
  0x81   :  { %v12407_v49 = vpop.permute.xlu0 %12406  ;;  %v10498_v50 = vpack.c.bf16 %v243_v47, %v242_v46  ;;  %v247_v53 = vsel %vm241_vm0, 0.0, %v12414_v44  ;;  %v246_v54 = vsel %vm241_vm0, 0.0, %v12413_v45 }
  0x82   :  { %v12409_v51 = vunpack.i.h.bf16 %v12407_v49  ;;  %v12408_v52 = vunpack.i.l.bf16 %v12407_v49  ;;  %v12417_v55 = vpop.permute.xlu1 %12416  ;;  %v10504_v61 = vpack.c.bf16 %v247_v53, %v246_v54 }
  0x83   :  { %11967 = vmatprep.subr.msk.bf16.mxu0 %vm14522_vm2, %v10498_v50  ;;  %v12419_v56 = vunpack.i.h.bf16 %v12417_v55  ;;  %v12418_v57 = vunpack.i.l.bf16 %v12417_v55 }
  0x84   :  { %v245_v58 = vsel %vm241_vm0, 0.0, %v12409_v51  ;;  %v244_v59 = vsel %vm241_vm0, 0.0, %v12408_v52  ;;  %11968 = vmatpush3.bf16.msk.msra.mxu0 %vm14522_vm2, %v10498_v50  ;;  %v12645_v51 = vld [vmem:[%s18612_s9 + $0x38] sm:$0xff]  }
  0x85   :  { %v10501_v60 = vpack.c.bf16 %v245_v58, %v244_v59  ;;  %v12422_v62 = vpop.permute.xlu0 %12421  ;;  %v249_v63 = vsel %vm241_vm0, 0.0, %v12419_v56  ;;  %v248_v0 = vsel %vm241_vm0, 0.0, %v12418_v57  ;;  %v12603_v56 = vld [vmem:[%s18626_s19 + $0x28] sm:$0xff]   ;;  %v12604_v58 = vld [vmem:[%s18626_s19 + $0x30] sm:$0xff]  }
  0x86   :  { %v12424_v1 = vunpack.i.h.bf16 %v12422_v62  ;;  %v12423_v2 = vunpack.i.l.bf16 %v12422_v62  ;;  %v12427_v3 = vpop.permute.xlu1 %12426  ;;  %v10507_v5 = vpack.c.bf16 %v249_v63, %v248_v0 }
  0x87   :  { %11969 = vmatprep.subr.msk.bf16.mxu0 %vm14522_vm2, %v10501_v60  ;;  %v12429_v8 = vunpack.i.h.bf16 %v12427_v3  ;;  %v12428_v12 = vunpack.i.l.bf16 %v12427_v3 }
  0x88   :  { %11970 = vmatpush3.bf16.msk.msra.mxu0 %vm14522_vm2, %v10501_v60  ;;  %v251_v6 = vsel %vm241_vm0, 0.0, %v12424_v1  ;;  %v250_v7 = vsel %vm241_vm0, 0.0, %v12423_v2 }
  0x89   :  { %11971 = vmatprep.subr.msk.bf16.mxu0 %vm14522_vm2, %v10504_v61  ;;  %v12432_v13 = vpop.permute.xlu0 %12431  ;;  %v10510_v18 = vpack.c.bf16 %v251_v6, %v250_v7  ;;  %v253_v19 = vsel %vm241_vm0, 0.0, %v12429_v8  ;;  %v252_v24 = vsel %vm241_vm0, 0.0, %v12428_v12  ;;  %v12605_v8 = vld [vmem:[%s18626_s19 + $0x38] sm:$0xff]   ;;  %v12606_v12 = vld [vmem:[%s18626_s19] sm:$0xff]  }
  0x8a   :  { %v12434_v25 = vunpack.i.h.bf16 %v12432_v13  ;;  %v12433_v26 = vunpack.i.l.bf16 %v12432_v13  ;;  %v12437_v28 = vpop.permute.xlu1 %12436  ;;  %v10513_v29 = vpack.c.bf16 %v253_v19, %v252_v24 }
  0x8b   :  { %v12439_v32 = vunpack.i.h.bf16 %v12437_v28  ;;  %v12438_v34 = vunpack.i.l.bf16 %v12437_v28 }
  0x8c   :  { %11972 = vmatpush3.bf16.msk.msra.mxu0 %vm14522_vm2, %v10504_v61  ;;  %v255_v30 = vsel %vm241_vm0, 0.0, %v12434_v25  ;;  %v254_v31 = vsel %vm241_vm0, 0.0, %v12433_v26 }
  0x8d   :  { %11973 = vmatprep.subr.msk.bf16.mxu0 %vm14522_vm2, %v10507_v5  ;;  %v12442_v35 = vpop.permute.xlu0 %12441  ;;  %v10516_v36 = vpack.c.bf16 %v255_v30, %v254_v31  ;;  %v257_v37 = vsel %vm241_vm0, 0.0, %v12439_v32  ;;  %v256_v38 = vsel %vm241_vm0, 0.0, %v12438_v34 }
  0x8e   :  { %v12444_v40 = vunpack.i.h.bf16 %v12442_v35  ;;  %v12443_v41 = vunpack.i.l.bf16 %v12442_v35  ;;  %v12447_v42 = vpop.permute.xlu1 %12446  ;;  %v10519_v43 = vpack.c.bf16 %v257_v37, %v256_v38 }
  0x8f   :  { %v12449_v46 = vunpack.i.h.bf16 %v12447_v42  ;;  %v12448_v47 = vunpack.i.l.bf16 %v12447_v42 }
  0x90   :  { %11974 = vmatpush3.bf16.msk.msra.mxu0 %vm14522_vm2, %v10507_v5  ;;  %v144_v44 = vsel %vm142_vm3, 0.0, %v12444_v40  ;;  %v143_v45 = vsel %vm142_vm3, 0.0, %v12443_v41 }
  0x91   :  { %11975 = vmatprep.subr.msk.bf16.mxu0 %vm14522_vm2, %v10510_v18  ;;  %v12452_v49 = vpop.permute.xlu0 %12451  ;;  %v10526_v50 = vpack.c.bf16 %v144_v44, %v143_v45  ;;  %v146_v52 = vsel %vm142_vm3, 0.0, %v12449_v46  ;;  %v145_v53 = vsel %vm142_vm3, 0.0, %v12448_v47  ;;  %v12607_v45 = vld [vmem:[%s18626_s19 + $0x8] sm:$0xff]   ;;  %v12608_v46 = vld [vmem:[%s18626_s19 + $0x10] sm:$0xff]   ;;  %v12609_v47 = vld [vmem:[%s18626_s19 + $0x18] sm:$0xff]  }
  0x92   :  { %v12454_v54 = vunpack.i.h.bf16 %v12452_v49  ;;  %v12453_v55 = vunpack.i.l.bf16 %v12452_v49  ;;  %v12457_v57 = vpop.permute.xlu1 %12456  ;;  %v10529_v59 = vpack.c.bf16 %v146_v52, %v145_v53  ;;  %v12610_v49 = vld [vmem:[%s18626_s19 + $0x40] sm:$0xff]   ;;  %v14662_v52 = vpack.c.bf16 %v14433_v15, %v14428_v14  ;;  %v12611_v14 = vld [vmem:[%s18626_s19 + $0x48] sm:$0xff]   ;;  %v12612_v15 = vld [vmem:[%s18626_s19 + $0x50] sm:$0xff]  }
  0x93   :  { %v12459_v62 = vunpack.i.h.bf16 %v12457_v57  ;;  %v12458_v63 = vunpack.i.l.bf16 %v12457_v57  ;;  %v14668_v53 = vpack.c.bf16 %v14443_v17, %v14438_v16  ;;  %v12613_v16 = vld [vmem:[%s18626_s19 + $0x58] sm:$0xff]   ;;  %s14297_s19 = smov 4  }
  0x94   :  { %11976 = vmatpush3.bf16.msk.msra.mxu0 %vm14522_vm2, %v10510_v18  ;;  %v148_v60 = vsel %vm142_vm3, 0.0, %v12454_v54  ;;  %v147_v61 = vsel %vm142_vm3, 0.0, %v12453_v55 }
  0x95   :  { %11977 = vmatprep.subr.msk.bf16.mxu0 %vm14522_vm2, %v10513_v29  ;;  %v12462_v0 = vpop.permute.xlu0 %12461  ;;  %v10532_v1 = vpack.c.bf16 %v148_v60, %v147_v61  ;;  %v150_v2 = vsel %vm142_vm3, 0.0, %v12459_v62  ;;  %v149_v3 = vsel %vm142_vm3, 0.0, %v12458_v63 }
  0x96   :  { %v12464_v5 = vunpack.i.h.bf16 %v12462_v0  ;;  %v12463_v6 = vunpack.i.l.bf16 %v12462_v0  ;;  %v12467_v7 = vpop.permute.xlu1 %12466  ;;  %v10535_v13 = vpack.c.bf16 %v150_v2, %v149_v3 }
  0x97   :  { %v12469_v24 = vunpack.i.h.bf16 %v12467_v7  ;;  %v12468_v25 = vunpack.i.l.bf16 %v12467_v7 }
  0x98   :  { %11978 = vmatpush3.bf16.msk.msra.mxu0 %vm14522_vm2, %v10513_v29  ;;  %v152_v18 = vsel %vm142_vm3, 0.0, %v12464_v5  ;;  %v151_v19 = vsel %vm142_vm3, 0.0, %v12463_v6 }
  0x99   :  { %11979 = vmatprep.subr.msk.bf16.mxu0 %vm14522_vm2, %v10516_v36  ;;  %v12472_v26 = vpop.permute.xlu0 %12471  ;;  %v10538_v28 = vpack.c.bf16 %v152_v18, %v151_v19  ;;  %v154_v29 = vsel %vm142_vm3, 0.0, %v12469_v24  ;;  %v153_v30 = vsel %vm142_vm3, 0.0, %v12468_v25 }
  0x9a   :  { %v12474_v31 = vunpack.i.h.bf16 %v12472_v26  ;;  %v12473_v32 = vunpack.i.l.bf16 %v12472_v26  ;;  %v12477_v34 = vpop.permute.xlu1 %12476  ;;  %v10541_v35 = vpack.c.bf16 %v154_v29, %v153_v30 }
  0x9b   :  { %v12479_v38 = vunpack.i.h.bf16 %v12477_v34  ;;  %v12478_v40 = vunpack.i.l.bf16 %v12477_v34 }
  0x9c   :  { %11980 = vmatpush3.bf16.msk.msra.mxu0 %vm14522_vm2, %v10516_v36  ;;  %v156_v36 = vsel %vm142_vm3, 0.0, %v12474_v31  ;;  %v155_v37 = vsel %vm142_vm3, 0.0, %v12473_v32 }
  0x9d   :  { %11981 = vmatprep.subr.msk.bf16.mxu0 %vm14522_vm2, %v10519_v43  ;;  %v10544_v41 = vpack.c.bf16 %v156_v36, %v155_v37  ;;  %v158_v42 = vsel %vm142_vm3, 0.0, %v12479_v38  ;;  %v12614_v36 = vld [vmem:[%s18606_s3 + $0x20] sm:$0xff]  }
  0x9e   :  { %12047 = vmatprep.mubr.msk.bf16.mxu1 %vm782_vm6, %v12614_v36 }
  0xa0   :  { %11982 = vmatpush3.bf16.msk.msra.mxu0 %vm14522_vm2, %v10519_v43  ;;  %v157_v43 = vsel %vm142_vm3, 0.0, %v12478_v40 }
  0xa1   :  { %11991 = vmatprep.subr.msk.bf16.mxu0 %vm14573_vm5, %v10526_v50  ;;  %v10547_v44 = vpack.c.bf16 %v158_v42, %v157_v43  ;;  %v1075_v42 = vld [vmem:[%s18607_s4] sm:$0xff]  ;;  %v1148_v43 = vld [vmem:[%s18608_s6 + $0x8] sm:$0xff] }
  0xa3   :  { %11984 = vmatmul.mubr.bf16.vlgmr.msra.gmra.mrb[0].mxu0 %v12603_v56 }
  0xa4   :  { %11992 = vmatpush3.bf16.msk.msra.mxu0 %vm14573_vm5, %v10526_v50  ;;  %11987 = vmatprep.mubr.bf16.mxu0 %v12604_v58  ;;  %v14656_v50 = vpack.c.bf16 %v14419_v11, %v14414_v10  ;;  %v14674_v10 = vpack.c.bf16 %v14459_v21, %v14454_v20  ;;  %v14680_v11 = vpack.c.bf16 %v14469_v23, %v14464_v22 }
  0xa5   :  { %11993 = vmatprep.subr.msk.bf16.mxu0 %vm14573_vm5, %v10529_v59 }
  0xa8   :  { %11994 = vmatpush3.bf16.msk.msra.mxu0 %vm14573_vm5, %v10529_v59 }
  0xa9   :  { %11995 = vmatprep.subr.msk.bf16.mxu0 %vm14573_vm5, %v10532_v1 }
  0xaa   :  { %v596_v20 = vpop.permute.xlu0 %595 }
  0xab   :  { %11988 = vmatmul.mubr.bf16.gmra.mrb[4].mxu0 %v12605_v8  ;;  %v601_v17 = vpop.permute.xlu1 %600 }
  0xac   :  { %11996 = vmatpush3.bf16.msk.msra.mxu0 %vm14573_vm5, %v10532_v1  ;;  %12007 = vmatprep.mubr.bf16.mxu0 %v12606_v12 }
  0xad   :  { %11997 = vmatprep.subr.msk.bf16.mxu0 %vm14573_vm5, %v10535_v13 }
  0xae   :  { %v611_v22 = vpop.permute.xlu0 %610 }
  0xaf   :  { %v606_v21 = vpop.permute.xlu1 %605 }
  0xb0   :  { %11998 = vmatpush3.bf16.msk.msra.mxu0 %vm14573_vm5, %v10535_v13 }
  0xb1   :  { %11999 = vmatprep.subr.msk.bf16.mxu0 %vm14573_vm5, %v10538_v28 }
  0xb2   :  { %v621_v61 = vpop.permute.xlu0 %620 }
  0xb3   :  { %v616_v56 = vpop.permute.xlu1 %615 }
  0xb4   :  { %12000 = vmatpush3.bf16.msk.msra.mxu0 %vm14573_vm5, %v10538_v28 }
  0xb5   :  { %12001 = vmatprep.subr.msk.bf16.mxu0 %vm14573_vm5, %v10541_v35 }
  0xb6   :  { %v631_v19 = vpop.permute.xlu0 %630 }
  0xb7   :  { %v626_v6 = vpop.permute.xlu1 %625 }
  0xb8   :  { %12002 = vmatpush3.bf16.msk.msra.mxu0 %vm14573_vm5, %v10541_v35 }
  0xb9   :  { %12003 = vmatprep.subr.msk.bf16.mxu0 %vm14573_vm5, %v10544_v41 }
  0xbc   :  { %12004 = vmatpush3.bf16.msk.msra.mxu0 %vm14573_vm5, %v10544_v41  ;;  %v1076_v41 = vld [vmem:[%s18607_s4 + $0x8] sm:$0xff] }
  0xbd   :  { %12005 = vmatprep.subr.msk.bf16.mxu0 %vm14573_vm5, %v10547_v44 }
  0xc0   :  { %12006 = vmatpush3.bf16.msk.msra.mxu0 %vm14573_vm5, %v10547_v44  ;;  %v1147_v44 = vld [vmem:[%s18608_s6] sm:$0xff] }
  0xc1   :  { %12015 = vmatprep.subr.bf16.mxu0 %v14398_v4 }
  0xc3   :  { %12008 = vmatmul.mubr.bf16.vlgmr.msra.gmra.mrb[0].mxu0 %v12607_v45  ;;  %v1078_v45 = vld [vmem:[%s18607_s4 + $0x18] sm:$0xff] }
  0xc4   :  { %12016 = vmatpush3.bf16.msra.mxu0 %v14398_v4  ;;  %12011 = vmatprep.mubr.bf16.mxu0 %v12608_v46  ;;  %v1077_v46 = vld [vmem:[%s18607_s4 + $0x10] sm:$0xff] }
  0xc5   :  { %12017 = vmatprep.subr.bf16.mxu0 %v14490_v27 }
  0xc8   :  { %12018 = vmatpush3.bf16.msra.mxu0 %v14490_v27 }
  0xc9   :  { %12019 = vmatprep.subr.bf16.mxu0 %v14409_v9 }
  0xcb   :  { %12012 = vmatmul.mubr.bf16.gmra.mrb[4].mxu0 %v12609_v47  ;;  %v1150_v47 = vld [vmem:[%s18608_s6 + $0x18] sm:$0xff] }
  0xcc   :  { %12020 = vmatpush3.bf16.msra.mxu0 %v14409_v9  ;;  %12031 = vmatprep.mubr.bf16.mxu0 %v12610_v49  ;;  %v1149_v49 = vld [vmem:[%s18608_s6 + $0x10] sm:$0xff] }
  0xcd   :  { %12021 = vmatprep.subr.bf16.mxu0 %v14656_v50 }
  0xd0   :  { %12022 = vmatpush3.bf16.msra.mxu0 %v14656_v50 }
  0xd1   :  { %12023 = vmatprep.subr.bf16.mxu0 %v14662_v52 }
  0xd4   :  { %12024 = vmatpush3.bf16.msra.mxu0 %v14662_v52 }
  0xd5   :  { %12025 = vmatprep.subr.bf16.mxu0 %v14668_v53 }
  0xd8   :  { %12026 = vmatpush3.bf16.msra.mxu0 %v14668_v53 }
  0xd9   :  { %12027 = vmatprep.subr.bf16.mxu0 %v14674_v10 }
  0xdc   :  { %12028 = vmatpush3.bf16.msra.mxu0 %v14674_v10 }
  0xdd   :  { %12029 = vmatprep.subr.bf16.mxu0 %v14680_v11 }
  0xe0   :  { %12030 = vmatpush3.bf16.msra.mxu0 %v14680_v11 }
  0xe3   :  { %12032 = vmatmul.mubr.bf16.vlgmr.msra.gmra.mrb[0].mxu0 %v12611_v14  ;;  %v1080_v14 = vld [vmem:[%s18607_s4 + $0x28] sm:$0xff] }
  0xe4   :  { %12035 = vmatprep.mubr.bf16.mxu0 %v12612_v15  ;;  %v1079_v15 = vld [vmem:[%s18607_s4 + $0x20] sm:$0xff] }
  0xeb   :  { %12036 = vmatmul.mubr.bf16.gmra.mrb[4].mxu0 %v12613_v16  ;;  %v1152_v16 = vld [vmem:[%s18608_s6 + $0x28] sm:$0xff] }
 0x1b6   :  { %v12033_v23 = vpop.f32.mrb[0].mxu0 }
 0x1b7   :  { %v635_v54 = vadd.f32 %v12033_v23, %v606_v21  ;;  %v546_v55 = vpop.f32.mrb[1].mxu0  ;;  %v1081_v21 = vld [vmem:[%s18607_s4 + $0x30] sm:$0xff] }
 0x1b8   :  { %v633_v57 = vadd.f32 %v596_v20, %v546_v55  ;;  %v12034_v58 = vpop.f32.mrb[2].mxu0  ;;  %v1082_v20 = vld [vmem:[%s18607_s4 + $0x38] sm:$0xff]  ;;  %v1153_v23 = vld [vmem:[%s18608_s6 + $0x30] sm:$0xff] }
 0x1b9   :  { %v636_v59 = vadd.f32 %v12034_v58, %v611_v22  ;;  %v549_v60 = vpop.f32.mrb[3].mxu0  ;;  %v643_v63 = vmax.f32 %v635_v54, 0.0  ;;  %v1154_v22 = vld [vmem:[%s18608_s6 + $0x38] sm:$0xff] }
 0x1ba   :  { %v634_v62 = vadd.f32 %v601_v17, %v549_v60  ;;  %v641_v1 = vmax.f32 %v633_v57, 0.0  ;;  %v1151_v17 = vld [vmem:[%s18608_s6 + $0x20] sm:$0xff] }
 0x1bb   :  { %v644_v0 = vmax.f32 %v636_v59, 0.0 }
 0x1bc   :  { %v642_v2 = vmax.f32 %v634_v62, 0.0 }
 0x1bd   :  { %v12487_v3 = vpack.i.bf16 %v644_v0, %v643_v63  ;;  %v14694_v5 = vpack.c.bf16 %v644_v0, %v643_v63 }
 0x1be   :  { %v12037_v7 = vpop.f32.mrb[4].mxu0  ;;  %v12482_v8 = vpack.i.bf16 %v642_v2, %v641_v1  ;;  %v14696_v12 = vpack.c.bf16 %v642_v2, %v641_v1 }
 0x1bf   :  { %v639_v13 = vadd.f32 %v12037_v7, %v626_v6  ;;  %12488 = vrot.lane.b32.xlu0 %v12487_v3, %s14294_s27  ;;  %v562_v18 = vpop.f32.mrb[5].mxu0 }
 0x1c0   :  { %v637_v24 = vadd.f32 %v616_v56, %v562_v18  ;;  %12483 = vrot.lane.b32.xlu1 %v12482_v8, %s14294_s27  ;;  %v12038_v25 = vpop.f32.mrb[6].mxu0 }
 0x1c1   :  { %v640_v26 = vadd.f32 %v12038_v25, %v631_v19  ;;  %v565_v28 = vpop.f32.mrb[7].mxu0  ;;  %v647_v30 = vmax.f32 %v639_v13, 0.0 }
 0x1c2   :  { %v638_v29 = vadd.f32 %v621_v61, %v565_v28  ;;  %v645_v32 = vmax.f32 %v637_v24, 0.0 }
 0x1c3   :  { %v648_v31 = vmax.f32 %v640_v26, 0.0 }
 0x1c4   :  { %v646_v34 = vmax.f32 %v638_v29, 0.0 }
 0x1c5   :  { %v12497_v35 = vpack.i.bf16 %v648_v31, %v647_v30  ;;  %v14703_v37 = vpack.c.bf16 %v648_v31, %v647_v30 }
 0x1c6   :  { %v12492_v38 = vpack.i.bf16 %v646_v34, %v645_v32  ;;  %v14705_v40 = vpack.c.bf16 %v646_v34, %v645_v32 }
 0x1c7   :  { %12498 = vrot.lane.b32.xlu0 %v12497_v35, %s14294_s27 }
 0x1c8   :  { %12493 = vrot.lane.b32.xlu1 %v12492_v38, %s14294_s27 }
 0x1cb   :  { %12508 = vrot.lane.b32.xlu0 %v12487_v3, %s14295_s30 }
 0x1cc   :  { %12503 = vrot.lane.b32.xlu1 %v12482_v8, %s14295_s30 }
 0x1cf   :  { %12518 = vrot.lane.b32.xlu0 %v12497_v35, %s14295_s30 }
 0x1d0   :  { %12513 = vrot.lane.b32.xlu1 %v12492_v38, %s14295_s30 }
 0x1d3   :  { %1090 = vperm.xlu0 %12480, %v1076_v41  }
 0x1d4   :  { %1085 = vperm.xlu1 %12481, %v1075_v42  }
 0x1d7   :  { %1162 = vperm.xlu0 %12480, %v1148_v43   ;;  %v12615_v43 = vld [vmem:[%s18606_s3 + $0x28] sm:$0xff]  }
 0x1d8   :  { %1157 = vperm.xlu1 %12481, %v1147_v44  }
 0x1db   :  { %1100 = vperm.xlu0 %12480, %v1078_v45  }
 0x1dc   :  { %1095 = vperm.xlu1 %12481, %v1077_v46  }
 0x1df   :  { %1172 = vperm.xlu0 %12480, %v1150_v47  }
 0x1e0   :  { %1167 = vperm.xlu1 %12481, %v1149_v49   ;;  %v12616_v49 = vld [vmem:[%s18606_s3 + $0x30] sm:$0xff]  }
 0x1e3   :  { %1110 = vperm.xlu0 %12480, %v1080_v14  }
 0x1e4   :  { %1105 = vperm.xlu1 %12481, %v1079_v15  }
 0x1e7   :  { %1182 = vperm.xlu0 %12480, %v1152_v16  }
 0x1e8   :  { %1177 = vperm.xlu1 %12481, %v1151_v17  }
 0x1eb   :  { %1120 = vperm.xlu0 %12480, %v1082_v20  }
 0x1ec   :  { %1115 = vperm.xlu1 %12481, %v1081_v21  }
 0x1ef   :  { %1192 = vperm.xlu0 %12480, %v1154_v22   ;;  %v12617_v22 = vld [vmem:[%s18606_s3 + $0x38] sm:$0xff]  }
 0x1f0   :  { %1187 = vperm.xlu1 %12481, %v1153_v23  }
 0x231   :  { %v12489_v54 = vpop.permute.xlu0 %12488 }
 0x232   :  { %v12491_v55 = vunpack.i.h.bf16 %v12489_v54  ;;  %v12490_v56 = vunpack.i.l.bf16 %v12489_v54  ;;  %v12484_v57 = vpop.permute.xlu1 %12483 }
 0x233   :  { %v12486_v58 = vunpack.i.h.bf16 %v12484_v57  ;;  %v12485_v59 = vunpack.i.l.bf16 %v12484_v57  ;;  %v12619_v57 = vld [vmem:[%s18606_s3 + $0x8] sm:$0xff]  }
 0x234   :  { %v736_v60 = vsel %vm241_vm0, 0.0, %v12491_v55  ;;  %v735_v61 = vsel %vm241_vm0, 0.0, %v12490_v56  ;;  %v12618_v55 = vld [vmem:[%s18606_s3] sm:$0xff]  }
 0x235   :  { %v733_v62 = vsel %vm241_vm0, 0.0, %v12485_v59  ;;  %v734_v63 = vsel %vm241_vm0, 0.0, %v12486_v58  ;;  %v10577_v1 = vpack.c.bf16 %v736_v60, %v735_v61  ;;  %v12620_v58 = vld [vmem:[%s18606_s3 + $0x10] sm:$0xff]   ;;  %v12621_v59 = vld [vmem:[%s18606_s3 + $0x18] sm:$0xff]   ;;  %v12622_v60 = vld [vmem:[%s18606_s3 + $0x40] sm:$0xff]  }
 0x236   :  { %v10574_v0 = vpack.c.bf16 %v734_v63, %v733_v62 }
 0x238   :  { %12039 = vmatprep.subr.msk.bf16.mxu1 %vm14522_vm2, %v10574_v0 }
 0x239   :  { %12040 = vmatpush3.bf16.msk.msra.mxu1 %vm14522_vm2, %v10574_v0  ;;  %v12499_v2 = vpop.permute.xlu0 %12498 }
 0x23a   :  { %v12501_v3 = vunpack.i.h.bf16 %v12499_v2  ;;  %v12500_v6 = vunpack.i.l.bf16 %v12499_v2  ;;  %12041 = vmatprep.subr.msk.bf16.mxu1 %vm14522_vm2, %v10577_v1  ;;  %v12494_v7 = vpop.permute.xlu1 %12493 }
 0x23b   :  { %v12496_v8 = vunpack.i.h.bf16 %v12494_v7  ;;  %v12495_v13 = vunpack.i.l.bf16 %v12494_v7 }
 0x23c   :  { %v740_v18 = vsel %vm241_vm0, 0.0, %v12501_v3  ;;  %v739_v19 = vsel %vm241_vm0, 0.0, %v12500_v6 }
 0x23d   :  { %v738_v24 = vsel %vm241_vm0, 0.0, %v12496_v8  ;;  %v737_v25 = vsel %vm241_vm0, 0.0, %v12495_v13  ;;  %12042 = vmatpush3.bf16.msk.msra.mxu1 %vm14522_vm2, %v10577_v1  ;;  %v12509_v28 = vpop.permute.xlu0 %12508  ;;  %v10583_v32 = vpack.c.bf16 %v740_v18, %v739_v19 }
 0x23e   :  { %v10580_v26 = vpack.c.bf16 %v738_v24, %v737_v25  ;;  %v12504_v29 = vpop.permute.xlu1 %12503  ;;  %v12511_v34 = vunpack.i.h.bf16 %v12509_v28  ;;  %v12510_v35 = vunpack.i.l.bf16 %v12509_v28 }
 0x23f   :  { %v12506_v30 = vunpack.i.h.bf16 %v12504_v29  ;;  %v12505_v31 = vunpack.i.l.bf16 %v12504_v29 }
 0x240   :  { %12043 = vmatprep.subr.msk.bf16.mxu1 %vm14522_vm2, %v10580_v26  ;;  %v684_v44 = vsel %vm142_vm3, 0.0, %v12511_v34  ;;  %v683_v45 = vsel %vm142_vm3, 0.0, %v12510_v35 }
 0x241   :  { %v682_v36 = vsel %vm142_vm3, 0.0, %v12506_v30  ;;  %v681_v38 = vsel %vm142_vm3, 0.0, %v12505_v31  ;;  %12044 = vmatpush3.bf16.msk.msra.mxu1 %vm14522_vm2, %v10580_v26  ;;  %v12519_v14 = vpop.permute.xlu0 %12518  ;;  %v10597_v15 = vpack.c.bf16 %v684_v44, %v683_v45 }
 0x242   :  { %v12514_v41 = vpop.permute.xlu1 %12513  ;;  %12045 = vmatprep.subr.msk.bf16.mxu1 %vm14522_vm2, %v10583_v32  ;;  %v10594_v42 = vpack.c.bf16 %v682_v36, %v681_v38  ;;  %v12521_v16 = vunpack.i.h.bf16 %v12519_v14  ;;  %v12520_v17 = vunpack.i.l.bf16 %v12519_v14 }
 0x243   :  { %v12516_v46 = vunpack.i.h.bf16 %v12514_v41  ;;  %v12515_v47 = vunpack.i.l.bf16 %v12514_v41 }
 0x244   :  { %v688_v23 = vsel %vm142_vm3, 0.0, %v12521_v16  ;;  %v687_v54 = vsel %vm142_vm3, 0.0, %v12520_v17 }
 0x245   :  { %12046 = vmatpush3.bf16.msk.msra.mxu1 %vm14522_vm2, %v10583_v32  ;;  %v686_v20 = vsel %vm142_vm3, 0.0, %v12516_v46  ;;  %v685_v21 = vsel %vm142_vm3, 0.0, %v12515_v47  ;;  %v10603_v56 = vpack.c.bf16 %v688_v23, %v687_v54 }
 0x246   :  { %12055 = vmatprep.subr.msk.bf16.mxu1 %vm14573_vm5, %v10594_v42  ;;  %v10600_v48 = vpack.c.bf16 %v686_v20, %v685_v21 }
 0x248   :  { %12048 = vmatmul.mubr.msk.bf16.vlgmr.msra.gmra.mrb[0].mxu1 %vm782_vm6, %v12615_v43 }
 0x249   :  { %12056 = vmatpush3.bf16.msk.msra.mxu1 %vm14573_vm5, %v10594_v42  ;;  %12051 = vmatprep.mubr.msk.bf16.mxu1 %vm782_vm6, %v12616_v49 }
 0x24a   :  { %12057 = vmatprep.subr.msk.bf16.mxu1 %vm14573_vm5, %v10597_v15 }
 0x24d   :  { %12058 = vmatpush3.bf16.msk.msra.mxu1 %vm14573_vm5, %v10597_v15 }
 0x24e   :  { %12059 = vmatprep.subr.msk.bf16.mxu1 %vm14573_vm5, %v10600_v48 }
 0x250   :  { %12052 = vmatmul.mubr.msk.bf16.gmra.mrb[4].mxu1 %vm782_vm6, %v12617_v22 }
 0x251   :  { %12060 = vmatpush3.bf16.msk.msra.mxu1 %vm14573_vm5, %v10600_v48  ;;  %12063 = vmatprep.mubr.msk.bf16.mxu1 %vm782_vm6, %v12618_v55 }
 0x252   :  { %12061 = vmatprep.subr.msk.bf16.mxu1 %vm14573_vm5, %v10603_v56 }
 0x255   :  { %12062 = vmatpush3.bf16.msk.msra.mxu1 %vm14573_vm5, %v10603_v56 }
 0x256   :  { %12071 = vmatprep.subr.bf16.mxu1 %v14696_v12 }
 0x258   :  { %12064 = vmatmul.mubr.msk.bf16.vlgmr.msra.gmra.mrb[0].mxu1 %vm782_vm6, %v12619_v57 }
 0x259   :  { %12072 = vmatpush3.bf16.msra.mxu1 %v14696_v12  ;;  %12067 = vmatprep.mubr.msk.bf16.mxu1 %vm782_vm6, %v12620_v58  ;;  %v12623_v12 = vld [vmem:[%s18606_s3 + $0x48] sm:$0xff]  }
 0x25a   :  { %12073 = vmatprep.subr.bf16.mxu1 %v14694_v5 }
 0x25d   :  { %12074 = vmatpush3.bf16.msra.mxu1 %v14694_v5  ;;  %v12624_v5 = vld [vmem:[%s18606_s3 + $0x50] sm:$0xff]  }
 0x25e   :  { %12075 = vmatprep.subr.bf16.mxu1 %v14705_v40 }
 0x260   :  { %12068 = vmatmul.mubr.msk.bf16.gmra.mrb[4].mxu1 %vm782_vm6, %v12621_v59 }
 0x261   :  { %12076 = vmatpush3.bf16.msra.mxu1 %v14705_v40  ;;  %12079 = vmatprep.mubr.msk.bf16.mxu1 %vm782_vm6, %v12622_v60  ;;  %v12625_v40 = vld [vmem:[%s18606_s3 + $0x58] sm:$0xff]  }
 0x262   :  { %12077 = vmatprep.subr.bf16.mxu1 %v14703_v37 }
 0x265   :  { %12078 = vmatpush3.bf16.msra.mxu1 %v14703_v37  ;;  %v12626_v37 = vld [vmem:[%s18609_s5] sm:$0xff]  }
 0x266   :  { %12087 = vmatprep.subr.bf16.mxu1 %v14398_v4 }
 0x268   :  { %12080 = vmatmul.mubr.msk.bf16.vlgmr.msra.gmra.mrb[0].mxu1 %vm782_vm6, %v12623_v12 }
 0x269   :  { %12088 = vmatpush3.bf16.msra.mxu1 %v14398_v4  ;;  %12083 = vmatprep.mubr.msk.bf16.mxu1 %vm782_vm6, %v12624_v5  ;;  %v12627_v4 = vld [vmem:[%s18609_s5 + $0x8] sm:$0xff]  }
 0x26a   :  { %12089 = vmatprep.subr.bf16.mxu1 %v14490_v27 }
 0x26d   :  { %12090 = vmatpush3.bf16.msra.mxu1 %v14490_v27  ;;  %v12629_v27 = vld [vmem:[%s18609_s5 + $0x18] sm:$0xff]  }
 0x26e   :  { %12091 = vmatprep.subr.bf16.mxu1 %v14409_v9 }
 0x270   :  { %12084 = vmatmul.mubr.msk.bf16.gmra.mrb[4].mxu1 %vm782_vm6, %v12625_v40 }
 0x271   :  { %12092 = vmatpush3.bf16.msra.mxu1 %v14409_v9  ;;  %12103 = vmatprep.mubr.bf16.mxu1 %v12626_v37  ;;  %v12628_v9 = vld [vmem:[%s18609_s5 + $0x10] sm:$0xff]  }
 0x272   :  { %12093 = vmatprep.subr.bf16.mxu1 %v14656_v50 }
 0x275   :  { %12094 = vmatpush3.bf16.msra.mxu1 %v14656_v50  ;;  %v1086_v50 = vpop.permute.xlu1 %1085 }
 0x276   :  { %12095 = vmatprep.subr.bf16.mxu1 %v14662_v52 }
 0x279   :  { %12096 = vmatpush3.bf16.msra.mxu1 %v14662_v52  ;;  %v1091_v52 = vpop.permute.xlu0 %1090  ;;  %v1158_v63 = vpop.permute.xlu1 %1157 }
 0x27a   :  { %12097 = vmatprep.subr.bf16.mxu1 %v14668_v53 }
 0x27d   :  { %12098 = vmatpush3.bf16.msra.mxu1 %v14668_v53  ;;  %v1163_v0 = vpop.permute.xlu0 %1162  ;;  %v1096_v2 = vpop.permute.xlu1 %1095 }
 0x27e   :  { %12099 = vmatprep.subr.bf16.mxu1 %v14674_v10 }
 0x281   :  { %12100 = vmatpush3.bf16.msra.mxu1 %v14674_v10  ;;  %v1101_v7 = vpop.permute.xlu0 %1100  ;;  %v1168_v8 = vpop.permute.xlu1 %1167 }
 0x282   :  { %12101 = vmatprep.subr.bf16.mxu1 %v14680_v11 }
 0x285   :  { %12102 = vmatpush3.bf16.msra.mxu1 %v14680_v11  ;;  %v1173_v13 = vpop.permute.xlu0 %1172  ;;  %v1106_v18 = vpop.permute.xlu1 %1105 }
 0x288   :  { %12104 = vmatmul.mubr.bf16.vlgmr.msra.gmra.mrb[8].mxu1 %v12627_v4 }
 0x289   :  { %12107 = vmatprep.mubr.bf16.mxu1 %v12628_v9  ;;  %v1111_v19 = vpop.permute.xlu0 %1110  ;;  %v1178_v24 = vpop.permute.xlu1 %1177 }
 0x28d   :  { %v1183_v26 = vpop.permute.xlu0 %1182  ;;  %v1116_v36 = vpop.permute.xlu1 %1115 }
 0x290   :  { %12108 = vmatmul.mubr.bf16.gmra.mrb[12].mxu1 %v12629_v27 }
 0x291   :  { %v1121_v47 = vpop.permute.xlu0 %1120  ;;  %v1188_v54 = vpop.permute.xlu1 %1187 }
 0x295   :  { %v1193_v40 = vpop.permute.xlu0 %1192 }
 0x33b   :  { %v12081_v53 = vpop.f32.mrb[0].mxu1 }
 0x33c   :  { %v1036_v10 = vpop.f32.mrb[1].mxu1  ;;  %v1125_v25 = vadd.f32 %v12081_v53, %v1096_v2 }
 0x33d   :  { %v12082_v61 = vpop.f32.mrb[2].mxu1  ;;  %v1123_v28 = vadd.f32 %v1086_v50, %v1036_v10 }
 0x33e   :  { %v1039_v62 = vpop.f32.mrb[3].mxu1  ;;  %v1126_v29 = vadd.f32 %v12082_v61, %v1101_v7  ;;  %v1133_v32 = vmax.f32 %v1125_v25, 0.0  ;;  %v1731_v25 = vld [vmem:[%s18611_s8 + $0x10] sm:$0xff] }
 0x33f   :  { %v1124_v30 = vadd.f32 %v1091_v52, %v1039_v62  ;;  %v1131_v38 = vmax.f32 %v1123_v28, 0.0  ;;  %v1733_v28 = vld [vmem:[%s18611_s8 + $0x20] sm:$0xff] }
 0x340   :  { %v1134_v43 = vmax.f32 %v1126_v29, 0.0  ;;  %v1736_v29 = vld [vmem:[%s18611_s8 + $0x38] sm:$0xff] }
 0x341   :  { %v1132_v49 = vmax.f32 %v1124_v30, 0.0  ;;  %v1735_v30 = vld [vmem:[%s18611_s8 + $0x30] sm:$0xff] }
 0x343   :  { %v12085_v11 = vpop.f32.mrb[4].mxu1 }
 0x344   :  { %v1052_v1 = vpop.f32.mrb[5].mxu1  ;;  %v1129_v16 = vadd.f32 %v12085_v11, %v1116_v36 }
 0x345   :  { %v12086_v3 = vpop.f32.mrb[6].mxu1  ;;  %v1127_v20 = vadd.f32 %v1106_v18, %v1052_v1  ;;  %v1730_v18 = vld [vmem:[%s18611_s8 + $0x8] sm:$0xff] }
 0x346   :  { %v1055_v6 = vpop.f32.mrb[7].mxu1  ;;  %v1130_v48 = vadd.f32 %v12086_v3, %v1121_v47  ;;  %v1137_v59 = vmax.f32 %v1129_v16, 0.0 }
 0x347   :  { %v1128_v55 = vadd.f32 %v1111_v19, %v1055_v6  ;;  %v1135_v37 = vmax.f32 %v1127_v20, 0.0  ;;  %v1729_v19 = vld [vmem:[%s18611_s8] sm:$0xff] }
 0x348   :  { %v1138_v50 = vmax.f32 %v1130_v48, 0.0 }
 0x349   :  { %v1136_v61 = vmax.f32 %v1128_v55, 0.0 }
 0x35b   :  { %v12105_v31 = vpop.f32.mrb[8].mxu1 }
 0x35c   :  { %v1262_v34 = vadd.f32 %v12105_v31, %v1168_v8  ;;  %v1253_v35 = vpop.f32.mrb[9].mxu1 }
 0x35d   :  { %v1254_v41 = vadd.f32 %v1253_v35, %v1158_v63  ;;  %v12106_v42 = vpop.f32.mrb[10].mxu1 }
 0x35e   :  { %v1286_v44 = vadd.f32 %v1262_v34, %v1133_v32  ;;  %v1265_v45 = vadd.f32 %v12106_v42, %v1173_v13  ;;  %v1256_v46 = vpop.f32.mrb[11].mxu1  ;;  %v12630_v13 = vld [vmem:[%s18610_s7 + $0x20] sm:$0xff]  }
 0x35f   :  { %v1284_v14 = vadd.f32 %v1254_v41, %v1131_v38  ;;  %v1257_v15 = vadd.f32 %v1256_v46, %v1163_v0  ;;  %12119 = vmatprep.mubr.msk.bf16.mxu1 %vm782_vm6, %v12630_v13 }
 0x360   :  { %v1287_v17 = vadd.f32 %v1265_v45, %v1134_v43  ;;  %v14890_v22 = vmax.f32 %v1286_v44, 0.0 }
 0x361   :  { %v1285_v21 = vadd.f32 %v1257_v15, %v1132_v49  ;;  %v14894_v56 = vmax.f32 %v1284_v14, 0.0 }
 0x362   :  { %v14892_v23 = vmax.f32 %v1287_v17, 0.0 }
 0x363   :  { %v14896_v57 = vmax.f32 %v1285_v21, 0.0  ;;  %v12109_v58 = vpop.f32.mrb[12].mxu1 }
 0x364   :  { %v1278_v60 = vadd.f32 %v12109_v58, %v1188_v54  ;;  %v1269_v12 = vpop.f32.mrb[13].mxu1  ;;  %v12527_v5 = vpack.i.bf16 %v14892_v23, %v14890_v22 }
 0x365   :  { %v1270_v4 = vadd.f32 %v1269_v12, %v1178_v24  ;;  %v12110_v9 = vpop.f32.mrb[14].mxu1  ;;  %v12522_v27 = vpack.i.bf16 %v14896_v57, %v14894_v56  ;;  %v1732_v24 = vld [vmem:[%s18611_s8 + $0x18] sm:$0xff] }
 0x366   :  { %v1290_v52 = vadd.f32 %v1278_v60, %v1137_v59  ;;  %v1281_v53 = vadd.f32 %v12110_v9, %v1193_v40  ;;  %12528 = vrot.lane.b32.xlu0 %v12527_v5, %s14295_s30  ;;  %v1272_v10 = vpop.f32.mrb[15].mxu1 }
 0x367   :  { %v1288_v62 = vadd.f32 %v1270_v4, %v1135_v37  ;;  %v1273_v63 = vadd.f32 %v1272_v10, %v1183_v26  ;;  %12523 = vrot.lane.b32.xlu1 %v12522_v27, %s14295_s30  ;;  %v1734_v26 = vld [vmem:[%s18611_s8 + $0x28] sm:$0xff] }
 0x368   :  { %v1291_v0 = vadd.f32 %v1281_v53, %v1138_v50  ;;  %v14904_v1 = vmax.f32 %v1290_v52, 0.0  ;;  %v12656_v50 = vld [vmem:[%s18614_s11 + $0x4] ss:$8 sps:$4 sm:$0xff]  }
 0x369   :  { %v1289_v11 = vadd.f32 %v1273_v63, %v1136_v61  ;;  %v14908_v3 = vmax.f32 %v1288_v62, 0.0  ;;  %v12632_v63 = vld [vmem:[%s18610_s7 + $0x30] sm:$0xff]  }
 0x36a   :  { %v14906_v2 = vmax.f32 %v1291_v0, 0.0 }
 0x36b   :  { %v14910_v6 = vmax.f32 %v1289_v11, 0.0 }
 0x36c   :  { %v12537_v7 = vpack.i.bf16 %v14906_v2, %v14904_v1 }
 0x36d   :  { %v12532_v8 = vpack.i.bf16 %v14910_v6, %v14908_v3 }
 0x36e   :  { %12538 = vrot.lane.b32.xlu0 %v12537_v7, %s14295_s30 }
 0x36f   :  { %12533 = vrot.lane.b32.xlu1 %v12532_v8, %s14295_s30 }
 0x372   :  { %12548 = vrot.lane.b32.xlu0 %v12527_v5, %s14297_s19 }
 0x373   :  { %12543 = vrot.lane.b32.xlu1 %v12522_v27, %s14297_s19 }
 0x376   :  { %12558 = vrot.lane.b32.xlu0 %v12537_v7, %s14297_s19 }
 0x377   :  { %12553 = vrot.lane.b32.xlu1 %v12532_v8, %s14297_s19 }
 0x37a   :  { %1744 = vperm.xlu0 %12480, %v1730_v18  }
 0x37b   :  { %1739 = vperm.xlu1 %12481, %v1729_v19  }
 0x37e   :  { %1754 = vperm.xlu0 %12480, %v1732_v24   ;;  %v12633_v24 = vld [vmem:[%s18610_s7 + $0x38] sm:$0xff]  }
 0x37f   :  { %1749 = vperm.xlu1 %12481, %v1731_v25  }
 0x382   :  { %1764 = vperm.xlu0 %12480, %v1734_v26  }
 0x383   :  { %1759 = vperm.xlu1 %12481, %v1733_v28   ;;  %v12634_v28 = vld [vmem:[%s18610_s7] sm:$0xff]  }
 0x386   :  { %1774 = vperm.xlu0 %12480, %v1736_v29  }
 0x387   :  { %1769 = vperm.xlu1 %12481, %v1735_v30   ;;  %v1620_v30 = vpack.c.bf16 %v14896_v57, %v14894_v56 }
 0x3d8   :  { %v12529_v31 = vpop.permute.xlu0 %12528 }
 0x3d9   :  { %v12531_v32 = vunpack.i.h.bf16 %v12529_v31  ;;  %v12530_v34 = vunpack.i.l.bf16 %v12529_v31  ;;  %v12524_v35 = vpop.permute.xlu1 %12523  ;;  %v12635_v31 = vld [vmem:[%s18610_s7 + $0x8] sm:$0xff]  }
 0x3da   :  { %v12526_v36 = vunpack.i.h.bf16 %v12524_v35  ;;  %v12525_v38 = vunpack.i.l.bf16 %v12524_v35  ;;  %v1622_v35 = vpack.c.bf16 %v14910_v6, %v14908_v3 }
 0x3db   :  { %v1391_v41 = vsel %vm142_vm3, 0.0, %v12531_v32  ;;  %v1390_v42 = vsel %vm142_vm3, 0.0, %v12530_v34  ;;  %v12636_v32 = vld [vmem:[%s18610_s7 + $0x10] sm:$0xff]   ;;  %v1621_v34 = vpack.c.bf16 %v14892_v23, %v14890_v22 }
 0x3dc   :  { %v1389_v43 = vsel %vm142_vm3, 0.0, %v12526_v36  ;;  %v1388_v44 = vsel %vm142_vm3, 0.0, %v12525_v38  ;;  %v10645_v46 = vpack.c.bf16 %v1391_v41, %v1390_v42  ;;  %v12637_v36 = vld [vmem:[%s18610_s7 + $0x18] sm:$0xff]   ;;  %v12638_v38 = vld [vmem:[%s18610_s7 + $0x40] sm:$0xff]   ;;  %v1623_v41 = vpack.c.bf16 %v14906_v2, %v14904_v1  ;;  %v12639_v42 = vld [vmem:[%s18610_s7 + $0x48] sm:$0xff]  }
 0x3dd   :  { %v10642_v45 = vpack.c.bf16 %v1389_v43, %v1388_v44  ;;  %v12640_v43 = vld [vmem:[%s18610_s7 + $0x50] sm:$0xff]   ;;  %v12641_v44 = vld [vmem:[%s18610_s7 + $0x58] sm:$0xff]  }
 0x3df   :  { %12111 = vmatprep.subr.msk.bf16.mxu1 %vm14573_vm5, %v10642_v45 }
 0x3e0   :  { %v12539_v47 = vpop.permute.xlu0 %12538  ;;  %12112 = vmatpush3.bf16.msk.msra.mxu1 %vm14573_vm5, %v10642_v45 }
 0x3e1   :  { %v12541_v49 = vunpack.i.h.bf16 %v12539_v47  ;;  %v12540_v14 = vunpack.i.l.bf16 %v12539_v47  ;;  %12113 = vmatprep.subr.msk.bf16.mxu1 %vm14573_vm5, %v10645_v46  ;;  %v12534_v15 = vpop.permute.xlu1 %12533 }
 0x3e2   :  { %v12536_v16 = vunpack.i.h.bf16 %v12534_v15  ;;  %v12535_v17 = vunpack.i.l.bf16 %v12534_v15 }
 0x3e3   :  { %v1395_v20 = vsel %vm142_vm3, 0.0, %v12541_v49  ;;  %v1394_v21 = vsel %vm142_vm3, 0.0, %v12540_v14 }
 0x3e4   :  { %v1393_v48 = vsel %vm142_vm3, 0.0, %v12536_v16  ;;  %v1392_v54 = vsel %vm142_vm3, 0.0, %v12535_v17  ;;  %12114 = vmatpush3.bf16.msk.msra.mxu1 %vm14573_vm5, %v10645_v46  ;;  %v12549_v58 = vpop.permute.xlu0 %12548  ;;  %v10651_v5 = vpack.c.bf16 %v1395_v20, %v1394_v21 }
 0x3e5   :  { %v10648_v55 = vpack.c.bf16 %v1393_v48, %v1392_v54  ;;  %v12544_v59 = vpop.permute.xlu1 %12543  ;;  %v12551_v40 = vunpack.i.h.bf16 %v12549_v58  ;;  %v12550_v37 = vunpack.i.l.bf16 %v12549_v58 }
 0x3e6   :  { %v12546_v60 = vunpack.i.h.bf16 %v12544_v59  ;;  %v12545_v12 = vunpack.i.l.bf16 %v12544_v59 }
 0x3e7   :  { %12115 = vmatprep.subr.msk.bf16.mxu1 %vm14573_vm5, %v10648_v55  ;;  %v1337_v53 = vsel %vm1333_vm7, 0.0, %v12551_v40  ;;  %v1336_v10 = vsel %vm1333_vm7, 0.0, %v12550_v37 }
 0x3e8   :  { %v1335_v4 = vsel %vm1333_vm7, 0.0, %v12546_v60  ;;  %v1334_v9 = vsel %vm1333_vm7, 0.0, %v12545_v12  ;;  %12116 = vmatpush3.bf16.msk.msra.mxu1 %vm14573_vm5, %v10648_v55  ;;  %v12559_v0 = vpop.permute.xlu0 %12558  ;;  %v10665_v11 = vpack.c.bf16 %v1337_v53, %v1336_v10 }
 0x3e9   :  { %v12554_v27 = vpop.permute.xlu1 %12553  ;;  %12117 = vmatprep.subr.msk.bf16.mxu1 %vm14573_vm5, %v10651_v5  ;;  %v10662_v52 = vpack.c.bf16 %v1335_v4, %v1334_v9  ;;  %v12561_v7 = vunpack.i.h.bf16 %v12559_v0  ;;  %v12560_v8 = vunpack.i.l.bf16 %v12559_v0 }
 0x3ea   :  { %v12556_v61 = vunpack.i.h.bf16 %v12554_v27  ;;  %v12555_v62 = vunpack.i.l.bf16 %v12554_v27 }
 0x3eb   :  { %v1341_v25 = vsel %vm1333_vm7, 0.0, %v12561_v7  ;;  %v1340_v26 = vsel %vm1333_vm7, 0.0, %v12560_v8 }
 0x3ec   :  { %12118 = vmatpush3.bf16.msk.msra.mxu1 %vm14573_vm5, %v10651_v5  ;;  %v1339_v13 = vsel %vm1333_vm7, 0.0, %v12556_v61  ;;  %v1338_v18 = vsel %vm1333_vm7, 0.0, %v12555_v62  ;;  %v10671_v29 = vpack.c.bf16 %v1341_v25, %v1340_v26  ;;  %v12642_v26 = vld [vmem:[%s18612_s9 + $0x20] sm:$0xff]  }
 0x3ed   :  { %12127 = vmatprep.subr.msk.bf16.mxu1 %vm14975_vm9, %v10662_v52  ;;  %v10668_v19 = vpack.c.bf16 %v1339_v13, %v1338_v18  ;;  %12167 = vmatprep.mubr.msk.bf16.mxu0 %vm782_vm6, %v12642_v26 }
 0x3ef   :  { %12120 = vmatmul.mubr.msk.bf16.vlgmr.msra.gmra.mrb[16].mxu1 %vm782_vm6, %v12631_v39 }
 0x3f0   :  { %12128 = vmatpush3.bf16.msk.msra.mxu1 %vm14975_vm9, %v10662_v52  ;;  %12123 = vmatprep.mubr.msk.bf16.mxu1 %vm782_vm6, %v12632_v63 }
 0x3f1   :  { %12129 = vmatprep.subr.msk.bf16.mxu1 %vm14975_vm9, %v10665_v11 }
 0x3f4   :  { %12130 = vmatpush3.bf16.msk.msra.mxu1 %vm14975_vm9, %v10665_v11 }
 0x3f5   :  { %12131 = vmatprep.subr.msk.bf16.mxu1 %vm14975_vm9, %v10668_v19 }
 0x3f7   :  { %12124 = vmatmul.mubr.msk.bf16.gmra.mrb[20].mxu1 %vm782_vm6, %v12633_v24 }
 0x3f8   :  { %12132 = vmatpush3.bf16.msk.msra.mxu1 %vm14975_vm9, %v10668_v19  ;;  %12135 = vmatprep.mubr.msk.bf16.mxu1 %vm782_vm6, %v12634_v28 }
 0x3f9   :  { %12133 = vmatprep.subr.msk.bf16.mxu1 %vm14975_vm9, %v10671_v29  ;;  %v1745_v46 = vpop.permute.xlu0 %1744 }
 0x3fa   :  { %v1740_v45 = vpop.permute.xlu1 %1739 }
 0x3fc   :  { %12134 = vmatpush3.bf16.msk.msra.mxu1 %vm14975_vm9, %v10671_v29  ;;  %v2222_v29 = vld [vmem:[%s18613_s10 + $0x20] sm:$0xff] }
 0x3fd   :  { %12143 = vmatprep.subr.bf16.mxu1 %v1620_v30  ;;  %v1755_v49 = vpop.permute.xlu0 %1754 }
 0x3fe   :  { %v1750_v47 = vpop.permute.xlu1 %1749 }
 0x3ff   :  { %12136 = vmatmul.mubr.msk.bf16.vlgmr.msra.gmra.mrb[16].mxu1 %vm782_vm6, %v12635_v31  ;;  %v2223_v31 = vld [vmem:[%s18613_s10 + $0x28] sm:$0xff] }
 0x400   :  { %12144 = vmatpush3.bf16.msra.mxu1 %v1620_v30  ;;  %12139 = vmatprep.mubr.msk.bf16.mxu1 %vm782_vm6, %v12636_v32  ;;  %v2221_v30 = vld [vmem:[%s18613_s10 + $0x18] sm:$0xff]  ;;  %v2218_v32 = vld [vmem:[%s18613_s10] sm:$0xff] }
 0x401   :  { %12145 = vmatprep.subr.bf16.mxu1 %v1621_v34  ;;  %v1765_v55 = vpop.permute.xlu0 %1764 }
 0x402   :  { %v1760_v17 = vpop.permute.xlu1 %1759 }
 0x404   :  { %12146 = vmatpush3.bf16.msra.mxu1 %v1621_v34  ;;  %v2224_v34 = vld [vmem:[%s18613_s10 + $0x30] sm:$0xff] }
 0x405   :  { %12147 = vmatprep.subr.bf16.mxu1 %v1622_v35  ;;  %v1775_v10 = vpop.permute.xlu0 %1774 }
 0x406   :  { %v1770_v4 = vpop.permute.xlu1 %1769 }
 0x407   :  { %12140 = vmatmul.mubr.msk.bf16.gmra.mrb[20].mxu1 %vm782_vm6, %v12637_v36  ;;  %v2225_v36 = vld [vmem:[%s18613_s10 + $0x38] sm:$0xff] }
 0x408   :  { %12148 = vmatpush3.bf16.msra.mxu1 %v1622_v35  ;;  %12151 = vmatprep.mubr.msk.bf16.mxu1 %vm782_vm6, %v12638_v38  ;;  %v2219_v35 = vld [vmem:[%s18613_s10 + $0x8] sm:$0xff]  ;;  %v2220_v38 = vld [vmem:[%s18613_s10 + $0x10] sm:$0xff] }
 0x409   :  { %12149 = vmatprep.subr.bf16.mxu1 %v1623_v41 }
 0x40c   :  { %12150 = vmatpush3.bf16.msra.mxu1 %v1623_v41  ;;  %v12657_v41 = vld [vmem:[%s18614_s11 + $0xf00] ss:$8 sps:$4 sm:$0xff]  }
 0x40f   :  { %12152 = vmatmul.mubr.msk.bf16.vlgmr.msra.gmra.mrb[16].mxu1 %vm782_vm6, %v12639_v42  ;;  %v12659_v42 = vld [vmem:[%s18614_s11 + $0xf04] ss:$8 sps:$4 sm:$0xff]  }
 0x410   :  { %12155 = vmatprep.mubr.msk.bf16.mxu1 %vm782_vm6, %v12640_v43  ;;  %9253 = vmatprep.subr.bf16.mxu1 %v12659_v42  ;;  %v12663_v43 = vld [vmem:[%s18614_s11 + $0xf10] ss:$8 sps:$4 sm:$0xff]  }
 0x411   :  { %9254 = vmatpush1.bf16.msra.mxu1 %v12657_v41 }
 0x417   :  { %12156 = vmatmul.mubr.msk.bf16.gmra.mrb[20].mxu1 %vm782_vm6, %v12641_v44  ;;  %v12665_v44 = vld [vmem:[%s18614_s11 + $0xf14] ss:$8 sps:$4 sm:$0xff]  }
 0x418   :  { %9255 = vmatprep.subr.bf16.mxu1 %v12665_v44 }
 0x419   :  { %9256 = vmatpush1.bf16.msra.mxu1 %v12663_v43 }
 0x4e2   :  { %v12153_v14 = vpop.f32.mrb[16].mxu1 }
 0x4e3   :  { %v1779_v15 = vadd.f32 %v12153_v14, %v1750_v47  ;;  %v1690_v16 = vpop.f32.mrb[17].mxu1  ;;  %v12677_v47 = vld [vmem:[%s18614_s11 + $0xf34] ss:$8 sps:$4 sm:$0xff]   ;;  %v12683_v14 = vld [vmem:[%s18614_s11 + $0xf44] ss:$8 sps:$4 sm:$0xff]  }
 0x4e4   :  { %v1777_v20 = vadd.f32 %v1740_v45, %v1690_v16  ;;  %v12154_v21 = vpop.f32.mrb[18].mxu1  ;;  %v12671_v45 = vld [vmem:[%s18614_s11 + $0xf24] ss:$8 sps:$4 sm:$0xff]   ;;  %v12689_v16 = vld [vmem:[%s18614_s11 + $0xf54] ss:$8 sps:$4 sm:$0xff]  }
 0x4e5   :  { %v1780_v48 = vadd.f32 %v12154_v21, %v1755_v49  ;;  %v1693_v54 = vpop.f32.mrb[19].mxu1  ;;  %v1787_v59 = vmax.f32 %v1779_v15, 0.0  ;;  %9257 = vmatprep.subr.bf16.mxu1 %v12671_v45  ;;  %v12675_v49 = vld [vmem:[%s18614_s11 + $0xf30] ss:$8 sps:$4 sm:$0xff]   ;;  %v12681_v15 = vld [vmem:[%s18614_s11 + $0xf40] ss:$8 sps:$4 sm:$0xff]  }
 0x4e6   :  { %v1778_v58 = vadd.f32 %v1745_v46, %v1693_v54  ;;  %v1785_v12 = vmax.f32 %v1777_v20, 0.0  ;;  %v12669_v46 = vld [vmem:[%s18614_s11 + $0xf20] ss:$8 sps:$4 sm:$0xff]   ;;  %v12695_v20 = vld [vmem:[%s18614_s11 + $0xf64] ss:$8 sps:$4 sm:$0xff]  }
 0x4e7   :  { %v1788_v60 = vmax.f32 %v1780_v48, 0.0  ;;  %9258 = vmatpush1.bf16.msra.mxu1 %v12669_v46  ;;  %v12693_v21 = vld [vmem:[%s18614_s11 + $0xf60] ss:$8 sps:$4 sm:$0xff]   ;;  %v12701_v48 = vld [vmem:[%s18614_s11 + $0xf74] ss:$8 sps:$4 sm:$0xff]  }
 0x4e8   :  { %v1786_v5 = vmax.f32 %v1778_v58, 0.0  ;;  %9259 = vmatprep.subr.bf16.mxu1 %v12677_v47  ;;  %v12699_v54 = vld [vmem:[%s18614_s11 + $0xf70] ss:$8 sps:$4 sm:$0xff]   ;;  %v12705_v58 = vld [vmem:[%s18614_s11 + $0xf80] ss:$8 sps:$4 sm:$0xff]  }
 0x4e9   :  { %v12567_v40 = vpack.i.bf16 %v1788_v60, %v1787_v59  ;;  %v15055_v37 = vpack.c.bf16 %v1788_v60, %v1787_v59  ;;  %v12713_v59 = vld [vmem:[%s18614_s11 + $0xf94] ss:$8 sps:$4 sm:$0xff]   ;;  %v12711_v60 = vld [vmem:[%s18614_s11 + $0xf90] ss:$8 sps:$4 sm:$0xff]  }
 0x4ea   :  { %v12157_v9 = vpop.f32.mrb[20].mxu1  ;;  %v12562_v27 = vpack.i.bf16 %v1786_v5, %v1785_v12  ;;  %v15057_v52 = vpack.c.bf16 %v1786_v5, %v1785_v12  ;;  %v12719_v12 = vld [vmem:[%s18614_s11 + $0xfa4] ss:$8 sps:$4 sm:$0xff]   ;;  %v12717_v5 = vld [vmem:[%s18614_s11 + $0xfa0] ss:$8 sps:$4 sm:$0xff]  }
 0x4eb   :  { %v1783_v39 = vadd.f32 %v12157_v9, %v1770_v4  ;;  %12568 = vrot.lane.b32.xlu0 %v12567_v40, %s14295_s30  ;;  %v1706_v53 = vpop.f32.mrb[21].mxu1  ;;  %9260 = vmatpush1.bf16.msra.mxu1 %v12675_v49  ;;  %v12723_v4 = vld [vmem:[%s18614_s11 + $0xfb0] ss:$8 sps:$4 sm:$0xff]   ;;  %v12731_v9 = vld [vmem:[%s18614_s11 + $0xfc4] ss:$8 sps:$4 sm:$0xff]  }
 0x4ec   :  { %v1781_v61 = vadd.f32 %v1760_v17, %v1706_v53  ;;  %12563 = vrot.lane.b32.xlu1 %v12562_v27, %s14295_s30  ;;  %v12158_v62 = vpop.f32.mrb[22].mxu1  ;;  %9261 = vmatprep.subr.bf16.mxu1 %v12683_v14  ;;  %v12687_v17 = vld [vmem:[%s18614_s11 + $0xf50] ss:$8 sps:$4 sm:$0xff]  }
 0x4ed   :  { %v1784_v63 = vadd.f32 %v12158_v62, %v1775_v10  ;;  %v1709_v0 = vpop.f32.mrb[23].mxu1  ;;  %v1791_v7 = vmax.f32 %v1783_v39, 0.0 }
 0x4ee   :  { %v1782_v11 = vadd.f32 %v1765_v55, %v1709_v0  ;;  %v1789_v13 = vmax.f32 %v1781_v61, 0.0  ;;  %v12707_v55 = vld [vmem:[%s18614_s11 + $0xf84] ss:$8 sps:$4 sm:$0xff]  }
 0x4ef   :  { %v1792_v8 = vmax.f32 %v1784_v63, 0.0  ;;  %9262 = vmatpush1.bf16.msra.mxu1 %v12681_v15 }
 0x4f0   :  { %v1790_v18 = vmax.f32 %v1782_v11, 0.0  ;;  %9263 = vmatprep.subr.bf16.mxu1 %v12689_v16  ;;  %v12643_v16 = vld [vmem:[%s18612_s9 + $0x28] sm:$0xff]  }
 0x4f1   :  { %v12577_v19 = vpack.i.bf16 %v1792_v8, %v1791_v7  ;;  %v15061_v24 = vpack.c.bf16 %v1792_v8, %v1791_v7 }
 0x4f2   :  { %v12572_v25 = vpack.i.bf16 %v1790_v18, %v1789_v13  ;;  %v15066_v28 = vpack.c.bf16 %v1790_v18, %v1789_v13 }
 0x4f3   :  { %12578 = vrot.lane.b32.xlu0 %v12577_v19, %s14295_s30  ;;  %9264 = vmatpush1.bf16.msra.mxu1 %v12687_v17  ;;  %v12644_v17 = vld [vmem:[%s18612_s9 + $0x30] sm:$0xff]  }
 0x4f4   :  { %12573 = vrot.lane.b32.xlu1 %v12572_v25, %s14295_s30  ;;  %9265 = vmatprep.subr.bf16.mxu1 %v12695_v20 }
 0x4f7   :  { %12588 = vrot.lane.b32.xlu0 %v12567_v40, %s14297_s19  ;;  %9266 = vmatpush1.bf16.msra.mxu1 %v12693_v21  ;;  %v12725_v40 = vld [vmem:[%s18614_s11 + $0xfb4] ss:$8 sps:$4 sm:$0xff]  }
 0x4f8   :  { %12583 = vrot.lane.b32.xlu1 %v12562_v27, %s14297_s19  ;;  %9267 = vmatprep.subr.bf16.mxu1 %v12701_v48  ;;  %v12729_v27 = vld [vmem:[%s18614_s11 + $0xfc0] ss:$8 sps:$4 sm:$0xff]  }
 0x4fb   :  { %12598 = vrot.lane.b32.xlu0 %v12577_v19, %s14297_s19  ;;  %9268 = vmatpush1.bf16.msra.mxu1 %v12699_v54 }
 0x4fc   :  { %12593 = vrot.lane.b32.xlu1 %v12572_v25, %s14297_s19  ;;  %9269 = vmatprep.subr.bf16.mxu1 %v12707_v55 }
 0x4ff   :  { %2248 = vperm.xlu0 %12480, %v2222_v29   ;;  %9270 = vmatpush1.bf16.msra.mxu1 %v12705_v58 }
 0x500   :  { %2243 = vperm.xlu1 %12481, %v2221_v30   ;;  %9271 = vmatprep.subr.bf16.mxu1 %v12713_v59 }
 0x503   :  { %2253 = vperm.xlu0 %12480, %v2223_v31   ;;  %9272 = vmatpush1.bf16.msra.mxu1 %v12711_v60 }
 0x504   :  { %2228 = vperm.xlu1 %12481, %v2218_v32   ;;  %9273 = vmatprep.subr.bf16.mxu1 %v12719_v12 }
 0x507   :  { %2258 = vperm.xlu0 %12480, %v2224_v34   ;;  %9274 = vmatpush1.bf16.msra.mxu1 %v12717_v5 }
 0x508   :  { %2233 = vperm.xlu1 %12481, %v2219_v35   ;;  %9275 = vmatprep.subr.bf16.mxu1 %v12725_v40 }
 0x50b   :  { %2263 = vperm.xlu0 %12480, %v2225_v36   ;;  %9276 = vmatpush1.bf16.msra.mxu1 %v12723_v4  ;;  %v12646_v4 = vld [vmem:[%s18612_s9] sm:$0xff]  }
 0x50c   :  { %2238 = vperm.xlu1 %12481, %v2220_v38   ;;  %9277 = vmatprep.subr.bf16.mxu1 %v12731_v9 }
 0x50f   :  { %9278 = vmatpush1.bf16.msra.mxu1 %v12729_v27 }
 0x55d   :  { %v12569_v39 = vpop.permute.xlu0 %12568 }
 0x55e   :  { %v12571_v53 = vunpack.i.h.bf16 %v12569_v39  ;;  %v12570_v10 = vunpack.i.l.bf16 %v12569_v39  ;;  %v12564_v61 = vpop.permute.xlu1 %12563 }
 0x55f   :  { %v12566_v62 = vunpack.i.h.bf16 %v12564_v61  ;;  %v12565_v63 = vunpack.i.l.bf16 %v12564_v61  ;;  %v12648_v61 = vld [vmem:[%s18612_s9 + $0x10] sm:$0xff]  }
 0x560   :  { %v1880_v0 = vsel %vm142_vm3, 0.0, %v12571_v53  ;;  %v1879_v11 = vsel %vm142_vm3, 0.0, %v12570_v10  ;;  %v12647_v10 = vld [vmem:[%s18612_s9 + $0x8] sm:$0xff]  }
 0x561   :  { %v1878_v7 = vsel %vm142_vm3, 0.0, %v12566_v62  ;;  %v1877_v8 = vsel %vm142_vm3, 0.0, %v12565_v63  ;;  %v10709_v18 = vpack.c.bf16 %v1880_v0, %v1879_v11  ;;  %v12649_v62 = vld [vmem:[%s18612_s9 + $0x18] sm:$0xff]   ;;  %v12650_v63 = vld [vmem:[%s18612_s9 + $0x40] sm:$0xff]  }
 0x562   :  { %v10706_v13 = vpack.c.bf16 %v1878_v7, %v1877_v8  ;;  %v12654_v0 = vld [vmem:[%s18614_s11] ss:$8 sps:$4 sm:$0xff]   ;;  %v12660_v11 = vld [vmem:[%s18614_s11 + $0x10] ss:$8 sps:$4 sm:$0xff]   ;;  %v12668_v7 = vld [vmem:[%s18614_s11 + $0x24] ss:$8 sps:$4 sm:$0xff]  }
 0x563   :  { %v12653_v8 = vld [vmem:[%s18612_s9 + $0x58] sm:$0xff]  }
 0x564   :  { %12159 = vmatprep.subr.msk.bf16.mxu0 %vm14573_vm5, %v10706_v13 }
 0x565   :  { %12160 = vmatpush3.bf16.msk.msra.mxu0 %vm14573_vm5, %v10706_v13  ;;  %v12579_v19 = vpop.permute.xlu0 %12578  ;;  %v12674_v13 = vld [vmem:[%s18614_s11 + $0x34] ss:$8 sps:$4 sm:$0xff]  }
 0x566   :  { %v12581_v25 = vunpack.i.h.bf16 %v12579_v19  ;;  %v12580_v26 = vunpack.i.l.bf16 %v12579_v19  ;;  %12161 = vmatprep.subr.msk.bf16.mxu0 %vm14573_vm5, %v10709_v18  ;;  %v12574_v29 = vpop.permute.xlu1 %12573  ;;  %v12680_v19 = vld [vmem:[%s18614_s11 + $0x44] ss:$8 sps:$4 sm:$0xff]  }
 0x567   :  { %v12576_v30 = vunpack.i.h.bf16 %v12574_v29  ;;  %v12575_v31 = vunpack.i.l.bf16 %v12574_v29  ;;  %v12684_v29 = vld [vmem:[%s18614_s11 + $0x50] ss:$8 sps:$4 sm:$0xff]  }
 0x568   :  { %v1884_v32 = vsel %vm142_vm3, 0.0, %v12581_v25  ;;  %v1883_v34 = vsel %vm142_vm3, 0.0, %v12580_v26  ;;  %v12678_v25 = vld [vmem:[%s18614_s11 + $0x40] ss:$8 sps:$4 sm:$0xff]   ;;  %v12686_v26 = vld [vmem:[%s18614_s11 + $0x54] ss:$8 sps:$4 sm:$0xff]  }
 0x569   :  { %v1882_v35 = vsel %vm142_vm3, 0.0, %v12576_v30  ;;  %v1881_v36 = vsel %vm142_vm3, 0.0, %v12575_v31  ;;  %12162 = vmatpush3.bf16.msk.msra.mxu0 %vm14573_vm5, %v10709_v18  ;;  %v12589_v41 = vpop.permute.xlu0 %12588  ;;  %v10715_v45 = vpack.c.bf16 %v1884_v32, %v1883_v34  ;;  %v12672_v18 = vld [vmem:[%s18614_s11 + $0x30] ss:$8 sps:$4 sm:$0xff]   ;;  %v12692_v30 = vld [vmem:[%s18614_s11 + $0x64] ss:$8 sps:$4 sm:$0xff]  }
 0x56a   :  { %v10712_v38 = vpack.c.bf16 %v1882_v35, %v1881_v36  ;;  %v12584_v42 = vpop.permute.xlu1 %12583  ;;  %v12591_v46 = vunpack.i.h.bf16 %v12589_v41  ;;  %v12590_v47 = vunpack.i.l.bf16 %v12589_v41  ;;  %v12690_v31 = vld [vmem:[%s18614_s11 + $0x60] ss:$8 sps:$4 sm:$0xff]   ;;  %v12698_v32 = vld [vmem:[%s18614_s11 + $0x74] ss:$8 sps:$4 sm:$0xff]   ;;  %v12696_v34 = vld [vmem:[%s18614_s11 + $0x70] ss:$8 sps:$4 sm:$0xff]  }
 0x56b   :  { %v12586_v43 = vunpack.i.h.bf16 %v12584_v42  ;;  %v12585_v44 = vunpack.i.l.bf16 %v12584_v42  ;;  %v12704_v35 = vld [vmem:[%s18614_s11 + $0x84] ss:$8 sps:$4 sm:$0xff]   ;;  %v12702_v36 = vld [vmem:[%s18614_s11 + $0x80] ss:$8 sps:$4 sm:$0xff]   ;;  %v12708_v41 = vld [vmem:[%s18614_s11 + $0x90] ss:$8 sps:$4 sm:$0xff]  }
 0x56c   :  { %12163 = vmatprep.subr.msk.bf16.mxu0 %vm14573_vm5, %v10712_v38  ;;  %v1828_v21 = vsel %vm1333_vm7, 0.0, %v12591_v46  ;;  %v1827_v48 = vsel %vm1333_vm7, 0.0, %v12590_v47  ;;  %v12716_v42 = vld [vmem:[%s18614_s11 + $0xa4] ss:$8 sps:$4 sm:$0xff]   ;;  %v12726_v47 = vld [vmem:[%s18614_s11 + $0xc0] ss:$8 sps:$4 sm:$0xff]  }
 0x56d   :  { %v1826_v49 = vsel %vm1333_vm7, 0.0, %v12586_v43  ;;  %v1825_v14 = vsel %vm1333_vm7, 0.0, %v12585_v44  ;;  %12164 = vmatpush3.bf16.msk.msra.mxu0 %vm14573_vm5, %v10712_v38  ;;  %v12599_v58 = vpop.permute.xlu0 %12598  ;;  %v10729_v59 = vpack.c.bf16 %v1828_v21, %v1827_v48  ;;  %v12710_v38 = vld [vmem:[%s18614_s11 + $0x94] ss:$8 sps:$4 sm:$0xff]   ;;  %v12714_v43 = vld [vmem:[%s18614_s11 + $0xa0] ss:$8 sps:$4 sm:$0xff]  }
 0x56e   :  { %v12594_v15 = vpop.permute.xlu1 %12593  ;;  %12165 = vmatprep.subr.msk.bf16.mxu0 %vm14573_vm5, %v10715_v45  ;;  %v10726_v20 = vpack.c.bf16 %v1826_v49, %v1825_v14  ;;  %v12601_v60 = vunpack.i.h.bf16 %v12599_v58  ;;  %v12600_v12 = vunpack.i.l.bf16 %v12599_v58  ;;  %v12722_v44 = vld [vmem:[%s18614_s11 + $0xb4] ss:$8 sps:$4 sm:$0xff]   ;;  %v12728_v46 = vld [vmem:[%s18614_s11 + $0xc4] ss:$8 sps:$4 sm:$0xff]   ;;  %v12732_v14 = vld [vmem:[%s18614_s11 + $0xd0] ss:$8 sps:$4 sm:$0xff]  }
 0x56f   :  { %v12596_v54 = vunpack.i.h.bf16 %v12594_v15  ;;  %v12595_v55 = vunpack.i.l.bf16 %v12594_v15  ;;  %v12734_v49 = vld [vmem:[%s18614_s11 + $0xd4] ss:$8 sps:$4 sm:$0xff]   ;;  %v12743_v21 = vld [vmem:[%s18614_s11 + $0xfe4] ss:$8 sps:$4 sm:$0xff]   ;;  %v12741_v48 = vld [vmem:[%s18614_s11 + $0xfe0] ss:$8 sps:$4 sm:$0xff]  }
 0x570   :  { %v1832_v27 = vsel %vm1333_vm7, 0.0, %v12601_v60  ;;  %v1831_v39 = vsel %vm1333_vm7, 0.0, %v12600_v12  ;;  %v12737_v15 = vld [vmem:[%s18614_s11 + $0xfd4] ss:$8 sps:$4 sm:$0xff]   ;;  %v12752_v60 = vld [vmem:[%s18614_s11 + $0x104] ss:$8 sps:$4 sm:$0xff]  }
 0x571   :  { %12166 = vmatpush3.bf16.msk.msra.mxu0 %vm14573_vm5, %v10715_v45  ;;  %v1830_v5 = vsel %vm1333_vm7, 0.0, %v12596_v54  ;;  %v1829_v40 = vsel %vm1333_vm7, 0.0, %v12595_v55  ;;  %v10735_v53 = vpack.c.bf16 %v1832_v27, %v1831_v39  ;;  %v12720_v45 = vld [vmem:[%s18614_s11 + $0xb0] ss:$8 sps:$4 sm:$0xff]   ;;  %9279 = vmatprep.subr.bf16.mxu1 %v12737_v15  ;;  %v12746_v54 = vld [vmem:[%s18614_s11 + $0xf4] ss:$8 sps:$4 sm:$0xff]  }
 0x572   :  { %12175 = vmatprep.subr.msk.bf16.mxu0 %vm14975_vm9, %v10726_v20  ;;  %v10732_v9 = vpack.c.bf16 %v1830_v5, %v1829_v40  ;;  %v12744_v55 = vld [vmem:[%s18614_s11 + $0xf0] ss:$8 sps:$4 sm:$0xff]   ;;  %v12749_v58 = vld [vmem:[%s18614_s11 + $0xff4] ss:$8 sps:$4 sm:$0xff]   ;;  %v12755_v12 = vld [vmem:[%s18614_s11 + $0x1004] ss:$8 sps:$4 sm:$0xff]  }
 0x573   :  { %v12768_v15 = vld [vmem:[%s18614_s11 + $0x130] ss:$8 sps:$4 sm:$0xff]  }
 0x574   :  { %12168 = vmatmul.mubr.msk.bf16.vlgmr.msra.gmra.mrb[8].mxu0 %vm782_vm6, %v12643_v16  ;;  %v12735_v16 = vld [vmem:[%s18614_s11 + $0xfd0] ss:$8 sps:$4 sm:$0xff]  }
 0x575   :  { %12176 = vmatpush3.bf16.msk.msra.mxu0 %vm14975_vm9, %v10726_v20  ;;  %12171 = vmatprep.mubr.msk.bf16.mxu0 %vm782_vm6, %v12644_v17  ;;  %v12740_v17 = vld [vmem:[%s18614_s11 + $0xe4] ss:$8 sps:$4 sm:$0xff]   ;;  %v12738_v20 = vld [vmem:[%s18614_s11 + $0xe0] ss:$8 sps:$4 sm:$0xff]  }
 0x576   :  { %12177 = vmatprep.subr.msk.bf16.mxu0 %vm14975_vm9, %v10729_v59  ;;  %9280 = vmatpush1.bf16.msra.mxu1 %v12735_v16  ;;  %v12776_v16 = vld [vmem:[%s18614_s11 + $0x144] ss:$8 sps:$4 sm:$0xff]  }
 0x577   :  { %9281 = vmatprep.subr.bf16.mxu1 %v12743_v21  ;;  %v12774_v21 = vld [vmem:[%s18614_s11 + $0x140] ss:$8 sps:$4 sm:$0xff]  }
 0x579   :  { %12178 = vmatpush3.bf16.msk.msra.mxu0 %vm14975_vm9, %v10729_v59  ;;  %v12747_v59 = vld [vmem:[%s18614_s11 + $0xff0] ss:$8 sps:$4 sm:$0xff]  }
 0x57a   :  { %12179 = vmatprep.subr.msk.bf16.mxu0 %vm14975_vm9, %v10732_v9  ;;  %9282 = vmatpush1.bf16.msra.mxu1 %v12741_v48  ;;  %v12782_v48 = vld [vmem:[%s18614_s11 + $0x154] ss:$8 sps:$4 sm:$0xff]  }
 0x57b   :  { %9283 = vmatprep.subr.bf16.mxu1 %v12749_v58  ;;  %v12780_v58 = vld [vmem:[%s18614_s11 + $0x150] ss:$8 sps:$4 sm:$0xff]  }
 0x57c   :  { %12172 = vmatmul.mubr.msk.bf16.gmra.mrb[12].mxu0 %vm782_vm6, %v12645_v51 }
 0x57d   :  { %12180 = vmatpush3.bf16.msk.msra.mxu0 %vm14975_vm9, %v10732_v9  ;;  %12183 = vmatprep.mubr.msk.bf16.mxu0 %vm782_vm6, %v12646_v4 }
 0x57e   :  { %12181 = vmatprep.subr.msk.bf16.mxu0 %vm14975_vm9, %v10735_v53  ;;  %9284 = vmatpush1.bf16.msra.mxu1 %v12747_v59  ;;  %v12788_v59 = vld [vmem:[%s18614_s11 + $0x164] ss:$8 sps:$4 sm:$0xff]  }
 0x57f   :  { %9294 = vmatprep.subr.bf16.mxu1 %v12755_v12  ;;  %v2244_v5 = vpop.permute.xlu1 %2243  ;;  %v12786_v12 = vld [vmem:[%s18614_s11 + $0x160] ss:$8 sps:$4 sm:$0xff]  }
 0x581   :  { %12182 = vmatpush3.bf16.msk.msra.mxu0 %vm14975_vm9, %v10735_v53 }
 0x582   :  { %12191 = vmatprep.subr.bf16.mxu0 %v15057_v52 }
 0x583   :  { %v2229_v51 = vpop.permute.xlu1 %2228 }
 0x584   :  { %12184 = vmatmul.mubr.msk.bf16.vlgmr.msra.gmra.mrb[8].mxu0 %vm782_vm6, %v12647_v10 }
 0x585   :  { %12192 = vmatpush3.bf16.msra.mxu0 %v15057_v52  ;;  %12187 = vmatprep.mubr.msk.bf16.mxu0 %vm782_vm6, %v12648_v61  ;;  %v12651_v52 = vld [vmem:[%s18612_s9 + $0x48] sm:$0xff]  }
 0x586   :  { %12193 = vmatprep.subr.bf16.mxu0 %v15055_v37 }
 0x589   :  { %12194 = vmatpush3.bf16.msra.mxu0 %v15055_v37  ;;  %v12652_v37 = vld [vmem:[%s18612_s9 + $0x50] sm:$0xff]  }
 0x58a   :  { %12195 = vmatprep.subr.bf16.mxu0 %v15066_v28 }
 0x58c   :  { %12188 = vmatmul.mubr.msk.bf16.gmra.mrb[12].mxu0 %vm782_vm6, %v12649_v62 }
 0x58d   :  { %12196 = vmatpush3.bf16.msra.mxu0 %v15066_v28  ;;  %12199 = vmatprep.mubr.msk.bf16.mxu0 %vm782_vm6, %v12650_v63  ;;  %v12662_v28 = vld [vmem:[%s18614_s11 + $0x14] ss:$8 sps:$4 sm:$0xff]  }
 0x58e   :  { %12197 = vmatprep.subr.bf16.mxu0 %v15061_v24 }
 0x591   :  { %12198 = vmatpush3.bf16.msra.mxu0 %v15061_v24  ;;  %v12666_v24 = vld [vmem:[%s18614_s11 + $0x20] ss:$8 sps:$4 sm:$0xff]  }
 0x592   :  { %8638 = vmatprep.subr.bf16.mxu0 %v12656_v50 }
 0x594   :  { %12200 = vmatmul.mubr.msk.bf16.vlgmr.msra.gmra.mrb[8].mxu0 %vm782_vm6, %v12651_v52 }
 0x595   :  { %12203 = vmatprep.mubr.msk.bf16.mxu0 %vm782_vm6, %v12652_v37  ;;  %8639 = vmatpush1.bf16.msra.mxu0 %v12654_v0  ;;  %v2249_v37 = vpop.permute.xlu0 %2248 }
 0x596   :  { %8640 = vmatprep.subr.bf16.mxu0 %v12662_v28 }
 0x599   :  { %8641 = vmatpush1.bf16.msra.mxu0 %v12660_v11 }
 0x59a   :  { %8642 = vmatprep.subr.bf16.mxu0 %v12668_v7 }
 0x59c   :  { %12204 = vmatmul.mubr.msk.bf16.gmra.mrb[12].mxu0 %vm782_vm6, %v12653_v8 }
 0x59d   :  { %8643 = vmatpush1.bf16.msra.mxu0 %v12666_v24 }
 0x59e   :  { %8644 = vmatprep.subr.bf16.mxu0 %v12674_v13 }
 0x5a1   :  { %8645 = vmatpush1.bf16.msra.mxu0 %v12672_v18 }
 0x5a2   :  { %8646 = vmatprep.subr.bf16.mxu0 %v12680_v19 }
 0x5a5   :  { %8647 = vmatpush1.bf16.msra.mxu0 %v12678_v25  ;;  %v12753_v25 = vld [vmem:[%s18614_s11 + $0x1000] ss:$8 sps:$4 sm:$0xff]  }
 0x5a6   :  { %8648 = vmatprep.subr.bf16.mxu0 %v12686_v26 }
 0x5a9   :  { %8649 = vmatpush1.bf16.msra.mxu0 %v12684_v29  ;;  %v12758_v29 = vld [vmem:[%s18614_s11 + $0x114] ss:$8 sps:$4 sm:$0xff]  }
 0x5aa   :  { %8650 = vmatprep.subr.bf16.mxu0 %v12692_v30 }
 0x5ad   :  { %8651 = vmatpush1.bf16.msra.mxu0 %v12690_v31 }
 0x5ae   :  { %8652 = vmatprep.subr.bf16.mxu0 %v12698_v32 }
 0x5b1   :  { %8653 = vmatpush1.bf16.msra.mxu0 %v12696_v34 }
 0x5b2   :  { %8654 = vmatprep.subr.bf16.mxu0 %v12704_v35 }
 0x5b5   :  { %8655 = vmatpush1.bf16.msra.mxu0 %v12702_v36  ;;  %v12761_v36 = vld [vmem:[%s18614_s11 + $0x1014] ss:$8 sps:$4 sm:$0xff]  }
 0x5b6   :  { %8656 = vmatprep.subr.bf16.mxu0 %v12710_v38 }
 0x5b9   :  { %8657 = vmatpush1.bf16.msra.mxu0 %v12708_v41  ;;  %v12756_v41 = vld [vmem:[%s18614_s11 + $0x110] ss:$8 sps:$4 sm:$0xff]  }
 0x5ba   :  { %8658 = vmatprep.subr.bf16.mxu0 %v12716_v42  ;;  %v12759_v42 = vld [vmem:[%s18614_s11 + $0x1010] ss:$8 sps:$4 sm:$0xff]  }
 0x5bd   :  { %8659 = vmatpush1.bf16.msra.mxu0 %v12714_v43 }
 0x5be   :  { %8660 = vmatprep.subr.bf16.mxu0 %v12722_v44  ;;  %v12767_v44 = vld [vmem:[%s18614_s11 + $0x1024] ss:$8 sps:$4 sm:$0xff]  }
 0x5c1   :  { %8661 = vmatpush1.bf16.msra.mxu0 %v12720_v45  ;;  %v12762_v45 = vld [vmem:[%s18614_s11 + $0x120] ss:$8 sps:$4 sm:$0xff]  }
 0x5c2   :  { %8662 = vmatprep.subr.bf16.mxu0 %v12728_v46 }
 0x5c5   :  { %8663 = vmatpush1.bf16.msra.mxu0 %v12726_v47  ;;  %v12770_v47 = vld [vmem:[%s18614_s11 + $0x134] ss:$8 sps:$4 sm:$0xff]  }
 0x5c6   :  { %8664 = vmatprep.subr.bf16.mxu0 %v12734_v49  ;;  %v12765_v49 = vld [vmem:[%s18614_s11 + $0x1020] ss:$8 sps:$4 sm:$0xff]  }
 0x5c9   :  { %8665 = vmatpush1.bf16.msra.mxu0 %v12732_v14  ;;  %v12773_v14 = vld [vmem:[%s18614_s11 + $0x1034] ss:$8 sps:$4 sm:$0xff]  }
 0x5ca   :  { %8666 = vmatprep.subr.bf16.mxu0 %v12740_v17  ;;  %v12771_v17 = vld [vmem:[%s18614_s11 + $0x1030] ss:$8 sps:$4 sm:$0xff]  }
 0x5cd   :  { %8667 = vmatpush1.bf16.msra.mxu0 %v12738_v20  ;;  %v12779_v20 = vld [vmem:[%s18614_s11 + $0x1044] ss:$8 sps:$4 sm:$0xff]  }
 0x5ce   :  { %8668 = vmatprep.subr.bf16.mxu0 %v12746_v54  ;;  %v12777_v54 = vld [vmem:[%s18614_s11 + $0x1040] ss:$8 sps:$4 sm:$0xff]  }
 0x5d1   :  { %8669 = vmatpush1.bf16.msra.mxu0 %v12744_v55  ;;  %v12785_v55 = vld [vmem:[%s18614_s11 + $0x1054] ss:$8 sps:$4 sm:$0xff]  }
 0x5d2   :  { %8679 = vmatprep.subr.bf16.mxu0 %v12752_v60  ;;  %v12783_v60 = vld [vmem:[%s18614_s11 + $0x1050] ss:$8 sps:$4 sm:$0xff]  }
 0x667   :  { %v15397_v40 = vpop.f32.mrb[8].mxu0 }
 0x668   :  { %v2179_v4 = vpop.f32.mrb[9].mxu0 }
 0x669   :  { %v2266_v9 = vadd.f32 %v2229_v51, %v2179_v4  ;;  %v12202_v27 = vpop.f32.mrb[10].mxu0  ;;  %v12789_v51 = vld [vmem:[%s18614_s11 + $0x1060] ss:$8 sps:$4 sm:$0xff]   ;;  %v12794_v4 = vld [vmem:[%s18614_s11 + $0x174] ss:$8 sps:$4 sm:$0xff]  }
 0x66a   :  { %v2269_v39 = vadd.f32 %v12202_v27, %v2244_v5  ;;  %v15399_v53 = vpop.f32.mrb[11].mxu0  ;;  %v12791_v5 = vld [vmem:[%s18614_s11 + $0x1064] ss:$8 sps:$4 sm:$0xff]   ;;  %v12797_v27 = vld [vmem:[%s18614_s11 + $0x1074] ss:$8 sps:$4 sm:$0xff]  }
 0x66b   :  { %v2274_v10 = vmax.f32 %v2266_v9, 0.0  ;;  %v12792_v9 = vld [vmem:[%s18614_s11 + $0x170] ss:$8 sps:$4 sm:$0xff]  }
 0x66c   :  { %v2277_v61 = vmax.f32 %v2269_v39, 0.0  ;;  %v12795_v39 = vld [vmem:[%s18614_s11 + $0x1070] ss:$8 sps:$4 sm:$0xff]  }
 0x66d   :  { %v2282_v62 = vadd.f32 %v2274_v10, %v14894_v56  ;;  %v12750_v56 = vld [vmem:[%s18614_s11 + $0x100] ss:$8 sps:$4 sm:$0xff]   ;;  %v12800_v10 = vld [vmem:[%s18614_s11 + $0x184] ss:$8 sps:$4 sm:$0xff]  }
 0x66e   :  { %v2285_v63 = vadd.f32 %v2277_v61, %v14892_v23  ;;  %v12798_v61 = vld [vmem:[%s18614_s11 + $0x180] ss:$8 sps:$4 sm:$0xff]  }
 0x66f   :  { %v15403_v50 = vmax.f32 %v2282_v62, 0.0  ;;  %v15405_v52 = vpop.f32.mrb[12].mxu0  ;;  %v12803_v62 = vld [vmem:[%s18614_s11 + $0x1084] ss:$8 sps:$4 sm:$0xff]  }
 0x670   :  { %v15407_v0 = vmax.f32 %v2285_v63, 0.0  ;;  %v2195_v28 = vpop.f32.mrb[13].mxu0  ;;  %v12801_v63 = vld [vmem:[%s18614_s11 + $0x1080] ss:$8 sps:$4 sm:$0xff]  }
 0x671   :  { %v2270_v11 = vadd.f32 %v2249_v37, %v2195_v28  ;;  %v15409_v7 = vpop.f32.mrb[14].mxu0  ;;  %v2299_v8 = vrot.slane %v15403_v50, 1  ;;  %v2303_v13 = vrot.slane %v15403_v50, 3  ;;  %v2418_v30 = vpack.c.bf16 %v15403_v50, %v15403_v50  ;;  %v12806_v37 = vld [vmem:[%s18614_s11 + $0x194] ss:$8 sps:$4 sm:$0xff]  }
 0x672   :  { %v15412_v24 = vpop.f32.mrb[15].mxu0  ;;  %v2356_v23 = vrot.slane %v15407_v0, 7  ;;  %v2354_v26 = vrot.slane %v15407_v0, 6  ;;  %v12804_v28 = vld [vmem:[%s18614_s11 + $0x190] ss:$8 sps:$4 sm:$0xff]  }
 0x673   :  { %v2278_v18 = vmax.f32 %v2270_v11, 0.0  ;;  %v2419_v19 = vpack.c.bf16 %v2299_v8, %v2299_v8  ;;  %v2421_v34 = vpack.c.bf16 %v2303_v13, %v2303_v13  ;;  %v12809_v11 = vld [vmem:[%s18614_s11 + $0x1094] ss:$8 sps:$4 sm:$0xff]   ;;  %v12807_v8 = vld [vmem:[%s18614_s11 + $0x1090] ss:$8 sps:$4 sm:$0xff]  }
 0x674   :  { %v2449_v31 = vpack.c.bf16 %v2356_v23, %v2356_v23  ;;  %v2448_v35 = vpack.c.bf16 %v2354_v26, %v2354_v26  ;;  %v12810_v23 = vld [vmem:[%s18614_s11 + $0x1a0] ss:$8 sps:$4 sm:$0xff]   ;;  %v12815_v13 = vld [vmem:[%s18614_s11 + $0x10a4] ss:$8 sps:$4 sm:$0xff]   ;;  %v12821_v26 = vld [vmem:[%s18614_s11 + $0x10b4] ss:$8 sps:$4 sm:$0xff]  }
 0x675   :  { %v2286_v32 = vadd.f32 %v2278_v18, %v14908_v3  ;;  %8670 = vmatprep.mubr.bf16.mxu0 %v2419_v19  ;;  %v12764_v3 = vld [vmem:[%s18614_s11 + $0x124] ss:$8 sps:$4 sm:$0xff]   ;;  %v12813_v18 = vld [vmem:[%s18614_s11 + $0x10a0] ss:$8 sps:$4 sm:$0xff]   ;;  %v12818_v19 = vld [vmem:[%s18614_s11 + $0x1b4] ss:$8 sps:$4 sm:$0xff]  }
 0x676   :  { %8671 = vmatmul.mubr.bf16.vlgmr.msra.gmra.mrb[16].mxu0 %v2418_v30  ;;  %9285 = vmatprep.mubr.bf16.mxu1 %v2449_v31  ;;  %v12824_v30 = vld [vmem:[%s18614_s11 + $0x1c4] ss:$8 sps:$4 sm:$0xff]   ;;  %v12822_v31 = vld [vmem:[%s18614_s11 + $0x1c0] ss:$8 sps:$4 sm:$0xff]  }
 0x677   :  { %v15432_v38 = vmax.f32 %v2286_v32, 0.0  ;;  %8680 = vmatpush1.bf16.msra.mxu0 %v12750_v56  ;;  %8711 = vmatprep.mubr.bf16.mxu0 %v2421_v34  ;;  %v12812_v56 = vld [vmem:[%s18614_s11 + $0x1a4] ss:$8 sps:$4 sm:$0xff]   ;;  %v12825_v34 = vld [vmem:[%s18614_s11 + $0x10c0] ss:$8 sps:$4 sm:$0xff]  }
 0x678   :  { %9286 = vmatmul.mubr.bf16.vlgmr.msra.gmra.mrb[24].mxu1 %v2448_v35  ;;  %8681 = vmatprep.subr.bf16.mxu0 %v12758_v29  ;;  %v12819_v29 = vld [vmem:[%s18614_s11 + $0x10b0] ss:$8 sps:$4 sm:$0xff]   ;;  %v12827_v32 = vld [vmem:[%s18614_s11 + $0x10c4] ss:$8 sps:$4 sm:$0xff]   ;;  %v12830_v35 = vld [vmem:[%s18614_s11 + $0x1d4] ss:$8 sps:$4 sm:$0xff]  }
 0x679   :  { %9295 = vmatpush1.bf16.msra.mxu1 %v12753_v25  ;;  %v2359_v43 = vrot.slane %v15432_v38, 1  ;;  %v12816_v25 = vld [vmem:[%s18614_s11 + $0x1b0] ss:$8 sps:$4 sm:$0xff]  }
 0x67a   :  { %9296 = vmatprep.subr.bf16.mxu1 %v12761_v36  ;;  %v12828_v36 = vld [vmem:[%s18614_s11 + $0x1d0] ss:$8 sps:$4 sm:$0xff]  }
 0x67b   :  { %8682 = vmatpush1.bf16.msra.mxu0 %v12756_v41  ;;  %v2451_v46 = vpack.c.bf16 %v2359_v43, %v2359_v43  ;;  %v12833_v41 = vld [vmem:[%s18614_s11 + $0x10d4] ss:$8 sps:$4 sm:$0xff]   ;;  %v12834_v43 = vld [vmem:[%s18614_s11 + $0x1e0] ss:$8 sps:$4 sm:$0xff]  }
 0x67c   :  { %8683 = vmatprep.subr.bf16.mxu0 %v12764_v3  ;;  %v12831_v3 = vld [vmem:[%s18614_s11 + $0x10d0] ss:$8 sps:$4 sm:$0xff]  }
 0x67d   :  { %9297 = vmatpush1.bf16.msra.mxu1 %v12759_v42  ;;  %9326 = vmatprep.mubr.bf16.mxu1 %v2451_v46  ;;  %v12836_v42 = vld [vmem:[%s18614_s11 + $0x1e4] ss:$8 sps:$4 sm:$0xff]   ;;  %v12842_v46 = vld [vmem:[%s18614_s11 + $0x1f4] ss:$8 sps:$4 sm:$0xff]  }
 0x67e   :  { %9298 = vmatprep.subr.bf16.mxu1 %v12767_v44  ;;  %v12839_v44 = vld [vmem:[%s18614_s11 + $0x10e4] ss:$8 sps:$4 sm:$0xff]  }
 0x67f   :  { %8684 = vmatpush1.bf16.msra.mxu0 %v12762_v45  ;;  %v12837_v45 = vld [vmem:[%s18614_s11 + $0x10e0] ss:$8 sps:$4 sm:$0xff]  }
 0x680   :  { %8685 = vmatprep.subr.bf16.mxu0 %v12770_v47  ;;  %v12840_v47 = vld [vmem:[%s18614_s11 + $0x1f0] ss:$8 sps:$4 sm:$0xff]  }
 0x681   :  { %9299 = vmatpush1.bf16.msra.mxu1 %v12765_v49  ;;  %v12845_v49 = vld [vmem:[%s18614_s11 + $0x10f4] ss:$8 sps:$4 sm:$0xff]  }
 0x682   :  { %9300 = vmatprep.subr.bf16.mxu1 %v12773_v14  ;;  %v12843_v14 = vld [vmem:[%s18614_s11 + $0x10f0] ss:$8 sps:$4 sm:$0xff]  }
 0x683   :  { %8686 = vmatpush1.bf16.msra.mxu0 %v12768_v15  ;;  %v12848_v15 = vld [vmem:[%s18614_s11 + $0x204] ss:$8 sps:$4 sm:$0xff]  }
 0x684   :  { %8687 = vmatprep.subr.bf16.mxu0 %v12776_v16  ;;  %v2301_v16 = vrot.slane %v15403_v50, 2 }
 0x685   :  { %9301 = vmatpush1.bf16.msra.mxu1 %v12771_v17  ;;  %v12846_v17 = vld [vmem:[%s18614_s11 + $0x200] ss:$8 sps:$4 sm:$0xff]  }
 0x686   :  { %9302 = vmatprep.subr.bf16.mxu1 %v12779_v20  ;;  %v2307_v20 = vrot.slane %v15403_v50, 5 }
 0x687   :  { %8688 = vmatpush1.bf16.msra.mxu0 %v12774_v21  ;;  %v12851_v21 = vld [vmem:[%s18614_s11 + $0x1104] ss:$8 sps:$4 sm:$0xff]  }
 0x688   :  { %8689 = vmatprep.subr.bf16.mxu0 %v12782_v48  ;;  %v12849_v48 = vld [vmem:[%s18614_s11 + $0x1100] ss:$8 sps:$4 sm:$0xff]  }
 0x689   :  { %9303 = vmatpush1.bf16.msra.mxu1 %v12777_v54  ;;  %v2363_v54 = vrot.slane %v15432_v38, 3 }
 0x68a   :  { %9304 = vmatprep.subr.bf16.mxu1 %v12785_v55  ;;  %v12854_v55 = vld [vmem:[%s18614_s11 + $0x214] ss:$8 sps:$4 sm:$0xff]  }
 0x68b   :  { %8690 = vmatpush1.bf16.msra.mxu0 %v12780_v58  ;;  %v2420_v58 = vpack.c.bf16 %v2301_v16, %v2301_v16  ;;  %v12909_v16 = vld [vmem:[%s18614_s11 + $0x11a0] ss:$8 sps:$4 sm:$0xff]  }
 0x68c   :  { %8691 = vmatprep.subr.bf16.mxu0 %v12788_v59  ;;  %v2423_v59 = vpack.c.bf16 %v2307_v20, %v2307_v20  ;;  %v12912_v20 = vld [vmem:[%s18614_s11 + $0x2b0] ss:$8 sps:$4 sm:$0xff]  }
 0x68d   :  { %9305 = vmatpush1.bf16.msra.mxu1 %v12783_v60  ;;  %v2450_v60 = vpack.c.bf16 %v15432_v38, %v15432_v38 }
 0x68e   :  { %9306 = vmatprep.subr.bf16.mxu1 %v12791_v5  ;;  %v12857_v5 = vld [vmem:[%s18614_s11 + $0x1114] ss:$8 sps:$4 sm:$0xff]  }
 0x68f   :  { %8692 = vmatpush1.bf16.msra.mxu0 %v12786_v12  ;;  %v12852_v12 = vld [vmem:[%s18614_s11 + $0x210] ss:$8 sps:$4 sm:$0xff]  }
 0x690   :  { %8693 = vmatprep.subr.bf16.mxu0 %v12794_v4  ;;  %v12860_v4 = vld [vmem:[%s18614_s11 + $0x224] ss:$8 sps:$4 sm:$0xff]  }
 0x691   :  { %9307 = vmatpush1.bf16.msra.mxu1 %v12789_v51  ;;  %v2453_v51 = vpack.c.bf16 %v2363_v54, %v2363_v54  ;;  %v12923_v54 = vld [vmem:[%s18614_s11 + $0x11c4] ss:$8 sps:$4 sm:$0xff]  }
 0x692   :  { %9308 = vmatprep.subr.bf16.mxu1 %v12797_v27  ;;  %v12863_v27 = vld [vmem:[%s18614_s11 + $0x1124] ss:$8 sps:$4 sm:$0xff]  }
 0x693   :  { %8694 = vmatpush1.bf16.msra.mxu0 %v12792_v9  ;;  %v12855_v9 = vld [vmem:[%s18614_s11 + $0x1110] ss:$8 sps:$4 sm:$0xff]  }
 0x694   :  { %8695 = vmatprep.subr.bf16.mxu0 %v12800_v10  ;;  %v12866_v10 = vld [vmem:[%s18614_s11 + $0x234] ss:$8 sps:$4 sm:$0xff]  }
 0x695   :  { %9309 = vmatpush1.bf16.msra.mxu1 %v12795_v39  ;;  %v12858_v39 = vld [vmem:[%s18614_s11 + $0x220] ss:$8 sps:$4 sm:$0xff]  }
 0x696   :  { %9310 = vmatprep.subr.bf16.mxu1 %v12803_v62  ;;  %v12869_v62 = vld [vmem:[%s18614_s11 + $0x1134] ss:$8 sps:$4 sm:$0xff]  }
 0x697   :  { %8696 = vmatpush1.bf16.msra.mxu0 %v12798_v61  ;;  %v12861_v61 = vld [vmem:[%s18614_s11 + $0x1120] ss:$8 sps:$4 sm:$0xff]  }
 0x698   :  { %8697 = vmatprep.subr.bf16.mxu0 %v12806_v37  ;;  %v12872_v37 = vld [vmem:[%s18614_s11 + $0x244] ss:$8 sps:$4 sm:$0xff]  }
 0x699   :  { %9311 = vmatpush1.bf16.msra.mxu1 %v12801_v63  ;;  %v12864_v63 = vld [vmem:[%s18614_s11 + $0x230] ss:$8 sps:$4 sm:$0xff]  }
 0x69a   :  { %9312 = vmatprep.subr.bf16.mxu1 %v12809_v11  ;;  %v12875_v11 = vld [vmem:[%s18614_s11 + $0x1144] ss:$8 sps:$4 sm:$0xff]  }
 0x69b   :  { %8698 = vmatpush1.bf16.msra.mxu0 %v12804_v28  ;;  %v12867_v28 = vld [vmem:[%s18614_s11 + $0x1130] ss:$8 sps:$4 sm:$0xff]  }
 0x69c   :  { %8699 = vmatprep.subr.bf16.mxu0 %v12812_v56  ;;  %v12878_v56 = vld [vmem:[%s18614_s11 + $0x254] ss:$8 sps:$4 sm:$0xff]  }
 0x69d   :  { %9313 = vmatpush1.bf16.msra.mxu1 %v12807_v8  ;;  %v12870_v8 = vld [vmem:[%s18614_s11 + $0x240] ss:$8 sps:$4 sm:$0xff]  }
 0x69e   :  { %9314 = vmatprep.subr.bf16.mxu1 %v12815_v13  ;;  %v12881_v13 = vld [vmem:[%s18614_s11 + $0x1154] ss:$8 sps:$4 sm:$0xff]  }
 0x69f   :  { %8700 = vmatpush1.bf16.msra.mxu0 %v12810_v23  ;;  %v12873_v23 = vld [vmem:[%s18614_s11 + $0x1140] ss:$8 sps:$4 sm:$0xff]  }
 0x6a0   :  { %8701 = vmatprep.subr.bf16.mxu0 %v12818_v19  ;;  %v12884_v19 = vld [vmem:[%s18614_s11 + $0x264] ss:$8 sps:$4 sm:$0xff]  }
 0x6a1   :  { %9315 = vmatpush1.bf16.msra.mxu1 %v12813_v18  ;;  %v12876_v18 = vld [vmem:[%s18614_s11 + $0x250] ss:$8 sps:$4 sm:$0xff]  }
 0x6a2   :  { %9316 = vmatprep.subr.bf16.mxu1 %v12821_v26  ;;  %v12887_v26 = vld [vmem:[%s18614_s11 + $0x1164] ss:$8 sps:$4 sm:$0xff]  }
 0x6a3   :  { %8702 = vmatpush1.bf16.msra.mxu0 %v12816_v25  ;;  %v12879_v25 = vld [vmem:[%s18614_s11 + $0x1150] ss:$8 sps:$4 sm:$0xff]  }
 0x6a4   :  { %8703 = vmatprep.subr.bf16.mxu0 %v12824_v30  ;;  %v12890_v30 = vld [vmem:[%s18614_s11 + $0x274] ss:$8 sps:$4 sm:$0xff]  }
 0x6a5   :  { %9317 = vmatpush1.bf16.msra.mxu1 %v12819_v29  ;;  %v12882_v29 = vld [vmem:[%s18614_s11 + $0x260] ss:$8 sps:$4 sm:$0xff]  }
 0x6a6   :  { %9318 = vmatprep.subr.bf16.mxu1 %v12827_v32  ;;  %v12893_v32 = vld [vmem:[%s18614_s11 + $0x1174] ss:$8 sps:$4 sm:$0xff]  }
 0x6a7   :  { %8704 = vmatpush1.bf16.msra.mxu0 %v12822_v31  ;;  %v12885_v31 = vld [vmem:[%s18614_s11 + $0x1160] ss:$8 sps:$4 sm:$0xff]  }
 0x6a8   :  { %8705 = vmatprep.subr.bf16.mxu0 %v12830_v35  ;;  %v12896_v35 = vld [vmem:[%s18614_s11 + $0x284] ss:$8 sps:$4 sm:$0xff]  }
 0x6a9   :  { %9319 = vmatpush1.bf16.msra.mxu1 %v12825_v34  ;;  %v12888_v34 = vld [vmem:[%s18614_s11 + $0x270] ss:$8 sps:$4 sm:$0xff]  }
 0x6aa   :  { %9320 = vmatprep.subr.bf16.mxu1 %v12833_v41  ;;  %v12899_v41 = vld [vmem:[%s18614_s11 + $0x1184] ss:$8 sps:$4 sm:$0xff]  }
 0x6ab   :  { %8706 = vmatpush1.bf16.msra.mxu0 %v12828_v36  ;;  %v12891_v36 = vld [vmem:[%s18614_s11 + $0x1170] ss:$8 sps:$4 sm:$0xff]  }
 0x6ac   :  { %8707 = vmatprep.subr.bf16.mxu0 %v12836_v42  ;;  %v12902_v42 = vld [vmem:[%s18614_s11 + $0x294] ss:$8 sps:$4 sm:$0xff]  }
 0x6ad   :  { %9321 = vmatpush1.bf16.msra.mxu1 %v12831_v3  ;;  %v12894_v3 = vld [vmem:[%s18614_s11 + $0x280] ss:$8 sps:$4 sm:$0xff]  }
 0x6ae   :  { %9322 = vmatprep.subr.bf16.mxu1 %v12839_v44  ;;  %v12905_v44 = vld [vmem:[%s18614_s11 + $0x1194] ss:$8 sps:$4 sm:$0xff]  }
 0x6af   :  { %8708 = vmatpush1.bf16.msra.mxu0 %v12834_v43  ;;  %v12897_v43 = vld [vmem:[%s18614_s11 + $0x1180] ss:$8 sps:$4 sm:$0xff]  }
 0x6b0   :  { %8709 = vmatprep.subr.bf16.mxu0 %v12842_v46  ;;  %v12908_v46 = vld [vmem:[%s18614_s11 + $0x2a4] ss:$8 sps:$4 sm:$0xff]  }
 0x6b1   :  { %9323 = vmatpush1.bf16.msra.mxu1 %v12837_v45  ;;  %v12900_v45 = vld [vmem:[%s18614_s11 + $0x290] ss:$8 sps:$4 sm:$0xff]  }
 0x6b2   :  { %9324 = vmatprep.subr.bf16.mxu1 %v12845_v49  ;;  %v12911_v49 = vld [vmem:[%s18614_s11 + $0x11a4] ss:$8 sps:$4 sm:$0xff]  }
 0x6b3   :  { %8710 = vmatpush1.bf16.msra.mxu0 %v12840_v47  ;;  %v12903_v47 = vld [vmem:[%s18614_s11 + $0x1190] ss:$8 sps:$4 sm:$0xff]  }
 0x6b4   :  { %8720 = vmatprep.subr.bf16.mxu0 %v12848_v15  ;;  %v12914_v15 = vld [vmem:[%s18614_s11 + $0x2b4] ss:$8 sps:$4 sm:$0xff]  }
 0x6b5   :  { %9325 = vmatpush1.bf16.msra.mxu1 %v12843_v14  ;;  %v12906_v14 = vld [vmem:[%s18614_s11 + $0x2a0] ss:$8 sps:$4 sm:$0xff]  }
 0x6b6   :  { %8712 = vmatmul.mubr.bf16.vlgmr.msra.gmra.mrb[16].mxu0 %v2420_v58  ;;  %9335 = vmatprep.subr.bf16.mxu1 %v12851_v21  ;;  %v12920_v21 = vld [vmem:[%s18614_s11 + $0x2c4] ss:$8 sps:$4 sm:$0xff]   ;;  %v12926_v58 = vld [vmem:[%s18614_s11 + $0x2d4] ss:$8 sps:$4 sm:$0xff]  }
 0x6b7   :  { %8721 = vmatpush1.bf16.msra.mxu0 %v12846_v17  ;;  %8752 = vmatprep.mubr.bf16.mxu0 %v2423_v59  ;;  %v12917_v17 = vld [vmem:[%s18614_s11 + $0x11b4] ss:$8 sps:$4 sm:$0xff]   ;;  %v12921_v59 = vld [vmem:[%s18614_s11 + $0x11c0] ss:$8 sps:$4 sm:$0xff]  }
 0x6b8   :  { %9327 = vmatmul.mubr.bf16.vlgmr.msra.gmra.mrb[24].mxu1 %v2450_v60  ;;  %8722 = vmatprep.subr.bf16.mxu0 %v12854_v55  ;;  %v12918_v55 = vld [vmem:[%s18614_s11 + $0x2c0] ss:$8 sps:$4 sm:$0xff]   ;;  %v12929_v60 = vld [vmem:[%s18614_s11 + $0x11d4] ss:$8 sps:$4 sm:$0xff]  }
 0x6b9   :  { %9336 = vmatpush1.bf16.msra.mxu1 %v12849_v48  ;;  %9367 = vmatprep.mubr.bf16.mxu1 %v2453_v51  ;;  %v12915_v48 = vld [vmem:[%s18614_s11 + $0x11b0] ss:$8 sps:$4 sm:$0xff]  }
 0x6ba   :  { %9337 = vmatprep.subr.bf16.mxu1 %v12857_v5  ;;  %v12932_v5 = vld [vmem:[%s18614_s11 + $0x2e4] ss:$8 sps:$4 sm:$0xff]   ;;  %v12927_v51 = vld [vmem:[%s18614_s11 + $0x11d0] ss:$8 sps:$4 sm:$0xff]  }
 0x6bb   :  { %8723 = vmatpush1.bf16.msra.mxu0 %v12852_v12  ;;  %v12924_v12 = vld [vmem:[%s18614_s11 + $0x2d0] ss:$8 sps:$4 sm:$0xff]  }
 0x6bc   :  { %8724 = vmatprep.subr.bf16.mxu0 %v12860_v4  ;;  %v12935_v4 = vld [vmem:[%s18614_s11 + $0x11e4] ss:$8 sps:$4 sm:$0xff]  }
 0x6bd   :  { %9338 = vmatpush1.bf16.msra.mxu1 %v12855_v9  ;;  %v12930_v9 = vld [vmem:[%s18614_s11 + $0x2e0] ss:$8 sps:$4 sm:$0xff]  }
 0x6be   :  { %9339 = vmatprep.subr.bf16.mxu1 %v12863_v27  ;;  %v12938_v27 = vld [vmem:[%s18614_s11 + $0x2f4] ss:$8 sps:$4 sm:$0xff]  }
 0x6bf   :  { %8725 = vmatpush1.bf16.msra.mxu0 %v12858_v39  ;;  %v12933_v39 = vld [vmem:[%s18614_s11 + $0x11e0] ss:$8 sps:$4 sm:$0xff]  }
 0x6c0   :  { %8726 = vmatprep.subr.bf16.mxu0 %v12866_v10  ;;  %v12941_v10 = vld [vmem:[%s18614_s11 + $0x11f4] ss:$8 sps:$4 sm:$0xff]  }
 0x6c1   :  { %9340 = vmatpush1.bf16.msra.mxu1 %v12861_v61  ;;  %v12936_v61 = vld [vmem:[%s18614_s11 + $0x2f0] ss:$8 sps:$4 sm:$0xff]  }
 0x6c2   :  { %9341 = vmatprep.subr.bf16.mxu1 %v12869_v62  ;;  %v2305_v62 = vrot.slane %v15403_v50, 4 }
 0x6c3   :  { %8727 = vmatpush1.bf16.msra.mxu0 %v12864_v63  ;;  %v12944_v63 = vld [vmem:[%s18614_s11 + $0x304] ss:$8 sps:$4 sm:$0xff]  }
 0x6c4   :  { %8728 = vmatprep.subr.bf16.mxu0 %v12872_v37  ;;  %v12939_v37 = vld [vmem:[%s18614_s11 + $0x11f0] ss:$8 sps:$4 sm:$0xff]  }
 0x6c5   :  { %9342 = vmatpush1.bf16.msra.mxu1 %v12867_v28  ;;  %v2311_v28 = vrot.slane %v15403_v50, 7 }
 0x6c6   :  { %9343 = vmatprep.subr.bf16.mxu1 %v12875_v11  ;;  %v2361_v11 = vrot.slane %v15432_v38, 2 }
 0x6c7   :  { %8729 = vmatpush1.bf16.msra.mxu0 %v12870_v8  ;;  %v12947_v8 = vld [vmem:[%s18614_s11 + $0x1204] ss:$8 sps:$4 sm:$0xff]  }
 0x6c8   :  { %8730 = vmatprep.subr.bf16.mxu0 %v12878_v56  ;;  %v12942_v56 = vld [vmem:[%s18614_s11 + $0x300] ss:$8 sps:$4 sm:$0xff]  }
 0x6c9   :  { %9344 = vmatpush1.bf16.msra.mxu1 %v12873_v23  ;;  %v2367_v23 = vrot.slane %v15432_v38, 5 }
 0x6ca   :  { %9345 = vmatprep.subr.bf16.mxu1 %v12881_v13  ;;  %v2422_v13 = vpack.c.bf16 %v2305_v62, %v2305_v62  ;;  %v13007_v62 = vld [vmem:[%s18614_s11 + $0x12a4] ss:$8 sps:$4 sm:$0xff]  }
 0x6cb   :  { %8731 = vmatpush1.bf16.msra.mxu0 %v12876_v18  ;;  %v12950_v18 = vld [vmem:[%s18614_s11 + $0x314] ss:$8 sps:$4 sm:$0xff]  }
 0x6cc   :  { %8732 = vmatprep.subr.bf16.mxu0 %v12884_v19  ;;  %v2425_v19 = vpack.c.bf16 %v2311_v28, %v2311_v28  ;;  %v13005_v28 = vld [vmem:[%s18614_s11 + $0x12a0] ss:$8 sps:$4 sm:$0xff]  }
 0x6cd   :  { %9346 = vmatpush1.bf16.msra.mxu1 %v12879_v25  ;;  %v12945_v25 = vld [vmem:[%s18614_s11 + $0x1200] ss:$8 sps:$4 sm:$0xff]  }
 0x6ce   :  { %9347 = vmatprep.subr.bf16.mxu1 %v12887_v26  ;;  %v2452_v26 = vpack.c.bf16 %v2361_v11, %v2361_v11  ;;  %v13013_v11 = vld [vmem:[%s18614_s11 + $0x12b4] ss:$8 sps:$4 sm:$0xff]  }
 0x6cf   :  { %8733 = vmatpush1.bf16.msra.mxu0 %v12882_v29  ;;  %v12953_v29 = vld [vmem:[%s18614_s11 + $0x1214] ss:$8 sps:$4 sm:$0xff]  }
 0x6d0   :  { %8734 = vmatprep.subr.bf16.mxu0 %v12890_v30  ;;  %v2455_v30 = vpack.c.bf16 %v2367_v23, %v2367_v23  ;;  %v13016_v23 = vld [vmem:[%s18614_s11 + $0x3c4] ss:$8 sps:$4 sm:$0xff]  }
 0x6d1   :  { %9348 = vmatpush1.bf16.msra.mxu1 %v12885_v31  ;;  %v12948_v31 = vld [vmem:[%s18614_s11 + $0x310] ss:$8 sps:$4 sm:$0xff]  }
 0x6d2   :  { %9349 = vmatprep.subr.bf16.mxu1 %v12893_v32  ;;  %v12956_v32 = vld [vmem:[%s18614_s11 + $0x324] ss:$8 sps:$4 sm:$0xff]  }
 0x6d3   :  { %8735 = vmatpush1.bf16.msra.mxu0 %v12888_v34  ;;  %v12951_v34 = vld [vmem:[%s18614_s11 + $0x1210] ss:$8 sps:$4 sm:$0xff]  }
 0x6d4   :  { %8736 = vmatprep.subr.bf16.mxu0 %v12896_v35  ;;  %v12959_v35 = vld [vmem:[%s18614_s11 + $0x1224] ss:$8 sps:$4 sm:$0xff]  }
 0x6d5   :  { %9350 = vmatpush1.bf16.msra.mxu1 %v12891_v36  ;;  %v12954_v36 = vld [vmem:[%s18614_s11 + $0x320] ss:$8 sps:$4 sm:$0xff]  }
 0x6d6   :  { %9351 = vmatprep.subr.bf16.mxu1 %v12899_v41  ;;  %v12962_v41 = vld [vmem:[%s18614_s11 + $0x334] ss:$8 sps:$4 sm:$0xff]  }
 0x6d7   :  { %8737 = vmatpush1.bf16.msra.mxu0 %v12894_v3  ;;  %v12957_v3 = vld [vmem:[%s18614_s11 + $0x1220] ss:$8 sps:$4 sm:$0xff]  }
 0x6d8   :  { %8738 = vmatprep.subr.bf16.mxu0 %v12902_v42  ;;  %v12965_v42 = vld [vmem:[%s18614_s11 + $0x1234] ss:$8 sps:$4 sm:$0xff]  }
 0x6d9   :  { %9352 = vmatpush1.bf16.msra.mxu1 %v12897_v43  ;;  %v12960_v43 = vld [vmem:[%s18614_s11 + $0x330] ss:$8 sps:$4 sm:$0xff]  }
 0x6da   :  { %9353 = vmatprep.subr.bf16.mxu1 %v12905_v44  ;;  %v12968_v44 = vld [vmem:[%s18614_s11 + $0x344] ss:$8 sps:$4 sm:$0xff]  }
 0x6db   :  { %8739 = vmatpush1.bf16.msra.mxu0 %v12900_v45  ;;  %v12963_v45 = vld [vmem:[%s18614_s11 + $0x1230] ss:$8 sps:$4 sm:$0xff]  }
 0x6dc   :  { %8740 = vmatprep.subr.bf16.mxu0 %v12908_v46  ;;  %v12971_v46 = vld [vmem:[%s18614_s11 + $0x1244] ss:$8 sps:$4 sm:$0xff]  }
 0x6dd   :  { %9354 = vmatpush1.bf16.msra.mxu1 %v12903_v47  ;;  %v12966_v47 = vld [vmem:[%s18614_s11 + $0x340] ss:$8 sps:$4 sm:$0xff]  }
 0x6de   :  { %9355 = vmatprep.subr.bf16.mxu1 %v12911_v49  ;;  %v12974_v49 = vld [vmem:[%s18614_s11 + $0x354] ss:$8 sps:$4 sm:$0xff]  }
 0x6df   :  { %8741 = vmatpush1.bf16.msra.mxu0 %v12906_v14  ;;  %v12969_v14 = vld [vmem:[%s18614_s11 + $0x1240] ss:$8 sps:$4 sm:$0xff]  }
 0x6e0   :  { %8742 = vmatprep.subr.bf16.mxu0 %v12914_v15  ;;  %v12977_v15 = vld [vmem:[%s18614_s11 + $0x1254] ss:$8 sps:$4 sm:$0xff]  }
 0x6e1   :  { %9356 = vmatpush1.bf16.msra.mxu1 %v12909_v16  ;;  %v12972_v16 = vld [vmem:[%s18614_s11 + $0x350] ss:$8 sps:$4 sm:$0xff]  }
 0x6e2   :  { %9357 = vmatprep.subr.bf16.mxu1 %v12917_v17  ;;  %v12980_v17 = vld [vmem:[%s18614_s11 + $0x364] ss:$8 sps:$4 sm:$0xff]  }
 0x6e3   :  { %8743 = vmatpush1.bf16.msra.mxu0 %v12912_v20  ;;  %v12975_v20 = vld [vmem:[%s18614_s11 + $0x1250] ss:$8 sps:$4 sm:$0xff]  }
 0x6e4   :  { %8744 = vmatprep.subr.bf16.mxu0 %v12920_v21  ;;  %v12983_v21 = vld [vmem:[%s18614_s11 + $0x1264] ss:$8 sps:$4 sm:$0xff]  }
 0x6e5   :  { %9358 = vmatpush1.bf16.msra.mxu1 %v12915_v48  ;;  %v12978_v48 = vld [vmem:[%s18614_s11 + $0x360] ss:$8 sps:$4 sm:$0xff]  }
 0x6e6   :  { %9359 = vmatprep.subr.bf16.mxu1 %v12923_v54  ;;  %v12986_v54 = vld [vmem:[%s18614_s11 + $0x374] ss:$8 sps:$4 sm:$0xff]  }
 0x6e7   :  { %8745 = vmatpush1.bf16.msra.mxu0 %v12918_v55  ;;  %v12981_v55 = vld [vmem:[%s18614_s11 + $0x1260] ss:$8 sps:$4 sm:$0xff]  }
 0x6e8   :  { %8746 = vmatprep.subr.bf16.mxu0 %v12926_v58  ;;  %v12989_v58 = vld [vmem:[%s18614_s11 + $0x1274] ss:$8 sps:$4 sm:$0xff]  }
 0x6e9   :  { %9360 = vmatpush1.bf16.msra.mxu1 %v12921_v59  ;;  %v12984_v59 = vld [vmem:[%s18614_s11 + $0x370] ss:$8 sps:$4 sm:$0xff]  }
 0x6ea   :  { %9361 = vmatprep.subr.bf16.mxu1 %v12929_v60  ;;  %v12992_v60 = vld [vmem:[%s18614_s11 + $0x384] ss:$8 sps:$4 sm:$0xff]  }
 0x6eb   :  { %8747 = vmatpush1.bf16.msra.mxu0 %v12924_v12  ;;  %v12987_v12 = vld [vmem:[%s18614_s11 + $0x1270] ss:$8 sps:$4 sm:$0xff]  }
 0x6ec   :  { %8748 = vmatprep.subr.bf16.mxu0 %v12932_v5  ;;  %v12995_v5 = vld [vmem:[%s18614_s11 + $0x1284] ss:$8 sps:$4 sm:$0xff]  }
 0x6ed   :  { %9362 = vmatpush1.bf16.msra.mxu1 %v12927_v51  ;;  %v12990_v51 = vld [vmem:[%s18614_s11 + $0x380] ss:$8 sps:$4 sm:$0xff]  }
 0x6ee   :  { %9363 = vmatprep.subr.bf16.mxu1 %v12935_v4  ;;  %v12998_v4 = vld [vmem:[%s18614_s11 + $0x394] ss:$8 sps:$4 sm:$0xff]  }
 0x6ef   :  { %8749 = vmatpush1.bf16.msra.mxu0 %v12930_v9  ;;  %v12993_v9 = vld [vmem:[%s18614_s11 + $0x1280] ss:$8 sps:$4 sm:$0xff]  }
 0x6f0   :  { %8750 = vmatprep.subr.bf16.mxu0 %v12938_v27  ;;  %v13001_v27 = vld [vmem:[%s18614_s11 + $0x1294] ss:$8 sps:$4 sm:$0xff]  }
 0x6f1   :  { %9364 = vmatpush1.bf16.msra.mxu1 %v12933_v39  ;;  %v12996_v39 = vld [vmem:[%s18614_s11 + $0x390] ss:$8 sps:$4 sm:$0xff]  }
 0x6f2   :  { %9365 = vmatprep.subr.bf16.mxu1 %v12941_v10  ;;  %v13004_v10 = vld [vmem:[%s18614_s11 + $0x3a4] ss:$8 sps:$4 sm:$0xff]  }
 0x6f3   :  { %8751 = vmatpush1.bf16.msra.mxu0 %v12936_v61  ;;  %v12999_v61 = vld [vmem:[%s18614_s11 + $0x1290] ss:$8 sps:$4 sm:$0xff]  }
 0x6f4   :  { %8761 = vmatprep.subr.bf16.mxu0 %v12944_v63  ;;  %v13002_v63 = vld [vmem:[%s18614_s11 + $0x3a0] ss:$8 sps:$4 sm:$0xff]  }
 0x6f5   :  { %9366 = vmatpush1.bf16.msra.mxu1 %v12939_v37  ;;  %v13010_v37 = vld [vmem:[%s18614_s11 + $0x3b4] ss:$8 sps:$4 sm:$0xff]  }
 0x6f6   :  { %8753 = vmatmul.mubr.bf16.vlgmr.msra.gmra.mrb[16].mxu0 %v2422_v13  ;;  %9376 = vmatprep.subr.bf16.mxu1 %v12947_v8  ;;  %v13008_v8 = vld [vmem:[%s18614_s11 + $0x3b0] ss:$8 sps:$4 sm:$0xff]  }
 0x6f7   :  { %8762 = vmatpush1.bf16.msra.mxu0 %v12942_v56  ;;  %8793 = vmatprep.mubr.bf16.mxu0 %v2425_v19  ;;  %v2234_v56 = vpop.permute.xlu1 %2233  ;;  %v13019_v19 = vld [vmem:[%s18614_s11 + $0x12c4] ss:$8 sps:$4 sm:$0xff]  }
 0x6f8   :  { %9368 = vmatmul.mubr.bf16.vlgmr.msra.gmra.mrb[24].mxu1 %v2452_v26  ;;  %8763 = vmatprep.subr.bf16.mxu0 %v12950_v18  ;;  %v2267_v13 = vadd.f32 %v2234_v56, %v15399_v53  ;;  %v13011_v18 = vld [vmem:[%s18614_s11 + $0x12b0] ss:$8 sps:$4 sm:$0xff]   ;;  %v13022_v53 = vld [vmem:[%s18614_s11 + $0x3d4] ss:$8 sps:$4 sm:$0xff]   ;;  %v13076_v56 = vld [vmem:[%s18614_s11 + $0x464] ss:$8 sps:$4 sm:$0xff]  }
 0x6f9   :  { %9377 = vmatpush1.bf16.msra.mxu1 %v12945_v25  ;;  %9408 = vmatprep.mubr.bf16.mxu1 %v2455_v30  ;;  %v13014_v25 = vld [vmem:[%s18614_s11 + $0x3c0] ss:$8 sps:$4 sm:$0xff]   ;;  %v13025_v30 = vld [vmem:[%s18614_s11 + $0x12d4] ss:$8 sps:$4 sm:$0xff]  }
 0x6fa   :  { %9378 = vmatprep.subr.bf16.mxu1 %v12953_v29  ;;  %v2275_v26 = vmax.f32 %v2267_v13, 0.0  ;;  %v13017_v29 = vld [vmem:[%s18614_s11 + $0x12c0] ss:$8 sps:$4 sm:$0xff]   ;;  %v13079_v13 = vld [vmem:[%s18614_s11 + $0x1364] ss:$8 sps:$4 sm:$0xff]  }
 0x6fb   :  { %8764 = vmatpush1.bf16.msra.mxu0 %v12948_v31  ;;  %v13020_v31 = vld [vmem:[%s18614_s11 + $0x3d0] ss:$8 sps:$4 sm:$0xff]  }
 0x6fc   :  { %8765 = vmatprep.subr.bf16.mxu0 %v12956_v32  ;;  %v13028_v32 = vld [vmem:[%s18614_s11 + $0x3e4] ss:$8 sps:$4 sm:$0xff]  }
 0x6fd   :  { %9379 = vmatpush1.bf16.msra.mxu1 %v12951_v34  ;;  %v2283_v34 = vadd.f32 %v2275_v26, %v14896_v57  ;;  %v13034_v57 = vld [vmem:[%s18614_s11 + $0x3f4] ss:$8 sps:$4 sm:$0xff]   ;;  %v13080_v26 = vld [vmem:[%s18614_s11 + $0x470] ss:$8 sps:$4 sm:$0xff]  }
 0x6fe   :  { %9380 = vmatprep.subr.bf16.mxu1 %v12959_v35  ;;  %v13023_v35 = vld [vmem:[%s18614_s11 + $0x12d0] ss:$8 sps:$4 sm:$0xff]  }
 0x6ff   :  { %8766 = vmatpush1.bf16.msra.mxu0 %v12954_v36  ;;  %v13031_v36 = vld [vmem:[%s18614_s11 + $0x12e4] ss:$8 sps:$4 sm:$0xff]  }
 0x700   :  { %8767 = vmatprep.subr.bf16.mxu0 %v12962_v41  ;;  %v13026_v41 = vld [vmem:[%s18614_s11 + $0x3e0] ss:$8 sps:$4 sm:$0xff]  }
 0x701   :  { %9381 = vmatpush1.bf16.msra.mxu1 %v12957_v3  ;;  %v15992_v3 = vmax.f32 %v2283_v34, 0.0  ;;  %v13094_v34 = vld [vmem:[%s18614_s11 + $0x494] ss:$8 sps:$4 sm:$0xff]  }
 0x702   :  { %9382 = vmatprep.subr.bf16.mxu1 %v12965_v42  ;;  %v13029_v42 = vld [vmem:[%s18614_s11 + $0x12e0] ss:$8 sps:$4 sm:$0xff]  }
 0x703   :  { %8768 = vmatpush1.bf16.msra.mxu0 %v12960_v43  ;;  %v13037_v43 = vld [vmem:[%s18614_s11 + $0x12f4] ss:$8 sps:$4 sm:$0xff]  }
 0x704   :  { %8769 = vmatprep.subr.bf16.mxu0 %v12968_v44  ;;  %v13032_v44 = vld [vmem:[%s18614_s11 + $0x3f0] ss:$8 sps:$4 sm:$0xff]  }
 0x705   :  { %9383 = vmatpush1.bf16.msra.mxu1 %v12963_v45  ;;  %v2309_v45 = vrot.slane %v15403_v50, 6  ;;  %v13038_v50 = vld [vmem:[%s18614_s11 + $0x400] ss:$8 sps:$4 sm:$0xff]  }
 0x706   :  { %9384 = vmatprep.subr.bf16.mxu1 %v12971_v46  ;;  %v13040_v46 = vld [vmem:[%s18614_s11 + $0x404] ss:$8 sps:$4 sm:$0xff]  }
 0x707   :  { %8770 = vmatpush1.bf16.msra.mxu0 %v12966_v47  ;;  %v13035_v47 = vld [vmem:[%s18614_s11 + $0x12f0] ss:$8 sps:$4 sm:$0xff]  }
 0x708   :  { %8771 = vmatprep.subr.bf16.mxu0 %v12974_v49  ;;  %v2314_v49 = vrot.slane %v15992_v3, 1 }
 0x709   :  { %9385 = vmatpush1.bf16.msra.mxu1 %v12969_v14  ;;  %v2365_v14 = vrot.slane %v15432_v38, 4 }
 0x70a   :  { %9386 = vmatprep.subr.bf16.mxu1 %v12977_v15  ;;  %v13043_v15 = vld [vmem:[%s18614_s11 + $0x1304] ss:$8 sps:$4 sm:$0xff]  }
 0x70b   :  { %8772 = vmatpush1.bf16.msra.mxu0 %v12972_v16  ;;  %v2371_v16 = vrot.slane %v15432_v38, 7 }
 0x70c   :  { %8773 = vmatprep.subr.bf16.mxu0 %v12980_v17  ;;  %v2424_v17 = vpack.c.bf16 %v2309_v45, %v2309_v45  ;;  %v13106_v45 = vld [vmem:[%s18614_s11 + $0x4b4] ss:$8 sps:$4 sm:$0xff]  }
 0x70d   :  { %9387 = vmatpush1.bf16.msra.mxu1 %v12975_v20  ;;  %v13046_v20 = vld [vmem:[%s18614_s11 + $0x414] ss:$8 sps:$4 sm:$0xff]  }
 0x70e   :  { %9388 = vmatprep.subr.bf16.mxu1 %v12983_v21  ;;  %v2427_v21 = vpack.c.bf16 %v2314_v49, %v2314_v49  ;;  %v13104_v49 = vld [vmem:[%s18614_s11 + $0x4b0] ss:$8 sps:$4 sm:$0xff]  }
 0x70f   :  { %8774 = vmatpush1.bf16.msra.mxu0 %v12978_v48  ;;  %v13041_v48 = vld [vmem:[%s18614_s11 + $0x1300] ss:$8 sps:$4 sm:$0xff]  }
 0x710   :  { %8775 = vmatprep.subr.bf16.mxu0 %v12986_v54  ;;  %v2454_v54 = vpack.c.bf16 %v2365_v14, %v2365_v14  ;;  %v13112_v14 = vld [vmem:[%s18614_s11 + $0x4c4] ss:$8 sps:$4 sm:$0xff]  }
 0x711   :  { %9389 = vmatpush1.bf16.msra.mxu1 %v12981_v55  ;;  %v13049_v55 = vld [vmem:[%s18614_s11 + $0x1314] ss:$8 sps:$4 sm:$0xff]  }
 0x712   :  { %9390 = vmatprep.subr.bf16.mxu1 %v12989_v58  ;;  %v2457_v58 = vpack.c.bf16 %v2371_v16, %v2371_v16  ;;  %v13115_v16 = vld [vmem:[%s18614_s11 + $0x13c4] ss:$8 sps:$4 sm:$0xff]  }
 0x713   :  { %8776 = vmatpush1.bf16.msra.mxu0 %v12984_v59  ;;  %v13044_v59 = vld [vmem:[%s18614_s11 + $0x410] ss:$8 sps:$4 sm:$0xff]  }
 0x714   :  { %8777 = vmatprep.subr.bf16.mxu0 %v12992_v60  ;;  %v13052_v60 = vld [vmem:[%s18614_s11 + $0x424] ss:$8 sps:$4 sm:$0xff]  }
 0x715   :  { %9391 = vmatpush1.bf16.msra.mxu1 %v12987_v12  ;;  %v13047_v12 = vld [vmem:[%s18614_s11 + $0x1310] ss:$8 sps:$4 sm:$0xff]  }
 0x716   :  { %9392 = vmatprep.subr.bf16.mxu1 %v12995_v5  ;;  %v13055_v5 = vld [vmem:[%s18614_s11 + $0x1324] ss:$8 sps:$4 sm:$0xff]  }
 0x717   :  { %8778 = vmatpush1.bf16.msra.mxu0 %v12990_v51  ;;  %v13050_v51 = vld [vmem:[%s18614_s11 + $0x420] ss:$8 sps:$4 sm:$0xff]  }
 0x718   :  { %8779 = vmatprep.subr.bf16.mxu0 %v12998_v4  ;;  %v13058_v4 = vld [vmem:[%s18614_s11 + $0x434] ss:$8 sps:$4 sm:$0xff]  }
 0x719   :  { %9393 = vmatpush1.bf16.msra.mxu1 %v12993_v9  ;;  %v13053_v9 = vld [vmem:[%s18614_s11 + $0x1320] ss:$8 sps:$4 sm:$0xff]  }
 0x71a   :  { %9394 = vmatprep.subr.bf16.mxu1 %v13001_v27  ;;  %v13061_v27 = vld [vmem:[%s18614_s11 + $0x1334] ss:$8 sps:$4 sm:$0xff]  }
 0x71b   :  { %8780 = vmatpush1.bf16.msra.mxu0 %v12996_v39  ;;  %v13056_v39 = vld [vmem:[%s18614_s11 + $0x430] ss:$8 sps:$4 sm:$0xff]  }
 0x71c   :  { %8781 = vmatprep.subr.bf16.mxu0 %v13004_v10  ;;  %v13064_v10 = vld [vmem:[%s18614_s11 + $0x444] ss:$8 sps:$4 sm:$0xff]  }
 0x71d   :  { %9395 = vmatpush1.bf16.msra.mxu1 %v12999_v61  ;;  %v13059_v61 = vld [vmem:[%s18614_s11 + $0x1330] ss:$8 sps:$4 sm:$0xff]  }
 0x71e   :  { %9396 = vmatprep.subr.bf16.mxu1 %v13007_v62  ;;  %v13067_v62 = vld [vmem:[%s18614_s11 + $0x1344] ss:$8 sps:$4 sm:$0xff]  }
 0x71f   :  { %8782 = vmatpush1.bf16.msra.mxu0 %v13002_v63  ;;  %v13062_v63 = vld [vmem:[%s18614_s11 + $0x440] ss:$8 sps:$4 sm:$0xff]  }
 0x720   :  { %8783 = vmatprep.subr.bf16.mxu0 %v13010_v37  ;;  %v13070_v37 = vld [vmem:[%s18614_s11 + $0x454] ss:$8 sps:$4 sm:$0xff]  }
 0x721   :  { %9397 = vmatpush1.bf16.msra.mxu1 %v13005_v28  ;;  %v13065_v28 = vld [vmem:[%s18614_s11 + $0x1340] ss:$8 sps:$4 sm:$0xff]  }
 0x722   :  { %9398 = vmatprep.subr.bf16.mxu1 %v13013_v11  ;;  %v13073_v11 = vld [vmem:[%s18614_s11 + $0x1354] ss:$8 sps:$4 sm:$0xff]  }
 0x723   :  { %8784 = vmatpush1.bf16.msra.mxu0 %v13008_v8  ;;  %v13068_v8 = vld [vmem:[%s18614_s11 + $0x450] ss:$8 sps:$4 sm:$0xff]  }
 0x724   :  { %8785 = vmatprep.subr.bf16.mxu0 %v13016_v23  ;;  %v13071_v23 = vld [vmem:[%s18614_s11 + $0x1350] ss:$8 sps:$4 sm:$0xff]  }
 0x725   :  { %9399 = vmatpush1.bf16.msra.mxu1 %v13011_v18  ;;  %v13074_v18 = vld [vmem:[%s18614_s11 + $0x460] ss:$8 sps:$4 sm:$0xff]  }
 0x726   :  { %9400 = vmatprep.subr.bf16.mxu1 %v13019_v19  ;;  %v13082_v19 = vld [vmem:[%s18614_s11 + $0x474] ss:$8 sps:$4 sm:$0xff]  }
 0x727   :  { %8786 = vmatpush1.bf16.msra.mxu0 %v13014_v25  ;;  %v13077_v25 = vld [vmem:[%s18614_s11 + $0x1360] ss:$8 sps:$4 sm:$0xff]  }
 0x728   :  { %8787 = vmatprep.subr.bf16.mxu0 %v13022_v53  ;;  %v13085_v53 = vld [vmem:[%s18614_s11 + $0x1374] ss:$8 sps:$4 sm:$0xff]  }
 0x729   :  { %9401 = vmatpush1.bf16.msra.mxu1 %v13017_v29  ;;  %v13088_v29 = vld [vmem:[%s18614_s11 + $0x484] ss:$8 sps:$4 sm:$0xff]  }
 0x72a   :  { %9402 = vmatprep.subr.bf16.mxu1 %v13025_v30  ;;  %v13083_v30 = vld [vmem:[%s18614_s11 + $0x1370] ss:$8 sps:$4 sm:$0xff]  }
 0x72b   :  { %8788 = vmatpush1.bf16.msra.mxu0 %v13020_v31  ;;  %v13091_v31 = vld [vmem:[%s18614_s11 + $0x1384] ss:$8 sps:$4 sm:$0xff]  }
 0x72c   :  { %8789 = vmatprep.subr.bf16.mxu0 %v13028_v32  ;;  %v13086_v32 = vld [vmem:[%s18614_s11 + $0x480] ss:$8 sps:$4 sm:$0xff]  }
 0x72d   :  { %9403 = vmatpush1.bf16.msra.mxu1 %v13023_v35  ;;  %v13089_v35 = vld [vmem:[%s18614_s11 + $0x1380] ss:$8 sps:$4 sm:$0xff]  }
 0x72e   :  { %9404 = vmatprep.subr.bf16.mxu1 %v13031_v36  ;;  %v13097_v36 = vld [vmem:[%s18614_s11 + $0x1394] ss:$8 sps:$4 sm:$0xff]  }
 0x72f   :  { %8790 = vmatpush1.bf16.msra.mxu0 %v13026_v41  ;;  %v13092_v41 = vld [vmem:[%s18614_s11 + $0x490] ss:$8 sps:$4 sm:$0xff]  }
 0x730   :  { %8791 = vmatprep.subr.bf16.mxu0 %v13034_v57  ;;  %v13100_v57 = vld [vmem:[%s18614_s11 + $0x4a4] ss:$8 sps:$4 sm:$0xff]  }
 0x731   :  { %9405 = vmatpush1.bf16.msra.mxu1 %v13029_v42  ;;  %v13095_v42 = vld [vmem:[%s18614_s11 + $0x1390] ss:$8 sps:$4 sm:$0xff]  }
 0x732   :  { %9406 = vmatprep.subr.bf16.mxu1 %v13037_v43  ;;  %v13103_v43 = vld [vmem:[%s18614_s11 + $0x13a4] ss:$8 sps:$4 sm:$0xff]  }
 0x733   :  { %8792 = vmatpush1.bf16.msra.mxu0 %v13032_v44  ;;  %v13098_v44 = vld [vmem:[%s18614_s11 + $0x4a0] ss:$8 sps:$4 sm:$0xff]  }
 0x734   :  { %8802 = vmatprep.subr.bf16.mxu0 %v13040_v46  ;;  %v13101_v46 = vld [vmem:[%s18614_s11 + $0x13a0] ss:$8 sps:$4 sm:$0xff]  }
 0x735   :  { %9407 = vmatpush1.bf16.msra.mxu1 %v13035_v47  ;;  %v13109_v47 = vld [vmem:[%s18614_s11 + $0x13b4] ss:$8 sps:$4 sm:$0xff]  }
 0x736   :  { %8794 = vmatmul.mubr.bf16.vlgmr.msra.gmra.mrb[16].mxu0 %v2424_v17  ;;  %9417 = vmatprep.subr.bf16.mxu1 %v13043_v15  ;;  %v13107_v15 = vld [vmem:[%s18614_s11 + $0x13b0] ss:$8 sps:$4 sm:$0xff]  }
 0x737   :  { %8803 = vmatpush1.bf16.msra.mxu0 %v13038_v50  ;;  %8834 = vmatprep.mubr.bf16.mxu0 %v2427_v21  ;;  %v2254_v50 = vpop.permute.xlu0 %2253  ;;  %v13118_v21 = vld [vmem:[%s18614_s11 + $0x4d4] ss:$8 sps:$4 sm:$0xff]  }
 0x738   :  { %9409 = vmatmul.mubr.bf16.vlgmr.msra.gmra.mrb[24].mxu1 %v2454_v54  ;;  %8804 = vmatprep.subr.bf16.mxu0 %v13046_v20  ;;  %v2271_v17 = vadd.f32 %v2254_v50, %v15412_v24  ;;  %v13110_v20 = vld [vmem:[%s18614_s11 + $0x4c0] ss:$8 sps:$4 sm:$0xff]   ;;  %v13121_v24 = vld [vmem:[%s18614_s11 + $0x13d4] ss:$8 sps:$4 sm:$0xff]  }
 0x739   :  { %9418 = vmatpush1.bf16.msra.mxu1 %v13041_v48  ;;  %9449 = vmatprep.mubr.bf16.mxu1 %v2457_v58  ;;  %v13113_v48 = vld [vmem:[%s18614_s11 + $0x13c0] ss:$8 sps:$4 sm:$0xff]   ;;  %v13124_v58 = vld [vmem:[%s18614_s11 + $0x4e4] ss:$8 sps:$4 sm:$0xff]  }
 0x73a   :  { %9419 = vmatprep.subr.bf16.mxu1 %v13049_v55  ;;  %v2279_v54 = vmax.f32 %v2271_v17, 0.0  ;;  %v13116_v55 = vld [vmem:[%s18614_s11 + $0x4d0] ss:$8 sps:$4 sm:$0xff]   ;;  %v13173_v50 = vld [vmem:[%s18614_s11 + $0x1460] ss:$8 sps:$4 sm:$0xff]  }
 0x73b   :  { %8805 = vmatpush1.bf16.msra.mxu0 %v13044_v59  ;;  %v13119_v59 = vld [vmem:[%s18614_s11 + $0x13d0] ss:$8 sps:$4 sm:$0xff]  }
 0x73c   :  { %8806 = vmatprep.subr.bf16.mxu0 %v13052_v60  ;;  %v13127_v60 = vld [vmem:[%s18614_s11 + $0x13e4] ss:$8 sps:$4 sm:$0xff]   ;;  %v13176_v17 = vld [vmem:[%s18614_s11 + $0x570] ss:$8 sps:$4 sm:$0xff]  }
 0x73d   :  { %9420 = vmatpush1.bf16.msra.mxu1 %v13047_v12  ;;  %v2287_v12 = vadd.f32 %v2279_v54, %v14910_v6  ;;  %v13133_v6 = vld [vmem:[%s18614_s11 + $0x13f4] ss:$8 sps:$4 sm:$0xff]  }
 0x73e   :  { %9421 = vmatprep.subr.bf16.mxu1 %v13055_v5  ;;  %v13122_v5 = vld [vmem:[%s18614_s11 + $0x4e0] ss:$8 sps:$4 sm:$0xff]   ;;  %v13190_v54 = vld [vmem:[%s18614_s11 + $0x594] ss:$8 sps:$4 sm:$0xff]  }
 0x73f   :  { %8807 = vmatpush1.bf16.msra.mxu0 %v13050_v51  ;;  %v13130_v51 = vld [vmem:[%s18614_s11 + $0x4f4] ss:$8 sps:$4 sm:$0xff]  }
 0x740   :  { %8808 = vmatprep.subr.bf16.mxu0 %v13058_v4  ;;  %v13125_v4 = vld [vmem:[%s18614_s11 + $0x13e0] ss:$8 sps:$4 sm:$0xff]  }
 0x741   :  { %9422 = vmatpush1.bf16.msra.mxu1 %v13053_v9  ;;  %v16198_v9 = vmax.f32 %v2287_v12, 0.0  ;;  %v13191_v12 = vld [vmem:[%s18614_s11 + $0x1490] ss:$8 sps:$4 sm:$0xff]  }
 0x742   :  { %9423 = vmatprep.subr.bf16.mxu1 %v13061_v27  ;;  %v13128_v27 = vld [vmem:[%s18614_s11 + $0x4f0] ss:$8 sps:$4 sm:$0xff]  }
 0x743   :  { %8809 = vmatpush1.bf16.msra.mxu0 %v13056_v39  ;;  %v13136_v39 = vld [vmem:[%s18614_s11 + $0x504] ss:$8 sps:$4 sm:$0xff]  }
 0x744   :  { %8810 = vmatprep.subr.bf16.mxu0 %v13064_v10  ;;  %v13131_v10 = vld [vmem:[%s18614_s11 + $0x13f0] ss:$8 sps:$4 sm:$0xff]  }
 0x745   :  { %9424 = vmatpush1.bf16.msra.mxu1 %v13059_v61  ;;  %v2318_v61 = vrot.slane %v15992_v3, 3 }
 0x746   :  { %9425 = vmatprep.subr.bf16.mxu1 %v13067_v62  ;;  %v2369_v62 = vrot.slane %v15432_v38, 6 }
 0x747   :  { %8811 = vmatpush1.bf16.msra.mxu0 %v13062_v63  ;;  %v13139_v63 = vld [vmem:[%s18614_s11 + $0x1404] ss:$8 sps:$4 sm:$0xff]   ;;  %v2429_v38 = vpack.c.bf16 %v2318_v61, %v2318_v61  ;;  %v13203_v61 = vld [vmem:[%s18614_s11 + $0x14b0] ss:$8 sps:$4 sm:$0xff]  }
 0x748   :  { %8812 = vmatprep.subr.bf16.mxu0 %v13070_v37  ;;  %v13134_v37 = vld [vmem:[%s18614_s11 + $0x500] ss:$8 sps:$4 sm:$0xff]  }
 0x749   :  { %9426 = vmatpush1.bf16.msra.mxu1 %v13065_v28  ;;  %v2374_v28 = vrot.slane %v16198_v9, 1 }
 0x74a   :  { %9427 = vmatprep.subr.bf16.mxu1 %v13073_v11  ;;  %v2426_v11 = vpack.c.bf16 %v15992_v3, %v15992_v3 }
 0x74b   :  { %8813 = vmatpush1.bf16.msra.mxu0 %v13068_v8  ;;  %v13142_v8 = vld [vmem:[%s18614_s11 + $0x514] ss:$8 sps:$4 sm:$0xff]  }
 0x74c   :  { %8814 = vmatprep.subr.bf16.mxu0 %v13076_v56  ;;  %v13137_v56 = vld [vmem:[%s18614_s11 + $0x1400] ss:$8 sps:$4 sm:$0xff]  }
 0x74d   :  { %9428 = vmatpush1.bf16.msra.mxu1 %v13071_v23  ;;  %v2456_v23 = vpack.c.bf16 %v2369_v62, %v2369_v62  ;;  %v13211_v62 = vld [vmem:[%s18614_s11 + $0x14c4] ss:$8 sps:$4 sm:$0xff]  }
 0x74e   :  { %9429 = vmatprep.subr.bf16.mxu1 %v13079_v13  ;;  %v13145_v13 = vld [vmem:[%s18614_s11 + $0x1414] ss:$8 sps:$4 sm:$0xff]  }
 0x74f   :  { %8815 = vmatpush1.bf16.msra.mxu0 %v13074_v18  ;;  %v2459_v18 = vpack.c.bf16 %v2374_v28, %v2374_v28  ;;  %v13209_v28 = vld [vmem:[%s18614_s11 + $0x14c0] ss:$8 sps:$4 sm:$0xff]  }
 0x750   :  { %8816 = vmatprep.subr.bf16.mxu0 %v13082_v19  ;;  %v13140_v19 = vld [vmem:[%s18614_s11 + $0x510] ss:$8 sps:$4 sm:$0xff]  }
 0x751   :  { %9430 = vmatpush1.bf16.msra.mxu1 %v13077_v25  ;;  %v13148_v25 = vld [vmem:[%s18614_s11 + $0x524] ss:$8 sps:$4 sm:$0xff]  }
 0x752   :  { %9431 = vmatprep.subr.bf16.mxu1 %v13085_v53  ;;  %v13143_v53 = vld [vmem:[%s18614_s11 + $0x1410] ss:$8 sps:$4 sm:$0xff]  }
 0x753   :  { %8817 = vmatpush1.bf16.msra.mxu0 %v13080_v26  ;;  %v13151_v26 = vld [vmem:[%s18614_s11 + $0x1424] ss:$8 sps:$4 sm:$0xff]  }
 0x754   :  { %8818 = vmatprep.subr.bf16.mxu0 %v13088_v29  ;;  %v13146_v29 = vld [vmem:[%s18614_s11 + $0x520] ss:$8 sps:$4 sm:$0xff]  }
 0x755   :  { %9432 = vmatpush1.bf16.msra.mxu1 %v13083_v30  ;;  %v13154_v30 = vld [vmem:[%s18614_s11 + $0x534] ss:$8 sps:$4 sm:$0xff]  }
 0x756   :  { %9433 = vmatprep.subr.bf16.mxu1 %v13091_v31  ;;  %v13149_v31 = vld [vmem:[%s18614_s11 + $0x1420] ss:$8 sps:$4 sm:$0xff]  }
 0x757   :  { %8819 = vmatpush1.bf16.msra.mxu0 %v13086_v32  ;;  %v13157_v32 = vld [vmem:[%s18614_s11 + $0x1434] ss:$8 sps:$4 sm:$0xff]  }
 0x758   :  { %8820 = vmatprep.subr.bf16.mxu0 %v13094_v34  ;;  %v13152_v34 = vld [vmem:[%s18614_s11 + $0x530] ss:$8 sps:$4 sm:$0xff]  }
 0x759   :  { %9434 = vmatpush1.bf16.msra.mxu1 %v13089_v35  ;;  %v13160_v35 = vld [vmem:[%s18614_s11 + $0x544] ss:$8 sps:$4 sm:$0xff]  }
 0x75a   :  { %9435 = vmatprep.subr.bf16.mxu1 %v13097_v36  ;;  %v13155_v36 = vld [vmem:[%s18614_s11 + $0x1430] ss:$8 sps:$4 sm:$0xff]  }
 0x75b   :  { %8821 = vmatpush1.bf16.msra.mxu0 %v13092_v41  ;;  %v13163_v41 = vld [vmem:[%s18614_s11 + $0x1444] ss:$8 sps:$4 sm:$0xff]  }
 0x75c   :  { %8822 = vmatprep.subr.bf16.mxu0 %v13100_v57  ;;  %v13158_v57 = vld [vmem:[%s18614_s11 + $0x540] ss:$8 sps:$4 sm:$0xff]  }
 0x75d   :  { %9436 = vmatpush1.bf16.msra.mxu1 %v13095_v42  ;;  %v13166_v42 = vld [vmem:[%s18614_s11 + $0x554] ss:$8 sps:$4 sm:$0xff]  }
 0x75e   :  { %9437 = vmatprep.subr.bf16.mxu1 %v13103_v43  ;;  %v13161_v43 = vld [vmem:[%s18614_s11 + $0x1440] ss:$8 sps:$4 sm:$0xff]  }
 0x75f   :  { %8823 = vmatpush1.bf16.msra.mxu0 %v13098_v44  ;;  %v13169_v44 = vld [vmem:[%s18614_s11 + $0x1454] ss:$8 sps:$4 sm:$0xff]  }
 0x760   :  { %8824 = vmatprep.subr.bf16.mxu0 %v13106_v45  ;;  %v13164_v45 = vld [vmem:[%s18614_s11 + $0x550] ss:$8 sps:$4 sm:$0xff]  }
 0x761   :  { %9438 = vmatpush1.bf16.msra.mxu1 %v13101_v46  ;;  %v13172_v46 = vld [vmem:[%s18614_s11 + $0x564] ss:$8 sps:$4 sm:$0xff]  }
 0x762   :  { %9439 = vmatprep.subr.bf16.mxu1 %v13109_v47  ;;  %v13167_v47 = vld [vmem:[%s18614_s11 + $0x1450] ss:$8 sps:$4 sm:$0xff]  }
 0x763   :  { %8825 = vmatpush1.bf16.msra.mxu0 %v13104_v49  ;;  %v13175_v49 = vld [vmem:[%s18614_s11 + $0x1464] ss:$8 sps:$4 sm:$0xff]  }
 0x764   :  { %8826 = vmatprep.subr.bf16.mxu0 %v13112_v14  ;;  %v13170_v14 = vld [vmem:[%s18614_s11 + $0x560] ss:$8 sps:$4 sm:$0xff]  }
 0x765   :  { %9440 = vmatpush1.bf16.msra.mxu1 %v13107_v15  ;;  %v13178_v15 = vld [vmem:[%s18614_s11 + $0x574] ss:$8 sps:$4 sm:$0xff]  }
 0x766   :  { %9441 = vmatprep.subr.bf16.mxu1 %v13115_v16  ;;  %v13181_v16 = vld [vmem:[%s18614_s11 + $0x1474] ss:$8 sps:$4 sm:$0xff]  }
 0x767   :  { %8827 = vmatpush1.bf16.msra.mxu0 %v13110_v20  ;;  %v13184_v20 = vld [vmem:[%s18614_s11 + $0x584] ss:$8 sps:$4 sm:$0xff]  }
 0x768   :  { %8828 = vmatprep.subr.bf16.mxu0 %v13118_v21  ;;  %v13179_v21 = vld [vmem:[%s18614_s11 + $0x1470] ss:$8 sps:$4 sm:$0xff]  }
 0x769   :  { %9442 = vmatpush1.bf16.msra.mxu1 %v13113_v48  ;;  %v13187_v48 = vld [vmem:[%s18614_s11 + $0x1484] ss:$8 sps:$4 sm:$0xff]  }
 0x76a   :  { %9443 = vmatprep.subr.bf16.mxu1 %v13121_v24  ;;  %v13182_v24 = vld [vmem:[%s18614_s11 + $0x580] ss:$8 sps:$4 sm:$0xff]  }
 0x76b   :  { %8829 = vmatpush1.bf16.msra.mxu0 %v13116_v55  ;;  %v13185_v55 = vld [vmem:[%s18614_s11 + $0x1480] ss:$8 sps:$4 sm:$0xff]  }
 0x76c   :  { %8830 = vmatprep.subr.bf16.mxu0 %v13124_v58  ;;  %v13193_v58 = vld [vmem:[%s18614_s11 + $0x1494] ss:$8 sps:$4 sm:$0xff]  }
 0x76d   :  { %9444 = vmatpush1.bf16.msra.mxu1 %v13119_v59  ;;  %v13188_v59 = vld [vmem:[%s18614_s11 + $0x590] ss:$8 sps:$4 sm:$0xff]  }
 0x76e   :  { %9445 = vmatprep.subr.bf16.mxu1 %v13127_v60  ;;  %v13196_v60 = vld [vmem:[%s18614_s11 + $0x5a4] ss:$8 sps:$4 sm:$0xff]  }
 0x76f   :  { %8831 = vmatpush1.bf16.msra.mxu0 %v13122_v5  ;;  %v13199_v5 = vld [vmem:[%s18614_s11 + $0x14a4] ss:$8 sps:$4 sm:$0xff]  }
 0x770   :  { %8832 = vmatprep.subr.bf16.mxu0 %v13130_v51  ;;  %v13194_v51 = vld [vmem:[%s18614_s11 + $0x5a0] ss:$8 sps:$4 sm:$0xff]  }
 0x771   :  { %9446 = vmatpush1.bf16.msra.mxu1 %v13125_v4  ;;  %v13202_v4 = vld [vmem:[%s18614_s11 + $0x5b4] ss:$8 sps:$4 sm:$0xff]  }
 0x772   :  { %9447 = vmatprep.subr.bf16.mxu1 %v13133_v6  ;;  %v13197_v6 = vld [vmem:[%s18614_s11 + $0x14a0] ss:$8 sps:$4 sm:$0xff]  }
 0x773   :  { %8833 = vmatpush1.bf16.msra.mxu0 %v13128_v27  ;;  %v13205_v27 = vld [vmem:[%s18614_s11 + $0x14b4] ss:$8 sps:$4 sm:$0xff]  }
 0x774   :  { %8843 = vmatprep.subr.bf16.mxu0 %v13136_v39  ;;  %v13200_v39 = vld [vmem:[%s18614_s11 + $0x5b0] ss:$8 sps:$4 sm:$0xff]  }
 0x775   :  { %9448 = vmatpush1.bf16.msra.mxu1 %v13131_v10  ;;  %v13208_v10 = vld [vmem:[%s18614_s11 + $0x5c4] ss:$8 sps:$4 sm:$0xff]  }
 0x776   :  { %8835 = vmatmul.mubr.bf16.vlgmr.msra.gmra.mrb[16].mxu0 %v2426_v11  ;;  %9458 = vmatprep.subr.bf16.mxu1 %v13139_v63  ;;  %v13206_v63 = vld [vmem:[%s18614_s11 + $0x5c0] ss:$8 sps:$4 sm:$0xff]   ;;  %v13217_v11 = vld [vmem:[%s18614_s11 + $0x14d4] ss:$8 sps:$4 sm:$0xff]  }
 0x777   :  { %8844 = vmatpush1.bf16.msra.mxu0 %v13134_v37  ;;  %8875 = vmatprep.mubr.bf16.mxu0 %v2429_v38  ;;  %v13214_v37 = vld [vmem:[%s18614_s11 + $0x5d4] ss:$8 sps:$4 sm:$0xff]   ;;  %v13220_v38 = vld [vmem:[%s18614_s11 + $0x5e4] ss:$8 sps:$4 sm:$0xff]  }
 0x778   :  { %9450 = vmatmul.mubr.bf16.vlgmr.msra.gmra.mrb[24].mxu1 %v2456_v23  ;;  %8845 = vmatprep.subr.bf16.mxu0 %v13142_v8  ;;  %v13212_v8 = vld [vmem:[%s18614_s11 + $0x5d0] ss:$8 sps:$4 sm:$0xff]   ;;  %v13223_v23 = vld [vmem:[%s18614_s11 + $0x14e4] ss:$8 sps:$4 sm:$0xff]  }
 0x779   :  { %9459 = vmatpush1.bf16.msra.mxu1 %v13137_v56  ;;  %9490 = vmatprep.mubr.bf16.mxu1 %v2459_v18  ;;  %v13215_v56 = vld [vmem:[%s18614_s11 + $0x14d0] ss:$8 sps:$4 sm:$0xff]   ;;  %v13226_v18 = vld [vmem:[%s18614_s11 + $0x5f4] ss:$8 sps:$4 sm:$0xff]  }
 0x77a   :  { %9460 = vmatprep.subr.bf16.mxu1 %v13145_v13  ;;  %v13218_v13 = vld [vmem:[%s18614_s11 + $0x5e0] ss:$8 sps:$4 sm:$0xff]  }
 0x77b   :  { %8846 = vmatpush1.bf16.msra.mxu0 %v13140_v19  ;;  %v13221_v19 = vld [vmem:[%s18614_s11 + $0x14e0] ss:$8 sps:$4 sm:$0xff]  }
 0x77c   :  { %8847 = vmatprep.subr.bf16.mxu0 %v13148_v25  ;;  %v13229_v25 = vld [vmem:[%s18614_s11 + $0x14f4] ss:$8 sps:$4 sm:$0xff]  }
 0x77d   :  { %9461 = vmatpush1.bf16.msra.mxu1 %v13143_v53  ;;  %v13224_v53 = vld [vmem:[%s18614_s11 + $0x5f0] ss:$8 sps:$4 sm:$0xff]  }
 0x77e   :  { %9462 = vmatprep.subr.bf16.mxu1 %v13151_v26  ;;  %v2316_v26 = vrot.slane %v15992_v3, 2 }
 0x77f   :  { %8848 = vmatpush1.bf16.msra.mxu0 %v13146_v29  ;;  %v13232_v29 = vld [vmem:[%s18614_s11 + $0x604] ss:$8 sps:$4 sm:$0xff]  }
 0x780   :  { %8849 = vmatprep.subr.bf16.mxu0 %v13154_v30  ;;  %v13227_v30 = vld [vmem:[%s18614_s11 + $0x14f0] ss:$8 sps:$4 sm:$0xff]  }
 0x781   :  { %9463 = vmatpush1.bf16.msra.mxu1 %v13149_v31  ;;  %v2322_v31 = vrot.slane %v15992_v3, 5 }
 0x782   :  { %9464 = vmatprep.subr.bf16.mxu1 %v13157_v32  ;;  %v13235_v32 = vld [vmem:[%s18614_s11 + $0x1504] ss:$8 sps:$4 sm:$0xff]  }
 0x783   :  { %8850 = vmatpush1.bf16.msra.mxu0 %v13152_v34  ;;  %v13230_v34 = vld [vmem:[%s18614_s11 + $0x600] ss:$8 sps:$4 sm:$0xff]  }
 0x784   :  { %8851 = vmatprep.subr.bf16.mxu0 %v13160_v35  ;;  %v2378_v35 = vrot.slane %v16198_v9, 3 }
 0x785   :  { %9465 = vmatpush1.bf16.msra.mxu1 %v13155_v36  ;;  %v2428_v36 = vpack.c.bf16 %v2316_v26, %v2316_v26  ;;  %v13296_v26 = vld [vmem:[%s18614_s11 + $0x6b0] ss:$8 sps:$4 sm:$0xff]  }
 0x786   :  { %9466 = vmatprep.subr.bf16.mxu1 %v13163_v41  ;;  %v13238_v41 = vld [vmem:[%s18614_s11 + $0x614] ss:$8 sps:$4 sm:$0xff]  }
 0x787   :  { %8852 = vmatpush1.bf16.msra.mxu0 %v13158_v57  ;;  %v2431_v57 = vpack.c.bf16 %v2322_v31, %v2322_v31  ;;  %v13307_v31 = vld [vmem:[%s18614_s11 + $0x15c4] ss:$8 sps:$4 sm:$0xff]  }
 0x788   :  { %8853 = vmatprep.subr.bf16.mxu0 %v13166_v42  ;;  %v13233_v42 = vld [vmem:[%s18614_s11 + $0x1500] ss:$8 sps:$4 sm:$0xff]  }
 0x789   :  { %9467 = vmatpush1.bf16.msra.mxu1 %v13161_v43  ;;  %v2458_v43 = vpack.c.bf16 %v16198_v9, %v16198_v9 }
 0x78a   :  { %9468 = vmatprep.subr.bf16.mxu1 %v13169_v44  ;;  %v13241_v44 = vld [vmem:[%s18614_s11 + $0x1514] ss:$8 sps:$4 sm:$0xff]  }
 0x78b   :  { %8854 = vmatpush1.bf16.msra.mxu0 %v13164_v45  ;;  %v2461_v45 = vpack.c.bf16 %v2378_v35, %v2378_v35  ;;  %v13305_v35 = vld [vmem:[%s18614_s11 + $0x15c0] ss:$8 sps:$4 sm:$0xff]  }
 0x78c   :  { %8855 = vmatprep.subr.bf16.mxu0 %v13172_v46  ;;  %v13236_v46 = vld [vmem:[%s18614_s11 + $0x610] ss:$8 sps:$4 sm:$0xff]  }
 0x78d   :  { %9469 = vmatpush1.bf16.msra.mxu1 %v13167_v47  ;;  %v13244_v47 = vld [vmem:[%s18614_s11 + $0x624] ss:$8 sps:$4 sm:$0xff]  }
 0x78e   :  { %9470 = vmatprep.subr.bf16.mxu1 %v13175_v49  ;;  %v13239_v49 = vld [vmem:[%s18614_s11 + $0x1510] ss:$8 sps:$4 sm:$0xff]  }
 0x78f   :  { %8856 = vmatpush1.bf16.msra.mxu0 %v13170_v14  ;;  %v13247_v14 = vld [vmem:[%s18614_s11 + $0x1524] ss:$8 sps:$4 sm:$0xff]  }
 0x790   :  { %8857 = vmatprep.subr.bf16.mxu0 %v13178_v15  ;;  %v13242_v15 = vld [vmem:[%s18614_s11 + $0x620] ss:$8 sps:$4 sm:$0xff]  }
 0x791   :  { %9471 = vmatpush1.bf16.msra.mxu1 %v13173_v50  ;;  %v13250_v50 = vld [vmem:[%s18614_s11 + $0x634] ss:$8 sps:$4 sm:$0xff]  }
 0x792   :  { %9472 = vmatprep.subr.bf16.mxu1 %v13181_v16  ;;  %v13245_v16 = vld [vmem:[%s18614_s11 + $0x1520] ss:$8 sps:$4 sm:$0xff]  }
 0x793   :  { %8858 = vmatpush1.bf16.msra.mxu0 %v13176_v17  ;;  %v13253_v17 = vld [vmem:[%s18614_s11 + $0x1534] ss:$8 sps:$4 sm:$0xff]  }
 0x794   :  { %8859 = vmatprep.subr.bf16.mxu0 %v13184_v20  ;;  %v13248_v20 = vld [vmem:[%s18614_s11 + $0x630] ss:$8 sps:$4 sm:$0xff]  }
 0x795   :  { %9473 = vmatpush1.bf16.msra.mxu1 %v13179_v21  ;;  %v13256_v21 = vld [vmem:[%s18614_s11 + $0x644] ss:$8 sps:$4 sm:$0xff]  }
 0x796   :  { %9474 = vmatprep.subr.bf16.mxu1 %v13187_v48  ;;  %v13251_v48 = vld [vmem:[%s18614_s11 + $0x1530] ss:$8 sps:$4 sm:$0xff]  }
 0x797   :  { %8860 = vmatpush1.bf16.msra.mxu0 %v13182_v24  ;;  %v13259_v24 = vld [vmem:[%s18614_s11 + $0x1544] ss:$8 sps:$4 sm:$0xff]  }
 0x798   :  { %8861 = vmatprep.subr.bf16.mxu0 %v13190_v54  ;;  %v13254_v54 = vld [vmem:[%s18614_s11 + $0x640] ss:$8 sps:$4 sm:$0xff]  }
 0x799   :  { %9475 = vmatpush1.bf16.msra.mxu1 %v13185_v55  ;;  %v13262_v55 = vld [vmem:[%s18614_s11 + $0x654] ss:$8 sps:$4 sm:$0xff]  }
 0x79a   :  { %9476 = vmatprep.subr.bf16.mxu1 %v13193_v58  ;;  %v13257_v58 = vld [vmem:[%s18614_s11 + $0x1540] ss:$8 sps:$4 sm:$0xff]  }
 0x79b   :  { %8862 = vmatpush1.bf16.msra.mxu0 %v13188_v59  ;;  %v13265_v59 = vld [vmem:[%s18614_s11 + $0x1554] ss:$8 sps:$4 sm:$0xff]  }
 0x79c   :  { %8863 = vmatprep.subr.bf16.mxu0 %v13196_v60  ;;  %v13260_v60 = vld [vmem:[%s18614_s11 + $0x650] ss:$8 sps:$4 sm:$0xff]  }
 0x79d   :  { %9477 = vmatpush1.bf16.msra.mxu1 %v13191_v12  ;;  %v13268_v12 = vld [vmem:[%s18614_s11 + $0x664] ss:$8 sps:$4 sm:$0xff]  }
 0x79e   :  { %9478 = vmatprep.subr.bf16.mxu1 %v13199_v5  ;;  %v13263_v5 = vld [vmem:[%s18614_s11 + $0x1550] ss:$8 sps:$4 sm:$0xff]  }
 0x79f   :  { %8864 = vmatpush1.bf16.msra.mxu0 %v13194_v51  ;;  %v13271_v51 = vld [vmem:[%s18614_s11 + $0x1564] ss:$8 sps:$4 sm:$0xff]  }
 0x7a0   :  { %8865 = vmatprep.subr.bf16.mxu0 %v13202_v4  ;;  %v13266_v4 = vld [vmem:[%s18614_s11 + $0x660] ss:$8 sps:$4 sm:$0xff]  }
 0x7a1   :  { %9479 = vmatpush1.bf16.msra.mxu1 %v13197_v6  ;;  %v13274_v6 = vld [vmem:[%s18614_s11 + $0x674] ss:$8 sps:$4 sm:$0xff]  }
 0x7a2   :  { %9480 = vmatprep.subr.bf16.mxu1 %v13205_v27  ;;  %v13269_v27 = vld [vmem:[%s18614_s11 + $0x1560] ss:$8 sps:$4 sm:$0xff]  }
 0x7a3   :  { %8866 = vmatpush1.bf16.msra.mxu0 %v13200_v39  ;;  %v13277_v39 = vld [vmem:[%s18614_s11 + $0x1574] ss:$8 sps:$4 sm:$0xff]  }
 0x7a4   :  { %8867 = vmatprep.subr.bf16.mxu0 %v13208_v10  ;;  %v13272_v10 = vld [vmem:[%s18614_s11 + $0x670] ss:$8 sps:$4 sm:$0xff]  }
 0x7a5   :  { %9481 = vmatpush1.bf16.msra.mxu1 %v13203_v61  ;;  %v13280_v61 = vld [vmem:[%s18614_s11 + $0x684] ss:$8 sps:$4 sm:$0xff]  }
 0x7a6   :  { %9482 = vmatprep.subr.bf16.mxu1 %v13211_v62  ;;  %v13275_v62 = vld [vmem:[%s18614_s11 + $0x1570] ss:$8 sps:$4 sm:$0xff]  }
 0x7a7   :  { %8868 = vmatpush1.bf16.msra.mxu0 %v13206_v63  ;;  %v13283_v63 = vld [vmem:[%s18614_s11 + $0x1584] ss:$8 sps:$4 sm:$0xff]  }
 0x7a8   :  { %8869 = vmatprep.subr.bf16.mxu0 %v13214_v37  ;;  %v13278_v37 = vld [vmem:[%s18614_s11 + $0x680] ss:$8 sps:$4 sm:$0xff]  }
 0x7a9   :  { %9483 = vmatpush1.bf16.msra.mxu1 %v13209_v28  ;;  %v13286_v28 = vld [vmem:[%s18614_s11 + $0x694] ss:$8 sps:$4 sm:$0xff]  }
 0x7aa   :  { %9484 = vmatprep.subr.bf16.mxu1 %v13217_v11  ;;  %v13281_v11 = vld [vmem:[%s18614_s11 + $0x1580] ss:$8 sps:$4 sm:$0xff]  }
 0x7ab   :  { %8870 = vmatpush1.bf16.msra.mxu0 %v13212_v8  ;;  %v13289_v8 = vld [vmem:[%s18614_s11 + $0x1594] ss:$8 sps:$4 sm:$0xff]  }
 0x7ac   :  { %8871 = vmatprep.subr.bf16.mxu0 %v13220_v38  ;;  %v13284_v38 = vld [vmem:[%s18614_s11 + $0x690] ss:$8 sps:$4 sm:$0xff]  }
 0x7ad   :  { %9485 = vmatpush1.bf16.msra.mxu1 %v13215_v56  ;;  %v13292_v56 = vld [vmem:[%s18614_s11 + $0x6a4] ss:$8 sps:$4 sm:$0xff]  }
 0x7ae   :  { %9486 = vmatprep.subr.bf16.mxu1 %v13223_v23  ;;  %v13287_v23 = vld [vmem:[%s18614_s11 + $0x1590] ss:$8 sps:$4 sm:$0xff]  }
 0x7af   :  { %8872 = vmatpush1.bf16.msra.mxu0 %v13218_v13  ;;  %v13295_v13 = vld [vmem:[%s18614_s11 + $0x15a4] ss:$8 sps:$4 sm:$0xff]  }
 0x7b0   :  { %8873 = vmatprep.subr.bf16.mxu0 %v13226_v18  ;;  %v13290_v18 = vld [vmem:[%s18614_s11 + $0x6a0] ss:$8 sps:$4 sm:$0xff]  }
 0x7b1   :  { %9487 = vmatpush1.bf16.msra.mxu1 %v13221_v19  ;;  %v13298_v19 = vld [vmem:[%s18614_s11 + $0x6b4] ss:$8 sps:$4 sm:$0xff]  }
 0x7b2   :  { %9488 = vmatprep.subr.bf16.mxu1 %v13229_v25  ;;  %v13293_v25 = vld [vmem:[%s18614_s11 + $0x15a0] ss:$8 sps:$4 sm:$0xff]  }
 0x7b3   :  { %8874 = vmatpush1.bf16.msra.mxu0 %v13224_v53  ;;  %v13301_v53 = vld [vmem:[%s18614_s11 + $0x15b4] ss:$8 sps:$4 sm:$0xff]  }
 0x7b4   :  { %8884 = vmatprep.subr.bf16.mxu0 %v13232_v29  ;;  %v13304_v29 = vld [vmem:[%s18614_s11 + $0x6c4] ss:$8 sps:$4 sm:$0xff]  }
 0x7b5   :  { %9489 = vmatpush1.bf16.msra.mxu1 %v13227_v30  ;;  %v13299_v30 = vld [vmem:[%s18614_s11 + $0x15b0] ss:$8 sps:$4 sm:$0xff]  }
 0x7b6   :  { %8876 = vmatmul.mubr.bf16.vlgmr.msra.gmra.mrb[16].mxu0 %v2428_v36  ;;  %9499 = vmatprep.subr.bf16.mxu1 %v13235_v32  ;;  %v13302_v32 = vld [vmem:[%s18614_s11 + $0x6c0] ss:$8 sps:$4 sm:$0xff]   ;;  %v13313_v36 = vld [vmem:[%s18614_s11 + $0x15d4] ss:$8 sps:$4 sm:$0xff]  }
 0x7b7   :  { %8885 = vmatpush1.bf16.msra.mxu0 %v13230_v34  ;;  %8916 = vmatprep.mubr.bf16.mxu0 %v2431_v57  ;;  %v13310_v34 = vld [vmem:[%s18614_s11 + $0x6d4] ss:$8 sps:$4 sm:$0xff]   ;;  %v13316_v57 = vld [vmem:[%s18614_s11 + $0x6e4] ss:$8 sps:$4 sm:$0xff]  }
 0x7b8   :  { %9491 = vmatmul.mubr.bf16.vlgmr.msra.gmra.mrb[24].mxu1 %v2458_v43  ;;  %8886 = vmatprep.subr.bf16.mxu0 %v13238_v41  ;;  %v13308_v41 = vld [vmem:[%s18614_s11 + $0x6d0] ss:$8 sps:$4 sm:$0xff]   ;;  %v13319_v43 = vld [vmem:[%s18614_s11 + $0x15e4] ss:$8 sps:$4 sm:$0xff]  }
 0x7b9   :  { %9500 = vmatpush1.bf16.msra.mxu1 %v13233_v42  ;;  %9531 = vmatprep.mubr.bf16.mxu1 %v2461_v45  ;;  %v13311_v42 = vld [vmem:[%s18614_s11 + $0x15d0] ss:$8 sps:$4 sm:$0xff]   ;;  %v13322_v45 = vld [vmem:[%s18614_s11 + $0x6f4] ss:$8 sps:$4 sm:$0xff]  }
 0x7ba   :  { %9501 = vmatprep.subr.bf16.mxu1 %v13241_v44  ;;  %v13314_v44 = vld [vmem:[%s18614_s11 + $0x6e0] ss:$8 sps:$4 sm:$0xff]  }
 0x7bb   :  { %8887 = vmatpush1.bf16.msra.mxu0 %v13236_v46  ;;  %v13317_v46 = vld [vmem:[%s18614_s11 + $0x15e0] ss:$8 sps:$4 sm:$0xff]  }
 0x7bc   :  { %8888 = vmatprep.subr.bf16.mxu0 %v13244_v47  ;;  %v13325_v47 = vld [vmem:[%s18614_s11 + $0x15f4] ss:$8 sps:$4 sm:$0xff]  }
 0x7bd   :  { %9502 = vmatpush1.bf16.msra.mxu1 %v13239_v49  ;;  %v13320_v49 = vld [vmem:[%s18614_s11 + $0x6f0] ss:$8 sps:$4 sm:$0xff]  }
 0x7be   :  { %9503 = vmatprep.subr.bf16.mxu1 %v13247_v14  ;;  %v2320_v14 = vrot.slane %v15992_v3, 4 }
 0x7bf   :  { %8889 = vmatpush1.bf16.msra.mxu0 %v13242_v15  ;;  %v13328_v15 = vld [vmem:[%s18614_s11 + $0x704] ss:$8 sps:$4 sm:$0xff]  }
 0x7c0   :  { %8890 = vmatprep.subr.bf16.mxu0 %v13250_v50  ;;  %v13323_v50 = vld [vmem:[%s18614_s11 + $0x15f0] ss:$8 sps:$4 sm:$0xff]  }
 0x7c1   :  { %9504 = vmatpush1.bf16.msra.mxu1 %v13245_v16  ;;  %v2326_v16 = vrot.slane %v15992_v3, 7 }
 0x7c2   :  { %9505 = vmatprep.subr.bf16.mxu1 %v13253_v17  ;;  %v2376_v17 = vrot.slane %v16198_v9, 2 }
 0x7c3   :  { %8891 = vmatpush1.bf16.msra.mxu0 %v13248_v20  ;;  %v13331_v20 = vld [vmem:[%s18614_s11 + $0x1604] ss:$8 sps:$4 sm:$0xff]  }
 0x7c4   :  { %8892 = vmatprep.subr.bf16.mxu0 %v13256_v21  ;;  %v13326_v21 = vld [vmem:[%s18614_s11 + $0x700] ss:$8 sps:$4 sm:$0xff]  }
 0x7c5   :  { %9506 = vmatpush1.bf16.msra.mxu1 %v13251_v48  ;;  %v2382_v48 = vrot.slane %v16198_v9, 5 }
 0x7c6   :  { %9507 = vmatprep.subr.bf16.mxu1 %v13259_v24  ;;  %v2430_v24 = vpack.c.bf16 %v2320_v14, %v2320_v14  ;;  %v13397_v14 = vld [vmem:[%s18614_s11 + $0x16b4] ss:$8 sps:$4 sm:$0xff]  }
 0x7c7   :  { %8893 = vmatpush1.bf16.msra.mxu0 %v13254_v54  ;;  %v13334_v54 = vld [vmem:[%s18614_s11 + $0x714] ss:$8 sps:$4 sm:$0xff]  }
 0x7c8   :  { %8894 = vmatprep.subr.bf16.mxu0 %v13262_v55  ;;  %v2433_v55 = vpack.c.bf16 %v2326_v16, %v2326_v16  ;;  %v13400_v16 = vld [vmem:[%s18614_s11 + $0x7c4] ss:$8 sps:$4 sm:$0xff]  }
 0x7c9   :  { %9508 = vmatpush1.bf16.msra.mxu1 %v13257_v58  ;;  %v13329_v58 = vld [vmem:[%s18614_s11 + $0x1600] ss:$8 sps:$4 sm:$0xff]  }
 0x7ca   :  { %9509 = vmatprep.subr.bf16.mxu1 %v13265_v59  ;;  %v2460_v59 = vpack.c.bf16 %v2376_v17, %v2376_v17 }
 0x7cb   :  { %8895 = vmatpush1.bf16.msra.mxu0 %v13260_v60  ;;  %v13337_v60 = vld [vmem:[%s18614_s11 + $0x1614] ss:$8 sps:$4 sm:$0xff]  }
 0x7cc   :  { %8896 = vmatprep.subr.bf16.mxu0 %v13268_v12  ;;  %v2463_v12 = vpack.c.bf16 %v2382_v48, %v2382_v48  ;;  %v13398_v48 = vld [vmem:[%s18614_s11 + $0x7c0] ss:$8 sps:$4 sm:$0xff]  }
 0x7cd   :  { %9510 = vmatpush1.bf16.msra.mxu1 %v13263_v5  ;;  %v13332_v5 = vld [vmem:[%s18614_s11 + $0x710] ss:$8 sps:$4 sm:$0xff]  }
 0x7ce   :  { %9511 = vmatprep.subr.bf16.mxu1 %v13271_v51  ;;  %v13340_v51 = vld [vmem:[%s18614_s11 + $0x724] ss:$8 sps:$4 sm:$0xff]  }
 0x7cf   :  { %8897 = vmatpush1.bf16.msra.mxu0 %v13266_v4  ;;  %v13335_v4 = vld [vmem:[%s18614_s11 + $0x1610] ss:$8 sps:$4 sm:$0xff]  }
 0x7d0   :  { %8898 = vmatprep.subr.bf16.mxu0 %v13274_v6  ;;  %v13343_v6 = vld [vmem:[%s18614_s11 + $0x1624] ss:$8 sps:$4 sm:$0xff]  }
 0x7d1   :  { %9512 = vmatpush1.bf16.msra.mxu1 %v13269_v27  ;;  %v13338_v27 = vld [vmem:[%s18614_s11 + $0x720] ss:$8 sps:$4 sm:$0xff]  }
 0x7d2   :  { %9513 = vmatprep.subr.bf16.mxu1 %v13277_v39  ;;  %v13346_v39 = vld [vmem:[%s18614_s11 + $0x734] ss:$8 sps:$4 sm:$0xff]  }
 0x7d3   :  { %8899 = vmatpush1.bf16.msra.mxu0 %v13272_v10  ;;  %v13341_v10 = vld [vmem:[%s18614_s11 + $0x1620] ss:$8 sps:$4 sm:$0xff]  }
 0x7d4   :  { %8900 = vmatprep.subr.bf16.mxu0 %v13280_v61  ;;  %v13349_v61 = vld [vmem:[%s18614_s11 + $0x1634] ss:$8 sps:$4 sm:$0xff]  }
 0x7d5   :  { %9514 = vmatpush1.bf16.msra.mxu1 %v13275_v62  ;;  %v13344_v62 = vld [vmem:[%s18614_s11 + $0x730] ss:$8 sps:$4 sm:$0xff]  }
 0x7d6   :  { %9515 = vmatprep.subr.bf16.mxu1 %v13283_v63  ;;  %v13352_v63 = vld [vmem:[%s18614_s11 + $0x744] ss:$8 sps:$4 sm:$0xff]  }
 0x7d7   :  { %8901 = vmatpush1.bf16.msra.mxu0 %v13278_v37  ;;  %v13347_v37 = vld [vmem:[%s18614_s11 + $0x1630] ss:$8 sps:$4 sm:$0xff]  }
 0x7d8   :  { %8902 = vmatprep.subr.bf16.mxu0 %v13286_v28  ;;  %v13355_v28 = vld [vmem:[%s18614_s11 + $0x1644] ss:$8 sps:$4 sm:$0xff]  }
 0x7d9   :  { %9516 = vmatpush1.bf16.msra.mxu1 %v13281_v11  ;;  %v13350_v11 = vld [vmem:[%s18614_s11 + $0x740] ss:$8 sps:$4 sm:$0xff]  }
 0x7da   :  { %9517 = vmatprep.subr.bf16.mxu1 %v13289_v8  ;;  %v13358_v8 = vld [vmem:[%s18614_s11 + $0x754] ss:$8 sps:$4 sm:$0xff]  }
 0x7db   :  { %8903 = vmatpush1.bf16.msra.mxu0 %v13284_v38  ;;  %v13353_v38 = vld [vmem:[%s18614_s11 + $0x1640] ss:$8 sps:$4 sm:$0xff]  }
 0x7dc   :  { %8904 = vmatprep.subr.bf16.mxu0 %v13292_v56  ;;  %v13361_v56 = vld [vmem:[%s18614_s11 + $0x1654] ss:$8 sps:$4 sm:$0xff]  }
 0x7dd   :  { %9518 = vmatpush1.bf16.msra.mxu1 %v13287_v23  ;;  %v13356_v23 = vld [vmem:[%s18614_s11 + $0x750] ss:$8 sps:$4 sm:$0xff]  }
 0x7de   :  { %9519 = vmatprep.subr.bf16.mxu1 %v13295_v13  ;;  %v13364_v13 = vld [vmem:[%s18614_s11 + $0x764] ss:$8 sps:$4 sm:$0xff]  }
 0x7df   :  { %8905 = vmatpush1.bf16.msra.mxu0 %v13290_v18  ;;  %v13359_v18 = vld [vmem:[%s18614_s11 + $0x1650] ss:$8 sps:$4 sm:$0xff]  }
 0x7e0   :  { %8906 = vmatprep.subr.bf16.mxu0 %v13298_v19  ;;  %v13367_v19 = vld [vmem:[%s18614_s11 + $0x1664] ss:$8 sps:$4 sm:$0xff]  }
 0x7e1   :  { %9520 = vmatpush1.bf16.msra.mxu1 %v13293_v25  ;;  %v13362_v25 = vld [vmem:[%s18614_s11 + $0x760] ss:$8 sps:$4 sm:$0xff]  }
 0x7e2   :  { %9521 = vmatprep.subr.bf16.mxu1 %v13301_v53  ;;  %v13370_v53 = vld [vmem:[%s18614_s11 + $0x774] ss:$8 sps:$4 sm:$0xff]  }
 0x7e3   :  { %8907 = vmatpush1.bf16.msra.mxu0 %v13296_v26  ;;  %v13365_v26 = vld [vmem:[%s18614_s11 + $0x1660] ss:$8 sps:$4 sm:$0xff]  }
 0x7e4   :  { %8908 = vmatprep.subr.bf16.mxu0 %v13304_v29  ;;  %v13373_v29 = vld [vmem:[%s18614_s11 + $0x1674] ss:$8 sps:$4 sm:$0xff]  }
 0x7e5   :  { %9522 = vmatpush1.bf16.msra.mxu1 %v13299_v30  ;;  %v13368_v30 = vld [vmem:[%s18614_s11 + $0x770] ss:$8 sps:$4 sm:$0xff]  }
 0x7e6   :  { %9523 = vmatprep.subr.bf16.mxu1 %v13307_v31  ;;  %v13376_v31 = vld [vmem:[%s18614_s11 + $0x784] ss:$8 sps:$4 sm:$0xff]  }
 0x7e7   :  { %8909 = vmatpush1.bf16.msra.mxu0 %v13302_v32  ;;  %v13371_v32 = vld [vmem:[%s18614_s11 + $0x1670] ss:$8 sps:$4 sm:$0xff]  }
 0x7e8   :  { %8910 = vmatprep.subr.bf16.mxu0 %v13310_v34  ;;  %v13379_v34 = vld [vmem:[%s18614_s11 + $0x1684] ss:$8 sps:$4 sm:$0xff]  }
 0x7e9   :  { %9524 = vmatpush1.bf16.msra.mxu1 %v13305_v35  ;;  %v13374_v35 = vld [vmem:[%s18614_s11 + $0x780] ss:$8 sps:$4 sm:$0xff]  }
 0x7ea   :  { %9525 = vmatprep.subr.bf16.mxu1 %v13313_v36  ;;  %v13382_v36 = vld [vmem:[%s18614_s11 + $0x794] ss:$8 sps:$4 sm:$0xff]  }
 0x7eb   :  { %8911 = vmatpush1.bf16.msra.mxu0 %v13308_v41  ;;  %v13377_v41 = vld [vmem:[%s18614_s11 + $0x1680] ss:$8 sps:$4 sm:$0xff]  }
 0x7ec   :  { %8912 = vmatprep.subr.bf16.mxu0 %v13316_v57  ;;  %v13385_v57 = vld [vmem:[%s18614_s11 + $0x1694] ss:$8 sps:$4 sm:$0xff]  }
 0x7ed   :  { %9526 = vmatpush1.bf16.msra.mxu1 %v13311_v42  ;;  %v13380_v42 = vld [vmem:[%s18614_s11 + $0x790] ss:$8 sps:$4 sm:$0xff]  }
 0x7ee   :  { %9527 = vmatprep.subr.bf16.mxu1 %v13319_v43  ;;  %v13388_v43 = vld [vmem:[%s18614_s11 + $0x7a4] ss:$8 sps:$4 sm:$0xff]  }
 0x7ef   :  { %8913 = vmatpush1.bf16.msra.mxu0 %v13314_v44  ;;  %v13383_v44 = vld [vmem:[%s18614_s11 + $0x1690] ss:$8 sps:$4 sm:$0xff]  }
 0x7f0   :  { %8914 = vmatprep.subr.bf16.mxu0 %v13322_v45  ;;  %v13391_v45 = vld [vmem:[%s18614_s11 + $0x16a4] ss:$8 sps:$4 sm:$0xff]  }
 0x7f1   :  { %9528 = vmatpush1.bf16.msra.mxu1 %v13317_v46  ;;  %v13386_v46 = vld [vmem:[%s18614_s11 + $0x7a0] ss:$8 sps:$4 sm:$0xff]  }
 0x7f2   :  { %9529 = vmatprep.subr.bf16.mxu1 %v13325_v47  ;;  %v13394_v47 = vld [vmem:[%s18614_s11 + $0x7b4] ss:$8 sps:$4 sm:$0xff]  }
 0x7f3   :  { %8915 = vmatpush1.bf16.msra.mxu0 %v13320_v49  ;;  %v13389_v49 = vld [vmem:[%s18614_s11 + $0x16a0] ss:$8 sps:$4 sm:$0xff]  }
 0x7f4   :  { %8925 = vmatprep.subr.bf16.mxu0 %v13328_v15  ;;  %v13392_v15 = vld [vmem:[%s18614_s11 + $0x7b0] ss:$8 sps:$4 sm:$0xff]  }
 0x7f5   :  { %9530 = vmatpush1.bf16.msra.mxu1 %v13323_v50  ;;  %v2239_v50 = vpop.permute.xlu1 %2238 }
 0x7f6   :  { %8917 = vmatmul.mubr.bf16.vlgmr.msra.gmra.mrb[16].mxu0 %v2430_v24  ;;  %9540 = vmatprep.subr.bf16.mxu1 %v13331_v20  ;;  %v2268_v17 = vadd.f32 %v15397_v40, %v2239_v50  ;;  %v13395_v20 = vld [vmem:[%s18614_s11 + $0x16b0] ss:$8 sps:$4 sm:$0xff]   ;;  %v13406_v40 = vld [vmem:[%s18614_s11 + $0x7d4] ss:$8 sps:$4 sm:$0xff]  }
 0x7f7   :  { %8926 = vmatpush1.bf16.msra.mxu0 %v13326_v21  ;;  %8957 = vmatprep.mubr.bf16.mxu0 %v2433_v55  ;;  %v13403_v21 = vld [vmem:[%s18614_s11 + $0x16c4] ss:$8 sps:$4 sm:$0xff]   ;;  %v13409_v55 = vld [vmem:[%s18614_s11 + $0x16d4] ss:$8 sps:$4 sm:$0xff]  }
 0x7f8   :  { %9532 = vmatmul.mubr.bf16.vlgmr.msra.gmra.mrb[24].mxu1 %v2460_v59  ;;  %8927 = vmatprep.subr.bf16.mxu0 %v13334_v54  ;;  %v2276_v24 = vmax.f32 %v2268_v17, 0.0  ;;  %v13401_v54 = vld [vmem:[%s18614_s11 + $0x16c0] ss:$8 sps:$4 sm:$0xff]   ;;  %v13412_v59 = vld [vmem:[%s18614_s11 + $0x7e4] ss:$8 sps:$4 sm:$0xff]  }
 0x7f9   :  { %9541 = vmatpush1.bf16.msra.mxu1 %v13329_v58  ;;  %9572 = vmatprep.mubr.bf16.mxu1 %v2463_v12  ;;  %v13404_v58 = vld [vmem:[%s18614_s11 + $0x7d0] ss:$8 sps:$4 sm:$0xff]   ;;  %v13466_v50 = vld [vmem:[%s18614_s11 + $0x874] ss:$8 sps:$4 sm:$0xff]  }
 0x7fa   :  { %9542 = vmatprep.subr.bf16.mxu1 %v13337_v60  ;;  %v2284_v60 = vadd.f32 %v2276_v24, %v14890_v22  ;;  %v13407_v12 = vld [vmem:[%s18614_s11 + $0x16d0] ss:$8 sps:$4 sm:$0xff]   ;;  %v13418_v22 = vld [vmem:[%s18614_s11 + $0x7f4] ss:$8 sps:$4 sm:$0xff]   ;;  %v13470_v24 = vld [vmem:[%s18614_s11 + $0x880] ss:$8 sps:$4 sm:$0xff]  }
 0x7fb   :  { %8928 = vmatpush1.bf16.msra.mxu0 %v13332_v5  ;;  %v13415_v5 = vld [vmem:[%s18614_s11 + $0x16e4] ss:$8 sps:$4 sm:$0xff]   ;;  %v13469_v17 = vld [vmem:[%s18614_s11 + $0x1774] ss:$8 sps:$4 sm:$0xff]  }
 0x7fc   :  { %8929 = vmatprep.subr.bf16.mxu0 %v13340_v51  ;;  %v13410_v51 = vld [vmem:[%s18614_s11 + $0x7e0] ss:$8 sps:$4 sm:$0xff]  }
 0x7fd   :  { %9543 = vmatpush1.bf16.msra.mxu1 %v13335_v4  ;;  %v16786_v4 = vmax.f32 %v2284_v60, 0.0  ;;  %v13484_v60 = vld [vmem:[%s18614_s11 + $0x8a4] ss:$8 sps:$4 sm:$0xff]  }
 0x7fe   :  { %9544 = vmatprep.subr.bf16.mxu1 %v13343_v6  ;;  %v13413_v6 = vld [vmem:[%s18614_s11 + $0x16e0] ss:$8 sps:$4 sm:$0xff]  }
 0x7ff   :  { %8930 = vmatpush1.bf16.msra.mxu0 %v13338_v27  ;;  %v13421_v27 = vld [vmem:[%s18614_s11 + $0x16f4] ss:$8 sps:$4 sm:$0xff]  }
 0x800   :  { %8931 = vmatprep.subr.bf16.mxu0 %v13346_v39  ;;  %v13416_v39 = vld [vmem:[%s18614_s11 + $0x7f0] ss:$8 sps:$4 sm:$0xff]  }
 0x801   :  { %9545 = vmatpush1.bf16.msra.mxu1 %v13341_v10  ;;  %v2324_v10 = vrot.slane %v15992_v3, 6  ;;  %v13422_v3 = vld [vmem:[%s18614_s11 + $0x800] ss:$8 sps:$4 sm:$0xff]  }
 0x802   :  { %9546 = vmatprep.subr.bf16.mxu1 %v13349_v61  ;;  %v13424_v61 = vld [vmem:[%s18614_s11 + $0x804] ss:$8 sps:$4 sm:$0xff]  }
 0x803   :  { %8932 = vmatpush1.bf16.msra.mxu0 %v13344_v62  ;;  %v13419_v62 = vld [vmem:[%s18614_s11 + $0x16f0] ss:$8 sps:$4 sm:$0xff]  }
 0x804   :  { %8933 = vmatprep.subr.bf16.mxu0 %v13352_v63  ;;  %v2329_v63 = vrot.slane %v16786_v4, 1 }
 0x805   :  { %9547 = vmatpush1.bf16.msra.mxu1 %v13347_v37  ;;  %v2380_v37 = vrot.slane %v16198_v9, 4 }
 0x806   :  { %9548 = vmatprep.subr.bf16.mxu1 %v13355_v28  ;;  %v13427_v28 = vld [vmem:[%s18614_s11 + $0x1704] ss:$8 sps:$4 sm:$0xff]  }
 0x807   :  { %8934 = vmatpush1.bf16.msra.mxu0 %v13350_v11  ;;  %v2386_v11 = vrot.slane %v16198_v9, 7 }
 0x808   :  { %8935 = vmatprep.subr.bf16.mxu0 %v13358_v8  ;;  %v2432_v8 = vpack.c.bf16 %v2324_v10, %v2324_v10  ;;  %v13496_v10 = vld [vmem:[%s18614_s11 + $0x8c4] ss:$8 sps:$4 sm:$0xff]  }
 0x809   :  { %9549 = vmatpush1.bf16.msra.mxu1 %v13353_v38  ;;  %v13430_v38 = vld [vmem:[%s18614_s11 + $0x814] ss:$8 sps:$4 sm:$0xff]  }
 0x80a   :  { %9550 = vmatprep.subr.bf16.mxu1 %v13361_v56  ;;  %v2435_v56 = vpack.c.bf16 %v2329_v63, %v2329_v63  ;;  %v13499_v63 = vld [vmem:[%s18614_s11 + $0x17c4] ss:$8 sps:$4 sm:$0xff]  }
 0x80b   :  { %8936 = vmatpush1.bf16.msra.mxu0 %v13356_v23  ;;  %v13425_v23 = vld [vmem:[%s18614_s11 + $0x1700] ss:$8 sps:$4 sm:$0xff]  }
 0x80c   :  { %8937 = vmatprep.subr.bf16.mxu0 %v13364_v13  ;;  %v2462_v13 = vpack.c.bf16 %v2380_v37, %v2380_v37 }
 0x80d   :  { %9551 = vmatpush1.bf16.msra.mxu1 %v13359_v18  ;;  %v13433_v18 = vld [vmem:[%s18614_s11 + $0x1714] ss:$8 sps:$4 sm:$0xff]  }
 0x80e   :  { %9552 = vmatprep.subr.bf16.mxu1 %v13367_v19  ;;  %v2465_v19 = vpack.c.bf16 %v2386_v11, %v2386_v11  ;;  %v13497_v11 = vld [vmem:[%s18614_s11 + $0x17c0] ss:$8 sps:$4 sm:$0xff]  }
 0x80f   :  { %8938 = vmatpush1.bf16.msra.mxu0 %v13362_v25  ;;  %v13428_v25 = vld [vmem:[%s18614_s11 + $0x810] ss:$8 sps:$4 sm:$0xff]  }
 0x810   :  { %8939 = vmatprep.subr.bf16.mxu0 %v13370_v53  ;;  %v13436_v53 = vld [vmem:[%s18614_s11 + $0x824] ss:$8 sps:$4 sm:$0xff]  }
 0x811   :  { %9553 = vmatpush1.bf16.msra.mxu1 %v13365_v26  ;;  %v13431_v26 = vld [vmem:[%s18614_s11 + $0x1710] ss:$8 sps:$4 sm:$0xff]  }
 0x812   :  { %9554 = vmatprep.subr.bf16.mxu1 %v13373_v29  ;;  %v13439_v29 = vld [vmem:[%s18614_s11 + $0x1724] ss:$8 sps:$4 sm:$0xff]  }
 0x813   :  { %8940 = vmatpush1.bf16.msra.mxu0 %v13368_v30  ;;  %v13434_v30 = vld [vmem:[%s18614_s11 + $0x820] ss:$8 sps:$4 sm:$0xff]  }
 0x814   :  { %8941 = vmatprep.subr.bf16.mxu0 %v13376_v31  ;;  %v13442_v31 = vld [vmem:[%s18614_s11 + $0x834] ss:$8 sps:$4 sm:$0xff]  }
 0x815   :  { %9555 = vmatpush1.bf16.msra.mxu1 %v13371_v32  ;;  %v13437_v32 = vld [vmem:[%s18614_s11 + $0x1720] ss:$8 sps:$4 sm:$0xff]  }
 0x816   :  { %9556 = vmatprep.subr.bf16.mxu1 %v13379_v34  ;;  %v13445_v34 = vld [vmem:[%s18614_s11 + $0x1734] ss:$8 sps:$4 sm:$0xff]  }
 0x817   :  { %8942 = vmatpush1.bf16.msra.mxu0 %v13374_v35  ;;  %v13440_v35 = vld [vmem:[%s18614_s11 + $0x830] ss:$8 sps:$4 sm:$0xff]  }
 0x818   :  { %8943 = vmatprep.subr.bf16.mxu0 %v13382_v36  ;;  %v13448_v36 = vld [vmem:[%s18614_s11 + $0x844] ss:$8 sps:$4 sm:$0xff]  }
 0x819   :  { %9557 = vmatpush1.bf16.msra.mxu1 %v13377_v41  ;;  %v13443_v41 = vld [vmem:[%s18614_s11 + $0x1730] ss:$8 sps:$4 sm:$0xff]  }
 0x81a   :  { %9558 = vmatprep.subr.bf16.mxu1 %v13385_v57  ;;  %v13451_v57 = vld [vmem:[%s18614_s11 + $0x1744] ss:$8 sps:$4 sm:$0xff]  }
 0x81b   :  { %8944 = vmatpush1.bf16.msra.mxu0 %v13380_v42  ;;  %v13446_v42 = vld [vmem:[%s18614_s11 + $0x840] ss:$8 sps:$4 sm:$0xff]  }
 0x81c   :  { %8945 = vmatprep.subr.bf16.mxu0 %v13388_v43  ;;  %v13454_v43 = vld [vmem:[%s18614_s11 + $0x854] ss:$8 sps:$4 sm:$0xff]  }
 0x81d   :  { %9559 = vmatpush1.bf16.msra.mxu1 %v13383_v44  ;;  %v13449_v44 = vld [vmem:[%s18614_s11 + $0x1740] ss:$8 sps:$4 sm:$0xff]  }
 0x81e   :  { %9560 = vmatprep.subr.bf16.mxu1 %v13391_v45  ;;  %v13457_v45 = vld [vmem:[%s18614_s11 + $0x1754] ss:$8 sps:$4 sm:$0xff]  }
 0x81f   :  { %8946 = vmatpush1.bf16.msra.mxu0 %v13386_v46  ;;  %v13452_v46 = vld [vmem:[%s18614_s11 + $0x850] ss:$8 sps:$4 sm:$0xff]  }
 0x820   :  { %8947 = vmatprep.subr.bf16.mxu0 %v13394_v47  ;;  %v13460_v47 = vld [vmem:[%s18614_s11 + $0x864] ss:$8 sps:$4 sm:$0xff]  }
 0x821   :  { %9561 = vmatpush1.bf16.msra.mxu1 %v13389_v49  ;;  %v13455_v49 = vld [vmem:[%s18614_s11 + $0x1750] ss:$8 sps:$4 sm:$0xff]  }
 0x822   :  { %9562 = vmatprep.subr.bf16.mxu1 %v13397_v14  ;;  %v13463_v14 = vld [vmem:[%s18614_s11 + $0x1764] ss:$8 sps:$4 sm:$0xff]  }
 0x823   :  { %8948 = vmatpush1.bf16.msra.mxu0 %v13392_v15  ;;  %v13458_v15 = vld [vmem:[%s18614_s11 + $0x860] ss:$8 sps:$4 sm:$0xff]  }
 0x824   :  { %8949 = vmatprep.subr.bf16.mxu0 %v13400_v16  ;;  %v13461_v16 = vld [vmem:[%s18614_s11 + $0x1760] ss:$8 sps:$4 sm:$0xff]  }
 0x825   :  { %9563 = vmatpush1.bf16.msra.mxu1 %v13395_v20  ;;  %v13464_v20 = vld [vmem:[%s18614_s11 + $0x870] ss:$8 sps:$4 sm:$0xff]  }
 0x826   :  { %9564 = vmatprep.subr.bf16.mxu1 %v13403_v21  ;;  %v13472_v21 = vld [vmem:[%s18614_s11 + $0x884] ss:$8 sps:$4 sm:$0xff]  }
 0x827   :  { %8950 = vmatpush1.bf16.msra.mxu0 %v13398_v48  ;;  %v13467_v48 = vld [vmem:[%s18614_s11 + $0x1770] ss:$8 sps:$4 sm:$0xff]  }
 0x828   :  { %8951 = vmatprep.subr.bf16.mxu0 %v13406_v40  ;;  %v13475_v40 = vld [vmem:[%s18614_s11 + $0x1784] ss:$8 sps:$4 sm:$0xff]  }
 0x829   :  { %9565 = vmatpush1.bf16.msra.mxu1 %v13401_v54  ;;  %v13478_v54 = vld [vmem:[%s18614_s11 + $0x894] ss:$8 sps:$4 sm:$0xff]  }
 0x82a   :  { %9566 = vmatprep.subr.bf16.mxu1 %v13409_v55  ;;  %v13473_v55 = vld [vmem:[%s18614_s11 + $0x1780] ss:$8 sps:$4 sm:$0xff]  }
 0x82b   :  { %8952 = vmatpush1.bf16.msra.mxu0 %v13404_v58  ;;  %v13481_v58 = vld [vmem:[%s18614_s11 + $0x1794] ss:$8 sps:$4 sm:$0xff]  }
 0x82c   :  { %8953 = vmatprep.subr.bf16.mxu0 %v13412_v59  ;;  %v13476_v59 = vld [vmem:[%s18614_s11 + $0x890] ss:$8 sps:$4 sm:$0xff]  }
 0x82d   :  { %9567 = vmatpush1.bf16.msra.mxu1 %v13407_v12  ;;  %v13479_v12 = vld [vmem:[%s18614_s11 + $0x1790] ss:$8 sps:$4 sm:$0xff]  }
 0x82e   :  { %9568 = vmatprep.subr.bf16.mxu1 %v13415_v5  ;;  %v13487_v5 = vld [vmem:[%s18614_s11 + $0x17a4] ss:$8 sps:$4 sm:$0xff]  }
 0x82f   :  { %8954 = vmatpush1.bf16.msra.mxu0 %v13410_v51  ;;  %v13482_v51 = vld [vmem:[%s18614_s11 + $0x8a0] ss:$8 sps:$4 sm:$0xff]  }
 0x830   :  { %8955 = vmatprep.subr.bf16.mxu0 %v13418_v22  ;;  %v13490_v22 = vld [vmem:[%s18614_s11 + $0x8b4] ss:$8 sps:$4 sm:$0xff]  }
 0x831   :  { %9569 = vmatpush1.bf16.msra.mxu1 %v13413_v6  ;;  %v13485_v6 = vld [vmem:[%s18614_s11 + $0x17a0] ss:$8 sps:$4 sm:$0xff]  }
 0x832   :  { %9570 = vmatprep.subr.bf16.mxu1 %v13421_v27  ;;  %v13493_v27 = vld [vmem:[%s18614_s11 + $0x17b4] ss:$8 sps:$4 sm:$0xff]  }
 0x833   :  { %8956 = vmatpush1.bf16.msra.mxu0 %v13416_v39  ;;  %v13488_v39 = vld [vmem:[%s18614_s11 + $0x8b0] ss:$8 sps:$4 sm:$0xff]  }
 0x834   :  { %8966 = vmatprep.subr.bf16.mxu0 %v13424_v61  ;;  %v13491_v61 = vld [vmem:[%s18614_s11 + $0x17b0] ss:$8 sps:$4 sm:$0xff]  }
 0x835   :  { %9571 = vmatpush1.bf16.msra.mxu1 %v13419_v62  ;;  %v2259_v62 = vpop.permute.xlu0 %2258 }
 0x836   :  { %8958 = vmatmul.mubr.bf16.vlgmr.msra.gmra.mrb[16].mxu0 %v2432_v8  ;;  %9581 = vmatprep.subr.bf16.mxu1 %v13427_v28  ;;  %v2272_v37 = vadd.f32 %v15405_v52, %v2259_v62  ;;  %v13494_v28 = vld [vmem:[%s18614_s11 + $0x8c0] ss:$8 sps:$4 sm:$0xff]   ;;  %v13505_v52 = vld [vmem:[%s18614_s11 + $0x17d4] ss:$8 sps:$4 sm:$0xff]   ;;  %v13563_v62 = vld [vmem:[%s18614_s11 + $0x1870] ss:$8 sps:$4 sm:$0xff]  }
 0x837   :  { %8967 = vmatpush1.bf16.msra.mxu0 %v13422_v3  ;;  %8998 = vmatprep.mubr.bf16.mxu0 %v2435_v56  ;;  %v13502_v3 = vld [vmem:[%s18614_s11 + $0x8d4] ss:$8 sps:$4 sm:$0xff]   ;;  %v13508_v56 = vld [vmem:[%s18614_s11 + $0x8e4] ss:$8 sps:$4 sm:$0xff]  }
 0x838   :  { %9573 = vmatmul.mubr.bf16.vlgmr.msra.gmra.mrb[24].mxu1 %v2462_v13  ;;  %8968 = vmatprep.subr.bf16.mxu0 %v13430_v38  ;;  %v2280_v8 = vmax.f32 %v2272_v37, 0.0  ;;  %v13500_v38 = vld [vmem:[%s18614_s11 + $0x8d0] ss:$8 sps:$4 sm:$0xff]   ;;  %v13511_v13 = vld [vmem:[%s18614_s11 + $0x17e4] ss:$8 sps:$4 sm:$0xff]  }
 0x839   :  { %9582 = vmatpush1.bf16.msra.mxu1 %v13425_v23  ;;  %9613 = vmatprep.mubr.bf16.mxu1 %v2465_v19  ;;  %v13503_v23 = vld [vmem:[%s18614_s11 + $0x17d0] ss:$8 sps:$4 sm:$0xff]   ;;  %v13506_v19 = vld [vmem:[%s18614_s11 + $0x8e0] ss:$8 sps:$4 sm:$0xff]  }
 0x83a   :  { %9583 = vmatprep.subr.bf16.mxu1 %v13433_v18  ;;  %v2288_v18 = vadd.f32 %v2280_v8, %v14904_v1  ;;  %v13517_v1 = vld [vmem:[%s18614_s11 + $0x17f4] ss:$8 sps:$4 sm:$0xff]   ;;  %v13566_v37 = vld [vmem:[%s18614_s11 + $0x980] ss:$8 sps:$4 sm:$0xff]   ;;  %v13580_v8 = vld [vmem:[%s18614_s11 + $0x9a4] ss:$8 sps:$4 sm:$0xff]  }
 0x83b   :  { %8969 = vmatpush1.bf16.msra.mxu0 %v13428_v25  ;;  %v13514_v25 = vld [vmem:[%s18614_s11 + $0x8f4] ss:$8 sps:$4 sm:$0xff]  }
 0x83c   :  { %8970 = vmatprep.subr.bf16.mxu0 %v13436_v53  ;;  %v13509_v53 = vld [vmem:[%s18614_s11 + $0x17e0] ss:$8 sps:$4 sm:$0xff]  }
 0x83d   :  { %9584 = vmatpush1.bf16.msra.mxu1 %v13431_v26  ;;  %v16992_v26 = vmax.f32 %v2288_v18, 0.0  ;;  %v13581_v18 = vld [vmem:[%s18614_s11 + $0x18a0] ss:$8 sps:$4 sm:$0xff]  }
 0x83e   :  { %9585 = vmatprep.subr.bf16.mxu1 %v13439_v29  ;;  %v13512_v29 = vld [vmem:[%s18614_s11 + $0x8f0] ss:$8 sps:$4 sm:$0xff]  }
 0x83f   :  { %8971 = vmatpush1.bf16.msra.mxu0 %v13434_v30  ;;  %v13520_v30 = vld [vmem:[%s18614_s11 + $0x904] ss:$8 sps:$4 sm:$0xff]  }
 0x840   :  { %8972 = vmatprep.subr.bf16.mxu0 %v13442_v31  ;;  %v13515_v31 = vld [vmem:[%s18614_s11 + $0x17f0] ss:$8 sps:$4 sm:$0xff]  }
 0x841   :  { %9586 = vmatpush1.bf16.msra.mxu1 %v13437_v32  ;;  %v2333_v32 = vrot.slane %v16786_v4, 3 }
 0x842   :  { %9587 = vmatprep.subr.bf16.mxu1 %v13445_v34  ;;  %v2384_v34 = vrot.slane %v16198_v9, 6 }
 0x843   :  { %8973 = vmatpush1.bf16.msra.mxu0 %v13440_v35  ;;  %v13523_v35 = vld [vmem:[%s18614_s11 + $0x1804] ss:$8 sps:$4 sm:$0xff]   ;;  %v2437_v9 = vpack.c.bf16 %v2333_v32, %v2333_v32  ;;  %v13593_v32 = vld [vmem:[%s18614_s11 + $0x18c0] ss:$8 sps:$4 sm:$0xff]  }
 0x844   :  { %8974 = vmatprep.subr.bf16.mxu0 %v13448_v36  ;;  %v13518_v36 = vld [vmem:[%s18614_s11 + $0x900] ss:$8 sps:$4 sm:$0xff]  }
 0x845   :  { %9588 = vmatpush1.bf16.msra.mxu1 %v13443_v41  ;;  %v2389_v41 = vrot.slane %v16992_v26, 1 }
 0x846   :  { %9589 = vmatprep.subr.bf16.mxu1 %v13451_v57  ;;  %v2434_v57 = vpack.c.bf16 %v16786_v4, %v16786_v4 }
 0x847   :  { %8975 = vmatpush1.bf16.msra.mxu0 %v13446_v42  ;;  %v13526_v42 = vld [vmem:[%s18614_s11 + $0x914] ss:$8 sps:$4 sm:$0xff]  }
 0x848   :  { %8976 = vmatprep.subr.bf16.mxu0 %v13454_v43  ;;  %v13521_v43 = vld [vmem:[%s18614_s11 + $0x1800] ss:$8 sps:$4 sm:$0xff]  }
 0x849   :  { %9590 = vmatpush1.bf16.msra.mxu1 %v13449_v44  ;;  %v2464_v44 = vpack.c.bf16 %v2384_v34, %v2384_v34  ;;  %v13601_v34 = vld [vmem:[%s18614_s11 + $0x18d4] ss:$8 sps:$4 sm:$0xff]  }
 0x84a   :  { %9591 = vmatprep.subr.bf16.mxu1 %v13457_v45  ;;  %v13529_v45 = vld [vmem:[%s18614_s11 + $0x1814] ss:$8 sps:$4 sm:$0xff]  }
 0x84b   :  { %8977 = vmatpush1.bf16.msra.mxu0 %v13452_v46  ;;  %v2467_v46 = vpack.c.bf16 %v2389_v41, %v2389_v41  ;;  %v13599_v41 = vld [vmem:[%s18614_s11 + $0x18d0] ss:$8 sps:$4 sm:$0xff]  }
 0x84c   :  { %8978 = vmatprep.subr.bf16.mxu0 %v13460_v47  ;;  %v13524_v47 = vld [vmem:[%s18614_s11 + $0x910] ss:$8 sps:$4 sm:$0xff]  }
 0x84d   :  { %9592 = vmatpush1.bf16.msra.mxu1 %v13455_v49  ;;  %v13532_v49 = vld [vmem:[%s18614_s11 + $0x924] ss:$8 sps:$4 sm:$0xff]  }
 0x84e   :  { %9593 = vmatprep.subr.bf16.mxu1 %v13463_v14  ;;  %v13527_v14 = vld [vmem:[%s18614_s11 + $0x1810] ss:$8 sps:$4 sm:$0xff]  }
 0x84f   :  { %8979 = vmatpush1.bf16.msra.mxu0 %v13458_v15  ;;  %v13535_v15 = vld [vmem:[%s18614_s11 + $0x1824] ss:$8 sps:$4 sm:$0xff]  }
 0x850   :  { %8980 = vmatprep.subr.bf16.mxu0 %v13466_v50  ;;  %v13530_v50 = vld [vmem:[%s18614_s11 + $0x920] ss:$8 sps:$4 sm:$0xff]  }
 0x851   :  { %9594 = vmatpush1.bf16.msra.mxu1 %v13461_v16  ;;  %v13538_v16 = vld [vmem:[%s18614_s11 + $0x934] ss:$8 sps:$4 sm:$0xff]  }
 0x852   :  { %9595 = vmatprep.subr.bf16.mxu1 %v13469_v17  ;;  %v13533_v17 = vld [vmem:[%s18614_s11 + $0x1820] ss:$8 sps:$4 sm:$0xff]  }
 0x853   :  { %8981 = vmatpush1.bf16.msra.mxu0 %v13464_v20  ;;  %v13541_v20 = vld [vmem:[%s18614_s11 + $0x1834] ss:$8 sps:$4 sm:$0xff]  }
 0x854   :  { %8982 = vmatprep.subr.bf16.mxu0 %v13472_v21  ;;  %v13536_v21 = vld [vmem:[%s18614_s11 + $0x930] ss:$8 sps:$4 sm:$0xff]  }
 0x855   :  { %9596 = vmatpush1.bf16.msra.mxu1 %v13467_v48  ;;  %v13544_v48 = vld [vmem:[%s18614_s11 + $0x944] ss:$8 sps:$4 sm:$0xff]  }
 0x856   :  { %9597 = vmatprep.subr.bf16.mxu1 %v13475_v40  ;;  %v13539_v40 = vld [vmem:[%s18614_s11 + $0x1830] ss:$8 sps:$4 sm:$0xff]  }
 0x857   :  { %8983 = vmatpush1.bf16.msra.mxu0 %v13470_v24  ;;  %v13547_v24 = vld [vmem:[%s18614_s11 + $0x1844] ss:$8 sps:$4 sm:$0xff]  }
 0x858   :  { %8984 = vmatprep.subr.bf16.mxu0 %v13478_v54  ;;  %v13542_v54 = vld [vmem:[%s18614_s11 + $0x940] ss:$8 sps:$4 sm:$0xff]  }
 0x859   :  { %9598 = vmatpush1.bf16.msra.mxu1 %v13473_v55  ;;  %v13550_v55 = vld [vmem:[%s18614_s11 + $0x954] ss:$8 sps:$4 sm:$0xff]  }
 0x85a   :  { %9599 = vmatprep.subr.bf16.mxu1 %v13481_v58  ;;  %v13545_v58 = vld [vmem:[%s18614_s11 + $0x1840] ss:$8 sps:$4 sm:$0xff]  }
 0x85b   :  { %8985 = vmatpush1.bf16.msra.mxu0 %v13476_v59  ;;  %v13553_v59 = vld [vmem:[%s18614_s11 + $0x1854] ss:$8 sps:$4 sm:$0xff]  }
 0x85c   :  { %8986 = vmatprep.subr.bf16.mxu0 %v13484_v60  ;;  %v13548_v60 = vld [vmem:[%s18614_s11 + $0x950] ss:$8 sps:$4 sm:$0xff]  }
 0x85d   :  { %9600 = vmatpush1.bf16.msra.mxu1 %v13479_v12  ;;  %v13556_v12 = vld [vmem:[%s18614_s11 + $0x964] ss:$8 sps:$4 sm:$0xff]  }
 0x85e   :  { %9601 = vmatprep.subr.bf16.mxu1 %v13487_v5  ;;  %v13551_v5 = vld [vmem:[%s18614_s11 + $0x1850] ss:$8 sps:$4 sm:$0xff]  }
 0x85f   :  { %8987 = vmatpush1.bf16.msra.mxu0 %v13482_v51  ;;  %v13559_v51 = vld [vmem:[%s18614_s11 + $0x1864] ss:$8 sps:$4 sm:$0xff]  }
 0x860   :  { %8988 = vmatprep.subr.bf16.mxu0 %v13490_v22  ;;  %v13554_v22 = vld [vmem:[%s18614_s11 + $0x960] ss:$8 sps:$4 sm:$0xff]  }
 0x861   :  { %9602 = vmatpush1.bf16.msra.mxu1 %v13485_v6  ;;  %v13562_v6 = vld [vmem:[%s18614_s11 + $0x974] ss:$8 sps:$4 sm:$0xff]  }
 0x862   :  { %9603 = vmatprep.subr.bf16.mxu1 %v13493_v27  ;;  %v13557_v27 = vld [vmem:[%s18614_s11 + $0x1860] ss:$8 sps:$4 sm:$0xff]  }
 0x863   :  { %8989 = vmatpush1.bf16.msra.mxu0 %v13488_v39  ;;  %v13565_v39 = vld [vmem:[%s18614_s11 + $0x1874] ss:$8 sps:$4 sm:$0xff]  }
 0x864   :  { %8990 = vmatprep.subr.bf16.mxu0 %v13496_v10  ;;  %v13560_v10 = vld [vmem:[%s18614_s11 + $0x970] ss:$8 sps:$4 sm:$0xff]  }
 0x865   :  { %9604 = vmatpush1.bf16.msra.mxu1 %v13491_v61  ;;  %v13568_v61 = vld [vmem:[%s18614_s11 + $0x984] ss:$8 sps:$4 sm:$0xff]  }
 0x866   :  { %9605 = vmatprep.subr.bf16.mxu1 %v13499_v63  ;;  %v13571_v63 = vld [vmem:[%s18614_s11 + $0x1884] ss:$8 sps:$4 sm:$0xff]  }
 0x867   :  { %8991 = vmatpush1.bf16.msra.mxu0 %v13494_v28  ;;  %v13574_v28 = vld [vmem:[%s18614_s11 + $0x994] ss:$8 sps:$4 sm:$0xff]  }
 0x868   :  { %8992 = vmatprep.subr.bf16.mxu0 %v13502_v3  ;;  %v13569_v3 = vld [vmem:[%s18614_s11 + $0x1880] ss:$8 sps:$4 sm:$0xff]  }
 0x869   :  { %9606 = vmatpush1.bf16.msra.mxu1 %v13497_v11  ;;  %v13577_v11 = vld [vmem:[%s18614_s11 + $0x1894] ss:$8 sps:$4 sm:$0xff]  }
 0x86a   :  { %9607 = vmatprep.subr.bf16.mxu1 %v13505_v52  ;;  %v13572_v52 = vld [vmem:[%s18614_s11 + $0x990] ss:$8 sps:$4 sm:$0xff]  }
 0x86b   :  { %8993 = vmatpush1.bf16.msra.mxu0 %v13500_v38  ;;  %v13575_v38 = vld [vmem:[%s18614_s11 + $0x1890] ss:$8 sps:$4 sm:$0xff]  }
 0x86c   :  { %8994 = vmatprep.subr.bf16.mxu0 %v13508_v56  ;;  %v13583_v56 = vld [vmem:[%s18614_s11 + $0x18a4] ss:$8 sps:$4 sm:$0xff]  }
 0x86d   :  { %9608 = vmatpush1.bf16.msra.mxu1 %v13503_v23  ;;  %v13578_v23 = vld [vmem:[%s18614_s11 + $0x9a0] ss:$8 sps:$4 sm:$0xff]  }
 0x86e   :  { %9609 = vmatprep.subr.bf16.mxu1 %v13511_v13  ;;  %v13586_v13 = vld [vmem:[%s18614_s11 + $0x9b4] ss:$8 sps:$4 sm:$0xff]  }
 0x86f   :  { %8995 = vmatpush1.bf16.msra.mxu0 %v13506_v19  ;;  %v13589_v19 = vld [vmem:[%s18614_s11 + $0x18b4] ss:$8 sps:$4 sm:$0xff]  }
 0x870   :  { %8996 = vmatprep.subr.bf16.mxu0 %v13514_v25  ;;  %v13584_v25 = vld [vmem:[%s18614_s11 + $0x9b0] ss:$8 sps:$4 sm:$0xff]  }
 0x871   :  { %9610 = vmatpush1.bf16.msra.mxu1 %v13509_v53  ;;  %v13592_v53 = vld [vmem:[%s18614_s11 + $0x9c4] ss:$8 sps:$4 sm:$0xff]  }
 0x872   :  { %9611 = vmatprep.subr.bf16.mxu1 %v13517_v1  ;;  %v13587_v1 = vld [vmem:[%s18614_s11 + $0x18b0] ss:$8 sps:$4 sm:$0xff]  }
 0x873   :  { %8997 = vmatpush1.bf16.msra.mxu0 %v13512_v29  ;;  %v13595_v29 = vld [vmem:[%s18614_s11 + $0x18c4] ss:$8 sps:$4 sm:$0xff]  }
 0x874   :  { %9007 = vmatprep.subr.bf16.mxu0 %v13520_v30  ;;  %v13590_v30 = vld [vmem:[%s18614_s11 + $0x9c0] ss:$8 sps:$4 sm:$0xff]  }
 0x875   :  { %9612 = vmatpush1.bf16.msra.mxu1 %v13515_v31  ;;  %v13598_v31 = vld [vmem:[%s18614_s11 + $0x9d4] ss:$8 sps:$4 sm:$0xff]  }
 0x876   :  { %8999 = vmatmul.mubr.bf16.vlgmr.msra.gmra.mrb[16].mxu0 %v2434_v57  ;;  %9622 = vmatprep.subr.bf16.mxu1 %v13523_v35  ;;  %v13596_v35 = vld [vmem:[%s18614_s11 + $0x9d0] ss:$8 sps:$4 sm:$0xff]   ;;  %v13607_v57 = vld [vmem:[%s18614_s11 + $0x18e4] ss:$8 sps:$4 sm:$0xff]  }
 0x877   :  { %9008 = vmatpush1.bf16.msra.mxu0 %v13518_v36  ;;  %9039 = vmatprep.mubr.bf16.mxu0 %v2437_v9  ;;  %v13604_v36 = vld [vmem:[%s18614_s11 + $0x9e4] ss:$8 sps:$4 sm:$0xff]   ;;  %v13610_v9 = vld [vmem:[%s18614_s11 + $0x9f4] ss:$8 sps:$4 sm:$0xff]  }
 0x878   :  { %9614 = vmatmul.mubr.bf16.vlgmr.msra.gmra.mrb[24].mxu1 %v2464_v44  ;;  %9009 = vmatprep.subr.bf16.mxu0 %v13526_v42  ;;  %v13602_v42 = vld [vmem:[%s18614_s11 + $0x9e0] ss:$8 sps:$4 sm:$0xff]   ;;  %v13613_v44 = vld [vmem:[%s18614_s11 + $0x18f4] ss:$8 sps:$4 sm:$0xff]  }
 0x879   :  { %9623 = vmatpush1.bf16.msra.mxu1 %v13521_v43  ;;  %9654 = vmatprep.mubr.bf16.mxu1 %v2467_v46  ;;  %v13605_v43 = vld [vmem:[%s18614_s11 + $0x18e0] ss:$8 sps:$4 sm:$0xff]   ;;  %v2331_v46 = vrot.slane %v16786_v4, 2 }
 0x87a   :  { %9624 = vmatprep.subr.bf16.mxu1 %v13529_v45  ;;  %v13608_v45 = vld [vmem:[%s18614_s11 + $0x9f0] ss:$8 sps:$4 sm:$0xff]  }
 0x87b   :  { %9010 = vmatpush1.bf16.msra.mxu0 %v13524_v47  ;;  %v13616_v47 = vld [vmem:[%s18614_s11 + $0xa04] ss:$8 sps:$4 sm:$0xff]  }
 0x87c   :  { %9011 = vmatprep.subr.bf16.mxu0 %v13532_v49  ;;  %v13611_v49 = vld [vmem:[%s18614_s11 + $0x18f0] ss:$8 sps:$4 sm:$0xff]  }
 0x87d   :  { %9625 = vmatpush1.bf16.msra.mxu1 %v13527_v14  ;;  %v2337_v14 = vrot.slane %v16786_v4, 5 }
 0x87e   :  { %9626 = vmatprep.subr.bf16.mxu1 %v13535_v15  ;;  %v13619_v15 = vld [vmem:[%s18614_s11 + $0x1904] ss:$8 sps:$4 sm:$0xff]  }
 0x87f   :  { %9012 = vmatpush1.bf16.msra.mxu0 %v13530_v50  ;;  %v13614_v50 = vld [vmem:[%s18614_s11 + $0xa00] ss:$8 sps:$4 sm:$0xff]  }
 0x880   :  { %9013 = vmatprep.subr.bf16.mxu0 %v13538_v16  ;;  %v2393_v16 = vrot.slane %v16992_v26, 3 }
 0x881   :  { %9627 = vmatpush1.bf16.msra.mxu1 %v13533_v17  ;;  %v2436_v17 = vpack.c.bf16 %v2331_v46, %v2331_v46  ;;  %v13686_v46 = vld [vmem:[%s18614_s11 + $0xac0] ss:$8 sps:$4 sm:$0xff]  }
 0x882   :  { %9628 = vmatprep.subr.bf16.mxu1 %v13541_v20  ;;  %v13622_v20 = vld [vmem:[%s18614_s11 + $0xa14] ss:$8 sps:$4 sm:$0xff]  }
 0x883   :  { %9014 = vmatpush1.bf16.msra.mxu0 %v13536_v21  ;;  %v2439_v21 = vpack.c.bf16 %v2337_v14, %v2337_v14  ;;  %v13697_v14 = vld [vmem:[%s18614_s11 + $0x19d4] ss:$8 sps:$4 sm:$0xff]  }
 0x884   :  { %9015 = vmatprep.subr.bf16.mxu0 %v13544_v48  ;;  %v13617_v48 = vld [vmem:[%s18614_s11 + $0x1900] ss:$8 sps:$4 sm:$0xff]  }
 0x885   :  { %9629 = vmatpush1.bf16.msra.mxu1 %v13539_v40  ;;  %v2466_v40 = vpack.c.bf16 %v16992_v26, %v16992_v26 }
 0x886   :  { %9630 = vmatprep.subr.bf16.mxu1 %v13547_v24  ;;  %v13625_v24 = vld [vmem:[%s18614_s11 + $0x1914] ss:$8 sps:$4 sm:$0xff]  }
 0x887   :  { %9016 = vmatpush1.bf16.msra.mxu0 %v13542_v54  ;;  %v2469_v54 = vpack.c.bf16 %v2393_v16, %v2393_v16  ;;  %v13695_v16 = vld [vmem:[%s18614_s11 + $0x19d0] ss:$8 sps:$4 sm:$0xff]  }
 0x888   :  { %9017 = vmatprep.subr.bf16.mxu0 %v13550_v55  ;;  %v13620_v55 = vld [vmem:[%s18614_s11 + $0xa10] ss:$8 sps:$4 sm:$0xff]  }
 0x889   :  { %9631 = vmatpush1.bf16.msra.mxu1 %v13545_v58  ;;  %v13628_v58 = vld [vmem:[%s18614_s11 + $0xa24] ss:$8 sps:$4 sm:$0xff]  }
 0x88a   :  { %9632 = vmatprep.subr.bf16.mxu1 %v13553_v59  ;;  %v13623_v59 = vld [vmem:[%s18614_s11 + $0x1910] ss:$8 sps:$4 sm:$0xff]  }
 0x88b   :  { %9018 = vmatpush1.bf16.msra.mxu0 %v13548_v60  ;;  %v13631_v60 = vld [vmem:[%s18614_s11 + $0x1924] ss:$8 sps:$4 sm:$0xff]  }
 0x88c   :  { %9019 = vmatprep.subr.bf16.mxu0 %v13556_v12  ;;  %v13626_v12 = vld [vmem:[%s18614_s11 + $0xa20] ss:$8 sps:$4 sm:$0xff]  }
 0x88d   :  { %9633 = vmatpush1.bf16.msra.mxu1 %v13551_v5  ;;  %v13634_v5 = vld [vmem:[%s18614_s11 + $0xa34] ss:$8 sps:$4 sm:$0xff]  }
 0x88e   :  { %9634 = vmatprep.subr.bf16.mxu1 %v13559_v51  ;;  %v13629_v51 = vld [vmem:[%s18614_s11 + $0x1920] ss:$8 sps:$4 sm:$0xff]  }
 0x88f   :  { %9020 = vmatpush1.bf16.msra.mxu0 %v13554_v22  ;;  %v13637_v22 = vld [vmem:[%s18614_s11 + $0x1934] ss:$8 sps:$4 sm:$0xff]  }
 0x890   :  { %9021 = vmatprep.subr.bf16.mxu0 %v13562_v6  ;;  %v13632_v6 = vld [vmem:[%s18614_s11 + $0xa30] ss:$8 sps:$4 sm:$0xff]  }
 0x891   :  { %9635 = vmatpush1.bf16.msra.mxu1 %v13557_v27  ;;  %v13640_v27 = vld [vmem:[%s18614_s11 + $0xa44] ss:$8 sps:$4 sm:$0xff]  }
 0x892   :  { %9636 = vmatprep.subr.bf16.mxu1 %v13565_v39  ;;  %v13635_v39 = vld [vmem:[%s18614_s11 + $0x1930] ss:$8 sps:$4 sm:$0xff]  }
 0x893   :  { %9022 = vmatpush1.bf16.msra.mxu0 %v13560_v10  ;;  %v13643_v10 = vld [vmem:[%s18614_s11 + $0x1944] ss:$8 sps:$4 sm:$0xff]  }
 0x894   :  { %9023 = vmatprep.subr.bf16.mxu0 %v13568_v61  ;;  %v13638_v61 = vld [vmem:[%s18614_s11 + $0xa40] ss:$8 sps:$4 sm:$0xff]  }
 0x895   :  { %9637 = vmatpush1.bf16.msra.mxu1 %v13563_v62  ;;  %v13646_v62 = vld [vmem:[%s18614_s11 + $0xa54] ss:$8 sps:$4 sm:$0xff]  }
 0x896   :  { %9638 = vmatprep.subr.bf16.mxu1 %v13571_v63  ;;  %v13641_v63 = vld [vmem:[%s18614_s11 + $0x1940] ss:$8 sps:$4 sm:$0xff]  }
 0x897   :  { %9024 = vmatpush1.bf16.msra.mxu0 %v13566_v37  ;;  %v13649_v37 = vld [vmem:[%s18614_s11 + $0x1954] ss:$8 sps:$4 sm:$0xff]  }
 0x898   :  { %9025 = vmatprep.subr.bf16.mxu0 %v13574_v28  ;;  %v13644_v28 = vld [vmem:[%s18614_s11 + $0xa50] ss:$8 sps:$4 sm:$0xff]  }
 0x899   :  { %9639 = vmatpush1.bf16.msra.mxu1 %v13569_v3  ;;  %v13652_v3 = vld [vmem:[%s18614_s11 + $0xa64] ss:$8 sps:$4 sm:$0xff]  }
 0x89a   :  { %9640 = vmatprep.subr.bf16.mxu1 %v13577_v11  ;;  %v13647_v11 = vld [vmem:[%s18614_s11 + $0x1950] ss:$8 sps:$4 sm:$0xff]  }
 0x89b   :  { %9026 = vmatpush1.bf16.msra.mxu0 %v13572_v52  ;;  %v13655_v52 = vld [vmem:[%s18614_s11 + $0x1964] ss:$8 sps:$4 sm:$0xff]  }
 0x89c   :  { %9027 = vmatprep.subr.bf16.mxu0 %v13580_v8  ;;  %v13650_v8 = vld [vmem:[%s18614_s11 + $0xa60] ss:$8 sps:$4 sm:$0xff]  }
 0x89d   :  { %9641 = vmatpush1.bf16.msra.mxu1 %v13575_v38  ;;  %v13658_v38 = vld [vmem:[%s18614_s11 + $0xa74] ss:$8 sps:$4 sm:$0xff]  }
 0x89e   :  { %9642 = vmatprep.subr.bf16.mxu1 %v13583_v56  ;;  %v13653_v56 = vld [vmem:[%s18614_s11 + $0x1960] ss:$8 sps:$4 sm:$0xff]  }
 0x89f   :  { %9028 = vmatpush1.bf16.msra.mxu0 %v13578_v23  ;;  %v13661_v23 = vld [vmem:[%s18614_s11 + $0x1974] ss:$8 sps:$4 sm:$0xff]  }
 0x8a0   :  { %9029 = vmatprep.subr.bf16.mxu0 %v13586_v13  ;;  %v13656_v13 = vld [vmem:[%s18614_s11 + $0xa70] ss:$8 sps:$4 sm:$0xff]  }
 0x8a1   :  { %9643 = vmatpush1.bf16.msra.mxu1 %v13581_v18  ;;  %v13664_v18 = vld [vmem:[%s18614_s11 + $0xa84] ss:$8 sps:$4 sm:$0xff]  }
 0x8a2   :  { %9644 = vmatprep.subr.bf16.mxu1 %v13589_v19  ;;  %v13659_v19 = vld [vmem:[%s18614_s11 + $0x1970] ss:$8 sps:$4 sm:$0xff]  }
 0x8a3   :  { %9030 = vmatpush1.bf16.msra.mxu0 %v13584_v25  ;;  %v13667_v25 = vld [vmem:[%s18614_s11 + $0x1984] ss:$8 sps:$4 sm:$0xff]  }
 0x8a4   :  { %9031 = vmatprep.subr.bf16.mxu0 %v13592_v53  ;;  %v13662_v53 = vld [vmem:[%s18614_s11 + $0xa80] ss:$8 sps:$4 sm:$0xff]  }
 0x8a5   :  { %9645 = vmatpush1.bf16.msra.mxu1 %v13587_v1  ;;  %v13670_v1 = vld [vmem:[%s18614_s11 + $0xa94] ss:$8 sps:$4 sm:$0xff]  }
 0x8a6   :  { %9646 = vmatprep.subr.bf16.mxu1 %v13595_v29  ;;  %v13665_v29 = vld [vmem:[%s18614_s11 + $0x1980] ss:$8 sps:$4 sm:$0xff]  }
 0x8a7   :  { %9032 = vmatpush1.bf16.msra.mxu0 %v13590_v30  ;;  %v13673_v30 = vld [vmem:[%s18614_s11 + $0x1994] ss:$8 sps:$4 sm:$0xff]  }
 0x8a8   :  { %9033 = vmatprep.subr.bf16.mxu0 %v13598_v31  ;;  %v13668_v31 = vld [vmem:[%s18614_s11 + $0xa90] ss:$8 sps:$4 sm:$0xff]  }
 0x8a9   :  { %9647 = vmatpush1.bf16.msra.mxu1 %v13593_v32  ;;  %v13676_v32 = vld [vmem:[%s18614_s11 + $0xaa4] ss:$8 sps:$4 sm:$0xff]  }
 0x8aa   :  { %9648 = vmatprep.subr.bf16.mxu1 %v13601_v34  ;;  %v13671_v34 = vld [vmem:[%s18614_s11 + $0x1990] ss:$8 sps:$4 sm:$0xff]  }
 0x8ab   :  { %9034 = vmatpush1.bf16.msra.mxu0 %v13596_v35  ;;  %v13679_v35 = vld [vmem:[%s18614_s11 + $0x19a4] ss:$8 sps:$4 sm:$0xff]  }
 0x8ac   :  { %9035 = vmatprep.subr.bf16.mxu0 %v13604_v36  ;;  %v13674_v36 = vld [vmem:[%s18614_s11 + $0xaa0] ss:$8 sps:$4 sm:$0xff]  }
 0x8ad   :  { %9649 = vmatpush1.bf16.msra.mxu1 %v13599_v41  ;;  %v13682_v41 = vld [vmem:[%s18614_s11 + $0xab4] ss:$8 sps:$4 sm:$0xff]  }
 0x8ae   :  { %9650 = vmatprep.subr.bf16.mxu1 %v13607_v57  ;;  %v13677_v57 = vld [vmem:[%s18614_s11 + $0x19a0] ss:$8 sps:$4 sm:$0xff]  }
 0x8af   :  { %9036 = vmatpush1.bf16.msra.mxu0 %v13602_v42  ;;  %v13685_v42 = vld [vmem:[%s18614_s11 + $0x19b4] ss:$8 sps:$4 sm:$0xff]  }
 0x8b0   :  { %9037 = vmatprep.subr.bf16.mxu0 %v13610_v9  ;;  %v13680_v9 = vld [vmem:[%s18614_s11 + $0xab0] ss:$8 sps:$4 sm:$0xff]  }
 0x8b1   :  { %9651 = vmatpush1.bf16.msra.mxu1 %v13605_v43  ;;  %v13688_v43 = vld [vmem:[%s18614_s11 + $0xac4] ss:$8 sps:$4 sm:$0xff]  }
 0x8b2   :  { %9652 = vmatprep.subr.bf16.mxu1 %v13613_v44  ;;  %v13683_v44 = vld [vmem:[%s18614_s11 + $0x19b0] ss:$8 sps:$4 sm:$0xff]  }
 0x8b3   :  { %9038 = vmatpush1.bf16.msra.mxu0 %v13608_v45  ;;  %v13691_v45 = vld [vmem:[%s18614_s11 + $0x19c4] ss:$8 sps:$4 sm:$0xff]  }
 0x8b4   :  { %9048 = vmatprep.subr.bf16.mxu0 %v13616_v47  ;;  %v13694_v47 = vld [vmem:[%s18614_s11 + $0xad4] ss:$8 sps:$4 sm:$0xff]  }
 0x8b5   :  { %9653 = vmatpush1.bf16.msra.mxu1 %v13611_v49  ;;  %v13689_v49 = vld [vmem:[%s18614_s11 + $0x19c0] ss:$8 sps:$4 sm:$0xff]  }
 0x8b6   :  { %9040 = vmatmul.mubr.bf16.vlgmr.msra.gmra.mrb[16].mxu0 %v2436_v17  ;;  %9663 = vmatprep.subr.bf16.mxu1 %v13619_v15  ;;  %v13692_v15 = vld [vmem:[%s18614_s11 + $0xad0] ss:$8 sps:$4 sm:$0xff]   ;;  %v13703_v17 = vld [vmem:[%s18614_s11 + $0x19e4] ss:$8 sps:$4 sm:$0xff]  }
 0x8b7   :  { %9049 = vmatpush1.bf16.msra.mxu0 %v13614_v50  ;;  %9080 = vmatprep.mubr.bf16.mxu0 %v2439_v21  ;;  %v13700_v50 = vld [vmem:[%s18614_s11 + $0xae4] ss:$8 sps:$4 sm:$0xff]   ;;  %v13706_v21 = vld [vmem:[%s18614_s11 + $0xaf4] ss:$8 sps:$4 sm:$0xff]  }
 0x8b8   :  { %9655 = vmatmul.mubr.bf16.vlgmr.msra.gmra.mrb[24].mxu1 %v2466_v40  ;;  %9050 = vmatprep.subr.bf16.mxu0 %v13622_v20  ;;  %v13698_v20 = vld [vmem:[%s18614_s11 + $0xae0] ss:$8 sps:$4 sm:$0xff]   ;;  %v13709_v40 = vld [vmem:[%s18614_s11 + $0x19f4] ss:$8 sps:$4 sm:$0xff]  }
 0x8b9   :  { %9664 = vmatpush1.bf16.msra.mxu1 %v13617_v48  ;;  %9695 = vmatprep.mubr.bf16.mxu1 %v2469_v54  ;;  %v13701_v48 = vld [vmem:[%s18614_s11 + $0x19e0] ss:$8 sps:$4 sm:$0xff]   ;;  %v2335_v54 = vrot.slane %v16786_v4, 4 }
 0x8ba   :  { %9665 = vmatprep.subr.bf16.mxu1 %v13625_v24  ;;  %v13704_v24 = vld [vmem:[%s18614_s11 + $0xaf0] ss:$8 sps:$4 sm:$0xff]  }
 0x8bb   :  { %9051 = vmatpush1.bf16.msra.mxu0 %v13620_v55  ;;  %v13712_v55 = vld [vmem:[%s18614_s11 + $0xb04] ss:$8 sps:$4 sm:$0xff]  }
 0x8bc   :  { %9052 = vmatprep.subr.bf16.mxu0 %v13628_v58  ;;  %v13707_v58 = vld [vmem:[%s18614_s11 + $0x19f0] ss:$8 sps:$4 sm:$0xff]  }
 0x8bd   :  { %9666 = vmatpush1.bf16.msra.mxu1 %v13623_v59  ;;  %v2341_v59 = vrot.slane %v16786_v4, 7 }
 0x8be   :  { %9667 = vmatprep.subr.bf16.mxu1 %v13631_v60  ;;  %v2391_v60 = vrot.slane %v16992_v26, 2 }
 0x8bf   :  { %9053 = vmatpush1.bf16.msra.mxu0 %v13626_v12  ;;  %v13715_v12 = vld [vmem:[%s18614_s11 + $0x1a04] ss:$8 sps:$4 sm:$0xff]  }
 0x8c0   :  { %9054 = vmatprep.subr.bf16.mxu0 %v13634_v5  ;;  %v13710_v5 = vld [vmem:[%s18614_s11 + $0xb00] ss:$8 sps:$4 sm:$0xff]  }
 0x8c1   :  { %9668 = vmatpush1.bf16.msra.mxu1 %v13629_v51  ;;  %v2397_v51 = vrot.slane %v16992_v26, 5 }
 0x8c2   :  { %9669 = vmatprep.subr.bf16.mxu1 %v13637_v22  ;;  %v2438_v22 = vpack.c.bf16 %v2335_v54, %v2335_v54  ;;  %v13787_v54 = vld [vmem:[%s18614_s11 + $0x1ac4] ss:$8 sps:$4 sm:$0xff]  }
 0x8c3   :  { %9055 = vmatpush1.bf16.msra.mxu0 %v13632_v6  ;;  %v13718_v6 = vld [vmem:[%s18614_s11 + $0xb14] ss:$8 sps:$4 sm:$0xff]  }
 0x8c4   :  { %9056 = vmatprep.subr.bf16.mxu0 %v13640_v27  ;;  %v2441_v27 = vpack.c.bf16 %v2341_v59, %v2341_v59  ;;  %v13785_v59 = vld [vmem:[%s18614_s11 + $0x1ac0] ss:$8 sps:$4 sm:$0xff]  }
 0x8c5   :  { %9670 = vmatpush1.bf16.msra.mxu1 %v13635_v39  ;;  %v13713_v39 = vld [vmem:[%s18614_s11 + $0x1a00] ss:$8 sps:$4 sm:$0xff]  }
 0x8c6   :  { %9671 = vmatprep.subr.bf16.mxu1 %v13643_v10  ;;  %v2468_v10 = vpack.c.bf16 %v2391_v60, %v2391_v60  ;;  %v13793_v60 = vld [vmem:[%s18614_s11 + $0x1ad4] ss:$8 sps:$4 sm:$0xff]  }
 0x8c7   :  { %9057 = vmatpush1.bf16.msra.mxu0 %v13638_v61  ;;  %v13721_v61 = vld [vmem:[%s18614_s11 + $0x1a14] ss:$8 sps:$4 sm:$0xff]  }
 0x8c8   :  { %9058 = vmatprep.subr.bf16.mxu0 %v13646_v62  ;;  %v2471_v62 = vpack.c.bf16 %v2397_v51, %v2397_v51  ;;  %v13791_v51 = vld [vmem:[%s18614_s11 + $0x1ad0] ss:$8 sps:$4 sm:$0xff]  }
 0x8c9   :  { %9672 = vmatpush1.bf16.msra.mxu1 %v13641_v63  ;;  %v13716_v63 = vld [vmem:[%s18614_s11 + $0xb10] ss:$8 sps:$4 sm:$0xff]  }
 0x8ca   :  { %9673 = vmatprep.subr.bf16.mxu1 %v13649_v37  ;;  %v13724_v37 = vld [vmem:[%s18614_s11 + $0xb24] ss:$8 sps:$4 sm:$0xff]  }
 0x8cb   :  { %9059 = vmatpush1.bf16.msra.mxu0 %v13644_v28  ;;  %v13719_v28 = vld [vmem:[%s18614_s11 + $0x1a10] ss:$8 sps:$4 sm:$0xff]  }
 0x8cc   :  { %9060 = vmatprep.subr.bf16.mxu0 %v13652_v3  ;;  %v13727_v3 = vld [vmem:[%s18614_s11 + $0x1a24] ss:$8 sps:$4 sm:$0xff]  }
 0x8cd   :  { %9674 = vmatpush1.bf16.msra.mxu1 %v13647_v11  ;;  %v13722_v11 = vld [vmem:[%s18614_s11 + $0xb20] ss:$8 sps:$4 sm:$0xff]  }
 0x8ce   :  { %9675 = vmatprep.subr.bf16.mxu1 %v13655_v52  ;;  %v13730_v52 = vld [vmem:[%s18614_s11 + $0xb34] ss:$8 sps:$4 sm:$0xff]  }
 0x8cf   :  { %9061 = vmatpush1.bf16.msra.mxu0 %v13650_v8  ;;  %v13725_v8 = vld [vmem:[%s18614_s11 + $0x1a20] ss:$8 sps:$4 sm:$0xff]  }
 0x8d0   :  { %9062 = vmatprep.subr.bf16.mxu0 %v13658_v38  ;;  %v13733_v38 = vld [vmem:[%s18614_s11 + $0x1a34] ss:$8 sps:$4 sm:$0xff]  }
 0x8d1   :  { %9676 = vmatpush1.bf16.msra.mxu1 %v13653_v56  ;;  %v13728_v56 = vld [vmem:[%s18614_s11 + $0xb30] ss:$8 sps:$4 sm:$0xff]  }
 0x8d2   :  { %9677 = vmatprep.subr.bf16.mxu1 %v13661_v23  ;;  %v13736_v23 = vld [vmem:[%s18614_s11 + $0xb44] ss:$8 sps:$4 sm:$0xff]  }
 0x8d3   :  { %9063 = vmatpush1.bf16.msra.mxu0 %v13656_v13  ;;  %v13731_v13 = vld [vmem:[%s18614_s11 + $0x1a30] ss:$8 sps:$4 sm:$0xff]  }
 0x8d4   :  { %9064 = vmatprep.subr.bf16.mxu0 %v13664_v18  ;;  %v13739_v18 = vld [vmem:[%s18614_s11 + $0x1a44] ss:$8 sps:$4 sm:$0xff]  }
 0x8d5   :  { %9678 = vmatpush1.bf16.msra.mxu1 %v13659_v19  ;;  %v13734_v19 = vld [vmem:[%s18614_s11 + $0xb40] ss:$8 sps:$4 sm:$0xff]  }
 0x8d6   :  { %9679 = vmatprep.subr.bf16.mxu1 %v13667_v25  ;;  %v13742_v25 = vld [vmem:[%s18614_s11 + $0xb54] ss:$8 sps:$4 sm:$0xff]  }
 0x8d7   :  { %9065 = vmatpush1.bf16.msra.mxu0 %v13662_v53  ;;  %v13737_v53 = vld [vmem:[%s18614_s11 + $0x1a40] ss:$8 sps:$4 sm:$0xff]  }
 0x8d8   :  { %9066 = vmatprep.subr.bf16.mxu0 %v13670_v1  ;;  %v13745_v1 = vld [vmem:[%s18614_s11 + $0x1a54] ss:$8 sps:$4 sm:$0xff]  }
 0x8d9   :  { %9680 = vmatpush1.bf16.msra.mxu1 %v13665_v29  ;;  %v13740_v29 = vld [vmem:[%s18614_s11 + $0xb50] ss:$8 sps:$4 sm:$0xff]  }
 0x8da   :  { %9681 = vmatprep.subr.bf16.mxu1 %v13673_v30  ;;  %v13748_v30 = vld [vmem:[%s18614_s11 + $0xb64] ss:$8 sps:$4 sm:$0xff]  }
 0x8db   :  { %9067 = vmatpush1.bf16.msra.mxu0 %v13668_v31  ;;  %v13743_v31 = vld [vmem:[%s18614_s11 + $0x1a50] ss:$8 sps:$4 sm:$0xff]  }
 0x8dc   :  { %9068 = vmatprep.subr.bf16.mxu0 %v13676_v32  ;;  %v13751_v32 = vld [vmem:[%s18614_s11 + $0x1a64] ss:$8 sps:$4 sm:$0xff]  }
 0x8dd   :  { %9682 = vmatpush1.bf16.msra.mxu1 %v13671_v34  ;;  %v13746_v34 = vld [vmem:[%s18614_s11 + $0xb60] ss:$8 sps:$4 sm:$0xff]  }
 0x8de   :  { %9683 = vmatprep.subr.bf16.mxu1 %v13679_v35  ;;  %v13754_v35 = vld [vmem:[%s18614_s11 + $0xb74] ss:$8 sps:$4 sm:$0xff]  }
 0x8df   :  { %9069 = vmatpush1.bf16.msra.mxu0 %v13674_v36  ;;  %v13749_v36 = vld [vmem:[%s18614_s11 + $0x1a60] ss:$8 sps:$4 sm:$0xff]  }
 0x8e0   :  { %9070 = vmatprep.subr.bf16.mxu0 %v13682_v41  ;;  %v13757_v41 = vld [vmem:[%s18614_s11 + $0x1a74] ss:$8 sps:$4 sm:$0xff]  }
 0x8e1   :  { %9684 = vmatpush1.bf16.msra.mxu1 %v13677_v57  ;;  %v13752_v57 = vld [vmem:[%s18614_s11 + $0xb70] ss:$8 sps:$4 sm:$0xff]  }
 0x8e2   :  { %9685 = vmatprep.subr.bf16.mxu1 %v13685_v42  ;;  %v13760_v42 = vld [vmem:[%s18614_s11 + $0xb84] ss:$8 sps:$4 sm:$0xff]  }
 0x8e3   :  { %9071 = vmatpush1.bf16.msra.mxu0 %v13680_v9  ;;  %v13755_v9 = vld [vmem:[%s18614_s11 + $0x1a70] ss:$8 sps:$4 sm:$0xff]  }
 0x8e4   :  { %9072 = vmatprep.subr.bf16.mxu0 %v13688_v43  ;;  %v13763_v43 = vld [vmem:[%s18614_s11 + $0x1a84] ss:$8 sps:$4 sm:$0xff]  }
 0x8e5   :  { %9686 = vmatpush1.bf16.msra.mxu1 %v13683_v44  ;;  %v13758_v44 = vld [vmem:[%s18614_s11 + $0xb80] ss:$8 sps:$4 sm:$0xff]  }
 0x8e6   :  { %9687 = vmatprep.subr.bf16.mxu1 %v13691_v45  ;;  %v13766_v45 = vld [vmem:[%s18614_s11 + $0xb94] ss:$8 sps:$4 sm:$0xff]  }
 0x8e7   :  { %9073 = vmatpush1.bf16.msra.mxu0 %v13686_v46  ;;  %v13761_v46 = vld [vmem:[%s18614_s11 + $0x1a80] ss:$8 sps:$4 sm:$0xff]  }
 0x8e8   :  { %9074 = vmatprep.subr.bf16.mxu0 %v13694_v47  ;;  %v13769_v47 = vld [vmem:[%s18614_s11 + $0x1a94] ss:$8 sps:$4 sm:$0xff]  }
 0x8e9   :  { %9688 = vmatpush1.bf16.msra.mxu1 %v13689_v49  ;;  %v13764_v49 = vld [vmem:[%s18614_s11 + $0xb90] ss:$8 sps:$4 sm:$0xff]  }
 0x8ea   :  { %9689 = vmatprep.subr.bf16.mxu1 %v13697_v14  ;;  %v13772_v14 = vld [vmem:[%s18614_s11 + $0xba4] ss:$8 sps:$4 sm:$0xff]  }
 0x8eb   :  { %9075 = vmatpush1.bf16.msra.mxu0 %v13692_v15  ;;  %v13767_v15 = vld [vmem:[%s18614_s11 + $0x1a90] ss:$8 sps:$4 sm:$0xff]  }
 0x8ec   :  { %9076 = vmatprep.subr.bf16.mxu0 %v13700_v50  ;;  %v13775_v50 = vld [vmem:[%s18614_s11 + $0x1aa4] ss:$8 sps:$4 sm:$0xff]  }
 0x8ed   :  { %9690 = vmatpush1.bf16.msra.mxu1 %v13695_v16  ;;  %v13770_v16 = vld [vmem:[%s18614_s11 + $0xba0] ss:$8 sps:$4 sm:$0xff]  }
 0x8ee   :  { %9691 = vmatprep.subr.bf16.mxu1 %v13703_v17  ;;  %v13778_v17 = vld [vmem:[%s18614_s11 + $0xbb4] ss:$8 sps:$4 sm:$0xff]  }
 0x8ef   :  { %9077 = vmatpush1.bf16.msra.mxu0 %v13698_v20  ;;  %v13773_v20 = vld [vmem:[%s18614_s11 + $0x1aa0] ss:$8 sps:$4 sm:$0xff]  }
 0x8f0   :  { %9078 = vmatprep.subr.bf16.mxu0 %v13706_v21  ;;  %v13781_v21 = vld [vmem:[%s18614_s11 + $0x1ab4] ss:$8 sps:$4 sm:$0xff]  }
 0x8f1   :  { %9692 = vmatpush1.bf16.msra.mxu1 %v13701_v48  ;;  %v13776_v48 = vld [vmem:[%s18614_s11 + $0xbb0] ss:$8 sps:$4 sm:$0xff]  }
 0x8f2   :  { %9693 = vmatprep.subr.bf16.mxu1 %v13709_v40  ;;  %v13784_v40 = vld [vmem:[%s18614_s11 + $0xbc4] ss:$8 sps:$4 sm:$0xff]  }
 0x8f3   :  { %9079 = vmatpush1.bf16.msra.mxu0 %v13704_v24  ;;  %v13779_v24 = vld [vmem:[%s18614_s11 + $0x1ab0] ss:$8 sps:$4 sm:$0xff]  }
 0x8f4   :  { %9089 = vmatprep.subr.bf16.mxu0 %v13712_v55  ;;  %v13782_v55 = vld [vmem:[%s18614_s11 + $0xbc0] ss:$8 sps:$4 sm:$0xff]  }
 0x8f5   :  { %9694 = vmatpush1.bf16.msra.mxu1 %v13707_v58  ;;  %v13790_v58 = vld [vmem:[%s18614_s11 + $0xbd4] ss:$8 sps:$4 sm:$0xff]  }
 0x8f6   :  { %9081 = vmatmul.mubr.bf16.vlgmr.msra.gmra.mrb[16].mxu0 %v2438_v22  ;;  %9704 = vmatprep.subr.bf16.mxu1 %v13715_v12  ;;  %v13788_v12 = vld [vmem:[%s18614_s11 + $0xbd0] ss:$8 sps:$4 sm:$0xff]   ;;  %v13799_v22 = vld [vmem:[%s18614_s11 + $0x1ae4] ss:$8 sps:$4 sm:$0xff]  }
 0x8f7   :  { %9090 = vmatpush1.bf16.msra.mxu0 %v13710_v5  ;;  %9121 = vmatprep.mubr.bf16.mxu0 %v2441_v27  ;;  %v13796_v5 = vld [vmem:[%s18614_s11 + $0xbe4] ss:$8 sps:$4 sm:$0xff]   ;;  %v13802_v27 = vld [vmem:[%s18614_s11 + $0xbf4] ss:$8 sps:$4 sm:$0xff]  }
 0x8f8   :  { %9696 = vmatmul.mubr.bf16.vlgmr.msra.gmra.mrb[24].mxu1 %v2468_v10  ;;  %9091 = vmatprep.subr.bf16.mxu0 %v13718_v6  ;;  %v13794_v6 = vld [vmem:[%s18614_s11 + $0xbe0] ss:$8 sps:$4 sm:$0xff]   ;;  %v13805_v10 = vld [vmem:[%s18614_s11 + $0x1af4] ss:$8 sps:$4 sm:$0xff]  }
 0x8f9   :  { %9705 = vmatpush1.bf16.msra.mxu1 %v13713_v39  ;;  %9736 = vmatprep.mubr.bf16.mxu1 %v2471_v62  ;;  %v13797_v39 = vld [vmem:[%s18614_s11 + $0x1ae0] ss:$8 sps:$4 sm:$0xff]   ;;  %v2339_v62 = vrot.slane %v16786_v4, 6 }
 0x8fa   :  { %9706 = vmatprep.subr.bf16.mxu1 %v13721_v61  ;;  %v13800_v61 = vld [vmem:[%s18614_s11 + $0xbf0] ss:$8 sps:$4 sm:$0xff]   ;;  %v13806_v4 = vld [vmem:[%s18614_s11 + $0xc00] ss:$8 sps:$4 sm:$0xff]  }
 0x8fb   :  { %9092 = vmatpush1.bf16.msra.mxu0 %v13716_v63  ;;  %v13808_v63 = vld [vmem:[%s18614_s11 + $0xc04] ss:$8 sps:$4 sm:$0xff]  }
 0x8fc   :  { %9093 = vmatprep.subr.bf16.mxu0 %v13724_v37  ;;  %v13803_v37 = vld [vmem:[%s18614_s11 + $0x1af0] ss:$8 sps:$4 sm:$0xff]  }
 0x8fd   :  { %9707 = vmatpush1.bf16.msra.mxu1 %v13719_v28  ;;  %v2344_v28 = vrot.slane %v15407_v0, 1 }
 0x8fe   :  { %9708 = vmatprep.subr.bf16.mxu1 %v13727_v3  ;;  %v2395_v3 = vrot.slane %v16992_v26, 4 }
 0x8ff   :  { %9094 = vmatpush1.bf16.msra.mxu0 %v13722_v11  ;;  %v13811_v11 = vld [vmem:[%s18614_s11 + $0x1b04] ss:$8 sps:$4 sm:$0xff]  }
 0x900   :  { %9095 = vmatprep.subr.bf16.mxu0 %v13730_v52  ;;  %v2401_v52 = vrot.slane %v16992_v26, 7 }
 0x901   :  { %9709 = vmatpush1.bf16.msra.mxu1 %v13725_v8  ;;  %v2440_v8 = vpack.c.bf16 %v2339_v62, %v2339_v62  ;;  %v13883_v62 = vld [vmem:[%s18614_s11 + $0x1bc4] ss:$8 sps:$4 sm:$0xff]  }
 0x902   :  { %9710 = vmatprep.subr.bf16.mxu1 %v13733_v38  ;;  %v13814_v38 = vld [vmem:[%s18614_s11 + $0xc14] ss:$8 sps:$4 sm:$0xff]  }
 0x903   :  { %9096 = vmatpush1.bf16.msra.mxu0 %v13728_v56  ;;  %v2443_v56 = vpack.c.bf16 %v2344_v28, %v2344_v28  ;;  %v13886_v28 = vld [vmem:[%s18614_s11 + $0xcd4] ss:$8 sps:$4 sm:$0xff]  }
 0x904   :  { %9097 = vmatprep.subr.bf16.mxu0 %v13736_v23  ;;  %v13809_v23 = vld [vmem:[%s18614_s11 + $0x1b00] ss:$8 sps:$4 sm:$0xff]  }
 0x905   :  { %9711 = vmatpush1.bf16.msra.mxu1 %v13731_v13  ;;  %v2470_v13 = vpack.c.bf16 %v2395_v3, %v2395_v3  ;;  %v13881_v3 = vld [vmem:[%s18614_s11 + $0x1bc0] ss:$8 sps:$4 sm:$0xff]  }
 0x906   :  { %9712 = vmatprep.subr.bf16.mxu1 %v13739_v18  ;;  %v13817_v18 = vld [vmem:[%s18614_s11 + $0x1b14] ss:$8 sps:$4 sm:$0xff]  }
 0x907   :  { %9098 = vmatpush1.bf16.msra.mxu0 %v13734_v19  ;;  %v2473_v19 = vpack.c.bf16 %v2401_v52, %v2401_v52  ;;  %v13892_v52 = vld [vmem:[%s18614_s11 + $0xce4] ss:$8 sps:$4 sm:$0xff]  }
 0x908   :  { %9099 = vmatprep.subr.bf16.mxu0 %v13742_v25  ;;  %v13812_v25 = vld [vmem:[%s18614_s11 + $0xc10] ss:$8 sps:$4 sm:$0xff]  }
 0x909   :  { %9713 = vmatpush1.bf16.msra.mxu1 %v13737_v53  ;;  %v13820_v53 = vld [vmem:[%s18614_s11 + $0xc24] ss:$8 sps:$4 sm:$0xff]  }
 0x90a   :  { %9714 = vmatprep.subr.bf16.mxu1 %v13745_v1  ;;  %v13815_v1 = vld [vmem:[%s18614_s11 + $0x1b10] ss:$8 sps:$4 sm:$0xff]  }
 0x90b   :  { %9100 = vmatpush1.bf16.msra.mxu0 %v13740_v29  ;;  %v13823_v29 = vld [vmem:[%s18614_s11 + $0x1b24] ss:$8 sps:$4 sm:$0xff]  }
 0x90c   :  { %9101 = vmatprep.subr.bf16.mxu0 %v13748_v30  ;;  %v13818_v30 = vld [vmem:[%s18614_s11 + $0xc20] ss:$8 sps:$4 sm:$0xff]  }
 0x90d   :  { %9715 = vmatpush1.bf16.msra.mxu1 %v13743_v31  ;;  %v13826_v31 = vld [vmem:[%s18614_s11 + $0xc34] ss:$8 sps:$4 sm:$0xff]  }
 0x90e   :  { %9716 = vmatprep.subr.bf16.mxu1 %v13751_v32  ;;  %v13821_v32 = vld [vmem:[%s18614_s11 + $0x1b20] ss:$8 sps:$4 sm:$0xff]  }
 0x90f   :  { %9102 = vmatpush1.bf16.msra.mxu0 %v13746_v34  ;;  %v13829_v34 = vld [vmem:[%s18614_s11 + $0x1b34] ss:$8 sps:$4 sm:$0xff]  }
 0x910   :  { %9103 = vmatprep.subr.bf16.mxu0 %v13754_v35  ;;  %v13824_v35 = vld [vmem:[%s18614_s11 + $0xc30] ss:$8 sps:$4 sm:$0xff]  }
 0x911   :  { %9717 = vmatpush1.bf16.msra.mxu1 %v13749_v36  ;;  %v13832_v36 = vld [vmem:[%s18614_s11 + $0xc44] ss:$8 sps:$4 sm:$0xff]  }
 0x912   :  { %9718 = vmatprep.subr.bf16.mxu1 %v13757_v41  ;;  %v13827_v41 = vld [vmem:[%s18614_s11 + $0x1b30] ss:$8 sps:$4 sm:$0xff]  }
 0x913   :  { %9104 = vmatpush1.bf16.msra.mxu0 %v13752_v57  ;;  %v13835_v57 = vld [vmem:[%s18614_s11 + $0x1b44] ss:$8 sps:$4 sm:$0xff]  }
 0x914   :  { %9105 = vmatprep.subr.bf16.mxu0 %v13760_v42  ;;  %v13830_v42 = vld [vmem:[%s18614_s11 + $0xc40] ss:$8 sps:$4 sm:$0xff]  }
 0x915   :  { %9719 = vmatpush1.bf16.msra.mxu1 %v13755_v9  ;;  %v13838_v9 = vld [vmem:[%s18614_s11 + $0xc54] ss:$8 sps:$4 sm:$0xff]  }
 0x916   :  { %9720 = vmatprep.subr.bf16.mxu1 %v13763_v43  ;;  %v13833_v43 = vld [vmem:[%s18614_s11 + $0x1b40] ss:$8 sps:$4 sm:$0xff]  }
 0x917   :  { %9106 = vmatpush1.bf16.msra.mxu0 %v13758_v44  ;;  %v13841_v44 = vld [vmem:[%s18614_s11 + $0x1b54] ss:$8 sps:$4 sm:$0xff]  }
 0x918   :  { %9107 = vmatprep.subr.bf16.mxu0 %v13766_v45  ;;  %v13836_v45 = vld [vmem:[%s18614_s11 + $0xc50] ss:$8 sps:$4 sm:$0xff]  }
 0x919   :  { %9721 = vmatpush1.bf16.msra.mxu1 %v13761_v46  ;;  %v13844_v46 = vld [vmem:[%s18614_s11 + $0xc64] ss:$8 sps:$4 sm:$0xff]  }
 0x91a   :  { %9722 = vmatprep.subr.bf16.mxu1 %v13769_v47  ;;  %v13839_v47 = vld [vmem:[%s18614_s11 + $0x1b50] ss:$8 sps:$4 sm:$0xff]  }
 0x91b   :  { %9108 = vmatpush1.bf16.msra.mxu0 %v13764_v49  ;;  %v13847_v49 = vld [vmem:[%s18614_s11 + $0x1b64] ss:$8 sps:$4 sm:$0xff]  }
 0x91c   :  { %9109 = vmatprep.subr.bf16.mxu0 %v13772_v14  ;;  %v13842_v14 = vld [vmem:[%s18614_s11 + $0xc60] ss:$8 sps:$4 sm:$0xff]  }
 0x91d   :  { %9723 = vmatpush1.bf16.msra.mxu1 %v13767_v15  ;;  %v13850_v15 = vld [vmem:[%s18614_s11 + $0xc74] ss:$8 sps:$4 sm:$0xff]  }
 0x91e   :  { %9724 = vmatprep.subr.bf16.mxu1 %v13775_v50  ;;  %v13845_v50 = vld [vmem:[%s18614_s11 + $0x1b60] ss:$8 sps:$4 sm:$0xff]  }
 0x91f   :  { %9110 = vmatpush1.bf16.msra.mxu0 %v13770_v16  ;;  %v13853_v16 = vld [vmem:[%s18614_s11 + $0x1b74] ss:$8 sps:$4 sm:$0xff]  }
 0x920   :  { %9111 = vmatprep.subr.bf16.mxu0 %v13778_v17  ;;  %v13848_v17 = vld [vmem:[%s18614_s11 + $0xc70] ss:$8 sps:$4 sm:$0xff]  }
 0x921   :  { %9725 = vmatpush1.bf16.msra.mxu1 %v13773_v20  ;;  %v13856_v20 = vld [vmem:[%s18614_s11 + $0xc84] ss:$8 sps:$4 sm:$0xff]  }
 0x922   :  { %9726 = vmatprep.subr.bf16.mxu1 %v13781_v21  ;;  %v13851_v21 = vld [vmem:[%s18614_s11 + $0x1b70] ss:$8 sps:$4 sm:$0xff]  }
 0x923   :  { %9112 = vmatpush1.bf16.msra.mxu0 %v13776_v48  ;;  %v13859_v48 = vld [vmem:[%s18614_s11 + $0x1b84] ss:$8 sps:$4 sm:$0xff]  }
 0x924   :  { %9113 = vmatprep.subr.bf16.mxu0 %v13784_v40  ;;  %v13854_v40 = vld [vmem:[%s18614_s11 + $0xc80] ss:$8 sps:$4 sm:$0xff]  }
 0x925   :  { %9727 = vmatpush1.bf16.msra.mxu1 %v13779_v24  ;;  %v13862_v24 = vld [vmem:[%s18614_s11 + $0xc94] ss:$8 sps:$4 sm:$0xff]  }
 0x926   :  { %9728 = vmatprep.subr.bf16.mxu1 %v13787_v54  ;;  %v13857_v54 = vld [vmem:[%s18614_s11 + $0x1b80] ss:$8 sps:$4 sm:$0xff]  }
 0x927   :  { %9114 = vmatpush1.bf16.msra.mxu0 %v13782_v55  ;;  %v13865_v55 = vld [vmem:[%s18614_s11 + $0x1b94] ss:$8 sps:$4 sm:$0xff]  }
 0x928   :  { %9115 = vmatprep.subr.bf16.mxu0 %v13790_v58  ;;  %v13860_v58 = vld [vmem:[%s18614_s11 + $0xc90] ss:$8 sps:$4 sm:$0xff]  }
 0x929   :  { %9729 = vmatpush1.bf16.msra.mxu1 %v13785_v59  ;;  %v13868_v59 = vld [vmem:[%s18614_s11 + $0xca4] ss:$8 sps:$4 sm:$0xff]  }
 0x92a   :  { %9730 = vmatprep.subr.bf16.mxu1 %v13793_v60  ;;  %v13863_v60 = vld [vmem:[%s18614_s11 + $0x1b90] ss:$8 sps:$4 sm:$0xff]  }
 0x92b   :  { %9116 = vmatpush1.bf16.msra.mxu0 %v13788_v12  ;;  %v13871_v12 = vld [vmem:[%s18614_s11 + $0x1ba4] ss:$8 sps:$4 sm:$0xff]  }
 0x92c   :  { %9117 = vmatprep.subr.bf16.mxu0 %v13796_v5  ;;  %v13866_v5 = vld [vmem:[%s18614_s11 + $0xca0] ss:$8 sps:$4 sm:$0xff]  }
 0x92d   :  { %9731 = vmatpush1.bf16.msra.mxu1 %v13791_v51  ;;  %v13874_v51 = vld [vmem:[%s18614_s11 + $0xcb4] ss:$8 sps:$4 sm:$0xff]  }
 0x92e   :  { %9732 = vmatprep.subr.bf16.mxu1 %v13799_v22  ;;  %v13869_v22 = vld [vmem:[%s18614_s11 + $0x1ba0] ss:$8 sps:$4 sm:$0xff]  }
 0x92f   :  { %9118 = vmatpush1.bf16.msra.mxu0 %v13794_v6  ;;  %v13877_v6 = vld [vmem:[%s18614_s11 + $0x1bb4] ss:$8 sps:$4 sm:$0xff]  }
 0x930   :  { %9119 = vmatprep.subr.bf16.mxu0 %v13802_v27  ;;  %v13872_v27 = vld [vmem:[%s18614_s11 + $0xcb0] ss:$8 sps:$4 sm:$0xff]  }
 0x931   :  { %9733 = vmatpush1.bf16.msra.mxu1 %v13797_v39  ;;  %v13880_v39 = vld [vmem:[%s18614_s11 + $0xcc4] ss:$8 sps:$4 sm:$0xff]  }
 0x932   :  { %9734 = vmatprep.subr.bf16.mxu1 %v13805_v10  ;;  %v13875_v10 = vld [vmem:[%s18614_s11 + $0x1bb0] ss:$8 sps:$4 sm:$0xff]  }
 0x933   :  { %9120 = vmatpush1.bf16.msra.mxu0 %v13800_v61  ;;  %v2264_v61 = vpop.permute.xlu0 %2263 }
 0x934   :  { %9130 = vmatprep.subr.bf16.mxu0 %v13808_v63  ;;  %v2273_v63 = vadd.f32 %v15409_v7, %v2264_v61  ;;  %v13889_v7 = vld [vmem:[%s18614_s11 + $0x1bd4] ss:$8 sps:$4 sm:$0xff]  }
 0x935   :  { %9735 = vmatpush1.bf16.msra.mxu1 %v13803_v37  ;;  %v13878_v37 = vld [vmem:[%s18614_s11 + $0xcc0] ss:$8 sps:$4 sm:$0xff]   ;;  %v13958_v61 = vld [vmem:[%s18614_s11 + $0xd94] ss:$8 sps:$4 sm:$0xff]  }
 0x936   :  { %9122 = vmatmul.mubr.bf16.vlgmr.msra.gmra.mrb[16].mxu0 %v2440_v8  ;;  %9745 = vmatprep.subr.bf16.mxu1 %v13811_v11  ;;  %v2281_v11 = vmax.f32 %v2273_v63, 0.0  ;;  %v13887_v8 = vld [vmem:[%s18614_s11 + $0x1bd0] ss:$8 sps:$4 sm:$0xff]   ;;  %v13961_v63 = vld [vmem:[%s18614_s11 + $0x1c94] ss:$8 sps:$4 sm:$0xff]  }
 0x937   :  { %9131 = vmatpush1.bf16.msra.mxu0 %v13806_v4  ;;  %9162 = vmatprep.mubr.bf16.mxu0 %v2443_v56  ;;  %v13884_v4 = vld [vmem:[%s18614_s11 + $0xcd0] ss:$8 sps:$4 sm:$0xff]  }
 0x938   :  { %9737 = vmatmul.mubr.bf16.vlgmr.msra.gmra.mrb[24].mxu1 %v2470_v13  ;;  %9132 = vmatprep.subr.bf16.mxu0 %v13814_v38  ;;  %v13895_v38 = vld [vmem:[%s18614_s11 + $0x1be4] ss:$8 sps:$4 sm:$0xff]   ;;  %v2289_v56 = vadd.f32 %v2281_v11, %v14906_v2  ;;  %v13898_v13 = vld [vmem:[%s18614_s11 + $0xcf4] ss:$8 sps:$4 sm:$0xff]   ;;  %v13962_v11 = vld [vmem:[%s18614_s11 + $0xda0] ss:$8 sps:$4 sm:$0xff]  }
 0x939   :  { %9746 = vmatpush1.bf16.msra.mxu1 %v13809_v23  ;;  %9777 = vmatprep.mubr.bf16.mxu1 %v2473_v19  ;;  %v13890_v23 = vld [vmem:[%s18614_s11 + $0xce0] ss:$8 sps:$4 sm:$0xff]   ;;  %v13901_v2 = vld [vmem:[%s18614_s11 + $0x1bf4] ss:$8 sps:$4 sm:$0xff]  }
 0x93a   :  { %9747 = vmatprep.subr.bf16.mxu1 %v13817_v18  ;;  %v13893_v18 = vld [vmem:[%s18614_s11 + $0x1be0] ss:$8 sps:$4 sm:$0xff]   ;;  %v17782_v19 = vmax.f32 %v2289_v56, 0.0  ;;  %v13976_v56 = vld [vmem:[%s18614_s11 + $0xdc4] ss:$8 sps:$4 sm:$0xff]  }
 0x93b   :  { %9133 = vmatpush1.bf16.msra.mxu0 %v13812_v25  ;;  %v13896_v25 = vld [vmem:[%s18614_s11 + $0xcf0] ss:$8 sps:$4 sm:$0xff]  }
 0x93c   :  { %9134 = vmatprep.subr.bf16.mxu0 %v13820_v53  ;;  %v13904_v53 = vld [vmem:[%s18614_s11 + $0xd04] ss:$8 sps:$4 sm:$0xff]  }
 0x93d   :  { %9748 = vmatpush1.bf16.msra.mxu1 %v13815_v1  ;;  %v13899_v1 = vld [vmem:[%s18614_s11 + $0x1bf0] ss:$8 sps:$4 sm:$0xff]  }
 0x93e   :  { %9749 = vmatprep.subr.bf16.mxu1 %v13823_v29  ;;  %v2348_v29 = vrot.slane %v15407_v0, 3 }
 0x93f   :  { %9135 = vmatpush1.bf16.msra.mxu0 %v13818_v30  ;;  %v2399_v30 = vrot.slane %v16992_v26, 6 }
 0x940   :  { %9136 = vmatprep.subr.bf16.mxu0 %v13826_v31  ;;  %v13907_v31 = vld [vmem:[%s18614_s11 + $0x1c04] ss:$8 sps:$4 sm:$0xff]   ;;  %v2445_v26 = vpack.c.bf16 %v2348_v29, %v2348_v29 }
 0x941   :  { %9750 = vmatpush1.bf16.msra.mxu1 %v13821_v32  ;;  %v13902_v32 = vld [vmem:[%s18614_s11 + $0xd00] ss:$8 sps:$4 sm:$0xff]   ;;  %v13988_v29 = vld [vmem:[%s18614_s11 + $0xde4] ss:$8 sps:$4 sm:$0xff]  }
 0x942   :  { %9751 = vmatprep.subr.bf16.mxu1 %v13829_v34  ;;  %v2404_v34 = vrot.slane %v17782_v19, 1 }
 0x943   :  { %9137 = vmatpush1.bf16.msra.mxu0 %v13824_v35  ;;  %v2442_v35 = vpack.c.bf16 %v15407_v0, %v15407_v0 }
 0x944   :  { %9138 = vmatprep.subr.bf16.mxu0 %v13832_v36  ;;  %v13910_v36 = vld [vmem:[%s18614_s11 + $0xd14] ss:$8 sps:$4 sm:$0xff]  }
 0x945   :  { %9752 = vmatpush1.bf16.msra.mxu1 %v13827_v41  ;;  %v13905_v41 = vld [vmem:[%s18614_s11 + $0x1c00] ss:$8 sps:$4 sm:$0xff]  }
 0x946   :  { %9753 = vmatprep.subr.bf16.mxu1 %v13835_v57  ;;  %v2472_v57 = vpack.c.bf16 %v2399_v30, %v2399_v30  ;;  %v13983_v30 = vld [vmem:[%s18614_s11 + $0x1cd0] ss:$8 sps:$4 sm:$0xff]  }
 0x947   :  { %9139 = vmatpush1.bf16.msra.mxu0 %v13830_v42  ;;  %v13913_v42 = vld [vmem:[%s18614_s11 + $0x1c14] ss:$8 sps:$4 sm:$0xff]  }
 0x948   :  { %9140 = vmatprep.subr.bf16.mxu0 %v13838_v9  ;;  %v2475_v9 = vpack.c.bf16 %v2404_v34, %v2404_v34  ;;  %v13994_v34 = vld [vmem:[%s18614_s11 + $0xdf4] ss:$8 sps:$4 sm:$0xff]  }
 0x949   :  { %9754 = vmatpush1.bf16.msra.mxu1 %v13833_v43  ;;  %v13908_v43 = vld [vmem:[%s18614_s11 + $0xd10] ss:$8 sps:$4 sm:$0xff]  }
 0x94a   :  { %9755 = vmatprep.subr.bf16.mxu1 %v13841_v44  ;;  %v13916_v44 = vld [vmem:[%s18614_s11 + $0xd24] ss:$8 sps:$4 sm:$0xff]  }
 0x94b   :  { %9141 = vmatpush1.bf16.msra.mxu0 %v13836_v45  ;;  %v13911_v45 = vld [vmem:[%s18614_s11 + $0x1c10] ss:$8 sps:$4 sm:$0xff]  }
 0x94c   :  { %9142 = vmatprep.subr.bf16.mxu0 %v13844_v46  ;;  %v13919_v46 = vld [vmem:[%s18614_s11 + $0x1c24] ss:$8 sps:$4 sm:$0xff]  }
 0x94d   :  { %9756 = vmatpush1.bf16.msra.mxu1 %v13839_v47  ;;  %v13914_v47 = vld [vmem:[%s18614_s11 + $0xd20] ss:$8 sps:$4 sm:$0xff]  }
 0x94e   :  { %9757 = vmatprep.subr.bf16.mxu1 %v13847_v49  ;;  %v13922_v49 = vld [vmem:[%s18614_s11 + $0xd34] ss:$8 sps:$4 sm:$0xff]  }
 0x94f   :  { %9143 = vmatpush1.bf16.msra.mxu0 %v13842_v14  ;;  %v13917_v14 = vld [vmem:[%s18614_s11 + $0x1c20] ss:$8 sps:$4 sm:$0xff]  }
 0x950   :  { %9144 = vmatprep.subr.bf16.mxu0 %v13850_v15  ;;  %v13925_v15 = vld [vmem:[%s18614_s11 + $0x1c34] ss:$8 sps:$4 sm:$0xff]  }
 0x951   :  { %9758 = vmatpush1.bf16.msra.mxu1 %v13845_v50  ;;  %v13920_v50 = vld [vmem:[%s18614_s11 + $0xd30] ss:$8 sps:$4 sm:$0xff]  }
 0x952   :  { %9759 = vmatprep.subr.bf16.mxu1 %v13853_v16  ;;  %v13928_v16 = vld [vmem:[%s18614_s11 + $0xd44] ss:$8 sps:$4 sm:$0xff]  }
 0x953   :  { %9145 = vmatpush1.bf16.msra.mxu0 %v13848_v17  ;;  %v13923_v17 = vld [vmem:[%s18614_s11 + $0x1c30] ss:$8 sps:$4 sm:$0xff]  }
 0x954   :  { %9146 = vmatprep.subr.bf16.mxu0 %v13856_v20  ;;  %v13931_v20 = vld [vmem:[%s18614_s11 + $0x1c44] ss:$8 sps:$4 sm:$0xff]  }
 0x955   :  { %9760 = vmatpush1.bf16.msra.mxu1 %v13851_v21  ;;  %v13926_v21 = vld [vmem:[%s18614_s11 + $0xd40] ss:$8 sps:$4 sm:$0xff]  }
 0x956   :  { %9761 = vmatprep.subr.bf16.mxu1 %v13859_v48  ;;  %v13934_v48 = vld [vmem:[%s18614_s11 + $0xd54] ss:$8 sps:$4 sm:$0xff]  }
 0x957   :  { %9147 = vmatpush1.bf16.msra.mxu0 %v13854_v40  ;;  %v13929_v40 = vld [vmem:[%s18614_s11 + $0x1c40] ss:$8 sps:$4 sm:$0xff]  }
 0x958   :  { %9148 = vmatprep.subr.bf16.mxu0 %v13862_v24  ;;  %v13937_v24 = vld [vmem:[%s18614_s11 + $0x1c54] ss:$8 sps:$4 sm:$0xff]  }
 0x959   :  { %9762 = vmatpush1.bf16.msra.mxu1 %v13857_v54  ;;  %v13932_v54 = vld [vmem:[%s18614_s11 + $0xd50] ss:$8 sps:$4 sm:$0xff]  }
 0x95a   :  { %9763 = vmatprep.subr.bf16.mxu1 %v13865_v55  ;;  %v13940_v55 = vld [vmem:[%s18614_s11 + $0xd64] ss:$8 sps:$4 sm:$0xff]  }
 0x95b   :  { %9149 = vmatpush1.bf16.msra.mxu0 %v13860_v58  ;;  %v13935_v58 = vld [vmem:[%s18614_s11 + $0x1c50] ss:$8 sps:$4 sm:$0xff]  }
 0x95c   :  { %9150 = vmatprep.subr.bf16.mxu0 %v13868_v59  ;;  %v13943_v59 = vld [vmem:[%s18614_s11 + $0x1c64] ss:$8 sps:$4 sm:$0xff]  }
 0x95d   :  { %9764 = vmatpush1.bf16.msra.mxu1 %v13863_v60  ;;  %v13938_v60 = vld [vmem:[%s18614_s11 + $0xd60] ss:$8 sps:$4 sm:$0xff]  }
 0x95e   :  { %9765 = vmatprep.subr.bf16.mxu1 %v13871_v12  ;;  %v13946_v12 = vld [vmem:[%s18614_s11 + $0xd74] ss:$8 sps:$4 sm:$0xff]  }
 0x95f   :  { %9151 = vmatpush1.bf16.msra.mxu0 %v13866_v5  ;;  %v13941_v5 = vld [vmem:[%s18614_s11 + $0x1c60] ss:$8 sps:$4 sm:$0xff]  }
 0x960   :  { %9152 = vmatprep.subr.bf16.mxu0 %v13874_v51  ;;  %v13949_v51 = vld [vmem:[%s18614_s11 + $0x1c74] ss:$8 sps:$4 sm:$0xff]  }
 0x961   :  { %9766 = vmatpush1.bf16.msra.mxu1 %v13869_v22  ;;  %v13944_v22 = vld [vmem:[%s18614_s11 + $0xd70] ss:$8 sps:$4 sm:$0xff]  }
 0x962   :  { %9767 = vmatprep.subr.bf16.mxu1 %v13877_v6  ;;  %v13952_v6 = vld [vmem:[%s18614_s11 + $0xd84] ss:$8 sps:$4 sm:$0xff]  }
 0x963   :  { %9153 = vmatpush1.bf16.msra.mxu0 %v13872_v27  ;;  %v13947_v27 = vld [vmem:[%s18614_s11 + $0x1c70] ss:$8 sps:$4 sm:$0xff]  }
 0x964   :  { %9154 = vmatprep.subr.bf16.mxu0 %v13880_v39  ;;  %v13955_v39 = vld [vmem:[%s18614_s11 + $0x1c84] ss:$8 sps:$4 sm:$0xff]  }
 0x965   :  { %9768 = vmatpush1.bf16.msra.mxu1 %v13875_v10  ;;  %v13950_v10 = vld [vmem:[%s18614_s11 + $0xd80] ss:$8 sps:$4 sm:$0xff]  }
 0x966   :  { %9769 = vmatprep.subr.bf16.mxu1 %v13883_v62  ;;  %v13953_v62 = vld [vmem:[%s18614_s11 + $0x1c80] ss:$8 sps:$4 sm:$0xff]  }
 0x967   :  { %9155 = vmatpush1.bf16.msra.mxu0 %v13878_v37  ;;  %v13956_v37 = vld [vmem:[%s18614_s11 + $0xd90] ss:$8 sps:$4 sm:$0xff]  }
 0x968   :  { %9156 = vmatprep.subr.bf16.mxu0 %v13886_v28  ;;  %v13964_v28 = vld [vmem:[%s18614_s11 + $0xda4] ss:$8 sps:$4 sm:$0xff]  }
 0x969   :  { %9770 = vmatpush1.bf16.msra.mxu1 %v13881_v3  ;;  %v13959_v3 = vld [vmem:[%s18614_s11 + $0x1c90] ss:$8 sps:$4 sm:$0xff]  }
 0x96a   :  { %9771 = vmatprep.subr.bf16.mxu1 %v13889_v7  ;;  %v13967_v7 = vld [vmem:[%s18614_s11 + $0x1ca4] ss:$8 sps:$4 sm:$0xff]  }
 0x96b   :  { %9157 = vmatpush1.bf16.msra.mxu0 %v13884_v4  ;;  %v13970_v4 = vld [vmem:[%s18614_s11 + $0xdb4] ss:$8 sps:$4 sm:$0xff]  }
 0x96c   :  { %9158 = vmatprep.subr.bf16.mxu0 %v13892_v52  ;;  %v13965_v52 = vld [vmem:[%s18614_s11 + $0x1ca0] ss:$8 sps:$4 sm:$0xff]  }
 0x96d   :  { %9772 = vmatpush1.bf16.msra.mxu1 %v13887_v8  ;;  %v13973_v8 = vld [vmem:[%s18614_s11 + $0x1cb4] ss:$8 sps:$4 sm:$0xff]  }
 0x96e   :  { %9773 = vmatprep.subr.bf16.mxu1 %v13895_v38  ;;  %v13968_v38 = vld [vmem:[%s18614_s11 + $0xdb0] ss:$8 sps:$4 sm:$0xff]  }
 0x96f   :  { %9159 = vmatpush1.bf16.msra.mxu0 %v13890_v23  ;;  %v13971_v23 = vld [vmem:[%s18614_s11 + $0x1cb0] ss:$8 sps:$4 sm:$0xff]  }
 0x970   :  { %9160 = vmatprep.subr.bf16.mxu0 %v13898_v13  ;;  %v13979_v13 = vld [vmem:[%s18614_s11 + $0x1cc4] ss:$8 sps:$4 sm:$0xff]  }
 0x971   :  { %9774 = vmatpush1.bf16.msra.mxu1 %v13893_v18  ;;  %v13974_v18 = vld [vmem:[%s18614_s11 + $0xdc0] ss:$8 sps:$4 sm:$0xff]  }
 0x972   :  { %9775 = vmatprep.subr.bf16.mxu1 %v13901_v2  ;;  %v13982_v2 = vld [vmem:[%s18614_s11 + $0xdd4] ss:$8 sps:$4 sm:$0xff]  }
 0x973   :  { %9161 = vmatpush1.bf16.msra.mxu0 %v13896_v25  ;;  %v13977_v25 = vld [vmem:[%s18614_s11 + $0x1cc0] ss:$8 sps:$4 sm:$0xff]  }
 0x974   :  { %9171 = vmatprep.subr.bf16.mxu0 %v13904_v53  ;;  %v13985_v53 = vld [vmem:[%s18614_s11 + $0x1cd4] ss:$8 sps:$4 sm:$0xff]  }
 0x975   :  { %9776 = vmatpush1.bf16.msra.mxu1 %v13899_v1  ;;  %v13980_v1 = vld [vmem:[%s18614_s11 + $0xdd0] ss:$8 sps:$4 sm:$0xff]  }
 0x976   :  { %9163 = vmatmul.mubr.bf16.vlgmr.msra.gmra.mrb[16].mxu0 %v2442_v35  ;;  %9786 = vmatprep.subr.bf16.mxu1 %v13907_v31  ;;  %v13991_v31 = vld [vmem:[%s18614_s11 + $0x1ce4] ss:$8 sps:$4 sm:$0xff]   ;;  %v13989_v35 = vld [vmem:[%s18614_s11 + $0x1ce0] ss:$8 sps:$4 sm:$0xff]  }
 0x977   :  { %9172 = vmatpush1.bf16.msra.mxu0 %v13902_v32  ;;  %9203 = vmatprep.mubr.bf16.mxu0 %v2445_v26  ;;  %v13986_v32 = vld [vmem:[%s18614_s11 + $0xde0] ss:$8 sps:$4 sm:$0xff]   ;;  %v13992_v26 = vld [vmem:[%s18614_s11 + $0xdf0] ss:$8 sps:$4 sm:$0xff]  }
 0x978   :  { %9778 = vmatmul.mubr.bf16.vlgmr.msra.gmra.mrb[24].mxu1 %v2472_v57  ;;  %9173 = vmatprep.subr.bf16.mxu0 %v13910_v36  ;;  %v13997_v36 = vld [vmem:[%s18614_s11 + $0x1cf4] ss:$8 sps:$4 sm:$0xff]   ;;  %v14000_v57 = vld [vmem:[%s18614_s11 + $0xe04] ss:$8 sps:$4 sm:$0xff]  }
 0x979   :  { %9787 = vmatpush1.bf16.msra.mxu1 %v13905_v41  ;;  %9818 = vmatprep.mubr.bf16.mxu1 %v2475_v9  ;;  %v2346_v41 = vrot.slane %v15407_v0, 2  ;;  %v2352_v9 = vrot.slane %v15407_v0, 5 }
 0x97a   :  { %9788 = vmatprep.subr.bf16.mxu1 %v13913_v42  ;;  %v13995_v42 = vld [vmem:[%s18614_s11 + $0x1cf0] ss:$8 sps:$4 sm:$0xff]  }
 0x97b   :  { %9174 = vmatpush1.bf16.msra.mxu0 %v13908_v43  ;;  %v14003_v43 = vld [vmem:[%s18614_s11 + $0x1d04] ss:$8 sps:$4 sm:$0xff]  }
 0x97c   :  { %9175 = vmatprep.subr.bf16.mxu0 %v13916_v44  ;;  %v13998_v44 = vld [vmem:[%s18614_s11 + $0xe00] ss:$8 sps:$4 sm:$0xff]  }
 0x97d   :  { %9789 = vmatpush1.bf16.msra.mxu1 %v13911_v45  ;;  %v2408_v45 = vrot.slane %v17782_v19, 3 }
 0x97e   :  { %9790 = vmatprep.subr.bf16.mxu1 %v13919_v46  ;;  %v2444_v46 = vpack.c.bf16 %v2346_v41, %v2346_v41  ;;  %v14081_v41 = vld [vmem:[%s18614_s11 + $0x1dd4] ss:$8 sps:$4 sm:$0xff]  }
 0x97f   :  { %9176 = vmatpush1.bf16.msra.mxu0 %v13914_v47  ;;  %v14006_v47 = vld [vmem:[%s18614_s11 + $0xe14] ss:$8 sps:$4 sm:$0xff]  }
 0x980   :  { %9177 = vmatprep.subr.bf16.mxu0 %v13922_v49  ;;  %v2447_v49 = vpack.c.bf16 %v2352_v9, %v2352_v9  ;;  %v14079_v9 = vld [vmem:[%s18614_s11 + $0x1dd0] ss:$8 sps:$4 sm:$0xff]  }
 0x981   :  { %9791 = vmatpush1.bf16.msra.mxu1 %v13917_v14  ;;  %v14001_v14 = vld [vmem:[%s18614_s11 + $0x1d00] ss:$8 sps:$4 sm:$0xff]  }
 0x982   :  { %9792 = vmatprep.subr.bf16.mxu1 %v13925_v15  ;;  %v2474_v15 = vpack.c.bf16 %v17782_v19, %v17782_v19 }
 0x983   :  { %9178 = vmatpush1.bf16.msra.mxu0 %v13920_v50  ;;  %v14009_v50 = vld [vmem:[%s18614_s11 + $0x1d14] ss:$8 sps:$4 sm:$0xff]  }
 0x984   :  { %9179 = vmatprep.subr.bf16.mxu0 %v13928_v16  ;;  %v2477_v16 = vpack.c.bf16 %v2408_v45, %v2408_v45  ;;  %v14090_v45 = vld [vmem:[%s18614_s11 + $0xef4] ss:$8 sps:$4 sm:$0xff]  }
 0x985   :  { %9793 = vmatpush1.bf16.msra.mxu1 %v13923_v17  ;;  %v14004_v17 = vld [vmem:[%s18614_s11 + $0xe10] ss:$8 sps:$4 sm:$0xff]  }
 0x986   :  { %9794 = vmatprep.subr.bf16.mxu1 %v13931_v20  ;;  %v14012_v20 = vld [vmem:[%s18614_s11 + $0xe24] ss:$8 sps:$4 sm:$0xff]  }
 0x987   :  { %9180 = vmatpush1.bf16.msra.mxu0 %v13926_v21  ;;  %v14007_v21 = vld [vmem:[%s18614_s11 + $0x1d10] ss:$8 sps:$4 sm:$0xff]  }
 0x988   :  { %9181 = vmatprep.subr.bf16.mxu0 %v13934_v48  ;;  %v14015_v48 = vld [vmem:[%s18614_s11 + $0x1d24] ss:$8 sps:$4 sm:$0xff]  }
 0x989   :  { %9795 = vmatpush1.bf16.msra.mxu1 %v13929_v40  ;;  %v14010_v40 = vld [vmem:[%s18614_s11 + $0xe20] ss:$8 sps:$4 sm:$0xff]  }
 0x98a   :  { %9796 = vmatprep.subr.bf16.mxu1 %v13937_v24  ;;  %v14018_v24 = vld [vmem:[%s18614_s11 + $0xe34] ss:$8 sps:$4 sm:$0xff]  }
 0x98b   :  { %9182 = vmatpush1.bf16.msra.mxu0 %v13932_v54  ;;  %v14013_v54 = vld [vmem:[%s18614_s11 + $0x1d20] ss:$8 sps:$4 sm:$0xff]  }
 0x98c   :  { %9183 = vmatprep.subr.bf16.mxu0 %v13940_v55  ;;  %v14021_v55 = vld [vmem:[%s18614_s11 + $0x1d34] ss:$8 sps:$4 sm:$0xff]  }
 0x98d   :  { %9797 = vmatpush1.bf16.msra.mxu1 %v13935_v58  ;;  %v14016_v58 = vld [vmem:[%s18614_s11 + $0xe30] ss:$8 sps:$4 sm:$0xff]  }
 0x98e   :  { %9798 = vmatprep.subr.bf16.mxu1 %v13943_v59  ;;  %v14024_v59 = vld [vmem:[%s18614_s11 + $0xe44] ss:$8 sps:$4 sm:$0xff]  }
 0x98f   :  { %9184 = vmatpush1.bf16.msra.mxu0 %v13938_v60  ;;  %v14019_v60 = vld [vmem:[%s18614_s11 + $0x1d30] ss:$8 sps:$4 sm:$0xff]  }
 0x990   :  { %9185 = vmatprep.subr.bf16.mxu0 %v13946_v12  ;;  %v14027_v12 = vld [vmem:[%s18614_s11 + $0x1d44] ss:$8 sps:$4 sm:$0xff]  }
 0x991   :  { %9799 = vmatpush1.bf16.msra.mxu1 %v13941_v5  ;;  %v14022_v5 = vld [vmem:[%s18614_s11 + $0xe40] ss:$8 sps:$4 sm:$0xff]  }
 0x992   :  { %9800 = vmatprep.subr.bf16.mxu1 %v13949_v51  ;;  %v14030_v51 = vld [vmem:[%s18614_s11 + $0xe54] ss:$8 sps:$4 sm:$0xff]  }
 0x993   :  { %9186 = vmatpush1.bf16.msra.mxu0 %v13944_v22  ;;  %v14025_v22 = vld [vmem:[%s18614_s11 + $0x1d40] ss:$8 sps:$4 sm:$0xff]  }
 0x994   :  { %9187 = vmatprep.subr.bf16.mxu0 %v13952_v6  ;;  %v14033_v6 = vld [vmem:[%s18614_s11 + $0x1d54] ss:$8 sps:$4 sm:$0xff]  }
 0x995   :  { %9801 = vmatpush1.bf16.msra.mxu1 %v13947_v27  ;;  %v14028_v27 = vld [vmem:[%s18614_s11 + $0xe50] ss:$8 sps:$4 sm:$0xff]  }
 0x996   :  { %9802 = vmatprep.subr.bf16.mxu1 %v13955_v39  ;;  %v14036_v39 = vld [vmem:[%s18614_s11 + $0xe64] ss:$8 sps:$4 sm:$0xff]  }
 0x997   :  { %9188 = vmatpush1.bf16.msra.mxu0 %v13950_v10  ;;  %v14031_v10 = vld [vmem:[%s18614_s11 + $0x1d50] ss:$8 sps:$4 sm:$0xff]  }
 0x998   :  { %9189 = vmatprep.subr.bf16.mxu0 %v13958_v61  ;;  %v14039_v61 = vld [vmem:[%s18614_s11 + $0x1d64] ss:$8 sps:$4 sm:$0xff]  }
 0x999   :  { %9803 = vmatpush1.bf16.msra.mxu1 %v13953_v62  ;;  %v14034_v62 = vld [vmem:[%s18614_s11 + $0xe60] ss:$8 sps:$4 sm:$0xff]  }
 0x99a   :  { %9804 = vmatprep.subr.bf16.mxu1 %v13961_v63  ;;  %v14042_v63 = vld [vmem:[%s18614_s11 + $0xe74] ss:$8 sps:$4 sm:$0xff]  }
 0x99b   :  { %9190 = vmatpush1.bf16.msra.mxu0 %v13956_v37  ;;  %v14037_v37 = vld [vmem:[%s18614_s11 + $0x1d60] ss:$8 sps:$4 sm:$0xff]  }
 0x99c   :  { %9191 = vmatprep.subr.bf16.mxu0 %v13964_v28  ;;  %v14045_v28 = vld [vmem:[%s18614_s11 + $0x1d74] ss:$8 sps:$4 sm:$0xff]  }
 0x99d   :  { %9805 = vmatpush1.bf16.msra.mxu1 %v13959_v3  ;;  %v14040_v3 = vld [vmem:[%s18614_s11 + $0xe70] ss:$8 sps:$4 sm:$0xff]  }
 0x99e   :  { %9806 = vmatprep.subr.bf16.mxu1 %v13967_v7  ;;  %v14048_v7 = vld [vmem:[%s18614_s11 + $0xe84] ss:$8 sps:$4 sm:$0xff]  }
 0x99f   :  { %9192 = vmatpush1.bf16.msra.mxu0 %v13962_v11  ;;  %v14043_v11 = vld [vmem:[%s18614_s11 + $0x1d70] ss:$8 sps:$4 sm:$0xff]  }
 0x9a0   :  { %9193 = vmatprep.subr.bf16.mxu0 %v13970_v4  ;;  %v14051_v4 = vld [vmem:[%s18614_s11 + $0x1d84] ss:$8 sps:$4 sm:$0xff]  }
 0x9a1   :  { %9807 = vmatpush1.bf16.msra.mxu1 %v13965_v52  ;;  %v14046_v52 = vld [vmem:[%s18614_s11 + $0xe80] ss:$8 sps:$4 sm:$0xff]  }
 0x9a2   :  { %9808 = vmatprep.subr.bf16.mxu1 %v13973_v8  ;;  %v14054_v8 = vld [vmem:[%s18614_s11 + $0xe94] ss:$8 sps:$4 sm:$0xff]  }
 0x9a3   :  { %9194 = vmatpush1.bf16.msra.mxu0 %v13968_v38  ;;  %v14049_v38 = vld [vmem:[%s18614_s11 + $0x1d80] ss:$8 sps:$4 sm:$0xff]  }
 0x9a4   :  { %9195 = vmatprep.subr.bf16.mxu0 %v13976_v56  ;;  %v14057_v56 = vld [vmem:[%s18614_s11 + $0x1d94] ss:$8 sps:$4 sm:$0xff]  }
 0x9a5   :  { %9809 = vmatpush1.bf16.msra.mxu1 %v13971_v23  ;;  %v14052_v23 = vld [vmem:[%s18614_s11 + $0xe90] ss:$8 sps:$4 sm:$0xff]  }
 0x9a6   :  { %9810 = vmatprep.subr.bf16.mxu1 %v13979_v13  ;;  %v14060_v13 = vld [vmem:[%s18614_s11 + $0xea4] ss:$8 sps:$4 sm:$0xff]  }
 0x9a7   :  { %9196 = vmatpush1.bf16.msra.mxu0 %v13974_v18  ;;  %v14055_v18 = vld [vmem:[%s18614_s11 + $0x1d90] ss:$8 sps:$4 sm:$0xff]  }
 0x9a8   :  { %9197 = vmatprep.subr.bf16.mxu0 %v13982_v2  ;;  %v14063_v2 = vld [vmem:[%s18614_s11 + $0x1da4] ss:$8 sps:$4 sm:$0xff]  }
 0x9a9   :  { %9811 = vmatpush1.bf16.msra.mxu1 %v13977_v25  ;;  %v14058_v25 = vld [vmem:[%s18614_s11 + $0xea0] ss:$8 sps:$4 sm:$0xff]  }
 0x9aa   :  { %9812 = vmatprep.subr.bf16.mxu1 %v13985_v53  ;;  %v14066_v53 = vld [vmem:[%s18614_s11 + $0xeb4] ss:$8 sps:$4 sm:$0xff]  }
 0x9ab   :  { %9198 = vmatpush1.bf16.msra.mxu0 %v13980_v1  ;;  %v14061_v1 = vld [vmem:[%s18614_s11 + $0x1da0] ss:$8 sps:$4 sm:$0xff]  }
 0x9ac   :  { %9199 = vmatprep.subr.bf16.mxu0 %v13988_v29  ;;  %v14069_v29 = vld [vmem:[%s18614_s11 + $0x1db4] ss:$8 sps:$4 sm:$0xff]  }
 0x9ad   :  { %9813 = vmatpush1.bf16.msra.mxu1 %v13983_v30  ;;  %v14064_v30 = vld [vmem:[%s18614_s11 + $0xeb0] ss:$8 sps:$4 sm:$0xff]  }
 0x9ae   :  { %9814 = vmatprep.subr.bf16.mxu1 %v13991_v31  ;;  %v14072_v31 = vld [vmem:[%s18614_s11 + $0xec4] ss:$8 sps:$4 sm:$0xff]  }
 0x9af   :  { %9200 = vmatpush1.bf16.msra.mxu0 %v13986_v32  ;;  %v14067_v32 = vld [vmem:[%s18614_s11 + $0x1db0] ss:$8 sps:$4 sm:$0xff]  }
 0x9b0   :  { %9201 = vmatprep.subr.bf16.mxu0 %v13994_v34  ;;  %v14075_v34 = vld [vmem:[%s18614_s11 + $0x1dc4] ss:$8 sps:$4 sm:$0xff]  }
 0x9b1   :  { %9815 = vmatpush1.bf16.msra.mxu1 %v13989_v35  ;;  %v14070_v35 = vld [vmem:[%s18614_s11 + $0xec0] ss:$8 sps:$4 sm:$0xff]  }
 0x9b2   :  { %9816 = vmatprep.subr.bf16.mxu1 %v13997_v36  ;;  %v14078_v36 = vld [vmem:[%s18614_s11 + $0xed4] ss:$8 sps:$4 sm:$0xff]  }
 0x9b3   :  { %9202 = vmatpush1.bf16.msra.mxu0 %v13992_v26  ;;  %v14073_v26 = vld [vmem:[%s18614_s11 + $0x1dc0] ss:$8 sps:$4 sm:$0xff]  }
 0x9b4   :  { %9212 = vmatprep.subr.bf16.mxu0 %v14000_v57  ;;  %v14076_v57 = vld [vmem:[%s18614_s11 + $0xed0] ss:$8 sps:$4 sm:$0xff]  }
 0x9b5   :  { %9817 = vmatpush1.bf16.msra.mxu1 %v13995_v42  ;;  %v14084_v42 = vld [vmem:[%s18614_s11 + $0xee4] ss:$8 sps:$4 sm:$0xff]  }
 0x9b6   :  { %9204 = vmatmul.mubr.bf16.vlgmr.msra.gmra.mrb[16].mxu0 %v2444_v46  ;;  %9827 = vmatprep.subr.bf16.mxu1 %v14003_v43  ;;  %v14087_v43 = vld [vmem:[%s18614_s11 + $0x1de4] ss:$8 sps:$4 sm:$0xff]   ;;  %v14085_v46 = vld [vmem:[%s18614_s11 + $0x1de0] ss:$8 sps:$4 sm:$0xff]  }
 0x9b7   :  { %9213 = vmatpush1.bf16.msra.mxu0 %v13998_v44  ;;  %9244 = vmatprep.mubr.bf16.mxu0 %v2447_v49  ;;  %v14082_v44 = vld [vmem:[%s18614_s11 + $0xee0] ss:$8 sps:$4 sm:$0xff]   ;;  %v14088_v49 = vld [vmem:[%s18614_s11 + $0xef0] ss:$8 sps:$4 sm:$0xff]  }
 0x9b8   :  { %9819 = vmatmul.mubr.bf16.vlgmr.msra.gmra.mrb[24].mxu1 %v2474_v15  ;;  %9214 = vmatprep.subr.bf16.mxu0 %v14006_v47  ;;  %v14093_v47 = vld [vmem:[%s18614_s11 + $0x1df4] ss:$8 sps:$4 sm:$0xff]   ;;  %v14091_v15 = vld [vmem:[%s18614_s11 + $0x1df0] ss:$8 sps:$4 sm:$0xff]  }
 0x9b9   :  { %9828 = vmatpush1.bf16.msra.mxu1 %v14001_v14  ;;  %9859 = vmatprep.mubr.bf16.mxu1 %v2477_v16  ;;  %v2350_v14 = vrot.slane %v15407_v0, 4  ;;  %v14096_v16 = vld [vmem:[%s18614_s11 + $0x1e04] ss:$8 sps:$4 sm:$0xff]   ;;  %v14094_v0 = vld [vmem:[%s18614_s11 + $0x1e00] ss:$8 sps:$4 sm:$0xff]  }
 0x9ba   :  { %9829 = vmatprep.subr.bf16.mxu1 %v14009_v50  ;;  %v2406_v50 = vrot.slane %v17782_v19, 2 }
 0x9bb   :  { %9215 = vmatpush1.bf16.msra.mxu0 %v14004_v17  ;;  %v2412_v17 = vrot.slane %v17782_v19, 5 }
 0x9bc   :  { %9216 = vmatprep.subr.bf16.mxu0 %v14012_v20  ;;  %v2446_v20 = vpack.c.bf16 %v2350_v14, %v2350_v14  ;;  %v14168_v14 = vld [vmem:[%s18614_s11 + $0x1f84] ss:$8 sps:$4 sm:$0xff]  }
 0x9bd   :  { %9830 = vmatpush1.bf16.msra.mxu1 %v14007_v21  ;;  %v2476_v21 = vpack.c.bf16 %v2406_v50, %v2406_v50  ;;  %v14198_v50 = vld [vmem:[%s18615_s13 + $0x24] ss:$8 sps:$4 sm:$0xff]  }
 0x9be   :  { %9831 = vmatprep.subr.bf16.mxu1 %v14015_v48  ;;  %v14099_v48 = vld [vmem:[%s18614_s11 + $0x1e14] ss:$8 sps:$4 sm:$0xff]  }
 0x9bf   :  { %9217 = vmatpush1.bf16.msra.mxu0 %v14010_v40  ;;  %v2479_v40 = vpack.c.bf16 %v2412_v17, %v2412_v17  ;;  %v14171_v17 = vld [vmem:[%s18614_s11 + $0x1f94] ss:$8 sps:$4 sm:$0xff]  }
 0x9c0   :  { %9218 = vmatprep.subr.bf16.mxu0 %v14018_v24  ;;  %v14097_v24 = vld [vmem:[%s18614_s11 + $0x1e10] ss:$8 sps:$4 sm:$0xff]  }
 0x9c1   :  { %9832 = vmatpush1.bf16.msra.mxu1 %v14013_v54  ;;  %v14102_v54 = vld [vmem:[%s18614_s11 + $0x1e24] ss:$8 sps:$4 sm:$0xff]  }
 0x9c2   :  { %9833 = vmatprep.subr.bf16.mxu1 %v14021_v55  ;;  %v14100_v55 = vld [vmem:[%s18614_s11 + $0x1e20] ss:$8 sps:$4 sm:$0xff]  }
 0x9c3   :  { %9219 = vmatpush1.bf16.msra.mxu0 %v14016_v58  ;;  %v14105_v58 = vld [vmem:[%s18614_s11 + $0x1e34] ss:$8 sps:$4 sm:$0xff]  }
 0x9c4   :  { %9220 = vmatprep.subr.bf16.mxu0 %v14024_v59  ;;  %v14103_v59 = vld [vmem:[%s18614_s11 + $0x1e30] ss:$8 sps:$4 sm:$0xff]  }
 0x9c5   :  { %9834 = vmatpush1.bf16.msra.mxu1 %v14019_v60  ;;  %v14108_v60 = vld [vmem:[%s18614_s11 + $0x1e44] ss:$8 sps:$4 sm:$0xff]  }
 0x9c6   :  { %9835 = vmatprep.subr.bf16.mxu1 %v14027_v12  ;;  %v14106_v12 = vld [vmem:[%s18614_s11 + $0x1e40] ss:$8 sps:$4 sm:$0xff]  }
 0x9c7   :  { %9221 = vmatpush1.bf16.msra.mxu0 %v14022_v5  ;;  %v14111_v5 = vld [vmem:[%s18614_s11 + $0x1e54] ss:$8 sps:$4 sm:$0xff]  }
 0x9c8   :  { %9222 = vmatprep.subr.bf16.mxu0 %v14030_v51  ;;  %v14109_v51 = vld [vmem:[%s18614_s11 + $0x1e50] ss:$8 sps:$4 sm:$0xff]  }
 0x9c9   :  { %9836 = vmatpush1.bf16.msra.mxu1 %v14025_v22  ;;  %v14114_v22 = vld [vmem:[%s18614_s11 + $0x1e64] ss:$8 sps:$4 sm:$0xff]  }
 0x9ca   :  { %9837 = vmatprep.subr.bf16.mxu1 %v14033_v6  ;;  %v14112_v6 = vld [vmem:[%s18614_s11 + $0x1e60] ss:$8 sps:$4 sm:$0xff]  }
 0x9cb   :  { %9223 = vmatpush1.bf16.msra.mxu0 %v14028_v27  ;;  %v14117_v27 = vld [vmem:[%s18614_s11 + $0x1e74] ss:$8 sps:$4 sm:$0xff]  }
 0x9cc   :  { %9224 = vmatprep.subr.bf16.mxu0 %v14036_v39  ;;  %v14115_v39 = vld [vmem:[%s18614_s11 + $0x1e70] ss:$8 sps:$4 sm:$0xff]  }
 0x9cd   :  { %9838 = vmatpush1.bf16.msra.mxu1 %v14031_v10  ;;  %v14120_v10 = vld [vmem:[%s18614_s11 + $0x1e84] ss:$8 sps:$4 sm:$0xff]  }
 0x9ce   :  { %9839 = vmatprep.subr.bf16.mxu1 %v14039_v61  ;;  %v14118_v61 = vld [vmem:[%s18614_s11 + $0x1e80] ss:$8 sps:$4 sm:$0xff]  }
 0x9cf   :  { %9225 = vmatpush1.bf16.msra.mxu0 %v14034_v62  ;;  %v14123_v62 = vld [vmem:[%s18614_s11 + $0x1e94] ss:$8 sps:$4 sm:$0xff]  }
 0x9d0   :  { %9226 = vmatprep.subr.bf16.mxu0 %v14042_v63  ;;  %v14121_v63 = vld [vmem:[%s18614_s11 + $0x1e90] ss:$8 sps:$4 sm:$0xff]  }
 0x9d1   :  { %9840 = vmatpush1.bf16.msra.mxu1 %v14037_v37  ;;  %v14126_v37 = vld [vmem:[%s18614_s11 + $0x1ea4] ss:$8 sps:$4 sm:$0xff]  }
 0x9d2   :  { %9841 = vmatprep.subr.bf16.mxu1 %v14045_v28  ;;  %v14124_v28 = vld [vmem:[%s18614_s11 + $0x1ea0] ss:$8 sps:$4 sm:$0xff]  }
 0x9d3   :  { %9227 = vmatpush1.bf16.msra.mxu0 %v14040_v3  ;;  %v14129_v3 = vld [vmem:[%s18614_s11 + $0x1eb4] ss:$8 sps:$4 sm:$0xff]  }
 0x9d4   :  { %9228 = vmatprep.subr.bf16.mxu0 %v14048_v7  ;;  %v14127_v7 = vld [vmem:[%s18614_s11 + $0x1eb0] ss:$8 sps:$4 sm:$0xff]  }
 0x9d5   :  { %9842 = vmatpush1.bf16.msra.mxu1 %v14043_v11  ;;  %v14132_v11 = vld [vmem:[%s18614_s11 + $0x1ec4] ss:$8 sps:$4 sm:$0xff]  }
 0x9d6   :  { %9843 = vmatprep.subr.bf16.mxu1 %v14051_v4  ;;  %v14130_v4 = vld [vmem:[%s18614_s11 + $0x1ec0] ss:$8 sps:$4 sm:$0xff]  }
 0x9d7   :  { %9229 = vmatpush1.bf16.msra.mxu0 %v14046_v52  ;;  %v14135_v52 = vld [vmem:[%s18614_s11 + $0x1ed4] ss:$8 sps:$4 sm:$0xff]  }
 0x9d8   :  { %9230 = vmatprep.subr.bf16.mxu0 %v14054_v8  ;;  %v14133_v8 = vld [vmem:[%s18614_s11 + $0x1ed0] ss:$8 sps:$4 sm:$0xff]  }
 0x9d9   :  { %9844 = vmatpush1.bf16.msra.mxu1 %v14049_v38  ;;  %v14138_v38 = vld [vmem:[%s18614_s11 + $0x1ee4] ss:$8 sps:$4 sm:$0xff]  }
 0x9da   :  { %9845 = vmatprep.subr.bf16.mxu1 %v14057_v56  ;;  %v14136_v56 = vld [vmem:[%s18614_s11 + $0x1ee0] ss:$8 sps:$4 sm:$0xff]  }
 0x9db   :  { %9231 = vmatpush1.bf16.msra.mxu0 %v14052_v23  ;;  %v14141_v23 = vld [vmem:[%s18614_s11 + $0x1ef4] ss:$8 sps:$4 sm:$0xff]  }
 0x9dc   :  { %9232 = vmatprep.subr.bf16.mxu0 %v14060_v13  ;;  %v14139_v13 = vld [vmem:[%s18614_s11 + $0x1ef0] ss:$8 sps:$4 sm:$0xff]  }
 0x9dd   :  { %9846 = vmatpush1.bf16.msra.mxu1 %v14055_v18  ;;  %v2410_v18 = vrot.slane %v17782_v19, 4 }
 0x9de   :  { %9847 = vmatprep.subr.bf16.mxu1 %v14063_v2  ;;  %v14144_v2 = vld [vmem:[%s18614_s11 + $0x1f04] ss:$8 sps:$4 sm:$0xff]  }
 0x9df   :  { %9233 = vmatpush1.bf16.msra.mxu0 %v14058_v25  ;;  %v2416_v25 = vrot.slane %v17782_v19, 7 }
 0x9e0   :  { %9234 = vmatprep.subr.bf16.mxu0 %v14066_v53  ;;  %v14142_v53 = vld [vmem:[%s18614_s11 + $0x1f00] ss:$8 sps:$4 sm:$0xff]  }
 0x9e1   :  { %9848 = vmatpush1.bf16.msra.mxu1 %v14061_v1  ;;  %v2478_v1 = vpack.c.bf16 %v2410_v18, %v2410_v18  ;;  %v14226_v18 = vld [vmem:[%s18615_s13 + $0xc0] ss:$8 sps:$4 sm:$0xff]  }
 0x9e2   :  { %9849 = vmatprep.subr.bf16.mxu1 %v14069_v29  ;;  %v14147_v29 = vld [vmem:[%s18614_s11 + $0x1f14] ss:$8 sps:$4 sm:$0xff]  }
 0x9e3   :  { %9235 = vmatpush1.bf16.msra.mxu0 %v14064_v30  ;;  %v2481_v30 = vpack.c.bf16 %v2416_v25, %v2416_v25  ;;  %v14229_v25 = vld [vmem:[%s18615_s13 + $0xd0] ss:$8 sps:$4 sm:$0xff]  }
 0x9e4   :  { %9236 = vmatprep.subr.bf16.mxu0 %v14072_v31  ;;  %v14145_v31 = vld [vmem:[%s18614_s11 + $0x1f10] ss:$8 sps:$4 sm:$0xff]  }
 0x9e5   :  { %9850 = vmatpush1.bf16.msra.mxu1 %v14067_v32  ;;  %v14150_v32 = vld [vmem:[%s18614_s11 + $0x1f24] ss:$8 sps:$4 sm:$0xff]  }
 0x9e6   :  { %9851 = vmatprep.subr.bf16.mxu1 %v14075_v34  ;;  %v14148_v34 = vld [vmem:[%s18614_s11 + $0x1f20] ss:$8 sps:$4 sm:$0xff]  }
 0x9e7   :  { %9237 = vmatpush1.bf16.msra.mxu0 %v14070_v35  ;;  %v14153_v35 = vld [vmem:[%s18614_s11 + $0x1f34] ss:$8 sps:$4 sm:$0xff]  }
 0x9e8   :  { %9238 = vmatprep.subr.bf16.mxu0 %v14078_v36  ;;  %v14151_v36 = vld [vmem:[%s18614_s11 + $0x1f30] ss:$8 sps:$4 sm:$0xff]  }
 0x9e9   :  { %9852 = vmatpush1.bf16.msra.mxu1 %v14073_v26  ;;  %v14156_v26 = vld [vmem:[%s18614_s11 + $0x1f44] ss:$8 sps:$4 sm:$0xff]  }
 0x9ea   :  { %9853 = vmatprep.subr.bf16.mxu1 %v14081_v41  ;;  %v14154_v41 = vld [vmem:[%s18614_s11 + $0x1f40] ss:$8 sps:$4 sm:$0xff]  }
 0x9eb   :  { %9239 = vmatpush1.bf16.msra.mxu0 %v14076_v57  ;;  %v14159_v57 = vld [vmem:[%s18614_s11 + $0x1f54] ss:$8 sps:$4 sm:$0xff]  }
 0x9ec   :  { %9240 = vmatprep.subr.bf16.mxu0 %v14084_v42  ;;  %v14157_v42 = vld [vmem:[%s18614_s11 + $0x1f50] ss:$8 sps:$4 sm:$0xff]  }
 0x9ed   :  { %9854 = vmatpush1.bf16.msra.mxu1 %v14079_v9  ;;  %v14162_v9 = vld [vmem:[%s18614_s11 + $0x1f64] ss:$8 sps:$4 sm:$0xff]  }
 0x9ee   :  { %9855 = vmatprep.subr.bf16.mxu1 %v14087_v43  ;;  %v14160_v43 = vld [vmem:[%s18614_s11 + $0x1f60] ss:$8 sps:$4 sm:$0xff]  }
 0x9ef   :  { %9241 = vmatpush1.bf16.msra.mxu0 %v14082_v44  ;;  %v14165_v44 = vld [vmem:[%s18614_s11 + $0x1f74] ss:$8 sps:$4 sm:$0xff]  }
 0x9f0   :  { %9242 = vmatprep.subr.bf16.mxu0 %v14090_v45  ;;  %v14190_v45 = vld [vmem:[%s18615_s13] ss:$8 sps:$4 sm:$0xff]  }
 0x9f1   :  { %9856 = vmatpush1.bf16.msra.mxu1 %v14085_v46  ;;  %v14192_v46 = vld [vmem:[%s18615_s13 + $0x4] ss:$8 sps:$4 sm:$0xff]  }
 0x9f2   :  { %9857 = vmatprep.subr.bf16.mxu1 %v14093_v47  ;;  %v14195_v47 = vld [vmem:[%s18615_s13 + $0x14] ss:$8 sps:$4 sm:$0xff]  }
 0x9f3   :  { %9243 = vmatpush1.bf16.msra.mxu0 %v14088_v49  ;;  %v14163_v49 = vld [vmem:[%s18614_s11 + $0x1f70] ss:$8 sps:$4 sm:$0xff]  }
 0x9f4   :  { %10156 = vmatprep.subr.bf16.mxu0 %v14192_v46 }
 0x9f5   :  { %9858 = vmatpush1.bf16.msra.mxu1 %v14091_v15  ;;  %v14193_v15 = vld [vmem:[%s18615_s13 + $0x10] ss:$8 sps:$4 sm:$0xff]  }
 0x9f6   :  { %9245 = vmatmul.mubr.bf16.vlgmr.msra.gmra.mrb[16].mxu0 %v2446_v20  ;;  %9868 = vmatprep.subr.bf16.mxu1 %v14096_v16  ;;  %v14166_v16 = vld [vmem:[%s18614_s11 + $0x1f80] ss:$8 sps:$4 sm:$0xff]  }
 0x9f7   :  { %10157 = vmatpush1.bf16.msra.mxu0 %v14190_v45  ;;  %v14196_v20 = vld [vmem:[%s18615_s13 + $0x20] ss:$8 sps:$4 sm:$0xff]  }
 0x9f8   :  { %9860 = vmatmul.mubr.bf16.vlgmr.msra.gmra.mrb[24].mxu1 %v2476_v21  ;;  %10158 = vmatprep.subr.bf16.mxu0 %v14195_v47  ;;  %v14169_v21 = vld [vmem:[%s18614_s11 + $0x1f90] ss:$8 sps:$4 sm:$0xff]  }
 0x9f9   :  { %9869 = vmatpush1.bf16.msra.mxu1 %v14094_v0  ;;  %9900 = vmatprep.mubr.bf16.mxu1 %v2479_v40  ;;  %v14201_v0 = vld [vmem:[%s18615_s13 + $0x34] ss:$8 sps:$4 sm:$0xff]   ;;  %v14199_v40 = vld [vmem:[%s18615_s13 + $0x30] ss:$8 sps:$4 sm:$0xff]  }
 0x9fa   :  { %9870 = vmatprep.subr.bf16.mxu1 %v14099_v48  ;;  %v14174_v48 = vld [vmem:[%s18614_s11 + $0x1fa4] ss:$8 sps:$4 sm:$0xff]  }
 0x9fb   :  { %10159 = vmatpush1.bf16.msra.mxu0 %v14193_v15 }
 0x9fc   :  { %10160 = vmatprep.subr.bf16.mxu0 %v14198_v50 }
 0x9fd   :  { %9871 = vmatpush1.bf16.msra.mxu1 %v14097_v24  ;;  %v14204_v24 = vld [vmem:[%s18615_s13 + $0x44] ss:$8 sps:$4 sm:$0xff]  }
 0x9fe   :  { %9872 = vmatprep.subr.bf16.mxu1 %v14102_v54  ;;  %v14172_v54 = vld [vmem:[%s18614_s11 + $0x1fa0] ss:$8 sps:$4 sm:$0xff]  }
 0x9ff   :  { %10161 = vmatpush1.bf16.msra.mxu0 %v14196_v20 }
 0xa00   :  { %10162 = vmatprep.subr.bf16.mxu0 %v14201_v0  ;;  %v14243_v0 = vld [vmem:[%s18616_s15 + $0x14] ss:$8 sps:$4 sm:$0xff]  }
 0xa01   :  { %9873 = vmatpush1.bf16.msra.mxu1 %v14100_v55  ;;  %v14177_v55 = vld [vmem:[%s18614_s11 + $0x1fb4] ss:$8 sps:$4 sm:$0xff]  }
 0xa02   :  { %9874 = vmatprep.subr.bf16.mxu1 %v14105_v58  ;;  %v14202_v58 = vld [vmem:[%s18615_s13 + $0x40] ss:$8 sps:$4 sm:$0xff]  }
 0xa03   :  { %10163 = vmatpush1.bf16.msra.mxu0 %v14199_v40  ;;  %v14244_v40 = vld [vmem:[%s18616_s15 + $0x20] ss:$8 sps:$4 sm:$0xff]  }
 0xa04   :  { %10164 = vmatprep.subr.bf16.mxu0 %v14204_v24  ;;  %v14249_v24 = vld [vmem:[%s18616_s15 + $0x34] ss:$8 sps:$4 sm:$0xff]  }
 0xa05   :  { %9875 = vmatpush1.bf16.msra.mxu1 %v14103_v59  ;;  %v14207_v59 = vld [vmem:[%s18615_s13 + $0x54] ss:$8 sps:$4 sm:$0xff]  }
 0xa06   :  { %9876 = vmatprep.subr.bf16.mxu1 %v14108_v60  ;;  %v14175_v60 = vld [vmem:[%s18614_s11 + $0x1fb0] ss:$8 sps:$4 sm:$0xff]  }
 0xa07   :  { %10165 = vmatpush1.bf16.msra.mxu0 %v14202_v58  ;;  %v14250_v58 = vld [vmem:[%s18616_s15 + $0x40] ss:$8 sps:$4 sm:$0xff]  }
 0xa08   :  { %10166 = vmatprep.subr.bf16.mxu0 %v14207_v59  ;;  %v14255_v59 = vld [vmem:[%s18616_s15 + $0x54] ss:$8 sps:$4 sm:$0xff]  }
 0xa09   :  { %9877 = vmatpush1.bf16.msra.mxu1 %v14106_v12  ;;  %v14205_v12 = vld [vmem:[%s18615_s13 + $0x50] ss:$8 sps:$4 sm:$0xff]  }
 0xa0a   :  { %9878 = vmatprep.subr.bf16.mxu1 %v14111_v5  ;;  %v14180_v5 = vld [vmem:[%s18614_s11 + $0x1fc4] ss:$8 sps:$4 sm:$0xff]  }
 0xa0b   :  { %10167 = vmatpush1.bf16.msra.mxu0 %v14205_v12  ;;  %v14258_v12 = vld [vmem:[%s18616_s15 + $0x64] ss:$8 sps:$4 sm:$0xff]  }
 0xa0d   :  { %9879 = vmatpush1.bf16.msra.mxu1 %v14109_v51  ;;  %v14210_v51 = vld [vmem:[%s18615_s13 + $0x64] ss:$8 sps:$4 sm:$0xff]  }
 0xa0e   :  { %9880 = vmatprep.subr.bf16.mxu1 %v14114_v22  ;;  %v14178_v22 = vld [vmem:[%s18614_s11 + $0x1fc0] ss:$8 sps:$4 sm:$0xff]   ;;  %10168 = vmatprep.subr.bf16.mxu0 %v14210_v51  ;;  %v14261_v51 = vld [vmem:[%s18616_s15 + $0x74] ss:$8 sps:$4 sm:$0xff]  }
 0xa11   :  { %9881 = vmatpush1.bf16.msra.mxu1 %v14112_v6  ;;  %v14208_v6 = vld [vmem:[%s18615_s13 + $0x60] ss:$8 sps:$4 sm:$0xff]  }
 0xa12   :  { %9882 = vmatprep.subr.bf16.mxu1 %v14117_v27  ;;  %v14183_v27 = vld [vmem:[%s18614_s11 + $0x1fd4] ss:$8 sps:$4 sm:$0xff]   ;;  %10169 = vmatpush1.bf16.msra.mxu0 %v14208_v6  ;;  %v14264_v6 = vld [vmem:[%s18616_s15 + $0x84] ss:$8 sps:$4 sm:$0xff]  }
 0xa15   :  { %9883 = vmatpush1.bf16.msra.mxu1 %v14115_v39  ;;  %v14213_v39 = vld [vmem:[%s18615_s13 + $0x74] ss:$8 sps:$4 sm:$0xff]  }
 0xa16   :  { %9884 = vmatprep.subr.bf16.mxu1 %v14120_v10  ;;  %v14181_v10 = vld [vmem:[%s18614_s11 + $0x1fd0] ss:$8 sps:$4 sm:$0xff]   ;;  %10170 = vmatprep.subr.bf16.mxu0 %v14213_v39  ;;  %v14267_v39 = vld [vmem:[%s18616_s15 + $0x94] ss:$8 sps:$4 sm:$0xff]  }
 0xa19   :  { %9885 = vmatpush1.bf16.msra.mxu1 %v14118_v61  ;;  %v14211_v61 = vld [vmem:[%s18615_s13 + $0x70] ss:$8 sps:$4 sm:$0xff]  }
 0xa1a   :  { %9886 = vmatprep.subr.bf16.mxu1 %v14123_v62  ;;  %v14186_v62 = vld [vmem:[%s18614_s11 + $0x1fe4] ss:$8 sps:$4 sm:$0xff]   ;;  %10171 = vmatpush1.bf16.msra.mxu0 %v14211_v61 }
 0xa1b   :  { %v14270_v61 = vld [vmem:[%s18616_s15 + $0xa4] ss:$8 sps:$4 sm:$0xff]  }
 0xa1d   :  { %9887 = vmatpush1.bf16.msra.mxu1 %v14121_v63  ;;  %v14216_v63 = vld [vmem:[%s18615_s13 + $0x84] ss:$8 sps:$4 sm:$0xff]  }
 0xa1e   :  { %9888 = vmatprep.subr.bf16.mxu1 %v14126_v37  ;;  %v14184_v37 = vld [vmem:[%s18614_s11 + $0x1fe0] ss:$8 sps:$4 sm:$0xff]   ;;  %10172 = vmatprep.subr.bf16.mxu0 %v14216_v63  ;;  %v14273_v63 = vld [vmem:[%s18616_s15 + $0xb4] ss:$8 sps:$4 sm:$0xff]  }
 0xa21   :  { %9889 = vmatpush1.bf16.msra.mxu1 %v14124_v28  ;;  %v14214_v28 = vld [vmem:[%s18615_s13 + $0x80] ss:$8 sps:$4 sm:$0xff]  }
 0xa22   :  { %9890 = vmatprep.subr.bf16.mxu1 %v14129_v3  ;;  %v14189_v3 = vld [vmem:[%s18614_s11 + $0x1ff4] ss:$8 sps:$4 sm:$0xff]   ;;  %10173 = vmatpush1.bf16.msra.mxu0 %v14214_v28  ;;  %v14276_v28 = vld [vmem:[%s18616_s15 + $0xc4] ss:$8 sps:$4 sm:$0xff]  }
 0xa25   :  { %9891 = vmatpush1.bf16.msra.mxu1 %v14127_v7  ;;  %v14219_v7 = vld [vmem:[%s18615_s13 + $0x94] ss:$8 sps:$4 sm:$0xff]  }
 0xa26   :  { %9892 = vmatprep.subr.bf16.mxu1 %v14132_v11  ;;  %v14187_v11 = vld [vmem:[%s18614_s11 + $0x1ff0] ss:$8 sps:$4 sm:$0xff]   ;;  %10174 = vmatprep.subr.bf16.mxu0 %v14219_v7  ;;  %v14279_v7 = vld [vmem:[%s18616_s15 + $0xd4] ss:$8 sps:$4 sm:$0xff]  }
 0xa29   :  { %9893 = vmatpush1.bf16.msra.mxu1 %v14130_v4  ;;  %v14217_v4 = vld [vmem:[%s18615_s13 + $0x90] ss:$8 sps:$4 sm:$0xff]  }
 0xa2a   :  { %9894 = vmatprep.subr.bf16.mxu1 %v14135_v52  ;;  %v2414_v52 = vrot.slane %v17782_v19, 6  ;;  %10175 = vmatpush1.bf16.msra.mxu0 %v14217_v4  ;;  %v14223_v19 = vld [vmem:[%s18615_s13 + $0xb0] ss:$8 sps:$4 sm:$0xff]   ;;  %v14280_v4 = vld [vmem:[%s18616_s15 + $0xe0] ss:$8 sps:$4 sm:$0xff]  }
 0xa2d   :  { %9895 = vmatpush1.bf16.msra.mxu1 %v14133_v8  ;;  %v14222_v8 = vld [vmem:[%s18615_s13 + $0xa4] ss:$8 sps:$4 sm:$0xff]  }
 0xa2e   :  { %9896 = vmatprep.subr.bf16.mxu1 %v14138_v38  ;;  %v14220_v38 = vld [vmem:[%s18615_s13 + $0xa0] ss:$8 sps:$4 sm:$0xff]   ;;  %10176 = vmatprep.subr.bf16.mxu0 %v14222_v8  ;;  %v14285_v8 = vld [vmem:[%s18616_s15 + $0xf4] ss:$8 sps:$4 sm:$0xff]  }
 0xa2f   :  { %10177 = vmatpush1.bf16.msra.mxu0 %v14220_v38  ;;  %v14283_v38 = vld [vmem:[%s18616_s15 + $0xf0] ss:$8 sps:$4 sm:$0xff]  }
 0xa31   :  { %9897 = vmatpush1.bf16.msra.mxu1 %v14136_v56  ;;  %v2480_v56 = vpack.c.bf16 %v2414_v52, %v2414_v52  ;;  %v14282_v52 = vld [vmem:[%s18616_s15 + $0xe4] ss:$8 sps:$4 sm:$0xff]  }
 0xa32   :  { %9898 = vmatprep.subr.bf16.mxu1 %v14141_v23  ;;  %v14225_v23 = vld [vmem:[%s18615_s13 + $0xb4] ss:$8 sps:$4 sm:$0xff]  }
 0xa33   :  { %10178 = vmatprep.subr.bf16.mxu0 %v14225_v23 }
 0xa34   :  { %10179 = vmatpush1.bf16.msra.mxu0 %v14223_v19 }
 0xa35   :  { %9899 = vmatpush1.bf16.msra.mxu1 %v14139_v13  ;;  %v14228_v13 = vld [vmem:[%s18615_s13 + $0xc4] ss:$8 sps:$4 sm:$0xff]  }
 0xa36   :  { %9909 = vmatprep.subr.bf16.mxu1 %v14144_v2  ;;  %10180 = vmatprep.subr.bf16.mxu0 %v14228_v13  ;;  %v14231_v2 = vld [vmem:[%s18615_s13 + $0xd4] ss:$8 sps:$4 sm:$0xff]  }
 0xa38   :  { %9901 = vmatmul.mubr.bf16.vlgmr.msra.gmra.mrb[24].mxu1 %v2478_v1  ;;  %10181 = vmatpush1.bf16.msra.mxu0 %v14226_v18  ;;  %v14232_v1 = vld [vmem:[%s18615_s13 + $0xe0] ss:$8 sps:$4 sm:$0xff]  }
 0xa39   :  { %9910 = vmatpush1.bf16.msra.mxu1 %v14142_v53  ;;  %9941 = vmatprep.mubr.bf16.mxu1 %v2481_v30  ;;  %v14234_v53 = vld [vmem:[%s18615_s13 + $0xe4] ss:$8 sps:$4 sm:$0xff]  }
 0xa3a   :  { %9911 = vmatprep.subr.bf16.mxu1 %v14147_v29  ;;  %10182 = vmatprep.subr.bf16.mxu0 %v14231_v2 }
 0xa3c   :  { %10183 = vmatpush1.bf16.msra.mxu0 %v14229_v25 }
 0xa3d   :  { %9912 = vmatpush1.bf16.msra.mxu1 %v14145_v31  ;;  %10184 = vmatprep.subr.bf16.mxu0 %v14234_v53 }
 0xa3e   :  { %9913 = vmatprep.subr.bf16.mxu1 %v14150_v32 }
 0xa40   :  { %10185 = vmatpush1.bf16.msra.mxu0 %v14232_v1 }
 0xa41   :  { %9914 = vmatpush1.bf16.msra.mxu1 %v14148_v34  ;;  %v14235_v34 = vld [vmem:[%s18615_s13 + $0xf0] ss:$8 sps:$4 sm:$0xff]  }
 0xa42   :  { %9915 = vmatprep.subr.bf16.mxu1 %v14153_v35  ;;  %v14237_v35 = vld [vmem:[%s18615_s13 + $0xf4] ss:$8 sps:$4 sm:$0xff]  }
 0xa43   :  { %10186 = vmatprep.subr.bf16.mxu0 %v14237_v35 }
 0xa44   :  { %10187 = vmatpush1.bf16.msra.mxu0 %v14235_v34  ;;  %v10233_v34 = vld [vmem:[%s18619_s16] sm:$0x3] }
 0xa45   :  { %9916 = vmatpush1.bf16.msra.mxu1 %v14151_v36  ;;  %v14240_v36 = vld [vmem:[%s18616_s15 + $0x4] ss:$8 sps:$4 sm:$0xff]  }
 0xa46   :  { %9917 = vmatprep.subr.bf16.mxu1 %v14156_v26  ;;  %10405 = vmatprep.subr.bf16.mxu0 %v14240_v36  ;;  %v18482_v26 = vshrl.u32 %v73_v33, 7 }
 0xa49   :  { %9918 = vmatpush1.bf16.msra.mxu1 %v14154_v41  ;;  %v18485_v41 = vsub.s32 0, %v18482_v26 }
 0xa4a   :  { %9919 = vmatprep.subr.bf16.mxu1 %v14159_v57  ;;  %v3506_v57 = vld [vmem:[%s18617_s12] sm:$0x3] }
 0xa4b   :  { %v10398_v35 = vrot.slane %v10233_v34, %v18485_v41 }
 0xa4d   :  { %9920 = vmatpush1.bf16.msra.mxu1 %v14157_v42  ;;  %v18491_v42 = vsub.s32 1, %v18482_v26 }
 0xa4e   :  { %9921 = vmatprep.subr.bf16.mxu1 %v14162_v9  ;;  %v8631_v9 = vrot.slane %v3506_v57, %v18485_v41 }
 0xa4f   :  { %v10402_v36 = vrot.slane %v10233_v34, %v18491_v42 }
 0xa51   :  { %9922 = vmatpush1.bf16.msra.mxu1 %v14160_v43  ;;  %v8635_v43 = vrot.slane %v3506_v57, %v18491_v42 }
 0xa52   :  { %9923 = vmatprep.subr.bf16.mxu1 %v14165_v44 }
 0xa55   :  { %9924 = vmatpush1.bf16.msra.mxu1 %v14163_v49 }
 0xa56   :  { %9925 = vmatprep.subr.bf16.mxu1 %v14168_v14 }
 0xa59   :  { %9926 = vmatpush1.bf16.msra.mxu1 %v14166_v16 }
 0xa5a   :  { %9927 = vmatprep.subr.bf16.mxu1 %v14171_v17  ;;  %v14238_v17 = vld [vmem:[%s18616_s15] ss:$8 sps:$4 sm:$0xff]  }
 0xa5d   :  { %9928 = vmatpush1.bf16.msra.mxu1 %v14169_v21  ;;  %v14241_v21 = vld [vmem:[%s18616_s15 + $0x10] ss:$8 sps:$4 sm:$0xff]  }
 0xa5e   :  { %9929 = vmatprep.subr.bf16.mxu1 %v14174_v48  ;;  %v14246_v48 = vld [vmem:[%s18616_s15 + $0x24] ss:$8 sps:$4 sm:$0xff]  }
 0xa61   :  { %9930 = vmatpush1.bf16.msra.mxu1 %v14172_v54  ;;  %v14247_v54 = vld [vmem:[%s18616_s15 + $0x30] ss:$8 sps:$4 sm:$0xff]  }
 0xa62   :  { %9931 = vmatprep.subr.bf16.mxu1 %v14177_v55  ;;  %v14252_v55 = vld [vmem:[%s18616_s15 + $0x44] ss:$8 sps:$4 sm:$0xff]  }
 0xa65   :  { %9932 = vmatpush1.bf16.msra.mxu1 %v14175_v60  ;;  %v14253_v60 = vld [vmem:[%s18616_s15 + $0x50] ss:$8 sps:$4 sm:$0xff]  }
 0xa66   :  { %9933 = vmatprep.subr.bf16.mxu1 %v14180_v5  ;;  %v14256_v5 = vld [vmem:[%s18616_s15 + $0x60] ss:$8 sps:$4 sm:$0xff]  }
 0xa69   :  { %9934 = vmatpush1.bf16.msra.mxu1 %v14178_v22  ;;  %v14259_v22 = vld [vmem:[%s18616_s15 + $0x70] ss:$8 sps:$4 sm:$0xff]  }
 0xa6a   :  { %9935 = vmatprep.subr.bf16.mxu1 %v14183_v27  ;;  %v14262_v27 = vld [vmem:[%s18616_s15 + $0x80] ss:$8 sps:$4 sm:$0xff]  }
 0xa6d   :  { %9936 = vmatpush1.bf16.msra.mxu1 %v14181_v10  ;;  %v14265_v10 = vld [vmem:[%s18616_s15 + $0x90] ss:$8 sps:$4 sm:$0xff]  }
 0xa6e   :  { %9937 = vmatprep.subr.bf16.mxu1 %v14186_v62  ;;  %v14268_v62 = vld [vmem:[%s18616_s15 + $0xa0] ss:$8 sps:$4 sm:$0xff]  }
 0xa71   :  { %9938 = vmatpush1.bf16.msra.mxu1 %v14184_v37  ;;  %v14271_v37 = vld [vmem:[%s18616_s15 + $0xb0] ss:$8 sps:$4 sm:$0xff]  }
 0xa72   :  { %9939 = vmatprep.subr.bf16.mxu1 %v14189_v3  ;;  %v14274_v3 = vld [vmem:[%s18616_s15 + $0xc0] ss:$8 sps:$4 sm:$0xff]  }
 0xa75   :  { %9940 = vmatpush1.bf16.msra.mxu1 %v14187_v11  ;;  %v14277_v11 = vld [vmem:[%s18616_s15 + $0xd0] ss:$8 sps:$4 sm:$0xff]  }
 0xa78   :  { %9942 = vmatmul.mubr.bf16.vlgmr.msra.gmra.mrb[24].mxu1 %v2480_v56  ;;  %v9984_v56 = vld [vmem:[%s18618_s14] sm:$0x3] }
 0xa79   :  { %v10149_v23 = vrot.slane %v9984_v56, %v18485_v41  ;;  %v10153_v19 = vrot.slane %v9984_v56, %v18491_v42 }
 0xac9   :  { %v9246_v29 = vpop.f32.mrb[16].mxu0 }
 0xaca   :  { %v9248_v30 = vpop.f32.mrb[17].mxu0  ;;  %v12207_v44 = vadd.f32 %v9246_v29, %v8631_v9 }
 0xacb   :  { %v9250_v31 = vpop.f32.mrb[18].mxu0  ;;  %v12209_v45 = vadd.f32 %v9248_v30, %v8635_v43 }
 0xacc   :  { %v9251_v32 = vpop.f32.mrb[19].mxu0 }
 0xb4b   :  { %v9943_v46 = vpop.f32.mrb[24].mxu1 }
 0xb4c   :  { %v12208_v47 = vadd.f32 %v12207_v44, %v9943_v46  ;;  %v9945_v49 = vpop.f32.mrb[25].mxu1 }
 0xb4d   :  { %v12210_v14 = vadd.f32 %v12209_v45, %v9945_v49  ;;  %v9947_v15 = vpop.f32.mrb[26].mxu1 }
 0xb4e   :  { %v9948_v50 = vpop.f32.mrb[27].mxu1  ;;  %v9950_v20 = vpack.c.bf16 %v12208_v47, %v12208_v47 }
 0xb4f   :  { %v9951_v16 = vpack.c.bf16 %v12210_v14, %v12210_v14 }
 0xb51   :  { %10188 = vmatprep.mubr.bf16.mxu0 %v9951_v16 }
 0xb52   :  { %10189 = vmatmul.mubr.bf16.vlgmr.msra.gmra.mrb[20].mxu0 %v9950_v20 }
 0xb53   :  { %10406 = vmatpush1.bf16.msra.mxu0 %v14238_v17  ;;  %v14298_v17 = vmov 1966171168  }
 0xb54   :  { %10407 = vmatprep.subr.bf16.mxu0 %v14243_v0  ;;  %v10462_v41 = vunpack.c.l.s4 %v14298_v17 }
 0xb56   :  { %v10463_v20 = vunpack.c.0.s8 %v10462_v41 }
 0xb57   :  { %10408 = vmatpush1.bf16.msra.mxu0 %v14241_v21 }
 0xb58   :  { %10409 = vmatprep.subr.bf16.mxu0 %v14246_v48  ;;  %v10466_v0 = vsub.s32 %v10463_v20, %v18482_v26 }
 0xb5b   :  { %10410 = vmatpush1.bf16.msra.mxu0 %v14244_v40 }
 0xb5c   :  { %10411 = vmatprep.subr.bf16.mxu0 %v14249_v24 }
 0xb5f   :  { %10412 = vmatpush1.bf16.msra.mxu0 %v14247_v54 }
 0xb60   :  { %10413 = vmatprep.subr.bf16.mxu0 %v14252_v55 }
 0xb63   :  { %10414 = vmatpush1.bf16.msra.mxu0 %v14250_v58 }
 0xb64   :  { %10415 = vmatprep.subr.bf16.mxu0 %v14255_v59 }
 0xb67   :  { %10416 = vmatpush1.bf16.msra.mxu0 %v14253_v60 }
 0xb68   :  { %10417 = vmatprep.subr.bf16.mxu0 %v14258_v12 }
 0xb6b   :  { %10418 = vmatpush1.bf16.msra.mxu0 %v14256_v5 }
 0xb6c   :  { %10419 = vmatprep.subr.bf16.mxu0 %v14261_v51 }
 0xb6f   :  { %10420 = vmatpush1.bf16.msra.mxu0 %v14259_v22 }
 0xb70   :  { %10421 = vmatprep.subr.bf16.mxu0 %v14264_v6 }
 0xb73   :  { %10422 = vmatpush1.bf16.msra.mxu0 %v14262_v27 }
 0xb74   :  { %10423 = vmatprep.subr.bf16.mxu0 %v14267_v39 }
 0xb77   :  { %10424 = vmatpush1.bf16.msra.mxu0 %v14265_v10 }
 0xb78   :  { %10425 = vmatprep.subr.bf16.mxu0 %v14270_v61 }
 0xb7b   :  { %10426 = vmatpush1.bf16.msra.mxu0 %v14268_v62 }
 0xb7c   :  { %10427 = vmatprep.subr.bf16.mxu0 %v14273_v63 }
 0xb7f   :  { %10428 = vmatpush1.bf16.msra.mxu0 %v14271_v37 }
 0xb80   :  { %10429 = vmatprep.subr.bf16.mxu0 %v14276_v28 }
 0xb83   :  { %10430 = vmatpush1.bf16.msra.mxu0 %v14274_v3 }
 0xb84   :  { %10431 = vmatprep.subr.bf16.mxu0 %v14279_v7 }
 0xb87   :  { %10432 = vmatpush1.bf16.msra.mxu0 %v14277_v11 }
 0xb88   :  { %10433 = vmatprep.subr.bf16.mxu0 %v14282_v52 }
 0xb8b   :  { %10434 = vmatpush1.bf16.msra.mxu0 %v14280_v4 }
 0xb8c   :  { %10435 = vmatprep.subr.bf16.mxu0 %v14285_v8 }
 0xb8f   :  { %10436 = vmatpush1.bf16.msra.mxu0 %v14283_v38 }
 0xc25   :  { %v10190_v13 = vpop.f32.mrb[20].mxu0 }
 0xc26   :  { %v10191_v18 = vadd.f32 %v10190_v13, %v10149_v23  ;;  %v10192_v2 = vpop.f32.mrb[21].mxu0 }
 0xc27   :  { %v10193_v25 = vadd.f32 %v10192_v2, %v10153_v19  ;;  %v10194_v53 = vpop.f32.mrb[22].mxu0 }
 0xc28   :  { %v10197_v1 = vmax.f32 %v10191_v18, 0.0  ;;  %v10195_v29 = vpop.f32.mrb[23].mxu0 }
 0xc29   :  { %v10198_v30 = vmax.f32 %v10193_v25, 0.0 }
 0xc2a   :  { %v10199_v32 = vpack.c.bf16 %v10197_v1, %v10197_v1 }
 0xc2b   :  { %v10200_v31 = vpack.c.bf16 %v10198_v30, %v10198_v30 }
 0xc2d   :  { %10437 = vmatprep.mubr.bf16.mxu0 %v10200_v31 }
 0xc2e   :  { %10438 = vmatmul.mubr.bf16.vlgmr.msra.gmra.mrb[24].mxu0 %v10199_v32 }
 0xd01   :  { %v10439_v57 = vpop.f32.mrb[24].mxu0 }
 0xd02   :  { %v10440_v9 = vadd.f32 %v10439_v57, %v10398_v35  ;;  %v10441_v43 = vpop.f32.mrb[25].mxu0 }
 0xd03   :  { %v10442_v44 = vadd.f32 %v10441_v43, %v10402_v36  ;;  %v10443_v45 = vpop.f32.mrb[26].mxu0 }
 0xd04   :  { %v11845_v46 = vmul.f32 -1.442695, %v10440_v9  ;;  %v10444_v47 = vpop.f32.mrb[27].mxu0 }
 0xd05   :  { %v11846_v49 = vmul.f32 -1.442695, %v10442_v44 }
 0xd06   :  { %14286 = vpow2.f32 %v11845_v46 }
 0xd07   :  { %14288 = vpow2.f32 %v11846_v49 }
 0xd10   :  { %v14287_v14 = vpop.eup %14286 }
 0xd11   :  { %v14289_v15 = vpop.eup %14288  ;;  %v10452_v50 = vadd.f32 1.0, %v14287_v14 }
 0xd12   :  { %v10453_v16 = vadd.f32 1.0, %v14289_v15 }
 0xd13   :  { %14290 = vrcp.f32 %v10452_v50 }
 0xd14   :  { %14292 = vrcp.f32 %v10453_v16 }
 0xd1d   :  { %v14291_v42 = vpop.eup %14290 }
 0xd1e   :  { %v14293_v21 = vpop.eup %14292 }
 0xd1f   :  { %v10460_v48 = vcombine.low %v14291_v42, %v14293_v21 }
 0xd21   :  { %v10467_v40 = vrot.slane %v10460_v48, %v10466_v0 }
 0xd23   :  { %v10474_v24 = vrot.slane %v10467_v40, %v10466_v0 }
 0xd25   :  { %10480 = vst.msk [vmem:[%s18620_s17] sm:$0x3] %vm10478_vm10, %v10474_v24 }

</bundles_post_ra>
